<compile_context>
chip_gen: v7x
topology: tpu7x:2x2x1
jax: 0.10.0
libtpu: 0.0.40
codegen_flags: <defaults>
</compile_context>

<pallas_src>
import random
from functools import partial

import jax
import jax.numpy as jnp
from jax import lax
from jax.experimental import pallas as pl
from jax.experimental.pallas import tpu as pltpu

# ----------------------------------------------------------------------------
# Small config, structurally consistent with MetaBlock defaults
# ----------------------------------------------------------------------------
NUM_CLASSES  = 10
DIM_EMB      = 16
EMB          = 32          # LSTM hidden size == mixer image_size == mixer dim
CROP_LEN     = 16
PATCH_SIZE   = 16
MLP_DEPTH    = 1
KERNEL_SIZE  = 3
CHANNELS     = 1
SAMPLE_COUNT = 4
EXPANSION    = 4
LSTM_IN      = 80          # hardcoded in the torch module (input_size=80)
SEQ_LEN      = 24          # input sequence length (>= CROP_LEN)
BATCH        = 2

NUM_PATCHES  = (EMB // PATCH_SIZE) ** 2              # 4
PATCH_DIM    = PATCH_SIZE * PATCH_SIZE * CHANNELS    # 256
HEAD_CH      = 88                                    # final Conv1d out-channels

_VMEM = pl.BlockSpec(memory_space=pltpu.MemorySpace.VMEM)


def _gelu(x):
    # TODO(synk): torch nn.GELU() default is the exact erf form; the tanh
    # approximation is used in-kernel (difference is ~1e-3 level).
    return jax.nn.gelu(x, approximate=True)


def _ln_flat(x, avg, g, b, eps=1e-5):
    """LayerNorm over 32-lane groups of the lane-flattened (patch*dim) layout.

    `avg` = kron(I_P, ones(H,H)/H): one matmul puts each lane's group mean in
    every lane of its group -> no in-kernel reshapes / cross-lane reductions.
    """
    mu = jnp.dot(x, avg, preferred_element_type=jnp.float32)
    xc = x - mu
    var = jnp.dot(xc * xc, avg, preferred_element_type=jnp.float32)
    return xc * lax.rsqrt(var + eps) * g + b


# ----------------------------------------------------------------------------
# The single fused kernel
# ----------------------------------------------------------------------------
def _metablock_kernel(*refs, depth, bp, t_len, lefts):
    (xt_ref, wih_ref, whh_ref, lb_ref, wce_ref, bce_ref) = refs[:6]
    blk_refs = refs[6:6 + 7 * depth]
    (avg_ref, ghead_ref, dva_ref, dvb_ref, dvbias_ref,
     outw_ref, outb_ref) = refs[6 + 7 * depth:6 + 7 * depth + 7]
    pred_ref, dvec_ref = refs[-2:]

    H = EMB
    S = len(lefts)

    # ---- LSTM input projection: one matmul per gate over ALL timesteps; the
    #      per-gate weights are pre-split so every gate tensor is lane-aligned.
    xt = xt_ref[...]
    xp = [jnp.dot(xt, wih_ref[k], preferred_element_type=jnp.float32) + lb_ref[k]
          for k in range(4)]                              # gate order i, f, g, o
    whh = [whh_ref[k] for k in range(4)]                  # bf16 (H, H)

    # ---- recurrence: fully unrolled, 4 lane-aligned (bp, H) gates per step,
    #      bf16 operands on the 24-step serial MXU chain, f32 state.
    h = jnp.zeros((bp, H), jnp.float32)
    c = jnp.zeros((bp, H), jnp.float32)
    h_list = []
    for t in range(t_len):
        hb = h.astype(jnp.bfloat16)
        r0, r1 = t * bp, (t + 1) * bp
        gi = xp[0][r0:r1, :] + jnp.dot(hb, whh[0], preferred_element_type=jnp.float32)
        gf = xp[1][r0:r1, :] + jnp.dot(hb, whh[1], preferred_element_type=jnp.float32)
        gg = xp[2][r0:r1, :] + jnp.dot(hb, whh[2], preferred_element_type=jnp.float32)
        go = xp[3][r0:r1, :] + jnp.dot(hb, whh[3], preferred_element_type=jnp.float32)
        c = jax.nn.sigmoid(gf) * c + jax.nn.sigmoid(gi) * jnp.tanh(gg)
        h = jax.nn.sigmoid(go) * jnp.tanh(c)
        h_list.append(h)
    emb1 = h_list[-1]                                     # (bp, H) == x[:, -1, :]

    # ---- crops -> ConvNorm -> Rearrange -> patch-embed, all folded into one
    #      precomputed affine map wce (CROP_LEN*H, P*H).  The contraction is a
    #      K-split accumulation: for each within-crop offset c the 4 sampled
    #      crops are stacked along the matmul rows (sublane concat only).
    tok = jnp.zeros((S * bp, NUM_PATCHES * H), jnp.float32) + bce_ref[...]
    for cidx in range(CROP_LEN):
        hblk = jnp.concatenate([h_list[lefts[s] + cidx] for s in range(S)],
                               axis=0)                    # (S*bp, H)
        tok = tok + jnp.dot(hblk, wce_ref[cidx * H:(cidx + 1) * H, :],
                            preferred_element_type=jnp.float32)
    # tok: (S*bp, P*H), lane index = p*H + d

    # ---- MLP-Mixer blocks on the lane-flattened layout (Kronecker weights).
    avg = avg_ref[...]
    for bidx in range(depth):
        k1, k2, c1, c2, lnp_r, b512_r, b128_r = blk_refs[7 * bidx:7 * (bidx + 1)]
        lnp, b512, b128 = lnp_r[...], b512_r[...], b128_r[...]
        # token mixing: PreNormResidual + Conv1d(k=1) FeedForward over patches
        y = _ln_flat(tok, avg, lnp[0:1, :], lnp[1:2, :])
        hdn = _gelu(jnp.dot(y, k1[...], preferred_element_type=jnp.float32)
                    + b512[0:1, :])
        tok = tok + (jnp.dot(hdn, k2[...], preferred_element_type=jnp.float32)
                     + b128[0:1, :])
        # channel mixing: PreNormResidual + Linear FeedForward over dim
        y = _ln_flat(tok, avg, lnp[2:3, :], lnp[3:4, :])
        hdn = _gelu(jnp.dot(y, c1[...], preferred_element_type=jnp.float32)
                    + b512[1:2, :])
        tok = tok + (jnp.dot(hdn, c2[...], preferred_element_type=jnp.float32)
                     + b128[1:2, :])

    # ---- head Conv1d(num_patches -> 88, k=3, pad=1): only the LAST output
    #      channel is consumed; its k-shifts are folded into ghead and its bias
    #      into the dv bias -> a single matmul.
    out = jnp.dot(tok, ghead_ref[...], preferred_element_type=jnp.float32)  # (S*bp, H)

    # ---- mean over the SAMPLE_COUNT crops, kept in VMEM
    emb2 = out[0:bp, :]
    for s in range(1, S):
        emb2 = emb2 + out[s * bp:(s + 1) * bp, :]
    emb2 = emb2 * (1.0 / S)

    # ---- dv Linear (torch concat folded into split weights) + classifier +
    #      L2-normalize (rsqrt on the EUP).
    emb = (jnp.dot(emb1, dva_ref[...], preferred_element_type=jnp.float32)
           + jnp.dot(emb2, dvb_ref[...], preferred_element_type=jnp.float32)
           + dvbias_ref[...])
    pred_ref[...] = (jnp.dot(emb, outw_ref[...], preferred_element_type=jnp.float32)
                     + outb_ref[...])
    ss = jnp.sum(emb * emb, axis=-1, keepdims=True)
    # TODO(synk): torch .norm().div() would NaN for an exactly-zero embedding;
    # the tiny eps keeps rsqrt finite, otherwise identical.
    dvec_ref[...] = emb * lax.rsqrt(ss + 1e-12)


# ----------------------------------------------------------------------------
# Wrapper: exactly one pallas_call for the whole forward
# ----------------------------------------------------------------------------
_BLK_ORDER = ("k1", "k2", "c1", "c2", "lnpack", "b512", "b128")


def meta_block_forward(x, p, lefts):
    B, T, F = x.shape
    bp = ((B + 7) // 8) * 8                          # pad batch to a sublane multiple
    xpad = jnp.pad(x.astype(jnp.float32), ((0, bp - B), (0, 0), (0, 0)))
    xt = xpad.transpose(1, 0, 2).reshape(T * bp, F)  # time-major rows for the LSTM

    depth = len(p["blocks"])
    blk_arrays = [blk[name] for blk in p["blocks"] for name in _BLK_ORDER]
    n_in = 6 + len(blk_arrays) + 7

    pred, dvec = pl.pallas_call(
        partial(_metablock_kernel, depth=depth, bp=bp, t_len=T, lefts=tuple(lefts)),
        out_shape=(jax.ShapeDtypeStruct((bp, NUM_CLASSES), jnp.float32),
                   jax.ShapeDtypeStruct((bp, DIM_EMB), jnp.float32)),
        in_specs=[_VMEM] * n_in,
        out_specs=(_VMEM, _VMEM),
    )(xt, p["wih"], p["whh"], p["lstm_b"], p["wce"], p["bce"],
      *blk_arrays,
      p["avg"], p["ghead"], p["dva"], p["dvb"], p["dv_bias"],
      p["out_wT"], p["out_b"])
    return pred[:B], dvec[:B]


# ----------------------------------------------------------------------------
# Parameter initialization (torch layout) and one-time kernel-layout preparation
# ----------------------------------------------------------------------------
def init_params(key):
    def nrm(k, shape, scale=0.05):
        return scale * jax.random.normal(k, shape, jnp.float32)

    ks = iter(jax.random.split(key, 64))
    H4 = 4 * EMB
    blocks = []
    for _ in range(MLP_DEPTH):
        blocks.append(dict(
            ln1_g=jnp.ones((EMB,), jnp.float32),
            ln1_b=jnp.zeros((EMB,), jnp.float32),
            t1_w=nrm(next(ks), (NUM_PATCHES * EXPANSION, NUM_PATCHES, 1)),
            t1_b=nrm(next(ks), (NUM_PATCHES * EXPANSION,)),
            t2_w=nrm(next(ks), (NUM_PATCHES, NUM_PATCHES * EXPANSION, 1)),
            t2_b=nrm(next(ks), (NUM_PATCHES,)),
            ln2_g=jnp.ones((EMB,), jnp.float32),
            ln2_b=jnp.zeros((EMB,), jnp.float32),
            c1_w=nrm(next(ks), (EMB * EXPANSION, EMB)),
            c1_b=nrm(next(ks), (EMB * EXPANSION,)),
            c2_w=nrm(next(ks), (EMB, EMB * EXPANSION)),
            c2_b=nrm(next(ks), (EMB,)),
        ))
    mixer = dict(
        pe_w=nrm(next(ks), (EMB, PATCH_DIM)),
        pe_b=nrm(next(ks), (EMB,)),
        blocks=blocks,
        head_w=nrm(next(ks), (HEAD_CH, NUM_PATCHES, KERNEL_SIZE)),
        head_b=nrm(next(ks), (HEAD_CH,)),
    )
    return dict(
        lstm_w_ih=nrm(next(ks), (H4, LSTM_IN)),
        lstm_w_hh=nrm(next(ks), (H4, EMB)),
        lstm_b_ih=nrm(next(ks), (H4,)),
        lstm_b_hh=nrm(next(ks), (H4,)),
        conv1_w=nrm(next(ks), (EMB, CROP_LEN, KERNEL_SIZE)),
        conv1_b=nrm(next(ks), (EMB,)),
        mixer=mixer,
        dv_w=nrm(next(ks), (DIM_EMB, 2 * EMB)),
        dv_b=nrm(next(ks), (DIM_EMB,)),
        out_w=nrm(next(ks), (NUM_CLASSES, DIM_EMB)),
        out_b=nrm(next(ks), (NUM_CLASSES,)),
    )


def prepare_params(params):
    """One-time (outside the hot path) precompute of all kernel-layout weights."""
    f32 = lambda a: jnp.asarray(a, jnp.float32)
    hi = lax.Precision.HIGHEST
    H, P, K = EMB, NUM_PATCHES, KERNEL_SIZE
    m = params["mixer"]

    # ---- LSTM: per-gate (lane-aligned) weights; recurrent weights in bf16 ----
    w_ih = f32(params["lstm_w_ih"])                       # (4H, F)
    w_hh = f32(params["lstm_w_hh"])                       # (4H, H)
    bias = f32(params["lstm_b_ih"] + params["lstm_b_hh"])
    wih = jnp.stack([w_ih[k * H:(k + 1) * H, :].T for k in range(4)], 0)   # (4, F, H)
    whh = jnp.stack([w_hh[k * H:(k + 1) * H, :].T for k in range(4)],
                    0).astype(jnp.bfloat16)                                # (4, H, H)
    lb = jnp.stack([bias[k * H:(k + 1) * H].reshape(1, H) for k in range(4)], 0)

    # ---- fold ConvNorm (Conv1d k=3, pad=1) + Rearrange + patch-embed Linear
    #      into one affine map: crop (CROP_LEN, H) -> tok (P, H), flattened ----
    conv_w = f32(params["conv1_w"])                       # (Cout=H, Cin=CROP_LEN, K)
    conv_b = f32(params["conv1_b"])                       # (H,)
    pe_w = f32(m["pe_w"])                                 # (H, PATCH_DIM)
    pe_b = f32(m["pe_b"])                                 # (H,)
    L = EMB
    kk, ww, vv = jnp.arange(K), jnp.arange(L), jnp.arange(L)
    sel = (vv[None, None, :] ==
           ww[None, :, None] + kk[:, None, None] - K // 2).astype(jnp.float32)
    # t_conv[c, v, o, w]: conv_out[o, w] = sum_{c,v} crop[c, v] * t_conv[c, v, o, w]
    t_conv = jnp.einsum('ock,kwv->cvow', conv_w, sel, precision=hi)
    # r_t[o, w, p, d]: tok[p, d] = sum_{o,w} conv_out[o, w] * r_t[o, w, p, d]
    pe_w3 = pe_w.reshape(H, PATCH_SIZE, PATCH_SIZE)       # (d, i, j)
    o_idx, w_idx = jnp.arange(L), jnp.arange(L)
    hg, ii = o_idx // PATCH_SIZE, o_idx % PATCH_SIZE
    wg, jj = w_idx // PATCH_SIZE, w_idx % PATCH_SIZE
    p_ow = hg[:, None] * (EMB // PATCH_SIZE) + wg[None, :]
    pe_gather = jnp.transpose(pe_w3[:, ii, :][:, :, jj], (1, 2, 0))        # (o, w, d)
    onehot = (p_ow[:, :, None] == jnp.arange(P)[None, None, :]).astype(jnp.float32)
    r_t = onehot[:, :, :, None] * pe_gather[:, :, None, :]                 # (o, w, p, d)
    wce = jnp.einsum('cvow,owpd->cvpd', t_conv, r_t,
                     precision=hi).reshape(CROP_LEN * L, P * H)            # (512, 128)
    bce = (pe_b[None, :] + jnp.einsum('o,owpd->pd', conv_b, r_t,
                                      precision=hi)).reshape(1, P * H)

    # ---- mixer blocks: Kronecker-expanded weights for the lane-flattened
    #      (p*H + d) layout; tiny 1-D params packed into a few 2-D arrays ----
    eye_h = jnp.eye(H, dtype=jnp.float32)
    eye_p = jnp.eye(P, dtype=jnp.float32)
    avg = jnp.kron(eye_p, jnp.full((H, H), 1.0 / H, jnp.float32))          # (128, 128)
    blocks = []
    for blk in m["blocks"]:
        t1 = f32(blk["t1_w"][:, :, 0])                    # (P*E, P)
        t2 = f32(blk["t2_w"][:, :, 0])                    # (P, P*E)
        c1 = f32(blk["c1_w"])                             # (H*E, H)
        c2 = f32(blk["c2_w"])                             # (H, H*E)
        blocks.append(dict(
            k1=jnp.kron(t1.T, eye_h),                     # (P*H, P*E*H)  token-mix up
            k2=jnp.kron(t2.T, eye_h),                     # (P*E*H, P*H)  token-mix down
            c1=jnp.kron(eye_p, c1.T),                     # (P*H, P*H*E)  chan-mix up
            c2=jnp.kron(eye_p, c2.T),                     # (P*H*E, P*H)  chan-mix down
            lnpack=jnp.stack([jnp.tile(f32(blk["ln1_g"]), P),
                              jnp.tile(f32(blk["ln1_b"]), P),
                              jnp.tile(f32(blk["ln2_g"]), P),
                              jnp.tile(f32(blk["ln2_b"]), P)], 0),         # (4, P*H)
            b512=jnp.stack([jnp.repeat(f32(blk["t1_b"]), H),
                            jnp.tile(f32(blk["c1_b"]), P)], 0),            # (2, P*E*H)
            b128=jnp.stack([jnp.repeat(f32(blk["t2_b"]), H),
                            jnp.tile(f32(blk["c2_b"]), P)], 0),            # (2, P*H)
        ))

    # ---- head Conv1d: last output channel only, k-shifts folded into ghead ----
    hwl = f32(m["head_w"][-1])                            # (P, K)
    hb_last = f32(m["head_b"][-1])
    dd = jnp.arange(H)
    ghead = jnp.zeros((P * H, H), jnp.float32)
    for k in range(K):
        shift_k = (dd[:, None] == dd[None, :] + (k - K // 2)).astype(jnp.float32)
        ghead = ghead + jnp.kron(hwl[:, k:k + 1], shift_k)                 # (P*H, H)

    # ---- dv / classifier: concat folded via split dv weights; head-conv bias
    #      folded into the dv bias ----
    dv_w = f32(params["dv_w"])                            # (DIM_EMB, 2H)
    dva = dv_w[:, :H].T                                   # (H, DIM_EMB)
    dvb = dv_w[:, H:].T                                   # (H, DIM_EMB)
    dv_bias = (f32(params["dv_b"]) + hb_last * jnp.sum(dvb, axis=0)).reshape(1, -1)

    return dict(
        wih=wih, whh=whh, lstm_b=lb,
        wce=wce, bce=bce, blocks=blocks, avg=avg, ghead=ghead,
        dva=dva, dvb=dvb, dv_bias=dv_bias,
        out_wT=f32(params["out_w"]).T, out_b=f32(params["out_b"]).reshape(1, -1),
    )


if __name__ == "__main__":
    # deterministic crop offsets (the torch module uses random.randint at runtime);
    # they are compile-time constants baked into the jitted trace.
    random.seed(0)
    lefts = tuple(random.randint(0, SEQ_LEN - CROP_LEN) for _ in range(SAMPLE_COUNT))

    key = jax.random.PRNGKey(0)
    kx, kp = jax.random.split(key)
    x = jax.random.normal(kx, (BATCH, SEQ_LEN, LSTM_IN), jnp.float32)
    params = init_params(kp)
    fast_params = prepare_params(params)

    fwd = jax.jit(partial(meta_block_forward, lefts=lefts))
    pred, dvec = fwd(x, fast_params)
    jax.block_until_ready((pred, dvec))

    assert pred.shape == (BATCH, NUM_CLASSES)
    assert dvec.shape == (BATCH, DIM_EMB)
    assert bool(jnp.all(jnp.isfinite(pred))) and bool(jnp.all(jnp.isfinite(dvec)))
    print("KERNEL_OK")
</pallas_src>

<mosaic_0001>
module attributes {stable_mosaic.version = 11 : i64} {
  func.func @_metablock_kernel(%arg0: memref<192x80xf32, #tpu.memory_space<vmem>>, %arg1: memref<4x80x32xf32, #tpu.memory_space<vmem>>, %arg2: memref<4x32x32xbf16, #tpu.memory_space<vmem>>, %arg3: memref<4x1x32xf32, #tpu.memory_space<vmem>>, %arg4: memref<512x128xf32, #tpu.memory_space<vmem>>, %arg5: memref<1x128xf32, #tpu.memory_space<vmem>>, %arg6: memref<128x512xf32, #tpu.memory_space<vmem>>, %arg7: memref<512x128xf32, #tpu.memory_space<vmem>>, %arg8: memref<128x512xf32, #tpu.memory_space<vmem>>, %arg9: memref<512x128xf32, #tpu.memory_space<vmem>>, %arg10: memref<4x128xf32, #tpu.memory_space<vmem>>, %arg11: memref<2x512xf32, #tpu.memory_space<vmem>>, %arg12: memref<2x128xf32, #tpu.memory_space<vmem>>, %arg13: memref<128x128xf32, #tpu.memory_space<vmem>>, %arg14: memref<128x32xf32, #tpu.memory_space<vmem>>, %arg15: memref<32x16xf32, #tpu.memory_space<vmem>>, %arg16: memref<32x16xf32, #tpu.memory_space<vmem>>, %arg17: memref<1x16xf32, #tpu.memory_space<vmem>>, %arg18: memref<16x10xf32, #tpu.memory_space<vmem>>, %arg19: memref<1x10xf32, #tpu.memory_space<vmem>>, %arg20: memref<8x10xf32, #tpu.memory_space<vmem>>, %arg21: memref<8x16xf32, #tpu.memory_space<vmem>>) attributes {dimension_semantics = [], scalar_prefetch = 0 : i64, scratch_operands = 0 : i64, tpu.core_type = #tpu.core_type<tc>} {
    %c0 = arith.constant 0 : index
    %c0_0 = arith.constant 0 : index
    %0 = vector.load %arg0[%c0, %c0_0] : memref<192x80xf32, #tpu.memory_space<vmem>>, vector<192x80xf32>
    %c0_1 = arith.constant 0 : index
    %c0_2 = arith.constant 0 : index
    %c0_3 = arith.constant 0 : index
    %1 = vector.load %arg1[%c0_1, %c0_2, %c0_3] : memref<4x80x32xf32, #tpu.memory_space<vmem>>, vector<1x80x32xf32>
    %2 = vector.shape_cast %1 : vector<1x80x32xf32> to vector<80x32xf32>
    %cst = arith.constant dense<0.000000e+00> : vector<192x32xf32>
    %3 = tpu.matmul %0, %2, %cst {dimension_numbers = #tpu.dot_dimension_numbers<[1], [0], [0], [1], [0, 0, 1, 1], [], []>} : vector<192x80xf32>, vector<80x32xf32>, vector<192x32xf32> -> vector<192x32xf32>
    %c0_4 = arith.constant 0 : index
    %c0_5 = arith.constant 0 : index
    %c0_6 = arith.constant 0 : index
    %4 = vector.load %arg3[%c0_4, %c0_5, %c0_6] : memref<4x1x32xf32, #tpu.memory_space<vmem>>, vector<1x1x32xf32>
    %5 = vector.shape_cast %4 : vector<1x1x32xf32> to vector<1x32xf32>
    %6 = vector.broadcast %5 : vector<1x32xf32> to vector<192x32xf32>
    %7 = arith.addf %3, %6 : vector<192x32xf32>
    %c1 = arith.constant 1 : index
    %c0_7 = arith.constant 0 : index
    %c0_8 = arith.constant 0 : index
    %8 = vector.load %arg1[%c1, %c0_7, %c0_8] : memref<4x80x32xf32, #tpu.memory_space<vmem>>, vector<1x80x32xf32>
    %9 = vector.shape_cast %8 : vector<1x80x32xf32> to vector<80x32xf32>
    %cst_9 = arith.constant dense<0.000000e+00> : vector<192x32xf32>
    %10 = tpu.matmul %0, %9, %cst_9 {dimension_numbers = #tpu.dot_dimension_numbers<[1], [0], [0], [1], [0, 0, 1, 1], [], []>} : vector<192x80xf32>, vector<80x32xf32>, vector<192x32xf32> -> vector<192x32xf32>
    %c1_10 = arith.constant 1 : index
    %c0_11 = arith.constant 0 : index
    %c0_12 = arith.constant 0 : index
    %11 = vector.load %arg3[%c1_10, %c0_11, %c0_12] : memref<4x1x32xf32, #tpu.memory_space<vmem>>, vector<1x1x32xf32>
    %12 = vector.shape_cast %11 : vector<1x1x32xf32> to vector<1x32xf32>
    %13 = vector.broadcast %12 : vector<1x32xf32> to vector<192x32xf32>
    %14 = arith.addf %10, %13 : vector<192x32xf32>
    %c2 = arith.constant 2 : index
    %c0_13 = arith.constant 0 : index
    %c0_14 = arith.constant 0 : index
    %15 = vector.load %arg1[%c2, %c0_13, %c0_14] : memref<4x80x32xf32, #tpu.memory_space<vmem>>, vector<1x80x32xf32>
    %16 = vector.shape_cast %15 : vector<1x80x32xf32> to vector<80x32xf32>
    %cst_15 = arith.constant dense<0.000000e+00> : vector<192x32xf32>
    %17 = tpu.matmul %0, %16, %cst_15 {dimension_numbers = #tpu.dot_dimension_numbers<[1], [0], [0], [1], [0, 0, 1, 1], [], []>} : vector<192x80xf32>, vector<80x32xf32>, vector<192x32xf32> -> vector<192x32xf32>
    %c2_16 = arith.constant 2 : index
    %c0_17 = arith.constant 0 : index
    %c0_18 = arith.constant 0 : index
    %18 = vector.load %arg3[%c2_16, %c0_17, %c0_18] : memref<4x1x32xf32, #tpu.memory_space<vmem>>, vector<1x1x32xf32>
    %19 = vector.shape_cast %18 : vector<1x1x32xf32> to vector<1x32xf32>
    %20 = vector.broadcast %19 : vector<1x32xf32> to vector<192x32xf32>
    %21 = arith.addf %17, %20 : vector<192x32xf32>
    %c3 = arith.constant 3 : index
    %c0_19 = arith.constant 0 : index
    %c0_20 = arith.constant 0 : index
    %22 = vector.load %arg1[%c3, %c0_19, %c0_20] : memref<4x80x32xf32, #tpu.memory_space<vmem>>, vector<1x80x32xf32>
    %23 = vector.shape_cast %22 : vector<1x80x32xf32> to vector<80x32xf32>
    %cst_21 = arith.constant dense<0.000000e+00> : vector<192x32xf32>
    %24 = tpu.matmul %0, %23, %cst_21 {dimension_numbers = #tpu.dot_dimension_numbers<[1], [0], [0], [1], [0, 0, 1, 1], [], []>} : vector<192x80xf32>, vector<80x32xf32>, vector<192x32xf32> -> vector<192x32xf32>
    %c3_22 = arith.constant 3 : index
    %c0_23 = arith.constant 0 : index
    %c0_24 = arith.constant 0 : index
    %25 = vector.load %arg3[%c3_22, %c0_23, %c0_24] : memref<4x1x32xf32, #tpu.memory_space<vmem>>, vector<1x1x32xf32>
    %26 = vector.shape_cast %25 : vector<1x1x32xf32> to vector<1x32xf32>
    %27 = vector.broadcast %26 : vector<1x32xf32> to vector<192x32xf32>
    %28 = arith.addf %24, %27 : vector<192x32xf32>
    %c0_25 = arith.constant 0 : index
    %c0_26 = arith.constant 0 : index
    %c0_27 = arith.constant 0 : index
    %29 = vector.load %arg2[%c0_25, %c0_26, %c0_27] : memref<4x32x32xbf16, #tpu.memory_space<vmem>>, vector<1x32x32xbf16>
    %30 = vector.shape_cast %29 : vector<1x32x32xbf16> to vector<32x32xbf16>
    %c1_28 = arith.constant 1 : index
    %c0_29 = arith.constant 0 : index
    %c0_30 = arith.constant 0 : index
    %31 = vector.load %arg2[%c1_28, %c0_29, %c0_30] : memref<4x32x32xbf16, #tpu.memory_space<vmem>>, vector<1x32x32xbf16>
    %32 = vector.shape_cast %31 : vector<1x32x32xbf16> to vector<32x32xbf16>
    %c2_31 = arith.constant 2 : index
    %c0_32 = arith.constant 0 : index
    %c0_33 = arith.constant 0 : index
    %33 = vector.load %arg2[%c2_31, %c0_32, %c0_33] : memref<4x32x32xbf16, #tpu.memory_space<vmem>>, vector<1x32x32xbf16>
    %34 = vector.shape_cast %33 : vector<1x32x32xbf16> to vector<32x32xbf16>
    %c3_34 = arith.constant 3 : index
    %c0_35 = arith.constant 0 : index
    %c0_36 = arith.constant 0 : index
    %35 = vector.load %arg2[%c3_34, %c0_35, %c0_36] : memref<4x32x32xbf16, #tpu.memory_space<vmem>>, vector<1x32x32xbf16>
    %36 = vector.shape_cast %35 : vector<1x32x32xbf16> to vector<32x32xbf16>
    %cst_37 = arith.constant 0.000000e+00 : f32
    %37 = vector.broadcast %cst_37 : f32 to vector<8x32xf32>
    %cst_38 = arith.constant 0.000000e+00 : f32
    %38 = vector.broadcast %cst_38 : f32 to vector<8x32xf32>
    %39 = arith.truncf %37 : vector<8x32xf32> to vector<8x32xbf16>
    %40 = vector.extract_strided_slice %7 {offsets = [0, 0], sizes = [8, 32], strides = [1, 1]} : vector<192x32xf32> to vector<8x32xf32>
    %cst_39 = arith.constant dense<0.000000e+00> : vector<8x32xf32>
    %41 = tpu.matmul %39, %30, %cst_39 {dimension_numbers = #tpu.dot_dimension_numbers<[1], [0], [0], [1], [0, 0, 1, 1], [], []>} : vector<8x32xbf16>, vector<32x32xbf16>, vector<8x32xf32> -> vector<8x32xf32>
    %42 = arith.addf %40, %41 : vector<8x32xf32>
    %43 = vector.extract_strided_slice %14 {offsets = [0, 0], sizes = [8, 32], strides = [1, 1]} : vector<192x32xf32> to vector<8x32xf32>
    %cst_40 = arith.constant dense<0.000000e+00> : vector<8x32xf32>
    %44 = tpu.matmul %39, %32, %cst_40 {dimension_numbers = #tpu.dot_dimension_numbers<[1], [0], [0], [1], [0, 0, 1, 1], [], []>} : vector<8x32xbf16>, vector<32x32xbf16>, vector<8x32xf32> -> vector<8x32xf32>
    %45 = arith.addf %43, %44 : vector<8x32xf32>
    %46 = vector.extract_strided_slice %21 {offsets = [0, 0], sizes = [8, 32], strides = [1, 1]} : vector<192x32xf32> to vector<8x32xf32>
    %cst_41 = arith.constant dense<0.000000e+00> : vector<8x32xf32>
    %47 = tpu.matmul %39, %34, %cst_41 {dimension_numbers = #tpu.dot_dimension_numbers<[1], [0], [0], [1], [0, 0, 1, 1], [], []>} : vector<8x32xbf16>, vector<32x32xbf16>, vector<8x32xf32> -> vector<8x32xf32>
    %48 = arith.addf %46, %47 : vector<8x32xf32>
    %49 = vector.extract_strided_slice %28 {offsets = [0, 0], sizes = [8, 32], strides = [1, 1]} : vector<192x32xf32> to vector<8x32xf32>
    %cst_42 = arith.constant dense<0.000000e+00> : vector<8x32xf32>
    %50 = tpu.matmul %39, %36, %cst_42 {dimension_numbers = #tpu.dot_dimension_numbers<[1], [0], [0], [1], [0, 0, 1, 1], [], []>} : vector<8x32xbf16>, vector<32x32xbf16>, vector<8x32xf32> -> vector<8x32xf32>
    %51 = arith.addf %49, %50 : vector<8x32xf32>
    %52 = arith.negf %45 : vector<8x32xf32>
    %53 = math.exp %52 : vector<8x32xf32>
    %cst_43 = arith.constant 1.000000e+00 : f32
    %54 = vector.broadcast %cst_43 : f32 to vector<8x32xf32>
    %55 = arith.addf %54, %53 : vector<8x32xf32>
    %56 = arith.divf %54, %55 : vector<8x32xf32>
    %57 = arith.mulf %56, %38 : vector<8x32xf32>
    %58 = arith.negf %42 : vector<8x32xf32>
    %59 = math.exp %58 : vector<8x32xf32>
    %cst_44 = arith.constant 1.000000e+00 : f32
    %60 = vector.broadcast %cst_44 : f32 to vector<8x32xf32>
    %61 = arith.addf %60, %59 : vector<8x32xf32>
    %62 = arith.divf %60, %61 : vector<8x32xf32>
    %63 = math.tanh %48 : vector<8x32xf32>
    %64 = arith.mulf %62, %63 : vector<8x32xf32>
    %65 = arith.addf %57, %64 : vector<8x32xf32>
    %66 = arith.negf %51 : vector<8x32xf32>
    %67 = math.exp %66 : vector<8x32xf32>
    %cst_45 = arith.constant 1.000000e+00 : f32
    %68 = vector.broadcast %cst_45 : f32 to vector<8x32xf32>
    %69 = arith.addf %68, %67 : vector<8x32xf32>
    %70 = arith.divf %68, %69 : vector<8x32xf32>
    %71 = math.tanh %65 : vector<8x32xf32>
    %72 = arith.mulf %70, %71 : vector<8x32xf32>
    %73 = arith.truncf %72 : vector<8x32xf32> to vector<8x32xbf16>
    %74 = vector.extract_strided_slice %7 {offsets = [8, 0], sizes = [8, 32], strides = [1, 1]} : vector<192x32xf32> to vector<8x32xf32>
    %cst_46 = arith.constant dense<0.000000e+00> : vector<8x32xf32>
    %75 = tpu.matmul %73, %30, %cst_46 {dimension_numbers = #tpu.dot_dimension_numbers<[1], [0], [0], [1], [0, 0, 1, 1], [], []>} : vector<8x32xbf16>, vector<32x32xbf16>, vector<8x32xf32> -> vector<8x32xf32>
    %76 = arith.addf %74, %75 : vector<8x32xf32>
    %77 = vector.extract_strided_slice %14 {offsets = [8, 0], sizes = [8, 32], strides = [1, 1]} : vector<192x32xf32> to vector<8x32xf32>
    %cst_47 = arith.constant dense<0.000000e+00> : vector<8x32xf32>
    %78 = tpu.matmul %73, %32, %cst_47 {dimension_numbers = #tpu.dot_dimension_numbers<[1], [0], [0], [1], [0, 0, 1, 1], [], []>} : vector<8x32xbf16>, vector<32x32xbf16>, vector<8x32xf32> -> vector<8x32xf32>
    %79 = arith.addf %77, %78 : vector<8x32xf32>
    %80 = vector.extract_strided_slice %21 {offsets = [8, 0], sizes = [8, 32], strides = [1, 1]} : vector<192x32xf32> to vector<8x32xf32>
    %cst_48 = arith.constant dense<0.000000e+00> : vector<8x32xf32>
    %81 = tpu.matmul %73, %34, %cst_48 {dimension_numbers = #tpu.dot_dimension_numbers<[1], [0], [0], [1], [0, 0, 1, 1], [], []>} : vector<8x32xbf16>, vector<32x32xbf16>, vector<8x32xf32> -> vector<8x32xf32>
    %82 = arith.addf %80, %81 : vector<8x32xf32>
    %83 = vector.extract_strided_slice %28 {offsets = [8, 0], sizes = [8, 32], strides = [1, 1]} : vector<192x32xf32> to vector<8x32xf32>
    %cst_49 = arith.constant dense<0.000000e+00> : vector<8x32xf32>
    %84 = tpu.matmul %73, %36, %cst_49 {dimension_numbers = #tpu.dot_dimension_numbers<[1], [0], [0], [1], [0, 0, 1, 1], [], []>} : vector<8x32xbf16>, vector<32x32xbf16>, vector<8x32xf32> -> vector<8x32xf32>
    %85 = arith.addf %83, %84 : vector<8x32xf32>
    %86 = arith.negf %79 : vector<8x32xf32>
    %87 = math.exp %86 : vector<8x32xf32>
    %cst_50 = arith.constant 1.000000e+00 : f32
    %88 = vector.broadcast %cst_50 : f32 to vector<8x32xf32>
    %89 = arith.addf %88, %87 : vector<8x32xf32>
    %90 = arith.divf %88, %89 : vector<8x32xf32>
    %91 = arith.mulf %90, %65 : vector<8x32xf32>
    %92 = arith.negf %76 : vector<8x32xf32>
    %93 = math.exp %92 : vector<8x32xf32>
    %cst_51 = arith.constant 1.000000e+00 : f32
    %94 = vector.broadcast %cst_51 : f32 to vector<8x32xf32>
    %95 = arith.addf %94, %93 : vector<8x32xf32>
    %96 = arith.divf %94, %95 : vector<8x32xf32>
    %97 = math.tanh %82 : vector<8x32xf32>
    %98 = arith.mulf %96, %97 : vector<8x32xf32>
    %99 = arith.addf %91, %98 : vector<8x32xf32>
    %100 = arith.negf %85 : vector<8x32xf32>
    %101 = math.exp %100 : vector<8x32xf32>
    %cst_52 = arith.constant 1.000000e+00 : f32
    %102 = vector.broadcast %cst_52 : f32 to vector<8x32xf32>
    %103 = arith.addf %102, %101 : vector<8x32xf32>
    %104 = arith.divf %102, %103 : vector<8x32xf32>
    %105 = math.tanh %99 : vector<8x32xf32>
    %106 = arith.mulf %104, %105 : vector<8x32xf32>
    %107 = arith.truncf %106 : vector<8x32xf32> to vector<8x32xbf16>
    %108 = vector.extract_strided_slice %7 {offsets = [16, 0], sizes = [8, 32], strides = [1, 1]} : vector<192x32xf32> to vector<8x32xf32>
    %cst_53 = arith.constant dense<0.000000e+00> : vector<8x32xf32>
    %109 = tpu.matmul %107, %30, %cst_53 {dimension_numbers = #tpu.dot_dimension_numbers<[1], [0], [0], [1], [0, 0, 1, 1], [], []>} : vector<8x32xbf16>, vector<32x32xbf16>, vector<8x32xf32> -> vector<8x32xf32>
    %110 = arith.addf %108, %109 : vector<8x32xf32>
    %111 = vector.extract_strided_slice %14 {offsets = [16, 0], sizes = [8, 32], strides = [1, 1]} : vector<192x32xf32> to vector<8x32xf32>
    %cst_54 = arith.constant dense<0.000000e+00> : vector<8x32xf32>
    %112 = tpu.matmul %107, %32, %cst_54 {dimension_numbers = #tpu.dot_dimension_numbers<[1], [0], [0], [1], [0, 0, 1, 1], [], []>} : vector<8x32xbf16>, vector<32x32xbf16>, vector<8x32xf32> -> vector<8x32xf32>
    %113 = arith.addf %111, %112 : vector<8x32xf32>
    %114 = vector.extract_strided_slice %21 {offsets = [16, 0], sizes = [8, 32], strides = [1, 1]} : vector<192x32xf32> to vector<8x32xf32>
    %cst_55 = arith.constant dense<0.000000e+00> : vector<8x32xf32>
    %115 = tpu.matmul %107, %34, %cst_55 {dimension_numbers = #tpu.dot_dimension_numbers<[1], [0], [0], [1], [0, 0, 1, 1], [], []>} : vector<8x32xbf16>, vector<32x32xbf16>, vector<8x32xf32> -> vector<8x32xf32>
    %116 = arith.addf %114, %115 : vector<8x32xf32>
    %117 = vector.extract_strided_slice %28 {offsets = [16, 0], sizes = [8, 32], strides = [1, 1]} : vector<192x32xf32> to vector<8x32xf32>
    %cst_56 = arith.constant dense<0.000000e+00> : vector<8x32xf32>
    %118 = tpu.matmul %107, %36, %cst_56 {dimension_numbers = #tpu.dot_dimension_numbers<[1], [0], [0], [1], [0, 0, 1, 1], [], []>} : vector<8x32xbf16>, vector<32x32xbf16>, vector<8x32xf32> -> vector<8x32xf32>
    %119 = arith.addf %117, %118 : vector<8x32xf32>
    %120 = arith.negf %113 : vector<8x32xf32>
    %121 = math.exp %120 : vector<8x32xf32>
    %cst_57 = arith.constant 1.000000e+00 : f32
    %122 = vector.broadcast %cst_57 : f32 to vector<8x32xf32>
    %123 = arith.addf %122, %121 : vector<8x32xf32>
    %124 = arith.divf %122, %123 : vector<8x32xf32>
    %125 = arith.mulf %124, %99 : vector<8x32xf32>
    %126 = arith.negf %110 : vector<8x32xf32>
    %127 = math.exp %126 : vector<8x32xf32>
    %cst_58 = arith.constant 1.000000e+00 : f32
    %128 = vector.broadcast %cst_58 : f32 to vector<8x32xf32>
    %129 = arith.addf %128, %127 : vector<8x32xf32>
    %130 = arith.divf %128, %129 : vector<8x32xf32>
    %131 = math.tanh %116 : vector<8x32xf32>
    %132 = arith.mulf %130, %131 : vector<8x32xf32>
    %133 = arith.addf %125, %132 : vector<8x32xf32>
    %134 = arith.negf %119 : vector<8x32xf32>
    %135 = math.exp %134 : vector<8x32xf32>
    %cst_59 = arith.constant 1.000000e+00 : f32
    %136 = vector.broadcast %cst_59 : f32 to vector<8x32xf32>
    %137 = arith.addf %136, %135 : vector<8x32xf32>
    %138 = arith.divf %136, %137 : vector<8x32xf32>
    %139 = math.tanh %133 : vector<8x32xf32>
    %140 = arith.mulf %138, %139 : vector<8x32xf32>
    %141 = arith.truncf %140 : vector<8x32xf32> to vector<8x32xbf16>
    %142 = vector.extract_strided_slice %7 {offsets = [24, 0], sizes = [8, 32], strides = [1, 1]} : vector<192x32xf32> to vector<8x32xf32>
    %cst_60 = arith.constant dense<0.000000e+00> : vector<8x32xf32>
    %143 = tpu.matmul %141, %30, %cst_60 {dimension_numbers = #tpu.dot_dimension_numbers<[1], [0], [0], [1], [0, 0, 1, 1], [], []>} : vector<8x32xbf16>, vector<32x32xbf16>, vector<8x32xf32> -> vector<8x32xf32>
    %144 = arith.addf %142, %143 : vector<8x32xf32>
    %145 = vector.extract_strided_slice %14 {offsets = [24, 0], sizes = [8, 32], strides = [1, 1]} : vector<192x32xf32> to vector<8x32xf32>
    %cst_61 = arith.constant dense<0.000000e+00> : vector<8x32xf32>
    %146 = tpu.matmul %141, %32, %cst_61 {dimension_numbers = #tpu.dot_dimension_numbers<[1], [0], [0], [1], [0, 0, 1, 1], [], []>} : vector<8x32xbf16>, vector<32x32xbf16>, vector<8x32xf32> -> vector<8x32xf32>
    %147 = arith.addf %145, %146 : vector<8x32xf32>
    %148 = vector.extract_strided_slice %21 {offsets = [24, 0], sizes = [8, 32], strides = [1, 1]} : vector<192x32xf32> to vector<8x32xf32>
    %cst_62 = arith.constant dense<0.000000e+00> : vector<8x32xf32>
    %149 = tpu.matmul %141, %34, %cst_62 {dimension_numbers = #tpu.dot_dimension_numbers<[1], [0], [0], [1], [0, 0, 1, 1], [], []>} : vector<8x32xbf16>, vector<32x32xbf16>, vector<8x32xf32> -> vector<8x32xf32>
    %150 = arith.addf %148, %149 : vector<8x32xf32>
    %151 = vector.extract_strided_slice %28 {offsets = [24, 0], sizes = [8, 32], strides = [1, 1]} : vector<192x32xf32> to vector<8x32xf32>
    %cst_63 = arith.constant dense<0.000000e+00> : vector<8x32xf32>
    %152 = tpu.matmul %141, %36, %cst_63 {dimension_numbers = #tpu.dot_dimension_numbers<[1], [0], [0], [1], [0, 0, 1, 1], [], []>} : vector<8x32xbf16>, vector<32x32xbf16>, vector<8x32xf32> -> vector<8x32xf32>
    %153 = arith.addf %151, %152 : vector<8x32xf32>
    %154 = arith.negf %147 : vector<8x32xf32>
    %155 = math.exp %154 : vector<8x32xf32>
    %cst_64 = arith.constant 1.000000e+00 : f32
    %156 = vector.broadcast %cst_64 : f32 to vector<8x32xf32>
    %157 = arith.addf %156, %155 : vector<8x32xf32>
    %158 = arith.divf %156, %157 : vector<8x32xf32>
    %159 = arith.mulf %158, %133 : vector<8x32xf32>
    %160 = arith.negf %144 : vector<8x32xf32>
    %161 = math.exp %160 : vector<8x32xf32>
    %cst_65 = arith.constant 1.000000e+00 : f32
    %162 = vector.broadcast %cst_65 : f32 to vector<8x32xf32>
    %163 = arith.addf %162, %161 : vector<8x32xf32>
    %164 = arith.divf %162, %163 : vector<8x32xf32>
    %165 = math.tanh %150 : vector<8x32xf32>
    %166 = arith.mulf %164, %165 : vector<8x32xf32>
    %167 = arith.addf %159, %166 : vector<8x32xf32>
    %168 = arith.negf %153 : vector<8x32xf32>
    %169 = math.exp %168 : vector<8x32xf32>
    %cst_66 = arith.constant 1.000000e+00 : f32
    %170 = vector.broadcast %cst_66 : f32 to vector<8x32xf32>
    %171 = arith.addf %170, %169 : vector<8x32xf32>
    %172 = arith.divf %170, %171 : vector<8x32xf32>
    %173 = math.tanh %167 : vector<8x32xf32>
    %174 = arith.mulf %172, %173 : vector<8x32xf32>
    %175 = arith.truncf %174 : vector<8x32xf32> to vector<8x32xbf16>
    %176 = vector.extract_strided_slice %7 {offsets = [32, 0], sizes = [8, 32], strides = [1, 1]} : vector<192x32xf32> to vector<8x32xf32>
    %cst_67 = arith.constant dense<0.000000e+00> : vector<8x32xf32>
    %177 = tpu.matmul %175, %30, %cst_67 {dimension_numbers = #tpu.dot_dimension_numbers<[1], [0], [0], [1], [0, 0, 1, 1], [], []>} : vector<8x32xbf16>, vector<32x32xbf16>, vector<8x32xf32> -> vector<8x32xf32>
    %178 = arith.addf %176, %177 : vector<8x32xf32>
    %179 = vector.extract_strided_slice %14 {offsets = [32, 0], sizes = [8, 32], strides = [1, 1]} : vector<192x32xf32> to vector<8x32xf32>
    %cst_68 = arith.constant dense<0.000000e+00> : vector<8x32xf32>
    %180 = tpu.matmul %175, %32, %cst_68 {dimension_numbers = #tpu.dot_dimension_numbers<[1], [0], [0], [1], [0, 0, 1, 1], [], []>} : vector<8x32xbf16>, vector<32x32xbf16>, vector<8x32xf32> -> vector<8x32xf32>
    %181 = arith.addf %179, %180 : vector<8x32xf32>
    %182 = vector.extract_strided_slice %21 {offsets = [32, 0], sizes = [8, 32], strides = [1, 1]} : vector<192x32xf32> to vector<8x32xf32>
    %cst_69 = arith.constant dense<0.000000e+00> : vector<8x32xf32>
    %183 = tpu.matmul %175, %34, %cst_69 {dimension_numbers = #tpu.dot_dimension_numbers<[1], [0], [0], [1], [0, 0, 1, 1], [], []>} : vector<8x32xbf16>, vector<32x32xbf16>, vector<8x32xf32> -> vector<8x32xf32>
    %184 = arith.addf %182, %183 : vector<8x32xf32>
    %185 = vector.extract_strided_slice %28 {offsets = [32, 0], sizes = [8, 32], strides = [1, 1]} : vector<192x32xf32> to vector<8x32xf32>
    %cst_70 = arith.constant dense<0.000000e+00> : vector<8x32xf32>
    %186 = tpu.matmul %175, %36, %cst_70 {dimension_numbers = #tpu.dot_dimension_numbers<[1], [0], [0], [1], [0, 0, 1, 1], [], []>} : vector<8x32xbf16>, vector<32x32xbf16>, vector<8x32xf32> -> vector<8x32xf32>
    %187 = arith.addf %185, %186 : vector<8x32xf32>
    %188 = arith.negf %181 : vector<8x32xf32>
    %189 = math.exp %188 : vector<8x32xf32>
    %cst_71 = arith.constant 1.000000e+00 : f32
    %190 = vector.broadcast %cst_71 : f32 to vector<8x32xf32>
    %191 = arith.addf %190, %189 : vector<8x32xf32>
    %192 = arith.divf %190, %191 : vector<8x32xf32>
    %193 = arith.mulf %192, %167 : vector<8x32xf32>
    %194 = arith.negf %178 : vector<8x32xf32>
    %195 = math.exp %194 : vector<8x32xf32>
    %cst_72 = arith.constant 1.000000e+00 : f32
    %196 = vector.broadcast %cst_72 : f32 to vector<8x32xf32>
    %197 = arith.addf %196, %195 : vector<8x32xf32>
    %198 = arith.divf %196, %197 : vector<8x32xf32>
    %199 = math.tanh %184 : vector<8x32xf32>
    %200 = arith.mulf %198, %199 : vector<8x32xf32>
    %201 = arith.addf %193, %200 : vector<8x32xf32>
    %202 = arith.negf %187 : vector<8x32xf32>
    %203 = math.exp %202 : vector<8x32xf32>
    %cst_73 = arith.constant 1.000000e+00 : f32
    %204 = vector.broadcast %cst_73 : f32 to vector<8x32xf32>
    %205 = arith.addf %204, %203 : vector<8x32xf32>
    %206 = arith.divf %204, %205 : vector<8x32xf32>
    %207 = math.tanh %201 : vector<8x32xf32>
    %208 = arith.mulf %206, %207 : vector<8x32xf32>
    %209 = arith.truncf %208 : vector<8x32xf32> to vector<8x32xbf16>
    %210 = vector.extract_strided_slice %7 {offsets = [40, 0], sizes = [8, 32], strides = [1, 1]} : vector<192x32xf32> to vector<8x32xf32>
    %cst_74 = arith.constant dense<0.000000e+00> : vector<8x32xf32>
    %211 = tpu.matmul %209, %30, %cst_74 {dimension_numbers = #tpu.dot_dimension_numbers<[1], [0], [0], [1], [0, 0, 1, 1], [], []>} : vector<8x32xbf16>, vector<32x32xbf16>, vector<8x32xf32> -> vector<8x32xf32>
    %212 = arith.addf %210, %211 : vector<8x32xf32>
    %213 = vector.extract_strided_slice %14 {offsets = [40, 0], sizes = [8, 32], strides = [1, 1]} : vector<192x32xf32> to vector<8x32xf32>
    %cst_75 = arith.constant dense<0.000000e+00> : vector<8x32xf32>
    %214 = tpu.matmul %209, %32, %cst_75 {dimension_numbers = #tpu.dot_dimension_numbers<[1], [0], [0], [1], [0, 0, 1, 1], [], []>} : vector<8x32xbf16>, vector<32x32xbf16>, vector<8x32xf32> -> vector<8x32xf32>
    %215 = arith.addf %213, %214 : vector<8x32xf32>
    %216 = vector.extract_strided_slice %21 {offsets = [40, 0], sizes = [8, 32], strides = [1, 1]} : vector<192x32xf32> to vector<8x32xf32>
    %cst_76 = arith.constant dense<0.000000e+00> : vector<8x32xf32>
    %217 = tpu.matmul %209, %34, %cst_76 {dimension_numbers = #tpu.dot_dimension_numbers<[1], [0], [0], [1], [0, 0, 1, 1], [], []>} : vector<8x32xbf16>, vector<32x32xbf16>, vector<8x32xf32> -> vector<8x32xf32>
    %218 = arith.addf %216, %217 : vector<8x32xf32>
    %219 = vector.extract_strided_slice %28 {offsets = [40, 0], sizes = [8, 32], strides = [1, 1]} : vector<192x32xf32> to vector<8x32xf32>
    %cst_77 = arith.constant dense<0.000000e+00> : vector<8x32xf32>
    %220 = tpu.matmul %209, %36, %cst_77 {dimension_numbers = #tpu.dot_dimension_numbers<[1], [0], [0], [1], [0, 0, 1, 1], [], []>} : vector<8x32xbf16>, vector<32x32xbf16>, vector<8x32xf32> -> vector<8x32xf32>
    %221 = arith.addf %219, %220 : vector<8x32xf32>
    %222 = arith.negf %215 : vector<8x32xf32>
    %223 = math.exp %222 : vector<8x32xf32>
    %cst_78 = arith.constant 1.000000e+00 : f32
    %224 = vector.broadcast %cst_78 : f32 to vector<8x32xf32>
    %225 = arith.addf %224, %223 : vector<8x32xf32>
    %226 = arith.divf %224, %225 : vector<8x32xf32>
    %227 = arith.mulf %226, %201 : vector<8x32xf32>
    %228 = arith.negf %212 : vector<8x32xf32>
    %229 = math.exp %228 : vector<8x32xf32>
    %cst_79 = arith.constant 1.000000e+00 : f32
    %230 = vector.broadcast %cst_79 : f32 to vector<8x32xf32>
    %231 = arith.addf %230, %229 : vector<8x32xf32>
    %232 = arith.divf %230, %231 : vector<8x32xf32>
    %233 = math.tanh %218 : vector<8x32xf32>
    %234 = arith.mulf %232, %233 : vector<8x32xf32>
    %235 = arith.addf %227, %234 : vector<8x32xf32>
    %236 = arith.negf %221 : vector<8x32xf32>
    %237 = math.exp %236 : vector<8x32xf32>
    %cst_80 = arith.constant 1.000000e+00 : f32
    %238 = vector.broadcast %cst_80 : f32 to vector<8x32xf32>
    %239 = arith.addf %238, %237 : vector<8x32xf32>
    %240 = arith.divf %238, %239 : vector<8x32xf32>
    %241 = math.tanh %235 : vector<8x32xf32>
    %242 = arith.mulf %240, %241 : vector<8x32xf32>
    %243 = arith.truncf %242 : vector<8x32xf32> to vector<8x32xbf16>
    %244 = vector.extract_strided_slice %7 {offsets = [48, 0], sizes = [8, 32], strides = [1, 1]} : vector<192x32xf32> to vector<8x32xf32>
    %cst_81 = arith.constant dense<0.000000e+00> : vector<8x32xf32>
    %245 = tpu.matmul %243, %30, %cst_81 {dimension_numbers = #tpu.dot_dimension_numbers<[1], [0], [0], [1], [0, 0, 1, 1], [], []>} : vector<8x32xbf16>, vector<32x32xbf16>, vector<8x32xf32> -> vector<8x32xf32>
    %246 = arith.addf %244, %245 : vector<8x32xf32>
    %247 = vector.extract_strided_slice %14 {offsets = [48, 0], sizes = [8, 32], strides = [1, 1]} : vector<192x32xf32> to vector<8x32xf32>
    %cst_82 = arith.constant dense<0.000000e+00> : vector<8x32xf32>
    %248 = tpu.matmul %243, %32, %cst_82 {dimension_numbers = #tpu.dot_dimension_numbers<[1], [0], [0], [1], [0, 0, 1, 1], [], []>} : vector<8x32xbf16>, vector<32x32xbf16>, vector<8x32xf32> -> vector<8x32xf32>
    %249 = arith.addf %247, %248 : vector<8x32xf32>
    %250 = vector.extract_strided_slice %21 {offsets = [48, 0], sizes = [8, 32], strides = [1, 1]} : vector<192x32xf32> to vector<8x32xf32>
    %cst_83 = arith.constant dense<0.000000e+00> : vector<8x32xf32>
    %251 = tpu.matmul %243, %34, %cst_83 {dimension_numbers = #tpu.dot_dimension_numbers<[1], [0], [0], [1], [0, 0, 1, 1], [], []>} : vector<8x32xbf16>, vector<32x32xbf16>, vector<8x32xf32> -> vector<8x32xf32>
    %252 = arith.addf %250, %251 : vector<8x32xf32>
    %253 = vector.extract_strided_slice %28 {offsets = [48, 0], sizes = [8, 32], strides = [1, 1]} : vector<192x32xf32> to vector<8x32xf32>
    %cst_84 = arith.constant dense<0.000000e+00> : vector<8x32xf32>
    %254 = tpu.matmul %243, %36, %cst_84 {dimension_numbers = #tpu.dot_dimension_numbers<[1], [0], [0], [1], [0, 0, 1, 1], [], []>} : vector<8x32xbf16>, vector<32x32xbf16>, vector<8x32xf32> -> vector<8x32xf32>
    %255 = arith.addf %253, %254 : vector<8x32xf32>
    %256 = arith.negf %249 : vector<8x32xf32>
    %257 = math.exp %256 : vector<8x32xf32>
    %cst_85 = arith.constant 1.000000e+00 : f32
    %258 = vector.broadcast %cst_85 : f32 to vector<8x32xf32>
    %259 = arith.addf %258, %257 : vector<8x32xf32>
    %260 = arith.divf %258, %259 : vector<8x32xf32>
    %261 = arith.mulf %260, %235 : vector<8x32xf32>
    %262 = arith.negf %246 : vector<8x32xf32>
    %263 = math.exp %262 : vector<8x32xf32>
    %cst_86 = arith.constant 1.000000e+00 : f32
    %264 = vector.broadcast %cst_86 : f32 to vector<8x32xf32>
    %265 = arith.addf %264, %263 : vector<8x32xf32>
    %266 = arith.divf %264, %265 : vector<8x32xf32>
    %267 = math.tanh %252 : vector<8x32xf32>
    %268 = arith.mulf %266, %267 : vector<8x32xf32>
    %269 = arith.addf %261, %268 : vector<8x32xf32>
    %270 = arith.negf %255 : vector<8x32xf32>
    %271 = math.exp %270 : vector<8x32xf32>
    %cst_87 = arith.constant 1.000000e+00 : f32
    %272 = vector.broadcast %cst_87 : f32 to vector<8x32xf32>
    %273 = arith.addf %272, %271 : vector<8x32xf32>
    %274 = arith.divf %272, %273 : vector<8x32xf32>
    %275 = math.tanh %269 : vector<8x32xf32>
    %276 = arith.mulf %274, %275 : vector<8x32xf32>
    %277 = arith.truncf %276 : vector<8x32xf32> to vector<8x32xbf16>
    %278 = vector.extract_strided_slice %7 {offsets = [56, 0], sizes = [8, 32], strides = [1, 1]} : vector<192x32xf32> to vector<8x32xf32>
    %cst_88 = arith.constant dense<0.000000e+00> : vector<8x32xf32>
    %279 = tpu.matmul %277, %30, %cst_88 {dimension_numbers = #tpu.dot_dimension_numbers<[1], [0], [0], [1], [0, 0, 1, 1], [], []>} : vector<8x32xbf16>, vector<32x32xbf16>, vector<8x32xf32> -> vector<8x32xf32>
    %280 = arith.addf %278, %279 : vector<8x32xf32>
    %281 = vector.extract_strided_slice %14 {offsets = [56, 0], sizes = [8, 32], strides = [1, 1]} : vector<192x32xf32> to vector<8x32xf32>
    %cst_89 = arith.constant dense<0.000000e+00> : vector<8x32xf32>
    %282 = tpu.matmul %277, %32, %cst_89 {dimension_numbers = #tpu.dot_dimension_numbers<[1], [0], [0], [1], [0, 0, 1, 1], [], []>} : vector<8x32xbf16>, vector<32x32xbf16>, vector<8x32xf32> -> vector<8x32xf32>
    %283 = arith.addf %281, %282 : vector<8x32xf32>
    %284 = vector.extract_strided_slice %21 {offsets = [56, 0], sizes = [8, 32], strides = [1, 1]} : vector<192x32xf32> to vector<8x32xf32>
    %cst_90 = arith.constant dense<0.000000e+00> : vector<8x32xf32>
    %285 = tpu.matmul %277, %34, %cst_90 {dimension_numbers = #tpu.dot_dimension_numbers<[1], [0], [0], [1], [0, 0, 1, 1], [], []>} : vector<8x32xbf16>, vector<32x32xbf16>, vector<8x32xf32> -> vector<8x32xf32>
    %286 = arith.addf %284, %285 : vector<8x32xf32>
    %287 = vector.extract_strided_slice %28 {offsets = [56, 0], sizes = [8, 32], strides = [1, 1]} : vector<192x32xf32> to vector<8x32xf32>
    %cst_91 = arith.constant dense<0.000000e+00> : vector<8x32xf32>
    %288 = tpu.matmul %277, %36, %cst_91 {dimension_numbers = #tpu.dot_dimension_numbers<[1], [0], [0], [1], [0, 0, 1, 1], [], []>} : vector<8x32xbf16>, vector<32x32xbf16>, vector<8x32xf32> -> vector<8x32xf32>
    %289 = arith.addf %287, %288 : vector<8x32xf32>
    %290 = arith.negf %283 : vector<8x32xf32>
    %291 = math.exp %290 : vector<8x32xf32>
    %cst_92 = arith.constant 1.000000e+00 : f32
    %292 = vector.broadcast %cst_92 : f32 to vector<8x32xf32>
    %293 = arith.addf %292, %291 : vector<8x32xf32>
    %294 = arith.divf %292, %293 : vector<8x32xf32>
    %295 = arith.mulf %294, %269 : vector<8x32xf32>
    %296 = arith.negf %280 : vector<8x32xf32>
    %297 = math.exp %296 : vector<8x32xf32>
    %cst_93 = arith.constant 1.000000e+00 : f32
    %298 = vector.broadcast %cst_93 : f32 to vector<8x32xf32>
    %299 = arith.addf %298, %297 : vector<8x32xf32>
    %300 = arith.divf %298, %299 : vector<8x32xf32>
    %301 = math.tanh %286 : vector<8x32xf32>
    %302 = arith.mulf %300, %301 : vector<8x32xf32>
    %303 = arith.addf %295, %302 : vector<8x32xf32>
    %304 = arith.negf %289 : vector<8x32xf32>
    %305 = math.exp %304 : vector<8x32xf32>
    %cst_94 = arith.constant 1.000000e+00 : f32
    %306 = vector.broadcast %cst_94 : f32 to vector<8x32xf32>
    %307 = arith.addf %306, %305 : vector<8x32xf32>
    %308 = arith.divf %306, %307 : vector<8x32xf32>
    %309 = math.tanh %303 : vector<8x32xf32>
    %310 = arith.mulf %308, %309 : vector<8x32xf32>
    %311 = arith.truncf %310 : vector<8x32xf32> to vector<8x32xbf16>
    %312 = vector.extract_strided_slice %7 {offsets = [64, 0], sizes = [8, 32], strides = [1, 1]} : vector<192x32xf32> to vector<8x32xf32>
    %cst_95 = arith.constant dense<0.000000e+00> : vector<8x32xf32>
    %313 = tpu.matmul %311, %30, %cst_95 {dimension_numbers = #tpu.dot_dimension_numbers<[1], [0], [0], [1], [0, 0, 1, 1], [], []>} : vector<8x32xbf16>, vector<32x32xbf16>, vector<8x32xf32> -> vector<8x32xf32>
    %314 = arith.addf %312, %313 : vector<8x32xf32>
    %315 = vector.extract_strided_slice %14 {offsets = [64, 0], sizes = [8, 32], strides = [1, 1]} : vector<192x32xf32> to vector<8x32xf32>
    %cst_96 = arith.constant dense<0.000000e+00> : vector<8x32xf32>
    %316 = tpu.matmul %311, %32, %cst_96 {dimension_numbers = #tpu.dot_dimension_numbers<[1], [0], [0], [1], [0, 0, 1, 1], [], []>} : vector<8x32xbf16>, vector<32x32xbf16>, vector<8x32xf32> -> vector<8x32xf32>
    %317 = arith.addf %315, %316 : vector<8x32xf32>
    %318 = vector.extract_strided_slice %21 {offsets = [64, 0], sizes = [8, 32], strides = [1, 1]} : vector<192x32xf32> to vector<8x32xf32>
    %cst_97 = arith.constant dense<0.000000e+00> : vector<8x32xf32>
    %319 = tpu.matmul %311, %34, %cst_97 {dimension_numbers = #tpu.dot_dimension_numbers<[1], [0], [0], [1], [0, 0, 1, 1], [], []>} : vector<8x32xbf16>, vector<32x32xbf16>, vector<8x32xf32> -> vector<8x32xf32>
    %320 = arith.addf %318, %319 : vector<8x32xf32>
    %321 = vector.extract_strided_slice %28 {offsets = [64, 0], sizes = [8, 32], strides = [1, 1]} : vector<192x32xf32> to vector<8x32xf32>
    %cst_98 = arith.constant dense<0.000000e+00> : vector<8x32xf32>
    %322 = tpu.matmul %311, %36, %cst_98 {dimension_numbers = #tpu.dot_dimension_numbers<[1], [0], [0], [1], [0, 0, 1, 1], [], []>} : vector<8x32xbf16>, vector<32x32xbf16>, vector<8x32xf32> -> vector<8x32xf32>
    %323 = arith.addf %321, %322 : vector<8x32xf32>
    %324 = arith.negf %317 : vector<8x32xf32>
    %325 = math.exp %324 : vector<8x32xf32>
    %cst_99 = arith.constant 1.000000e+00 : f32
    %326 = vector.broadcast %cst_99 : f32 to vector<8x32xf32>
    %327 = arith.addf %326, %325 : vector<8x32xf32>
    %328 = arith.divf %326, %327 : vector<8x32xf32>
    %329 = arith.mulf %328, %303 : vector<8x32xf32>
    %330 = arith.negf %314 : vector<8x32xf32>
    %331 = math.exp %330 : vector<8x32xf32>
    %cst_100 = arith.constant 1.000000e+00 : f32
    %332 = vector.broadcast %cst_100 : f32 to vector<8x32xf32>
    %333 = arith.addf %332, %331 : vector<8x32xf32>
    %334 = arith.divf %332, %333 : vector<8x32xf32>
    %335 = math.tanh %320 : vector<8x32xf32>
    %336 = arith.mulf %334, %335 : vector<8x32xf32>
    %337 = arith.addf %329, %336 : vector<8x32xf32>
    %338 = arith.negf %323 : vector<8x32xf32>
    %339 = math.exp %338 : vector<8x32xf32>
    %cst_101 = arith.constant 1.000000e+00 : f32
    %340 = vector.broadcast %cst_101 : f32 to vector<8x32xf32>
    %341 = arith.addf %340, %339 : vector<8x32xf32>
    %342 = arith.divf %340, %341 : vector<8x32xf32>
    %343 = math.tanh %337 : vector<8x32xf32>
    %344 = arith.mulf %342, %343 : vector<8x32xf32>
    %345 = arith.truncf %344 : vector<8x32xf32> to vector<8x32xbf16>
    %346 = vector.extract_strided_slice %7 {offsets = [72, 0], sizes = [8, 32], strides = [1, 1]} : vector<192x32xf32> to vector<8x32xf32>
    %cst_102 = arith.constant dense<0.000000e+00> : vector<8x32xf32>
    %347 = tpu.matmul %345, %30, %cst_102 {dimension_numbers = #tpu.dot_dimension_numbers<[1], [0], [0], [1], [0, 0, 1, 1], [], []>} : vector<8x32xbf16>, vector<32x32xbf16>, vector<8x32xf32> -> vector<8x32xf32>
    %348 = arith.addf %346, %347 : vector<8x32xf32>
    %349 = vector.extract_strided_slice %14 {offsets = [72, 0], sizes = [8, 32], strides = [1, 1]} : vector<192x32xf32> to vector<8x32xf32>
    %cst_103 = arith.constant dense<0.000000e+00> : vector<8x32xf32>
    %350 = tpu.matmul %345, %32, %cst_103 {dimension_numbers = #tpu.dot_dimension_numbers<[1], [0], [0], [1], [0, 0, 1, 1], [], []>} : vector<8x32xbf16>, vector<32x32xbf16>, vector<8x32xf32> -> vector<8x32xf32>
    %351 = arith.addf %349, %350 : vector<8x32xf32>
    %352 = vector.extract_strided_slice %21 {offsets = [72, 0], sizes = [8, 32], strides = [1, 1]} : vector<192x32xf32> to vector<8x32xf32>
    %cst_104 = arith.constant dense<0.000000e+00> : vector<8x32xf32>
    %353 = tpu.matmul %345, %34, %cst_104 {dimension_numbers = #tpu.dot_dimension_numbers<[1], [0], [0], [1], [0, 0, 1, 1], [], []>} : vector<8x32xbf16>, vector<32x32xbf16>, vector<8x32xf32> -> vector<8x32xf32>
    %354 = arith.addf %352, %353 : vector<8x32xf32>
    %355 = vector.extract_strided_slice %28 {offsets = [72, 0], sizes = [8, 32], strides = [1, 1]} : vector<192x32xf32> to vector<8x32xf32>
    %cst_105 = arith.constant dense<0.000000e+00> : vector<8x32xf32>
    %356 = tpu.matmul %345, %36, %cst_105 {dimension_numbers = #tpu.dot_dimension_numbers<[1], [0], [0], [1], [0, 0, 1, 1], [], []>} : vector<8x32xbf16>, vector<32x32xbf16>, vector<8x32xf32> -> vector<8x32xf32>
    %357 = arith.addf %355, %356 : vector<8x32xf32>
    %358 = arith.negf %351 : vector<8x32xf32>
    %359 = math.exp %358 : vector<8x32xf32>
    %cst_106 = arith.constant 1.000000e+00 : f32
    %360 = vector.broadcast %cst_106 : f32 to vector<8x32xf32>
    %361 = arith.addf %360, %359 : vector<8x32xf32>
    %362 = arith.divf %360, %361 : vector<8x32xf32>
    %363 = arith.mulf %362, %337 : vector<8x32xf32>
    %364 = arith.negf %348 : vector<8x32xf32>
    %365 = math.exp %364 : vector<8x32xf32>
    %cst_107 = arith.constant 1.000000e+00 : f32
    %366 = vector.broadcast %cst_107 : f32 to vector<8x32xf32>
    %367 = arith.addf %366, %365 : vector<8x32xf32>
    %368 = arith.divf %366, %367 : vector<8x32xf32>
    %369 = math.tanh %354 : vector<8x32xf32>
    %370 = arith.mulf %368, %369 : vector<8x32xf32>
    %371 = arith.addf %363, %370 : vector<8x32xf32>
    %372 = arith.negf %357 : vector<8x32xf32>
    %373 = math.exp %372 : vector<8x32xf32>
    %cst_108 = arith.constant 1.000000e+00 : f32
    %374 = vector.broadcast %cst_108 : f32 to vector<8x32xf32>
    %375 = arith.addf %374, %373 : vector<8x32xf32>
    %376 = arith.divf %374, %375 : vector<8x32xf32>
    %377 = math.tanh %371 : vector<8x32xf32>
    %378 = arith.mulf %376, %377 : vector<8x32xf32>
    %379 = arith.truncf %378 : vector<8x32xf32> to vector<8x32xbf16>
    %380 = vector.extract_strided_slice %7 {offsets = [80, 0], sizes = [8, 32], strides = [1, 1]} : vector<192x32xf32> to vector<8x32xf32>
    %cst_109 = arith.constant dense<0.000000e+00> : vector<8x32xf32>
    %381 = tpu.matmul %379, %30, %cst_109 {dimension_numbers = #tpu.dot_dimension_numbers<[1], [0], [0], [1], [0, 0, 1, 1], [], []>} : vector<8x32xbf16>, vector<32x32xbf16>, vector<8x32xf32> -> vector<8x32xf32>
    %382 = arith.addf %380, %381 : vector<8x32xf32>
    %383 = vector.extract_strided_slice %14 {offsets = [80, 0], sizes = [8, 32], strides = [1, 1]} : vector<192x32xf32> to vector<8x32xf32>
    %cst_110 = arith.constant dense<0.000000e+00> : vector<8x32xf32>
    %384 = tpu.matmul %379, %32, %cst_110 {dimension_numbers = #tpu.dot_dimension_numbers<[1], [0], [0], [1], [0, 0, 1, 1], [], []>} : vector<8x32xbf16>, vector<32x32xbf16>, vector<8x32xf32> -> vector<8x32xf32>
    %385 = arith.addf %383, %384 : vector<8x32xf32>
    %386 = vector.extract_strided_slice %21 {offsets = [80, 0], sizes = [8, 32], strides = [1, 1]} : vector<192x32xf32> to vector<8x32xf32>
    %cst_111 = arith.constant dense<0.000000e+00> : vector<8x32xf32>
    %387 = tpu.matmul %379, %34, %cst_111 {dimension_numbers = #tpu.dot_dimension_numbers<[1], [0], [0], [1], [0, 0, 1, 1], [], []>} : vector<8x32xbf16>, vector<32x32xbf16>, vector<8x32xf32> -> vector<8x32xf32>
    %388 = arith.addf %386, %387 : vector<8x32xf32>
    %389 = vector.extract_strided_slice %28 {offsets = [80, 0], sizes = [8, 32], strides = [1, 1]} : vector<192x32xf32> to vector<8x32xf32>
    %cst_112 = arith.constant dense<0.000000e+00> : vector<8x32xf32>
    %390 = tpu.matmul %379, %36, %cst_112 {dimension_numbers = #tpu.dot_dimension_numbers<[1], [0], [0], [1], [0, 0, 1, 1], [], []>} : vector<8x32xbf16>, vector<32x32xbf16>, vector<8x32xf32> -> vector<8x32xf32>
    %391 = arith.addf %389, %390 : vector<8x32xf32>
    %392 = arith.negf %385 : vector<8x32xf32>
    %393 = math.exp %392 : vector<8x32xf32>
    %cst_113 = arith.constant 1.000000e+00 : f32
    %394 = vector.broadcast %cst_113 : f32 to vector<8x32xf32>
    %395 = arith.addf %394, %393 : vector<8x32xf32>
    %396 = arith.divf %394, %395 : vector<8x32xf32>
    %397 = arith.mulf %396, %371 : vector<8x32xf32>
    %398 = arith.negf %382 : vector<8x32xf32>
    %399 = math.exp %398 : vector<8x32xf32>
    %cst_114 = arith.constant 1.000000e+00 : f32
    %400 = vector.broadcast %cst_114 : f32 to vector<8x32xf32>
    %401 = arith.addf %400, %399 : vector<8x32xf32>
    %402 = arith.divf %400, %401 : vector<8x32xf32>
    %403 = math.tanh %388 : vector<8x32xf32>
    %404 = arith.mulf %402, %403 : vector<8x32xf32>
    %405 = arith.addf %397, %404 : vector<8x32xf32>
    %406 = arith.negf %391 : vector<8x32xf32>
    %407 = math.exp %406 : vector<8x32xf32>
    %cst_115 = arith.constant 1.000000e+00 : f32
    %408 = vector.broadcast %cst_115 : f32 to vector<8x32xf32>
    %409 = arith.addf %408, %407 : vector<8x32xf32>
    %410 = arith.divf %408, %409 : vector<8x32xf32>
    %411 = math.tanh %405 : vector<8x32xf32>
    %412 = arith.mulf %410, %411 : vector<8x32xf32>
    %413 = arith.truncf %412 : vector<8x32xf32> to vector<8x32xbf16>
    %414 = vector.extract_strided_slice %7 {offsets = [88, 0], sizes = [8, 32], strides = [1, 1]} : vector<192x32xf32> to vector<8x32xf32>
    %cst_116 = arith.constant dense<0.000000e+00> : vector<8x32xf32>
    %415 = tpu.matmul %413, %30, %cst_116 {dimension_numbers = #tpu.dot_dimension_numbers<[1], [0], [0], [1], [0, 0, 1, 1], [], []>} : vector<8x32xbf16>, vector<32x32xbf16>, vector<8x32xf32> -> vector<8x32xf32>
    %416 = arith.addf %414, %415 : vector<8x32xf32>
    %417 = vector.extract_strided_slice %14 {offsets = [88, 0], sizes = [8, 32], strides = [1, 1]} : vector<192x32xf32> to vector<8x32xf32>
    %cst_117 = arith.constant dense<0.000000e+00> : vector<8x32xf32>
    %418 = tpu.matmul %413, %32, %cst_117 {dimension_numbers = #tpu.dot_dimension_numbers<[1], [0], [0], [1], [0, 0, 1, 1], [], []>} : vector<8x32xbf16>, vector<32x32xbf16>, vector<8x32xf32> -> vector<8x32xf32>
    %419 = arith.addf %417, %418 : vector<8x32xf32>
    %420 = vector.extract_strided_slice %21 {offsets = [88, 0], sizes = [8, 32], strides = [1, 1]} : vector<192x32xf32> to vector<8x32xf32>
    %cst_118 = arith.constant dense<0.000000e+00> : vector<8x32xf32>
    %421 = tpu.matmul %413, %34, %cst_118 {dimension_numbers = #tpu.dot_dimension_numbers<[1], [0], [0], [1], [0, 0, 1, 1], [], []>} : vector<8x32xbf16>, vector<32x32xbf16>, vector<8x32xf32> -> vector<8x32xf32>
    %422 = arith.addf %420, %421 : vector<8x32xf32>
    %423 = vector.extract_strided_slice %28 {offsets = [88, 0], sizes = [8, 32], strides = [1, 1]} : vector<192x32xf32> to vector<8x32xf32>
    %cst_119 = arith.constant dense<0.000000e+00> : vector<8x32xf32>
    %424 = tpu.matmul %413, %36, %cst_119 {dimension_numbers = #tpu.dot_dimension_numbers<[1], [0], [0], [1], [0, 0, 1, 1], [], []>} : vector<8x32xbf16>, vector<32x32xbf16>, vector<8x32xf32> -> vector<8x32xf32>
    %425 = arith.addf %423, %424 : vector<8x32xf32>
    %426 = arith.negf %419 : vector<8x32xf32>
    %427 = math.exp %426 : vector<8x32xf32>
    %cst_120 = arith.constant 1.000000e+00 : f32
    %428 = vector.broadcast %cst_120 : f32 to vector<8x32xf32>
    %429 = arith.addf %428, %427 : vector<8x32xf32>
    %430 = arith.divf %428, %429 : vector<8x32xf32>
    %431 = arith.mulf %430, %405 : vector<8x32xf32>
    %432 = arith.negf %416 : vector<8x32xf32>
    %433 = math.exp %432 : vector<8x32xf32>
    %cst_121 = arith.constant 1.000000e+00 : f32
    %434 = vector.broadcast %cst_121 : f32 to vector<8x32xf32>
    %435 = arith.addf %434, %433 : vector<8x32xf32>
    %436 = arith.divf %434, %435 : vector<8x32xf32>
    %437 = math.tanh %422 : vector<8x32xf32>
    %438 = arith.mulf %436, %437 : vector<8x32xf32>
    %439 = arith.addf %431, %438 : vector<8x32xf32>
    %440 = arith.negf %425 : vector<8x32xf32>
    %441 = math.exp %440 : vector<8x32xf32>
    %cst_122 = arith.constant 1.000000e+00 : f32
    %442 = vector.broadcast %cst_122 : f32 to vector<8x32xf32>
    %443 = arith.addf %442, %441 : vector<8x32xf32>
    %444 = arith.divf %442, %443 : vector<8x32xf32>
    %445 = math.tanh %439 : vector<8x32xf32>
    %446 = arith.mulf %444, %445 : vector<8x32xf32>
    %447 = arith.truncf %446 : vector<8x32xf32> to vector<8x32xbf16>
    %448 = vector.extract_strided_slice %7 {offsets = [96, 0], sizes = [8, 32], strides = [1, 1]} : vector<192x32xf32> to vector<8x32xf32>
    %cst_123 = arith.constant dense<0.000000e+00> : vector<8x32xf32>
    %449 = tpu.matmul %447, %30, %cst_123 {dimension_numbers = #tpu.dot_dimension_numbers<[1], [0], [0], [1], [0, 0, 1, 1], [], []>} : vector<8x32xbf16>, vector<32x32xbf16>, vector<8x32xf32> -> vector<8x32xf32>
    %450 = arith.addf %448, %449 : vector<8x32xf32>
    %451 = vector.extract_strided_slice %14 {offsets = [96, 0], sizes = [8, 32], strides = [1, 1]} : vector<192x32xf32> to vector<8x32xf32>
    %cst_124 = arith.constant dense<0.000000e+00> : vector<8x32xf32>
    %452 = tpu.matmul %447, %32, %cst_124 {dimension_numbers = #tpu.dot_dimension_numbers<[1], [0], [0], [1], [0, 0, 1, 1], [], []>} : vector<8x32xbf16>, vector<32x32xbf16>, vector<8x32xf32> -> vector<8x32xf32>
    %453 = arith.addf %451, %452 : vector<8x32xf32>
    %454 = vector.extract_strided_slice %21 {offsets = [96, 0], sizes = [8, 32], strides = [1, 1]} : vector<192x32xf32> to vector<8x32xf32>
    %cst_125 = arith.constant dense<0.000000e+00> : vector<8x32xf32>
    %455 = tpu.matmul %447, %34, %cst_125 {dimension_numbers = #tpu.dot_dimension_numbers<[1], [0], [0], [1], [0, 0, 1, 1], [], []>} : vector<8x32xbf16>, vector<32x32xbf16>, vector<8x32xf32> -> vector<8x32xf32>
    %456 = arith.addf %454, %455 : vector<8x32xf32>
    %457 = vector.extract_strided_slice %28 {offsets = [96, 0], sizes = [8, 32], strides = [1, 1]} : vector<192x32xf32> to vector<8x32xf32>
    %cst_126 = arith.constant dense<0.000000e+00> : vector<8x32xf32>
    %458 = tpu.matmul %447, %36, %cst_126 {dimension_numbers = #tpu.dot_dimension_numbers<[1], [0], [0], [1], [0, 0, 1, 1], [], []>} : vector<8x32xbf16>, vector<32x32xbf16>, vector<8x32xf32> -> vector<8x32xf32>
    %459 = arith.addf %457, %458 : vector<8x32xf32>
    %460 = arith.negf %453 : vector<8x32xf32>
    %461 = math.exp %460 : vector<8x32xf32>
    %cst_127 = arith.constant 1.000000e+00 : f32
    %462 = vector.broadcast %cst_127 : f32 to vector<8x32xf32>
    %463 = arith.addf %462, %461 : vector<8x32xf32>
    %464 = arith.divf %462, %463 : vector<8x32xf32>
    %465 = arith.mulf %464, %439 : vector<8x32xf32>
    %466 = arith.negf %450 : vector<8x32xf32>
    %467 = math.exp %466 : vector<8x32xf32>
    %cst_128 = arith.constant 1.000000e+00 : f32
    %468 = vector.broadcast %cst_128 : f32 to vector<8x32xf32>
    %469 = arith.addf %468, %467 : vector<8x32xf32>
    %470 = arith.divf %468, %469 : vector<8x32xf32>
    %471 = math.tanh %456 : vector<8x32xf32>
    %472 = arith.mulf %470, %471 : vector<8x32xf32>
    %473 = arith.addf %465, %472 : vector<8x32xf32>
    %474 = arith.negf %459 : vector<8x32xf32>
    %475 = math.exp %474 : vector<8x32xf32>
    %cst_129 = arith.constant 1.000000e+00 : f32
    %476 = vector.broadcast %cst_129 : f32 to vector<8x32xf32>
    %477 = arith.addf %476, %475 : vector<8x32xf32>
    %478 = arith.divf %476, %477 : vector<8x32xf32>
    %479 = math.tanh %473 : vector<8x32xf32>
    %480 = arith.mulf %478, %479 : vector<8x32xf32>
    %481 = arith.truncf %480 : vector<8x32xf32> to vector<8x32xbf16>
    %482 = vector.extract_strided_slice %7 {offsets = [104, 0], sizes = [8, 32], strides = [1, 1]} : vector<192x32xf32> to vector<8x32xf32>
    %cst_130 = arith.constant dense<0.000000e+00> : vector<8x32xf32>
    %483 = tpu.matmul %481, %30, %cst_130 {dimension_numbers = #tpu.dot_dimension_numbers<[1], [0], [0], [1], [0, 0, 1, 1], [], []>} : vector<8x32xbf16>, vector<32x32xbf16>, vector<8x32xf32> -> vector<8x32xf32>
    %484 = arith.addf %482, %483 : vector<8x32xf32>
    %485 = vector.extract_strided_slice %14 {offsets = [104, 0], sizes = [8, 32], strides = [1, 1]} : vector<192x32xf32> to vector<8x32xf32>
    %cst_131 = arith.constant dense<0.000000e+00> : vector<8x32xf32>
    %486 = tpu.matmul %481, %32, %cst_131 {dimension_numbers = #tpu.dot_dimension_numbers<[1], [0], [0], [1], [0, 0, 1, 1], [], []>} : vector<8x32xbf16>, vector<32x32xbf16>, vector<8x32xf32> -> vector<8x32xf32>
    %487 = arith.addf %485, %486 : vector<8x32xf32>
    %488 = vector.extract_strided_slice %21 {offsets = [104, 0], sizes = [8, 32], strides = [1, 1]} : vector<192x32xf32> to vector<8x32xf32>
    %cst_132 = arith.constant dense<0.000000e+00> : vector<8x32xf32>
    %489 = tpu.matmul %481, %34, %cst_132 {dimension_numbers = #tpu.dot_dimension_numbers<[1], [0], [0], [1], [0, 0, 1, 1], [], []>} : vector<8x32xbf16>, vector<32x32xbf16>, vector<8x32xf32> -> vector<8x32xf32>
    %490 = arith.addf %488, %489 : vector<8x32xf32>
    %491 = vector.extract_strided_slice %28 {offsets = [104, 0], sizes = [8, 32], strides = [1, 1]} : vector<192x32xf32> to vector<8x32xf32>
    %cst_133 = arith.constant dense<0.000000e+00> : vector<8x32xf32>
    %492 = tpu.matmul %481, %36, %cst_133 {dimension_numbers = #tpu.dot_dimension_numbers<[1], [0], [0], [1], [0, 0, 1, 1], [], []>} : vector<8x32xbf16>, vector<32x32xbf16>, vector<8x32xf32> -> vector<8x32xf32>
    %493 = arith.addf %491, %492 : vector<8x32xf32>
    %494 = arith.negf %487 : vector<8x32xf32>
    %495 = math.exp %494 : vector<8x32xf32>
    %cst_134 = arith.constant 1.000000e+00 : f32
    %496 = vector.broadcast %cst_134 : f32 to vector<8x32xf32>
    %497 = arith.addf %496, %495 : vector<8x32xf32>
    %498 = arith.divf %496, %497 : vector<8x32xf32>
    %499 = arith.mulf %498, %473 : vector<8x32xf32>
    %500 = arith.negf %484 : vector<8x32xf32>
    %501 = math.exp %500 : vector<8x32xf32>
    %cst_135 = arith.constant 1.000000e+00 : f32
    %502 = vector.broadcast %cst_135 : f32 to vector<8x32xf32>
    %503 = arith.addf %502, %501 : vector<8x32xf32>
    %504 = arith.divf %502, %503 : vector<8x32xf32>
    %505 = math.tanh %490 : vector<8x32xf32>
    %506 = arith.mulf %504, %505 : vector<8x32xf32>
    %507 = arith.addf %499, %506 : vector<8x32xf32>
    %508 = arith.negf %493 : vector<8x32xf32>
    %509 = math.exp %508 : vector<8x32xf32>
    %cst_136 = arith.constant 1.000000e+00 : f32
    %510 = vector.broadcast %cst_136 : f32 to vector<8x32xf32>
    %511 = arith.addf %510, %509 : vector<8x32xf32>
    %512 = arith.divf %510, %511 : vector<8x32xf32>
    %513 = math.tanh %507 : vector<8x32xf32>
    %514 = arith.mulf %512, %513 : vector<8x32xf32>
    %515 = arith.truncf %514 : vector<8x32xf32> to vector<8x32xbf16>
    %516 = vector.extract_strided_slice %7 {offsets = [112, 0], sizes = [8, 32], strides = [1, 1]} : vector<192x32xf32> to vector<8x32xf32>
    %cst_137 = arith.constant dense<0.000000e+00> : vector<8x32xf32>
    %517 = tpu.matmul %515, %30, %cst_137 {dimension_numbers = #tpu.dot_dimension_numbers<[1], [0], [0], [1], [0, 0, 1, 1], [], []>} : vector<8x32xbf16>, vector<32x32xbf16>, vector<8x32xf32> -> vector<8x32xf32>
    %518 = arith.addf %516, %517 : vector<8x32xf32>
    %519 = vector.extract_strided_slice %14 {offsets = [112, 0], sizes = [8, 32], strides = [1, 1]} : vector<192x32xf32> to vector<8x32xf32>
    %cst_138 = arith.constant dense<0.000000e+00> : vector<8x32xf32>
    %520 = tpu.matmul %515, %32, %cst_138 {dimension_numbers = #tpu.dot_dimension_numbers<[1], [0], [0], [1], [0, 0, 1, 1], [], []>} : vector<8x32xbf16>, vector<32x32xbf16>, vector<8x32xf32> -> vector<8x32xf32>
    %521 = arith.addf %519, %520 : vector<8x32xf32>
    %522 = vector.extract_strided_slice %21 {offsets = [112, 0], sizes = [8, 32], strides = [1, 1]} : vector<192x32xf32> to vector<8x32xf32>
    %cst_139 = arith.constant dense<0.000000e+00> : vector<8x32xf32>
    %523 = tpu.matmul %515, %34, %cst_139 {dimension_numbers = #tpu.dot_dimension_numbers<[1], [0], [0], [1], [0, 0, 1, 1], [], []>} : vector<8x32xbf16>, vector<32x32xbf16>, vector<8x32xf32> -> vector<8x32xf32>
    %524 = arith.addf %522, %523 : vector<8x32xf32>
    %525 = vector.extract_strided_slice %28 {offsets = [112, 0], sizes = [8, 32], strides = [1, 1]} : vector<192x32xf32> to vector<8x32xf32>
    %cst_140 = arith.constant dense<0.000000e+00> : vector<8x32xf32>
    %526 = tpu.matmul %515, %36, %cst_140 {dimension_numbers = #tpu.dot_dimension_numbers<[1], [0], [0], [1], [0, 0, 1, 1], [], []>} : vector<8x32xbf16>, vector<32x32xbf16>, vector<8x32xf32> -> vector<8x32xf32>
    %527 = arith.addf %525, %526 : vector<8x32xf32>
    %528 = arith.negf %521 : vector<8x32xf32>
    %529 = math.exp %528 : vector<8x32xf32>
    %cst_141 = arith.constant 1.000000e+00 : f32
    %530 = vector.broadcast %cst_141 : f32 to vector<8x32xf32>
    %531 = arith.addf %530, %529 : vector<8x32xf32>
    %532 = arith.divf %530, %531 : vector<8x32xf32>
    %533 = arith.mulf %532, %507 : vector<8x32xf32>
    %534 = arith.negf %518 : vector<8x32xf32>
    %535 = math.exp %534 : vector<8x32xf32>
    %cst_142 = arith.constant 1.000000e+00 : f32
    %536 = vector.broadcast %cst_142 : f32 to vector<8x32xf32>
    %537 = arith.addf %536, %535 : vector<8x32xf32>
    %538 = arith.divf %536, %537 : vector<8x32xf32>
    %539 = math.tanh %524 : vector<8x32xf32>
    %540 = arith.mulf %538, %539 : vector<8x32xf32>
    %541 = arith.addf %533, %540 : vector<8x32xf32>
    %542 = arith.negf %527 : vector<8x32xf32>
    %543 = math.exp %542 : vector<8x32xf32>
    %cst_143 = arith.constant 1.000000e+00 : f32
    %544 = vector.broadcast %cst_143 : f32 to vector<8x32xf32>
    %545 = arith.addf %544, %543 : vector<8x32xf32>
    %546 = arith.divf %544, %545 : vector<8x32xf32>
    %547 = math.tanh %541 : vector<8x32xf32>
    %548 = arith.mulf %546, %547 : vector<8x32xf32>
    %549 = arith.truncf %548 : vector<8x32xf32> to vector<8x32xbf16>
    %550 = vector.extract_strided_slice %7 {offsets = [120, 0], sizes = [8, 32], strides = [1, 1]} : vector<192x32xf32> to vector<8x32xf32>
    %cst_144 = arith.constant dense<0.000000e+00> : vector<8x32xf32>
    %551 = tpu.matmul %549, %30, %cst_144 {dimension_numbers = #tpu.dot_dimension_numbers<[1], [0], [0], [1], [0, 0, 1, 1], [], []>} : vector<8x32xbf16>, vector<32x32xbf16>, vector<8x32xf32> -> vector<8x32xf32>
    %552 = arith.addf %550, %551 : vector<8x32xf32>
    %553 = vector.extract_strided_slice %14 {offsets = [120, 0], sizes = [8, 32], strides = [1, 1]} : vector<192x32xf32> to vector<8x32xf32>
    %cst_145 = arith.constant dense<0.000000e+00> : vector<8x32xf32>
    %554 = tpu.matmul %549, %32, %cst_145 {dimension_numbers = #tpu.dot_dimension_numbers<[1], [0], [0], [1], [0, 0, 1, 1], [], []>} : vector<8x32xbf16>, vector<32x32xbf16>, vector<8x32xf32> -> vector<8x32xf32>
    %555 = arith.addf %553, %554 : vector<8x32xf32>
    %556 = vector.extract_strided_slice %21 {offsets = [120, 0], sizes = [8, 32], strides = [1, 1]} : vector<192x32xf32> to vector<8x32xf32>
    %cst_146 = arith.constant dense<0.000000e+00> : vector<8x32xf32>
    %557 = tpu.matmul %549, %34, %cst_146 {dimension_numbers = #tpu.dot_dimension_numbers<[1], [0], [0], [1], [0, 0, 1, 1], [], []>} : vector<8x32xbf16>, vector<32x32xbf16>, vector<8x32xf32> -> vector<8x32xf32>
    %558 = arith.addf %556, %557 : vector<8x32xf32>
    %559 = vector.extract_strided_slice %28 {offsets = [120, 0], sizes = [8, 32], strides = [1, 1]} : vector<192x32xf32> to vector<8x32xf32>
    %cst_147 = arith.constant dense<0.000000e+00> : vector<8x32xf32>
    %560 = tpu.matmul %549, %36, %cst_147 {dimension_numbers = #tpu.dot_dimension_numbers<[1], [0], [0], [1], [0, 0, 1, 1], [], []>} : vector<8x32xbf16>, vector<32x32xbf16>, vector<8x32xf32> -> vector<8x32xf32>
    %561 = arith.addf %559, %560 : vector<8x32xf32>
    %562 = arith.negf %555 : vector<8x32xf32>
    %563 = math.exp %562 : vector<8x32xf32>
    %cst_148 = arith.constant 1.000000e+00 : f32
    %564 = vector.broadcast %cst_148 : f32 to vector<8x32xf32>
    %565 = arith.addf %564, %563 : vector<8x32xf32>
    %566 = arith.divf %564, %565 : vector<8x32xf32>
    %567 = arith.mulf %566, %541 : vector<8x32xf32>
    %568 = arith.negf %552 : vector<8x32xf32>
    %569 = math.exp %568 : vector<8x32xf32>
    %cst_149 = arith.constant 1.000000e+00 : f32
    %570 = vector.broadcast %cst_149 : f32 to vector<8x32xf32>
    %571 = arith.addf %570, %569 : vector<8x32xf32>
    %572 = arith.divf %570, %571 : vector<8x32xf32>
    %573 = math.tanh %558 : vector<8x32xf32>
    %574 = arith.mulf %572, %573 : vector<8x32xf32>
    %575 = arith.addf %567, %574 : vector<8x32xf32>
    %576 = arith.negf %561 : vector<8x32xf32>
    %577 = math.exp %576 : vector<8x32xf32>
    %cst_150 = arith.constant 1.000000e+00 : f32
    %578 = vector.broadcast %cst_150 : f32 to vector<8x32xf32>
    %579 = arith.addf %578, %577 : vector<8x32xf32>
    %580 = arith.divf %578, %579 : vector<8x32xf32>
    %581 = math.tanh %575 : vector<8x32xf32>
    %582 = arith.mulf %580, %581 : vector<8x32xf32>
    %583 = arith.truncf %582 : vector<8x32xf32> to vector<8x32xbf16>
    %584 = vector.extract_strided_slice %7 {offsets = [128, 0], sizes = [8, 32], strides = [1, 1]} : vector<192x32xf32> to vector<8x32xf32>
    %cst_151 = arith.constant dense<0.000000e+00> : vector<8x32xf32>
    %585 = tpu.matmul %583, %30, %cst_151 {dimension_numbers = #tpu.dot_dimension_numbers<[1], [0], [0], [1], [0, 0, 1, 1], [], []>} : vector<8x32xbf16>, vector<32x32xbf16>, vector<8x32xf32> -> vector<8x32xf32>
    %586 = arith.addf %584, %585 : vector<8x32xf32>
    %587 = vector.extract_strided_slice %14 {offsets = [128, 0], sizes = [8, 32], strides = [1, 1]} : vector<192x32xf32> to vector<8x32xf32>
    %cst_152 = arith.constant dense<0.000000e+00> : vector<8x32xf32>
    %588 = tpu.matmul %583, %32, %cst_152 {dimension_numbers = #tpu.dot_dimension_numbers<[1], [0], [0], [1], [0, 0, 1, 1], [], []>} : vector<8x32xbf16>, vector<32x32xbf16>, vector<8x32xf32> -> vector<8x32xf32>
    %589 = arith.addf %587, %588 : vector<8x32xf32>
    %590 = vector.extract_strided_slice %21 {offsets = [128, 0], sizes = [8, 32], strides = [1, 1]} : vector<192x32xf32> to vector<8x32xf32>
    %cst_153 = arith.constant dense<0.000000e+00> : vector<8x32xf32>
    %591 = tpu.matmul %583, %34, %cst_153 {dimension_numbers = #tpu.dot_dimension_numbers<[1], [0], [0], [1], [0, 0, 1, 1], [], []>} : vector<8x32xbf16>, vector<32x32xbf16>, vector<8x32xf32> -> vector<8x32xf32>
    %592 = arith.addf %590, %591 : vector<8x32xf32>
    %593 = vector.extract_strided_slice %28 {offsets = [128, 0], sizes = [8, 32], strides = [1, 1]} : vector<192x32xf32> to vector<8x32xf32>
    %cst_154 = arith.constant dense<0.000000e+00> : vector<8x32xf32>
    %594 = tpu.matmul %583, %36, %cst_154 {dimension_numbers = #tpu.dot_dimension_numbers<[1], [0], [0], [1], [0, 0, 1, 1], [], []>} : vector<8x32xbf16>, vector<32x32xbf16>, vector<8x32xf32> -> vector<8x32xf32>
    %595 = arith.addf %593, %594 : vector<8x32xf32>
    %596 = arith.negf %589 : vector<8x32xf32>
    %597 = math.exp %596 : vector<8x32xf32>
    %cst_155 = arith.constant 1.000000e+00 : f32
    %598 = vector.broadcast %cst_155 : f32 to vector<8x32xf32>
    %599 = arith.addf %598, %597 : vector<8x32xf32>
    %600 = arith.divf %598, %599 : vector<8x32xf32>
    %601 = arith.mulf %600, %575 : vector<8x32xf32>
    %602 = arith.negf %586 : vector<8x32xf32>
    %603 = math.exp %602 : vector<8x32xf32>
    %cst_156 = arith.constant 1.000000e+00 : f32
    %604 = vector.broadcast %cst_156 : f32 to vector<8x32xf32>
    %605 = arith.addf %604, %603 : vector<8x32xf32>
    %606 = arith.divf %604, %605 : vector<8x32xf32>
    %607 = math.tanh %592 : vector<8x32xf32>
    %608 = arith.mulf %606, %607 : vector<8x32xf32>
    %609 = arith.addf %601, %608 : vector<8x32xf32>
    %610 = arith.negf %595 : vector<8x32xf32>
    %611 = math.exp %610 : vector<8x32xf32>
    %cst_157 = arith.constant 1.000000e+00 : f32
    %612 = vector.broadcast %cst_157 : f32 to vector<8x32xf32>
    %613 = arith.addf %612, %611 : vector<8x32xf32>
    %614 = arith.divf %612, %613 : vector<8x32xf32>
    %615 = math.tanh %609 : vector<8x32xf32>
    %616 = arith.mulf %614, %615 : vector<8x32xf32>
    %617 = arith.truncf %616 : vector<8x32xf32> to vector<8x32xbf16>
    %618 = vector.extract_strided_slice %7 {offsets = [136, 0], sizes = [8, 32], strides = [1, 1]} : vector<192x32xf32> to vector<8x32xf32>
    %cst_158 = arith.constant dense<0.000000e+00> : vector<8x32xf32>
    %619 = tpu.matmul %617, %30, %cst_158 {dimension_numbers = #tpu.dot_dimension_numbers<[1], [0], [0], [1], [0, 0, 1, 1], [], []>} : vector<8x32xbf16>, vector<32x32xbf16>, vector<8x32xf32> -> vector<8x32xf32>
    %620 = arith.addf %618, %619 : vector<8x32xf32>
    %621 = vector.extract_strided_slice %14 {offsets = [136, 0], sizes = [8, 32], strides = [1, 1]} : vector<192x32xf32> to vector<8x32xf32>
    %cst_159 = arith.constant dense<0.000000e+00> : vector<8x32xf32>
    %622 = tpu.matmul %617, %32, %cst_159 {dimension_numbers = #tpu.dot_dimension_numbers<[1], [0], [0], [1], [0, 0, 1, 1], [], []>} : vector<8x32xbf16>, vector<32x32xbf16>, vector<8x32xf32> -> vector<8x32xf32>
    %623 = arith.addf %621, %622 : vector<8x32xf32>
    %624 = vector.extract_strided_slice %21 {offsets = [136, 0], sizes = [8, 32], strides = [1, 1]} : vector<192x32xf32> to vector<8x32xf32>
    %cst_160 = arith.constant dense<0.000000e+00> : vector<8x32xf32>
    %625 = tpu.matmul %617, %34, %cst_160 {dimension_numbers = #tpu.dot_dimension_numbers<[1], [0], [0], [1], [0, 0, 1, 1], [], []>} : vector<8x32xbf16>, vector<32x32xbf16>, vector<8x32xf32> -> vector<8x32xf32>
    %626 = arith.addf %624, %625 : vector<8x32xf32>
    %627 = vector.extract_strided_slice %28 {offsets = [136, 0], sizes = [8, 32], strides = [1, 1]} : vector<192x32xf32> to vector<8x32xf32>
    %cst_161 = arith.constant dense<0.000000e+00> : vector<8x32xf32>
    %628 = tpu.matmul %617, %36, %cst_161 {dimension_numbers = #tpu.dot_dimension_numbers<[1], [0], [0], [1], [0, 0, 1, 1], [], []>} : vector<8x32xbf16>, vector<32x32xbf16>, vector<8x32xf32> -> vector<8x32xf32>
    %629 = arith.addf %627, %628 : vector<8x32xf32>
    %630 = arith.negf %623 : vector<8x32xf32>
    %631 = math.exp %630 : vector<8x32xf32>
    %cst_162 = arith.constant 1.000000e+00 : f32
    %632 = vector.broadcast %cst_162 : f32 to vector<8x32xf32>
    %633 = arith.addf %632, %631 : vector<8x32xf32>
    %634 = arith.divf %632, %633 : vector<8x32xf32>
    %635 = arith.mulf %634, %609 : vector<8x32xf32>
    %636 = arith.negf %620 : vector<8x32xf32>
    %637 = math.exp %636 : vector<8x32xf32>
    %cst_163 = arith.constant 1.000000e+00 : f32
    %638 = vector.broadcast %cst_163 : f32 to vector<8x32xf32>
    %639 = arith.addf %638, %637 : vector<8x32xf32>
    %640 = arith.divf %638, %639 : vector<8x32xf32>
    %641 = math.tanh %626 : vector<8x32xf32>
    %642 = arith.mulf %640, %641 : vector<8x32xf32>
    %643 = arith.addf %635, %642 : vector<8x32xf32>
    %644 = arith.negf %629 : vector<8x32xf32>
    %645 = math.exp %644 : vector<8x32xf32>
    %cst_164 = arith.constant 1.000000e+00 : f32
    %646 = vector.broadcast %cst_164 : f32 to vector<8x32xf32>
    %647 = arith.addf %646, %645 : vector<8x32xf32>
    %648 = arith.divf %646, %647 : vector<8x32xf32>
    %649 = math.tanh %643 : vector<8x32xf32>
    %650 = arith.mulf %648, %649 : vector<8x32xf32>
    %651 = arith.truncf %650 : vector<8x32xf32> to vector<8x32xbf16>
    %652 = vector.extract_strided_slice %7 {offsets = [144, 0], sizes = [8, 32], strides = [1, 1]} : vector<192x32xf32> to vector<8x32xf32>
    %cst_165 = arith.constant dense<0.000000e+00> : vector<8x32xf32>
    %653 = tpu.matmul %651, %30, %cst_165 {dimension_numbers = #tpu.dot_dimension_numbers<[1], [0], [0], [1], [0, 0, 1, 1], [], []>} : vector<8x32xbf16>, vector<32x32xbf16>, vector<8x32xf32> -> vector<8x32xf32>
    %654 = arith.addf %652, %653 : vector<8x32xf32>
    %655 = vector.extract_strided_slice %14 {offsets = [144, 0], sizes = [8, 32], strides = [1, 1]} : vector<192x32xf32> to vector<8x32xf32>
    %cst_166 = arith.constant dense<0.000000e+00> : vector<8x32xf32>
    %656 = tpu.matmul %651, %32, %cst_166 {dimension_numbers = #tpu.dot_dimension_numbers<[1], [0], [0], [1], [0, 0, 1, 1], [], []>} : vector<8x32xbf16>, vector<32x32xbf16>, vector<8x32xf32> -> vector<8x32xf32>
    %657 = arith.addf %655, %656 : vector<8x32xf32>
    %658 = vector.extract_strided_slice %21 {offsets = [144, 0], sizes = [8, 32], strides = [1, 1]} : vector<192x32xf32> to vector<8x32xf32>
    %cst_167 = arith.constant dense<0.000000e+00> : vector<8x32xf32>
    %659 = tpu.matmul %651, %34, %cst_167 {dimension_numbers = #tpu.dot_dimension_numbers<[1], [0], [0], [1], [0, 0, 1, 1], [], []>} : vector<8x32xbf16>, vector<32x32xbf16>, vector<8x32xf32> -> vector<8x32xf32>
    %660 = arith.addf %658, %659 : vector<8x32xf32>
    %661 = vector.extract_strided_slice %28 {offsets = [144, 0], sizes = [8, 32], strides = [1, 1]} : vector<192x32xf32> to vector<8x32xf32>
    %cst_168 = arith.constant dense<0.000000e+00> : vector<8x32xf32>
    %662 = tpu.matmul %651, %36, %cst_168 {dimension_numbers = #tpu.dot_dimension_numbers<[1], [0], [0], [1], [0, 0, 1, 1], [], []>} : vector<8x32xbf16>, vector<32x32xbf16>, vector<8x32xf32> -> vector<8x32xf32>
    %663 = arith.addf %661, %662 : vector<8x32xf32>
    %664 = arith.negf %657 : vector<8x32xf32>
    %665 = math.exp %664 : vector<8x32xf32>
    %cst_169 = arith.constant 1.000000e+00 : f32
    %666 = vector.broadcast %cst_169 : f32 to vector<8x32xf32>
    %667 = arith.addf %666, %665 : vector<8x32xf32>
    %668 = arith.divf %666, %667 : vector<8x32xf32>
    %669 = arith.mulf %668, %643 : vector<8x32xf32>
    %670 = arith.negf %654 : vector<8x32xf32>
    %671 = math.exp %670 : vector<8x32xf32>
    %cst_170 = arith.constant 1.000000e+00 : f32
    %672 = vector.broadcast %cst_170 : f32 to vector<8x32xf32>
    %673 = arith.addf %672, %671 : vector<8x32xf32>
    %674 = arith.divf %672, %673 : vector<8x32xf32>
    %675 = math.tanh %660 : vector<8x32xf32>
    %676 = arith.mulf %674, %675 : vector<8x32xf32>
    %677 = arith.addf %669, %676 : vector<8x32xf32>
    %678 = arith.negf %663 : vector<8x32xf32>
    %679 = math.exp %678 : vector<8x32xf32>
    %cst_171 = arith.constant 1.000000e+00 : f32
    %680 = vector.broadcast %cst_171 : f32 to vector<8x32xf32>
    %681 = arith.addf %680, %679 : vector<8x32xf32>
    %682 = arith.divf %680, %681 : vector<8x32xf32>
    %683 = math.tanh %677 : vector<8x32xf32>
    %684 = arith.mulf %682, %683 : vector<8x32xf32>
    %685 = arith.truncf %684 : vector<8x32xf32> to vector<8x32xbf16>
    %686 = vector.extract_strided_slice %7 {offsets = [152, 0], sizes = [8, 32], strides = [1, 1]} : vector<192x32xf32> to vector<8x32xf32>
    %cst_172 = arith.constant dense<0.000000e+00> : vector<8x32xf32>
    %687 = tpu.matmul %685, %30, %cst_172 {dimension_numbers = #tpu.dot_dimension_numbers<[1], [0], [0], [1], [0, 0, 1, 1], [], []>} : vector<8x32xbf16>, vector<32x32xbf16>, vector<8x32xf32> -> vector<8x32xf32>
    %688 = arith.addf %686, %687 : vector<8x32xf32>
    %689 = vector.extract_strided_slice %14 {offsets = [152, 0], sizes = [8, 32], strides = [1, 1]} : vector<192x32xf32> to vector<8x32xf32>
    %cst_173 = arith.constant dense<0.000000e+00> : vector<8x32xf32>
    %690 = tpu.matmul %685, %32, %cst_173 {dimension_numbers = #tpu.dot_dimension_numbers<[1], [0], [0], [1], [0, 0, 1, 1], [], []>} : vector<8x32xbf16>, vector<32x32xbf16>, vector<8x32xf32> -> vector<8x32xf32>
    %691 = arith.addf %689, %690 : vector<8x32xf32>
    %692 = vector.extract_strided_slice %21 {offsets = [152, 0], sizes = [8, 32], strides = [1, 1]} : vector<192x32xf32> to vector<8x32xf32>
    %cst_174 = arith.constant dense<0.000000e+00> : vector<8x32xf32>
    %693 = tpu.matmul %685, %34, %cst_174 {dimension_numbers = #tpu.dot_dimension_numbers<[1], [0], [0], [1], [0, 0, 1, 1], [], []>} : vector<8x32xbf16>, vector<32x32xbf16>, vector<8x32xf32> -> vector<8x32xf32>
    %694 = arith.addf %692, %693 : vector<8x32xf32>
    %695 = vector.extract_strided_slice %28 {offsets = [152, 0], sizes = [8, 32], strides = [1, 1]} : vector<192x32xf32> to vector<8x32xf32>
    %cst_175 = arith.constant dense<0.000000e+00> : vector<8x32xf32>
    %696 = tpu.matmul %685, %36, %cst_175 {dimension_numbers = #tpu.dot_dimension_numbers<[1], [0], [0], [1], [0, 0, 1, 1], [], []>} : vector<8x32xbf16>, vector<32x32xbf16>, vector<8x32xf32> -> vector<8x32xf32>
    %697 = arith.addf %695, %696 : vector<8x32xf32>
    %698 = arith.negf %691 : vector<8x32xf32>
    %699 = math.exp %698 : vector<8x32xf32>
    %cst_176 = arith.constant 1.000000e+00 : f32
    %700 = vector.broadcast %cst_176 : f32 to vector<8x32xf32>
    %701 = arith.addf %700, %699 : vector<8x32xf32>
    %702 = arith.divf %700, %701 : vector<8x32xf32>
    %703 = arith.mulf %702, %677 : vector<8x32xf32>
    %704 = arith.negf %688 : vector<8x32xf32>
    %705 = math.exp %704 : vector<8x32xf32>
    %cst_177 = arith.constant 1.000000e+00 : f32
    %706 = vector.broadcast %cst_177 : f32 to vector<8x32xf32>
    %707 = arith.addf %706, %705 : vector<8x32xf32>
    %708 = arith.divf %706, %707 : vector<8x32xf32>
    %709 = math.tanh %694 : vector<8x32xf32>
    %710 = arith.mulf %708, %709 : vector<8x32xf32>
    %711 = arith.addf %703, %710 : vector<8x32xf32>
    %712 = arith.negf %697 : vector<8x32xf32>
    %713 = math.exp %712 : vector<8x32xf32>
    %cst_178 = arith.constant 1.000000e+00 : f32
    %714 = vector.broadcast %cst_178 : f32 to vector<8x32xf32>
    %715 = arith.addf %714, %713 : vector<8x32xf32>
    %716 = arith.divf %714, %715 : vector<8x32xf32>
    %717 = math.tanh %711 : vector<8x32xf32>
    %718 = arith.mulf %716, %717 : vector<8x32xf32>
    %719 = arith.truncf %718 : vector<8x32xf32> to vector<8x32xbf16>
    %720 = vector.extract_strided_slice %7 {offsets = [160, 0], sizes = [8, 32], strides = [1, 1]} : vector<192x32xf32> to vector<8x32xf32>
    %cst_179 = arith.constant dense<0.000000e+00> : vector<8x32xf32>
    %721 = tpu.matmul %719, %30, %cst_179 {dimension_numbers = #tpu.dot_dimension_numbers<[1], [0], [0], [1], [0, 0, 1, 1], [], []>} : vector<8x32xbf16>, vector<32x32xbf16>, vector<8x32xf32> -> vector<8x32xf32>
    %722 = arith.addf %720, %721 : vector<8x32xf32>
    %723 = vector.extract_strided_slice %14 {offsets = [160, 0], sizes = [8, 32], strides = [1, 1]} : vector<192x32xf32> to vector<8x32xf32>
    %cst_180 = arith.constant dense<0.000000e+00> : vector<8x32xf32>
    %724 = tpu.matmul %719, %32, %cst_180 {dimension_numbers = #tpu.dot_dimension_numbers<[1], [0], [0], [1], [0, 0, 1, 1], [], []>} : vector<8x32xbf16>, vector<32x32xbf16>, vector<8x32xf32> -> vector<8x32xf32>
    %725 = arith.addf %723, %724 : vector<8x32xf32>
    %726 = vector.extract_strided_slice %21 {offsets = [160, 0], sizes = [8, 32], strides = [1, 1]} : vector<192x32xf32> to vector<8x32xf32>
    %cst_181 = arith.constant dense<0.000000e+00> : vector<8x32xf32>
    %727 = tpu.matmul %719, %34, %cst_181 {dimension_numbers = #tpu.dot_dimension_numbers<[1], [0], [0], [1], [0, 0, 1, 1], [], []>} : vector<8x32xbf16>, vector<32x32xbf16>, vector<8x32xf32> -> vector<8x32xf32>
    %728 = arith.addf %726, %727 : vector<8x32xf32>
    %729 = vector.extract_strided_slice %28 {offsets = [160, 0], sizes = [8, 32], strides = [1, 1]} : vector<192x32xf32> to vector<8x32xf32>
    %cst_182 = arith.constant dense<0.000000e+00> : vector<8x32xf32>
    %730 = tpu.matmul %719, %36, %cst_182 {dimension_numbers = #tpu.dot_dimension_numbers<[1], [0], [0], [1], [0, 0, 1, 1], [], []>} : vector<8x32xbf16>, vector<32x32xbf16>, vector<8x32xf32> -> vector<8x32xf32>
    %731 = arith.addf %729, %730 : vector<8x32xf32>
    %732 = arith.negf %725 : vector<8x32xf32>
    %733 = math.exp %732 : vector<8x32xf32>
    %cst_183 = arith.constant 1.000000e+00 : f32
    %734 = vector.broadcast %cst_183 : f32 to vector<8x32xf32>
    %735 = arith.addf %734, %733 : vector<8x32xf32>
    %736 = arith.divf %734, %735 : vector<8x32xf32>
    %737 = arith.mulf %736, %711 : vector<8x32xf32>
    %738 = arith.negf %722 : vector<8x32xf32>
    %739 = math.exp %738 : vector<8x32xf32>
    %cst_184 = arith.constant 1.000000e+00 : f32
    %740 = vector.broadcast %cst_184 : f32 to vector<8x32xf32>
    %741 = arith.addf %740, %739 : vector<8x32xf32>
    %742 = arith.divf %740, %741 : vector<8x32xf32>
    %743 = math.tanh %728 : vector<8x32xf32>
    %744 = arith.mulf %742, %743 : vector<8x32xf32>
    %745 = arith.addf %737, %744 : vector<8x32xf32>
    %746 = arith.negf %731 : vector<8x32xf32>
    %747 = math.exp %746 : vector<8x32xf32>
    %cst_185 = arith.constant 1.000000e+00 : f32
    %748 = vector.broadcast %cst_185 : f32 to vector<8x32xf32>
    %749 = arith.addf %748, %747 : vector<8x32xf32>
    %750 = arith.divf %748, %749 : vector<8x32xf32>
    %751 = math.tanh %745 : vector<8x32xf32>
    %752 = arith.mulf %750, %751 : vector<8x32xf32>
    %753 = arith.truncf %752 : vector<8x32xf32> to vector<8x32xbf16>
    %754 = vector.extract_strided_slice %7 {offsets = [168, 0], sizes = [8, 32], strides = [1, 1]} : vector<192x32xf32> to vector<8x32xf32>
    %cst_186 = arith.constant dense<0.000000e+00> : vector<8x32xf32>
    %755 = tpu.matmul %753, %30, %cst_186 {dimension_numbers = #tpu.dot_dimension_numbers<[1], [0], [0], [1], [0, 0, 1, 1], [], []>} : vector<8x32xbf16>, vector<32x32xbf16>, vector<8x32xf32> -> vector<8x32xf32>
    %756 = arith.addf %754, %755 : vector<8x32xf32>
    %757 = vector.extract_strided_slice %14 {offsets = [168, 0], sizes = [8, 32], strides = [1, 1]} : vector<192x32xf32> to vector<8x32xf32>
    %cst_187 = arith.constant dense<0.000000e+00> : vector<8x32xf32>
    %758 = tpu.matmul %753, %32, %cst_187 {dimension_numbers = #tpu.dot_dimension_numbers<[1], [0], [0], [1], [0, 0, 1, 1], [], []>} : vector<8x32xbf16>, vector<32x32xbf16>, vector<8x32xf32> -> vector<8x32xf32>
    %759 = arith.addf %757, %758 : vector<8x32xf32>
    %760 = vector.extract_strided_slice %21 {offsets = [168, 0], sizes = [8, 32], strides = [1, 1]} : vector<192x32xf32> to vector<8x32xf32>
    %cst_188 = arith.constant dense<0.000000e+00> : vector<8x32xf32>
    %761 = tpu.matmul %753, %34, %cst_188 {dimension_numbers = #tpu.dot_dimension_numbers<[1], [0], [0], [1], [0, 0, 1, 1], [], []>} : vector<8x32xbf16>, vector<32x32xbf16>, vector<8x32xf32> -> vector<8x32xf32>
    %762 = arith.addf %760, %761 : vector<8x32xf32>
    %763 = vector.extract_strided_slice %28 {offsets = [168, 0], sizes = [8, 32], strides = [1, 1]} : vector<192x32xf32> to vector<8x32xf32>
    %cst_189 = arith.constant dense<0.000000e+00> : vector<8x32xf32>
    %764 = tpu.matmul %753, %36, %cst_189 {dimension_numbers = #tpu.dot_dimension_numbers<[1], [0], [0], [1], [0, 0, 1, 1], [], []>} : vector<8x32xbf16>, vector<32x32xbf16>, vector<8x32xf32> -> vector<8x32xf32>
    %765 = arith.addf %763, %764 : vector<8x32xf32>
    %766 = arith.negf %759 : vector<8x32xf32>
    %767 = math.exp %766 : vector<8x32xf32>
    %cst_190 = arith.constant 1.000000e+00 : f32
    %768 = vector.broadcast %cst_190 : f32 to vector<8x32xf32>
    %769 = arith.addf %768, %767 : vector<8x32xf32>
    %770 = arith.divf %768, %769 : vector<8x32xf32>
    %771 = arith.mulf %770, %745 : vector<8x32xf32>
    %772 = arith.negf %756 : vector<8x32xf32>
    %773 = math.exp %772 : vector<8x32xf32>
    %cst_191 = arith.constant 1.000000e+00 : f32
    %774 = vector.broadcast %cst_191 : f32 to vector<8x32xf32>
    %775 = arith.addf %774, %773 : vector<8x32xf32>
    %776 = arith.divf %774, %775 : vector<8x32xf32>
    %777 = math.tanh %762 : vector<8x32xf32>
    %778 = arith.mulf %776, %777 : vector<8x32xf32>
    %779 = arith.addf %771, %778 : vector<8x32xf32>
    %780 = arith.negf %765 : vector<8x32xf32>
    %781 = math.exp %780 : vector<8x32xf32>
    %cst_192 = arith.constant 1.000000e+00 : f32
    %782 = vector.broadcast %cst_192 : f32 to vector<8x32xf32>
    %783 = arith.addf %782, %781 : vector<8x32xf32>
    %784 = arith.divf %782, %783 : vector<8x32xf32>
    %785 = math.tanh %779 : vector<8x32xf32>
    %786 = arith.mulf %784, %785 : vector<8x32xf32>
    %787 = arith.truncf %786 : vector<8x32xf32> to vector<8x32xbf16>
    %788 = vector.extract_strided_slice %7 {offsets = [176, 0], sizes = [8, 32], strides = [1, 1]} : vector<192x32xf32> to vector<8x32xf32>
    %cst_193 = arith.constant dense<0.000000e+00> : vector<8x32xf32>
    %789 = tpu.matmul %787, %30, %cst_193 {dimension_numbers = #tpu.dot_dimension_numbers<[1], [0], [0], [1], [0, 0, 1, 1], [], []>} : vector<8x32xbf16>, vector<32x32xbf16>, vector<8x32xf32> -> vector<8x32xf32>
    %790 = arith.addf %788, %789 : vector<8x32xf32>
    %791 = vector.extract_strided_slice %14 {offsets = [176, 0], sizes = [8, 32], strides = [1, 1]} : vector<192x32xf32> to vector<8x32xf32>
    %cst_194 = arith.constant dense<0.000000e+00> : vector<8x32xf32>
    %792 = tpu.matmul %787, %32, %cst_194 {dimension_numbers = #tpu.dot_dimension_numbers<[1], [0], [0], [1], [0, 0, 1, 1], [], []>} : vector<8x32xbf16>, vector<32x32xbf16>, vector<8x32xf32> -> vector<8x32xf32>
    %793 = arith.addf %791, %792 : vector<8x32xf32>
    %794 = vector.extract_strided_slice %21 {offsets = [176, 0], sizes = [8, 32], strides = [1, 1]} : vector<192x32xf32> to vector<8x32xf32>
    %cst_195 = arith.constant dense<0.000000e+00> : vector<8x32xf32>
    %795 = tpu.matmul %787, %34, %cst_195 {dimension_numbers = #tpu.dot_dimension_numbers<[1], [0], [0], [1], [0, 0, 1, 1], [], []>} : vector<8x32xbf16>, vector<32x32xbf16>, vector<8x32xf32> -> vector<8x32xf32>
    %796 = arith.addf %794, %795 : vector<8x32xf32>
    %797 = vector.extract_strided_slice %28 {offsets = [176, 0], sizes = [8, 32], strides = [1, 1]} : vector<192x32xf32> to vector<8x32xf32>
    %cst_196 = arith.constant dense<0.000000e+00> : vector<8x32xf32>
    %798 = tpu.matmul %787, %36, %cst_196 {dimension_numbers = #tpu.dot_dimension_numbers<[1], [0], [0], [1], [0, 0, 1, 1], [], []>} : vector<8x32xbf16>, vector<32x32xbf16>, vector<8x32xf32> -> vector<8x32xf32>
    %799 = arith.addf %797, %798 : vector<8x32xf32>
    %800 = arith.negf %793 : vector<8x32xf32>
    %801 = math.exp %800 : vector<8x32xf32>
    %cst_197 = arith.constant 1.000000e+00 : f32
    %802 = vector.broadcast %cst_197 : f32 to vector<8x32xf32>
    %803 = arith.addf %802, %801 : vector<8x32xf32>
    %804 = arith.divf %802, %803 : vector<8x32xf32>
    %805 = arith.mulf %804, %779 : vector<8x32xf32>
    %806 = arith.negf %790 : vector<8x32xf32>
    %807 = math.exp %806 : vector<8x32xf32>
    %cst_198 = arith.constant 1.000000e+00 : f32
    %808 = vector.broadcast %cst_198 : f32 to vector<8x32xf32>
    %809 = arith.addf %808, %807 : vector<8x32xf32>
    %810 = arith.divf %808, %809 : vector<8x32xf32>
    %811 = math.tanh %796 : vector<8x32xf32>
    %812 = arith.mulf %810, %811 : vector<8x32xf32>
    %813 = arith.addf %805, %812 : vector<8x32xf32>
    %814 = arith.negf %799 : vector<8x32xf32>
    %815 = math.exp %814 : vector<8x32xf32>
    %cst_199 = arith.constant 1.000000e+00 : f32
    %816 = vector.broadcast %cst_199 : f32 to vector<8x32xf32>
    %817 = arith.addf %816, %815 : vector<8x32xf32>
    %818 = arith.divf %816, %817 : vector<8x32xf32>
    %819 = math.tanh %813 : vector<8x32xf32>
    %820 = arith.mulf %818, %819 : vector<8x32xf32>
    %821 = arith.truncf %820 : vector<8x32xf32> to vector<8x32xbf16>
    %822 = vector.extract_strided_slice %7 {offsets = [184, 0], sizes = [8, 32], strides = [1, 1]} : vector<192x32xf32> to vector<8x32xf32>
    %cst_200 = arith.constant dense<0.000000e+00> : vector<8x32xf32>
    %823 = tpu.matmul %821, %30, %cst_200 {dimension_numbers = #tpu.dot_dimension_numbers<[1], [0], [0], [1], [0, 0, 1, 1], [], []>} : vector<8x32xbf16>, vector<32x32xbf16>, vector<8x32xf32> -> vector<8x32xf32>
    %824 = arith.addf %822, %823 : vector<8x32xf32>
    %825 = vector.extract_strided_slice %14 {offsets = [184, 0], sizes = [8, 32], strides = [1, 1]} : vector<192x32xf32> to vector<8x32xf32>
    %cst_201 = arith.constant dense<0.000000e+00> : vector<8x32xf32>
    %826 = tpu.matmul %821, %32, %cst_201 {dimension_numbers = #tpu.dot_dimension_numbers<[1], [0], [0], [1], [0, 0, 1, 1], [], []>} : vector<8x32xbf16>, vector<32x32xbf16>, vector<8x32xf32> -> vector<8x32xf32>
    %827 = arith.addf %825, %826 : vector<8x32xf32>
    %828 = vector.extract_strided_slice %21 {offsets = [184, 0], sizes = [8, 32], strides = [1, 1]} : vector<192x32xf32> to vector<8x32xf32>
    %cst_202 = arith.constant dense<0.000000e+00> : vector<8x32xf32>
    %829 = tpu.matmul %821, %34, %cst_202 {dimension_numbers = #tpu.dot_dimension_numbers<[1], [0], [0], [1], [0, 0, 1, 1], [], []>} : vector<8x32xbf16>, vector<32x32xbf16>, vector<8x32xf32> -> vector<8x32xf32>
    %830 = arith.addf %828, %829 : vector<8x32xf32>
    %831 = vector.extract_strided_slice %28 {offsets = [184, 0], sizes = [8, 32], strides = [1, 1]} : vector<192x32xf32> to vector<8x32xf32>
    %cst_203 = arith.constant dense<0.000000e+00> : vector<8x32xf32>
    %832 = tpu.matmul %821, %36, %cst_203 {dimension_numbers = #tpu.dot_dimension_numbers<[1], [0], [0], [1], [0, 0, 1, 1], [], []>} : vector<8x32xbf16>, vector<32x32xbf16>, vector<8x32xf32> -> vector<8x32xf32>
    %833 = arith.addf %831, %832 : vector<8x32xf32>
    %834 = arith.negf %827 : vector<8x32xf32>
    %835 = math.exp %834 : vector<8x32xf32>
    %cst_204 = arith.constant 1.000000e+00 : f32
    %836 = vector.broadcast %cst_204 : f32 to vector<8x32xf32>
    %837 = arith.addf %836, %835 : vector<8x32xf32>
    %838 = arith.divf %836, %837 : vector<8x32xf32>
    %839 = arith.mulf %838, %813 : vector<8x32xf32>
    %840 = arith.negf %824 : vector<8x32xf32>
    %841 = math.exp %840 : vector<8x32xf32>
    %cst_205 = arith.constant 1.000000e+00 : f32
    %842 = vector.broadcast %cst_205 : f32 to vector<8x32xf32>
    %843 = arith.addf %842, %841 : vector<8x32xf32>
    %844 = arith.divf %842, %843 : vector<8x32xf32>
    %845 = math.tanh %830 : vector<8x32xf32>
    %846 = arith.mulf %844, %845 : vector<8x32xf32>
    %847 = arith.addf %839, %846 : vector<8x32xf32>
    %848 = arith.negf %833 : vector<8x32xf32>
    %849 = math.exp %848 : vector<8x32xf32>
    %cst_206 = arith.constant 1.000000e+00 : f32
    %850 = vector.broadcast %cst_206 : f32 to vector<8x32xf32>
    %851 = arith.addf %850, %849 : vector<8x32xf32>
    %852 = arith.divf %850, %851 : vector<8x32xf32>
    %853 = math.tanh %847 : vector<8x32xf32>
    %854 = arith.mulf %852, %853 : vector<8x32xf32>
    %cst_207 = arith.constant 0.000000e+00 : f32
    %855 = vector.broadcast %cst_207 : f32 to vector<32x128xf32>
    %c0_208 = arith.constant 0 : index
    %c0_209 = arith.constant 0 : index
    %856 = vector.load %arg5[%c0_208, %c0_209] : memref<1x128xf32, #tpu.memory_space<vmem>>, vector<1x128xf32>
    %857 = vector.broadcast %856 : vector<1x128xf32> to vector<32x128xf32>
    %858 = arith.addf %855, %857 : vector<32x128xf32>
    %859 = tpu.concatenate %276, %276, %72, %208 in 0 : vector<8x32xf32>, vector<8x32xf32>, vector<8x32xf32>, vector<8x32xf32> -> vector<32x32xf32>
    %c0_210 = arith.constant 0 : index
    %c0_211 = arith.constant 0 : index
    %860 = vector.load %arg4[%c0_210, %c0_211] : memref<512x128xf32, #tpu.memory_space<vmem>>, vector<32x128xf32>
    %cst_212 = arith.constant dense<0.000000e+00> : vector<32x128xf32>
    %861 = tpu.matmul %859, %860, %cst_212 {dimension_numbers = #tpu.dot_dimension_numbers<[1], [0], [0], [1], [0, 0, 1, 1], [], []>} : vector<32x32xf32>, vector<32x128xf32>, vector<32x128xf32> -> vector<32x128xf32>
    %862 = arith.addf %858, %861 : vector<32x128xf32>
    %863 = tpu.concatenate %310, %310, %106, %242 in 0 : vector<8x32xf32>, vector<8x32xf32>, vector<8x32xf32>, vector<8x32xf32> -> vector<32x32xf32>
    %c32 = arith.constant 32 : index
    %c0_213 = arith.constant 0 : index
    %864 = vector.load %arg4[%c32, %c0_213] : memref<512x128xf32, #tpu.memory_space<vmem>>, vector<32x128xf32>
    %cst_214 = arith.constant dense<0.000000e+00> : vector<32x128xf32>
    %865 = tpu.matmul %863, %864, %cst_214 {dimension_numbers = #tpu.dot_dimension_numbers<[1], [0], [0], [1], [0, 0, 1, 1], [], []>} : vector<32x32xf32>, vector<32x128xf32>, vector<32x128xf32> -> vector<32x128xf32>
    %866 = arith.addf %862, %865 : vector<32x128xf32>
    %867 = tpu.concatenate %344, %344, %140, %276 in 0 : vector<8x32xf32>, vector<8x32xf32>, vector<8x32xf32>, vector<8x32xf32> -> vector<32x32xf32>
    %c64 = arith.constant 64 : index
    %c0_215 = arith.constant 0 : index
    %868 = vector.load %arg4[%c64, %c0_215] : memref<512x128xf32, #tpu.memory_space<vmem>>, vector<32x128xf32>
    %cst_216 = arith.constant dense<0.000000e+00> : vector<32x128xf32>
    %869 = tpu.matmul %867, %868, %cst_216 {dimension_numbers = #tpu.dot_dimension_numbers<[1], [0], [0], [1], [0, 0, 1, 1], [], []>} : vector<32x32xf32>, vector<32x128xf32>, vector<32x128xf32> -> vector<32x128xf32>
    %870 = arith.addf %866, %869 : vector<32x128xf32>
    %871 = tpu.concatenate %378, %378, %174, %310 in 0 : vector<8x32xf32>, vector<8x32xf32>, vector<8x32xf32>, vector<8x32xf32> -> vector<32x32xf32>
    %c96 = arith.constant 96 : index
    %c0_217 = arith.constant 0 : index
    %872 = vector.load %arg4[%c96, %c0_217] : memref<512x128xf32, #tpu.memory_space<vmem>>, vector<32x128xf32>
    %cst_218 = arith.constant dense<0.000000e+00> : vector<32x128xf32>
    %873 = tpu.matmul %871, %872, %cst_218 {dimension_numbers = #tpu.dot_dimension_numbers<[1], [0], [0], [1], [0, 0, 1, 1], [], []>} : vector<32x32xf32>, vector<32x128xf32>, vector<32x128xf32> -> vector<32x128xf32>
    %874 = arith.addf %870, %873 : vector<32x128xf32>
    %875 = tpu.concatenate %412, %412, %208, %344 in 0 : vector<8x32xf32>, vector<8x32xf32>, vector<8x32xf32>, vector<8x32xf32> -> vector<32x32xf32>
    %c128 = arith.constant 128 : index
    %c0_219 = arith.constant 0 : index
    %876 = vector.load %arg4[%c128, %c0_219] : memref<512x128xf32, #tpu.memory_space<vmem>>, vector<32x128xf32>
    %cst_220 = arith.constant dense<0.000000e+00> : vector<32x128xf32>
    %877 = tpu.matmul %875, %876, %cst_220 {dimension_numbers = #tpu.dot_dimension_numbers<[1], [0], [0], [1], [0, 0, 1, 1], [], []>} : vector<32x32xf32>, vector<32x128xf32>, vector<32x128xf32> -> vector<32x128xf32>
    %878 = arith.addf %874, %877 : vector<32x128xf32>
    %879 = tpu.concatenate %446, %446, %242, %378 in 0 : vector<8x32xf32>, vector<8x32xf32>, vector<8x32xf32>, vector<8x32xf32> -> vector<32x32xf32>
    %c160 = arith.constant 160 : index
    %c0_221 = arith.constant 0 : index
    %880 = vector.load %arg4[%c160, %c0_221] : memref<512x128xf32, #tpu.memory_space<vmem>>, vector<32x128xf32>
    %cst_222 = arith.constant dense<0.000000e+00> : vector<32x128xf32>
    %881 = tpu.matmul %879, %880, %cst_222 {dimension_numbers = #tpu.dot_dimension_numbers<[1], [0], [0], [1], [0, 0, 1, 1], [], []>} : vector<32x32xf32>, vector<32x128xf32>, vector<32x128xf32> -> vector<32x128xf32>
    %882 = arith.addf %878, %881 : vector<32x128xf32>
    %883 = tpu.concatenate %480, %480, %276, %412 in 0 : vector<8x32xf32>, vector<8x32xf32>, vector<8x32xf32>, vector<8x32xf32> -> vector<32x32xf32>
    %c192 = arith.constant 192 : index
    %c0_223 = arith.constant 0 : index
    %884 = vector.load %arg4[%c192, %c0_223] : memref<512x128xf32, #tpu.memory_space<vmem>>, vector<32x128xf32>
    %cst_224 = arith.constant dense<0.000000e+00> : vector<32x128xf32>
    %885 = tpu.matmul %883, %884, %cst_224 {dimension_numbers = #tpu.dot_dimension_numbers<[1], [0], [0], [1], [0, 0, 1, 1], [], []>} : vector<32x32xf32>, vector<32x128xf32>, vector<32x128xf32> -> vector<32x128xf32>
    %886 = arith.addf %882, %885 : vector<32x128xf32>
    %887 = tpu.concatenate %514, %514, %310, %446 in 0 : vector<8x32xf32>, vector<8x32xf32>, vector<8x32xf32>, vector<8x32xf32> -> vector<32x32xf32>
    %c224 = arith.constant 224 : index
    %c0_225 = arith.constant 0 : index
    %888 = vector.load %arg4[%c224, %c0_225] : memref<512x128xf32, #tpu.memory_space<vmem>>, vector<32x128xf32>
    %cst_226 = arith.constant dense<0.000000e+00> : vector<32x128xf32>
    %889 = tpu.matmul %887, %888, %cst_226 {dimension_numbers = #tpu.dot_dimension_numbers<[1], [0], [0], [1], [0, 0, 1, 1], [], []>} : vector<32x32xf32>, vector<32x128xf32>, vector<32x128xf32> -> vector<32x128xf32>
    %890 = arith.addf %886, %889 : vector<32x128xf32>
    %891 = tpu.concatenate %548, %548, %344, %480 in 0 : vector<8x32xf32>, vector<8x32xf32>, vector<8x32xf32>, vector<8x32xf32> -> vector<32x32xf32>
    %c256 = arith.constant 256 : index
    %c0_227 = arith.constant 0 : index
    %892 = vector.load %arg4[%c256, %c0_227] : memref<512x128xf32, #tpu.memory_space<vmem>>, vector<32x128xf32>
    %cst_228 = arith.constant dense<0.000000e+00> : vector<32x128xf32>
    %893 = tpu.matmul %891, %892, %cst_228 {dimension_numbers = #tpu.dot_dimension_numbers<[1], [0], [0], [1], [0, 0, 1, 1], [], []>} : vector<32x32xf32>, vector<32x128xf32>, vector<32x128xf32> -> vector<32x128xf32>
    %894 = arith.addf %890, %893 : vector<32x128xf32>
    %895 = tpu.concatenate %582, %582, %378, %514 in 0 : vector<8x32xf32>, vector<8x32xf32>, vector<8x32xf32>, vector<8x32xf32> -> vector<32x32xf32>
    %c288 = arith.constant 288 : index
    %c0_229 = arith.constant 0 : index
    %896 = vector.load %arg4[%c288, %c0_229] : memref<512x128xf32, #tpu.memory_space<vmem>>, vector<32x128xf32>
    %cst_230 = arith.constant dense<0.000000e+00> : vector<32x128xf32>
    %897 = tpu.matmul %895, %896, %cst_230 {dimension_numbers = #tpu.dot_dimension_numbers<[1], [0], [0], [1], [0, 0, 1, 1], [], []>} : vector<32x32xf32>, vector<32x128xf32>, vector<32x128xf32> -> vector<32x128xf32>
    %898 = arith.addf %894, %897 : vector<32x128xf32>
    %899 = tpu.concatenate %616, %616, %412, %548 in 0 : vector<8x32xf32>, vector<8x32xf32>, vector<8x32xf32>, vector<8x32xf32> -> vector<32x32xf32>
    %c320 = arith.constant 320 : index
    %c0_231 = arith.constant 0 : index
    %900 = vector.load %arg4[%c320, %c0_231] : memref<512x128xf32, #tpu.memory_space<vmem>>, vector<32x128xf32>
    %cst_232 = arith.constant dense<0.000000e+00> : vector<32x128xf32>
    %901 = tpu.matmul %899, %900, %cst_232 {dimension_numbers = #tpu.dot_dimension_numbers<[1], [0], [0], [1], [0, 0, 1, 1], [], []>} : vector<32x32xf32>, vector<32x128xf32>, vector<32x128xf32> -> vector<32x128xf32>
    %902 = arith.addf %898, %901 : vector<32x128xf32>
    %903 = tpu.concatenate %650, %650, %446, %582 in 0 : vector<8x32xf32>, vector<8x32xf32>, vector<8x32xf32>, vector<8x32xf32> -> vector<32x32xf32>
    %c352 = arith.constant 352 : index
    %c0_233 = arith.constant 0 : index
    %904 = vector.load %arg4[%c352, %c0_233] : memref<512x128xf32, #tpu.memory_space<vmem>>, vector<32x128xf32>
    %cst_234 = arith.constant dense<0.000000e+00> : vector<32x128xf32>
    %905 = tpu.matmul %903, %904, %cst_234 {dimension_numbers = #tpu.dot_dimension_numbers<[1], [0], [0], [1], [0, 0, 1, 1], [], []>} : vector<32x32xf32>, vector<32x128xf32>, vector<32x128xf32> -> vector<32x128xf32>
    %906 = arith.addf %902, %905 : vector<32x128xf32>
    %907 = tpu.concatenate %684, %684, %480, %616 in 0 : vector<8x32xf32>, vector<8x32xf32>, vector<8x32xf32>, vector<8x32xf32> -> vector<32x32xf32>
    %c384 = arith.constant 384 : index
    %c0_235 = arith.constant 0 : index
    %908 = vector.load %arg4[%c384, %c0_235] : memref<512x128xf32, #tpu.memory_space<vmem>>, vector<32x128xf32>
    %cst_236 = arith.constant dense<0.000000e+00> : vector<32x128xf32>
    %909 = tpu.matmul %907, %908, %cst_236 {dimension_numbers = #tpu.dot_dimension_numbers<[1], [0], [0], [1], [0, 0, 1, 1], [], []>} : vector<32x32xf32>, vector<32x128xf32>, vector<32x128xf32> -> vector<32x128xf32>
    %910 = arith.addf %906, %909 : vector<32x128xf32>
    %911 = tpu.concatenate %718, %718, %514, %650 in 0 : vector<8x32xf32>, vector<8x32xf32>, vector<8x32xf32>, vector<8x32xf32> -> vector<32x32xf32>
    %c416 = arith.constant 416 : index
    %c0_237 = arith.constant 0 : index
    %912 = vector.load %arg4[%c416, %c0_237] : memref<512x128xf32, #tpu.memory_space<vmem>>, vector<32x128xf32>
    %cst_238 = arith.constant dense<0.000000e+00> : vector<32x128xf32>
    %913 = tpu.matmul %911, %912, %cst_238 {dimension_numbers = #tpu.dot_dimension_numbers<[1], [0], [0], [1], [0, 0, 1, 1], [], []>} : vector<32x32xf32>, vector<32x128xf32>, vector<32x128xf32> -> vector<32x128xf32>
    %914 = arith.addf %910, %913 : vector<32x128xf32>
    %915 = tpu.concatenate %752, %752, %548, %684 in 0 : vector<8x32xf32>, vector<8x32xf32>, vector<8x32xf32>, vector<8x32xf32> -> vector<32x32xf32>
    %c448 = arith.constant 448 : index
    %c0_239 = arith.constant 0 : index
    %916 = vector.load %arg4[%c448, %c0_239] : memref<512x128xf32, #tpu.memory_space<vmem>>, vector<32x128xf32>
    %cst_240 = arith.constant dense<0.000000e+00> : vector<32x128xf32>
    %917 = tpu.matmul %915, %916, %cst_240 {dimension_numbers = #tpu.dot_dimension_numbers<[1], [0], [0], [1], [0, 0, 1, 1], [], []>} : vector<32x32xf32>, vector<32x128xf32>, vector<32x128xf32> -> vector<32x128xf32>
    %918 = arith.addf %914, %917 : vector<32x128xf32>
    %919 = tpu.concatenate %786, %786, %582, %718 in 0 : vector<8x32xf32>, vector<8x32xf32>, vector<8x32xf32>, vector<8x32xf32> -> vector<32x32xf32>
    %c480 = arith.constant 480 : index
    %c0_241 = arith.constant 0 : index
    %920 = vector.load %arg4[%c480, %c0_241] : memref<512x128xf32, #tpu.memory_space<vmem>>, vector<32x128xf32>
    %cst_242 = arith.constant dense<0.000000e+00> : vector<32x128xf32>
    %921 = tpu.matmul %919, %920, %cst_242 {dimension_numbers = #tpu.dot_dimension_numbers<[1], [0], [0], [1], [0, 0, 1, 1], [], []>} : vector<32x32xf32>, vector<32x128xf32>, vector<32x128xf32> -> vector<32x128xf32>
    %922 = arith.addf %918, %921 : vector<32x128xf32>
    %c0_243 = arith.constant 0 : index
    %c0_244 = arith.constant 0 : index
    %923 = vector.load %arg13[%c0_243, %c0_244] : memref<128x128xf32, #tpu.memory_space<vmem>>, vector<128x128xf32>
    %c0_245 = arith.constant 0 : index
    %c0_246 = arith.constant 0 : index
    %924 = vector.load %arg10[%c0_245, %c0_246] : memref<4x128xf32, #tpu.memory_space<vmem>>, vector<4x128xf32>
    %c0_247 = arith.constant 0 : index
    %c0_248 = arith.constant 0 : index
    %925 = vector.load %arg11[%c0_247, %c0_248] : memref<2x512xf32, #tpu.memory_space<vmem>>, vector<2x512xf32>
    %c0_249 = arith.constant 0 : index
    %c0_250 = arith.constant 0 : index
    %926 = vector.load %arg12[%c0_249, %c0_250] : memref<2x128xf32, #tpu.memory_space<vmem>>, vector<2x128xf32>
    %927 = vector.extract_strided_slice %924 {offsets = [0, 0], sizes = [1, 128], strides = [1, 1]} : vector<4x128xf32> to vector<1x128xf32>
    %928 = vector.extract_strided_slice %924 {offsets = [1, 0], sizes = [1, 128], strides = [1, 1]} : vector<4x128xf32> to vector<1x128xf32>
    %cst_251 = arith.constant dense<0.000000e+00> : vector<32x128xf32>
    %929 = tpu.matmul %922, %923, %cst_251 {dimension_numbers = #tpu.dot_dimension_numbers<[1], [0], [0], [1], [0, 0, 1, 1], [], []>} : vector<32x128xf32>, vector<128x128xf32>, vector<32x128xf32> -> vector<32x128xf32>
    %930 = arith.subf %922, %929 : vector<32x128xf32>
    %931 = arith.mulf %930, %930 : vector<32x128xf32>
    %cst_252 = arith.constant dense<0.000000e+00> : vector<32x128xf32>
    %932 = tpu.matmul %931, %923, %cst_252 {dimension_numbers = #tpu.dot_dimension_numbers<[1], [0], [0], [1], [0, 0, 1, 1], [], []>} : vector<32x128xf32>, vector<128x128xf32>, vector<32x128xf32> -> vector<32x128xf32>
    %cst_253 = arith.constant 9.99999974E-6 : f32
    %933 = vector.broadcast %cst_253 : f32 to vector<32x128xf32>
    %934 = arith.addf %932, %933 : vector<32x128xf32>
    %935 = math.rsqrt %934 : vector<32x128xf32>
    %936 = arith.mulf %930, %935 : vector<32x128xf32>
    %937 = vector.broadcast %927 : vector<1x128xf32> to vector<32x128xf32>
    %938 = arith.mulf %936, %937 : vector<32x128xf32>
    %939 = vector.broadcast %928 : vector<1x128xf32> to vector<32x128xf32>
    %940 = arith.addf %938, %939 : vector<32x128xf32>
    %c0_254 = arith.constant 0 : index
    %c0_255 = arith.constant 0 : index
    %941 = vector.load %arg6[%c0_254, %c0_255] : memref<128x512xf32, #tpu.memory_space<vmem>>, vector<128x512xf32>
    %cst_256 = arith.constant dense<0.000000e+00> : vector<32x512xf32>
    %942 = tpu.matmul %940, %941, %cst_256 {dimension_numbers = #tpu.dot_dimension_numbers<[1], [0], [0], [1], [0, 0, 1, 1], [], []>} : vector<32x128xf32>, vector<128x512xf32>, vector<32x512xf32> -> vector<32x512xf32>
    %943 = vector.extract_strided_slice %925 {offsets = [0, 0], sizes = [1, 512], strides = [1, 1]} : vector<2x512xf32> to vector<1x512xf32>
    %944 = vector.broadcast %943 : vector<1x512xf32> to vector<32x512xf32>
    %945 = arith.addf %942, %944 : vector<32x512xf32>
    %946 = arith.mulf %945, %945 : vector<32x512xf32>
    %947 = arith.mulf %945, %946 : vector<32x512xf32>
    %cst_257 = arith.constant 4.471500e-02 : f32
    %948 = vector.broadcast %cst_257 : f32 to vector<32x512xf32>
    %949 = arith.mulf %948, %947 : vector<32x512xf32>
    %950 = arith.addf %945, %949 : vector<32x512xf32>
    %cst_258 = arith.constant 0.797884583 : f32
    %951 = vector.broadcast %cst_258 : f32 to vector<32x512xf32>
    %952 = arith.mulf %951, %950 : vector<32x512xf32>
    %953 = math.tanh %952 : vector<32x512xf32>
    %cst_259 = arith.constant 1.000000e+00 : f32
    %954 = vector.broadcast %cst_259 : f32 to vector<32x512xf32>
    %955 = arith.addf %954, %953 : vector<32x512xf32>
    %cst_260 = arith.constant 5.000000e-01 : f32
    %956 = vector.broadcast %cst_260 : f32 to vector<32x512xf32>
    %957 = arith.mulf %956, %955 : vector<32x512xf32>
    %958 = arith.mulf %945, %957 : vector<32x512xf32>
    %c0_261 = arith.constant 0 : index
    %c0_262 = arith.constant 0 : index
    %959 = vector.load %arg7[%c0_261, %c0_262] : memref<512x128xf32, #tpu.memory_space<vmem>>, vector<512x128xf32>
    %cst_263 = arith.constant dense<0.000000e+00> : vector<32x128xf32>
    %960 = tpu.matmul %958, %959, %cst_263 {dimension_numbers = #tpu.dot_dimension_numbers<[1], [0], [0], [1], [0, 0, 1, 1], [], []>} : vector<32x512xf32>, vector<512x128xf32>, vector<32x128xf32> -> vector<32x128xf32>
    %961 = vector.extract_strided_slice %926 {offsets = [0, 0], sizes = [1, 128], strides = [1, 1]} : vector<2x128xf32> to vector<1x128xf32>
    %962 = vector.broadcast %961 : vector<1x128xf32> to vector<32x128xf32>
    %963 = arith.addf %960, %962 : vector<32x128xf32>
    %964 = arith.addf %922, %963 : vector<32x128xf32>
    %965 = vector.extract_strided_slice %924 {offsets = [2, 0], sizes = [1, 128], strides = [1, 1]} : vector<4x128xf32> to vector<1x128xf32>
    %966 = vector.extract_strided_slice %924 {offsets = [3, 0], sizes = [1, 128], strides = [1, 1]} : vector<4x128xf32> to vector<1x128xf32>
    %cst_264 = arith.constant dense<0.000000e+00> : vector<32x128xf32>
    %967 = tpu.matmul %964, %923, %cst_264 {dimension_numbers = #tpu.dot_dimension_numbers<[1], [0], [0], [1], [0, 0, 1, 1], [], []>} : vector<32x128xf32>, vector<128x128xf32>, vector<32x128xf32> -> vector<32x128xf32>
    %968 = arith.subf %964, %967 : vector<32x128xf32>
    %969 = arith.mulf %968, %968 : vector<32x128xf32>
    %cst_265 = arith.constant dense<0.000000e+00> : vector<32x128xf32>
    %970 = tpu.matmul %969, %923, %cst_265 {dimension_numbers = #tpu.dot_dimension_numbers<[1], [0], [0], [1], [0, 0, 1, 1], [], []>} : vector<32x128xf32>, vector<128x128xf32>, vector<32x128xf32> -> vector<32x128xf32>
    %cst_266 = arith.constant 9.99999974E-6 : f32
    %971 = vector.broadcast %cst_266 : f32 to vector<32x128xf32>
    %972 = arith.addf %970, %971 : vector<32x128xf32>
    %973 = math.rsqrt %972 : vector<32x128xf32>
    %974 = arith.mulf %968, %973 : vector<32x128xf32>
    %975 = vector.broadcast %965 : vector<1x128xf32> to vector<32x128xf32>
    %976 = arith.mulf %974, %975 : vector<32x128xf32>
    %977 = vector.broadcast %966 : vector<1x128xf32> to vector<32x128xf32>
    %978 = arith.addf %976, %977 : vector<32x128xf32>
    %c0_267 = arith.constant 0 : index
    %c0_268 = arith.constant 0 : index
    %979 = vector.load %arg8[%c0_267, %c0_268] : memref<128x512xf32, #tpu.memory_space<vmem>>, vector<128x512xf32>
    %cst_269 = arith.constant dense<0.000000e+00> : vector<32x512xf32>
    %980 = tpu.matmul %978, %979, %cst_269 {dimension_numbers = #tpu.dot_dimension_numbers<[1], [0], [0], [1], [0, 0, 1, 1], [], []>} : vector<32x128xf32>, vector<128x512xf32>, vector<32x512xf32> -> vector<32x512xf32>
    %981 = vector.extract_strided_slice %925 {offsets = [1, 0], sizes = [1, 512], strides = [1, 1]} : vector<2x512xf32> to vector<1x512xf32>
    %982 = vector.broadcast %981 : vector<1x512xf32> to vector<32x512xf32>
    %983 = arith.addf %980, %982 : vector<32x512xf32>
    %984 = arith.mulf %983, %983 : vector<32x512xf32>
    %985 = arith.mulf %983, %984 : vector<32x512xf32>
    %cst_270 = arith.constant 4.471500e-02 : f32
    %986 = vector.broadcast %cst_270 : f32 to vector<32x512xf32>
    %987 = arith.mulf %986, %985 : vector<32x512xf32>
    %988 = arith.addf %983, %987 : vector<32x512xf32>
    %cst_271 = arith.constant 0.797884583 : f32
    %989 = vector.broadcast %cst_271 : f32 to vector<32x512xf32>
    %990 = arith.mulf %989, %988 : vector<32x512xf32>
    %991 = math.tanh %990 : vector<32x512xf32>
    %cst_272 = arith.constant 1.000000e+00 : f32
    %992 = vector.broadcast %cst_272 : f32 to vector<32x512xf32>
    %993 = arith.addf %992, %991 : vector<32x512xf32>
    %cst_273 = arith.constant 5.000000e-01 : f32
    %994 = vector.broadcast %cst_273 : f32 to vector<32x512xf32>
    %995 = arith.mulf %994, %993 : vector<32x512xf32>
    %996 = arith.mulf %983, %995 : vector<32x512xf32>
    %c0_274 = arith.constant 0 : index
    %c0_275 = arith.constant 0 : index
    %997 = vector.load %arg9[%c0_274, %c0_275] : memref<512x128xf32, #tpu.memory_space<vmem>>, vector<512x128xf32>
    %cst_276 = arith.constant dense<0.000000e+00> : vector<32x128xf32>
    %998 = tpu.matmul %996, %997, %cst_276 {dimension_numbers = #tpu.dot_dimension_numbers<[1], [0], [0], [1], [0, 0, 1, 1], [], []>} : vector<32x512xf32>, vector<512x128xf32>, vector<32x128xf32> -> vector<32x128xf32>
    %999 = vector.extract_strided_slice %926 {offsets = [1, 0], sizes = [1, 128], strides = [1, 1]} : vector<2x128xf32> to vector<1x128xf32>
    %1000 = vector.broadcast %999 : vector<1x128xf32> to vector<32x128xf32>
    %1001 = arith.addf %998, %1000 : vector<32x128xf32>
    %1002 = arith.addf %964, %1001 : vector<32x128xf32>
    %c0_277 = arith.constant 0 : index
    %c0_278 = arith.constant 0 : index
    %1003 = vector.load %arg14[%c0_277, %c0_278] : memref<128x32xf32, #tpu.memory_space<vmem>>, vector<128x32xf32>
    %cst_279 = arith.constant dense<0.000000e+00> : vector<32x32xf32>
    %1004 = tpu.matmul %1002, %1003, %cst_279 {dimension_numbers = #tpu.dot_dimension_numbers<[1], [0], [0], [1], [0, 0, 1, 1], [], []>} : vector<32x128xf32>, vector<128x32xf32>, vector<32x32xf32> -> vector<32x32xf32>
    %1005 = vector.extract_strided_slice %1004 {offsets = [0, 0], sizes = [8, 32], strides = [1, 1]} : vector<32x32xf32> to vector<8x32xf32>
    %1006 = vector.extract_strided_slice %1004 {offsets = [8, 0], sizes = [8, 32], strides = [1, 1]} : vector<32x32xf32> to vector<8x32xf32>
    %1007 = arith.addf %1005, %1006 : vector<8x32xf32>
    %1008 = vector.extract_strided_slice %1004 {offsets = [16, 0], sizes = [8, 32], strides = [1, 1]} : vector<32x32xf32> to vector<8x32xf32>
    %1009 = arith.addf %1007, %1008 : vector<8x32xf32>
    %1010 = vector.extract_strided_slice %1004 {offsets = [24, 0], sizes = [8, 32], strides = [1, 1]} : vector<32x32xf32> to vector<8x32xf32>
    %1011 = arith.addf %1009, %1010 : vector<8x32xf32>
    %cst_280 = arith.constant 2.500000e-01 : f32
    %1012 = vector.broadcast %cst_280 : f32 to vector<8x32xf32>
    %1013 = arith.mulf %1011, %1012 : vector<8x32xf32>
    %c0_281 = arith.constant 0 : index
    %c0_282 = arith.constant 0 : index
    %1014 = vector.load %arg15[%c0_281, %c0_282] : memref<32x16xf32, #tpu.memory_space<vmem>>, vector<32x16xf32>
    %cst_283 = arith.constant dense<0.000000e+00> : vector<8x16xf32>
    %1015 = tpu.matmul %854, %1014, %cst_283 {dimension_numbers = #tpu.dot_dimension_numbers<[1], [0], [0], [1], [0, 0, 1, 1], [], []>} : vector<8x32xf32>, vector<32x16xf32>, vector<8x16xf32> -> vector<8x16xf32>
    %c0_284 = arith.constant 0 : index
    %c0_285 = arith.constant 0 : index
    %1016 = vector.load %arg16[%c0_284, %c0_285] : memref<32x16xf32, #tpu.memory_space<vmem>>, vector<32x16xf32>
    %cst_286 = arith.constant dense<0.000000e+00> : vector<8x16xf32>
    %1017 = tpu.matmul %1013, %1016, %cst_286 {dimension_numbers = #tpu.dot_dimension_numbers<[1], [0], [0], [1], [0, 0, 1, 1], [], []>} : vector<8x32xf32>, vector<32x16xf32>, vector<8x16xf32> -> vector<8x16xf32>
    %1018 = arith.addf %1015, %1017 : vector<8x16xf32>
    %c0_287 = arith.constant 0 : index
    %c0_288 = arith.constant 0 : index
    %1019 = vector.load %arg17[%c0_287, %c0_288] : memref<1x16xf32, #tpu.memory_space<vmem>>, vector<1x16xf32>
    %1020 = vector.broadcast %1019 : vector<1x16xf32> to vector<8x16xf32>
    %1021 = arith.addf %1018, %1020 : vector<8x16xf32>
    %c0_289 = arith.constant 0 : index
    %c0_290 = arith.constant 0 : index
    %1022 = vector.load %arg18[%c0_289, %c0_290] : memref<16x10xf32, #tpu.memory_space<vmem>>, vector<16x10xf32>
    %cst_291 = arith.constant dense<0.000000e+00> : vector<8x10xf32>
    %1023 = tpu.matmul %1021, %1022, %cst_291 {dimension_numbers = #tpu.dot_dimension_numbers<[1], [0], [0], [1], [0, 0, 1, 1], [], []>} : vector<8x16xf32>, vector<16x10xf32>, vector<8x10xf32> -> vector<8x10xf32>
    %c0_292 = arith.constant 0 : index
    %c0_293 = arith.constant 0 : index
    %1024 = vector.load %arg19[%c0_292, %c0_293] : memref<1x10xf32, #tpu.memory_space<vmem>>, vector<1x10xf32>
    %1025 = vector.broadcast %1024 : vector<1x10xf32> to vector<8x10xf32>
    %1026 = arith.addf %1023, %1025 : vector<8x10xf32>
    %c0_294 = arith.constant 0 : index
    %c0_295 = arith.constant 0 : index
    %1027 = vector.load %arg20[%c0_294, %c0_295] : memref<8x10xf32, #tpu.memory_space<vmem>>, vector<8x10xf32>
    tpu.vector_store %arg20[%c0_294, %c0_295], %1026 {strides = array<i32>} : memref<8x10xf32, #tpu.memory_space<vmem>>, vector<8x10xf32>,
    %1028 = arith.mulf %1021, %1021 : vector<8x16xf32>
    %cst_296 = arith.constant dense<0.000000e+00> : vector<8xf32>
    %1029 = vector.multi_reduction <add>, %1028, %cst_296 [1] : vector<8x16xf32> to vector<8xf32>
    %1030 = vector.shape_cast %1029 : vector<8xf32> to vector<8x1xf32>
    %cst_297 = arith.constant 9.99999996E-13 : f32
    %1031 = vector.broadcast %cst_297 : f32 to vector<8x1xf32>
    %1032 = arith.addf %1030, %1031 : vector<8x1xf32>
    %1033 = math.rsqrt %1032 : vector<8x1xf32>
    %1034 = vector.broadcast %1033 : vector<8x1xf32> to vector<8x16xf32>
    %1035 = arith.mulf %1021, %1034 : vector<8x16xf32>
    %c0_298 = arith.constant 0 : index
    %c0_299 = arith.constant 0 : index
    %1036 = vector.load %arg21[%c0_298, %c0_299] : memref<8x16xf32, #tpu.memory_space<vmem>>, vector<8x16xf32>
    tpu.vector_store %arg21[%c0_298, %c0_299], %1035 {strides = array<i32>} : memref<8x16xf32, #tpu.memory_space<vmem>>, vector<8x16xf32>,
    return
  }
}

</mosaic_0001>

<bundles_post_ra>
// kernel: meta_block_forward.1
= control target key start
LH: loop header
LB: loop body
LE: loop exit
PB: predicated region body
PF: predicated region fallthrough
CT: control target
= control target key end

     0   :  { %s16813_s0 = inlined_call_operand.vmem [shape: f32[192,80], index: 0, kind: input, shape index: {}]   ;;  %s16814_s1 = inlined_call_operand.vmem [shape: f32[4,80,32], index: 1, kind: input, shape index: {}]   ;;  %s16815_s2 = inlined_call_operand.vmem [shape: bf16[4,32,32], index: 2, kind: input, shape index: {}]   ;;  %s16816_s3 = inlined_call_operand.hbm [shape: f32[4,1,32], index: 3, kind: input, shape index: {}]   ;;  %s16817_s4 = inlined_call_operand.vmem [shape: f32[512,128], index: 4, kind: input, shape index: {}]   ;;  %s16818_s5 = inlined_call_operand.vmem [shape: f32[1,128], index: 5, kind: input, shape index: {}]   ;;  %s16819_s6 = inlined_call_operand.vmem [shape: f32[128,512], index: 6, kind: input, shape index: {}]   ;;  %s16820_s7 = inlined_call_operand.hbm [shape: f32[512,128], index: 7, kind: input, shape index: {}]   ;;  %s16821_s8 = inlined_call_operand.hbm [shape: f32[128,512], index: 8, kind: input, shape index: {}]   ;;  %s16822_s9 = inlined_call_operand.hbm [shape: f32[512,128], index: 9, kind: input, shape index: {}]   ;;  %s16823_s10 = inlined_call_operand.hbm [shape: f32[4,128], index: 10, kind: input, shape index: {}]   ;;  %s16824_s11 = inlined_call_operand.hbm [shape: f32[2,512], index: 11, kind: input, shape index: {}]   ;;  %s16825_s12 = inlined_call_operand.hbm [shape: f32[2,128], index: 12, kind: input, shape index: {}]   ;;  %s16826_s13 = inlined_call_operand.vmem [shape: f32[128,128], index: 13, kind: input, shape index: {}]   ;;  %s16827_s14 = inlined_call_operand.vmem [shape: f32[128,32], index: 14, kind: input, shape index: {}]   ;;  %s16828_s15 = inlined_call_operand.vmem [shape: f32[32,16], index: 15, kind: input, shape index: {}]   ;;  %s16829_s16 = inlined_call_operand.vmem [shape: f32[32,16], index: 16, kind: input, shape index: {}]   ;;  %s16830_s17 = inlined_call_operand.hbm [shape: f32[1,16], index: 17, kind: input, shape index: {}]   ;;  %s16831_s18 = inlined_call_operand.hbm [shape: f32[16,10], index: 18, kind: input, shape index: {}]   ;;  %s16832_s19 = inlined_call_operand.hbm [shape: f32[1,10], index: 19, kind: input, shape index: {}]   ;;  %s16833_s20 = inlined_call_operand.vmem [shape: f32[8,10], index: 20, kind: output, shape index: {0}]   ;;  %s16834_s21 = inlined_call_operand.vmem [shape: f32[8,16], index: 21, kind: output, shape index: {1}]  }
   0x1   :  { %16842 = sst [smem:[#allocation83_spill]] %s16813_s0 }
   0x2   :  { %16843 = sst [smem:[#allocation84_spill]] %s16814_s1 }
   0x3   :  { %16844 = sst [smem:[#allocation85_spill]] %s16815_s2 }
   0x4   :  { %16845 = sst [smem:[#allocation86_spill]] %s16816_s3 }
   0x5   :  { %16846 = sst [smem:[#allocation87_spill]] %s16817_s4 }
   0x6   :  { %16847 = sst [smem:[#allocation88_spill]] %s16818_s5 }
   0x7   :  { %16848 = sst [smem:[#allocation89_spill]] %s16833_s20 }
   0x8   :  { %27 = vsyncpa [#allocation3], 0 }
   0x9   :  { %28 = vsyncpa [#allocation5], 0 }
   0xa   :  { %29 = vsyncpa [#allocation8], 0 }
   0xb   :  { %30 = vsyncpa [#allocation11], 0 }
   0xc   :  { %31 = vsyncpa [#allocation14], 0 }
   0xd   :  { %32 = vsyncpa [#allocation17], 0  ;;  %s13584_s2 = smov [#allocation4]   ;;  %s13352_s3 = scalar_lea.hbm %s16820_s7, 8192 }
   0xe   :  { %s62_s25 = sshll.u32 %s13584_s2, 4  ;;  %p13353_p0 = scmp.ne.s32.totalorder %s16820_s7, %s13352_s3  ;;  %s63_s25 = int_to_ptr.vmem [resolvable:$true] %s62_s25 }
   0xf   :  { %p13356_p1 = scmp.lt.u32.totalorder %s13352_s3, %s16820_s7 }
  0x11   :  { %p13358_p2 = pnand %p13356_p1, %p13353_p0 }
  0x13   :  { %13361 = shalt.err (!%p13358_p2)
}
  0x14   :  { %s13362_s30 = scalar_lea.vmem %s63_s25, 8192  ;;  %p13367_p4 = scmp.lt.s32.totalorder %s63_s25, %s63_s25 }
  0x15   :  { %p13363_p3 = scmp.ne.s32.totalorder %s63_s25, %s13362_s30  ;;  %p13368_p5 = scmp.lt.s32.totalorder %s13362_s30, %s13362_s30 }
  0x17   :  { %p13369_p6 = por %p13368_p5, %p13367_p4 }
  0x19   :  { %p13370_p7 = pnand %p13369_p6, %p13363_p3 }
  0x1b   :  { %13373 = shalt.err (!%p13370_p7)
}
  0x1c   :  { %s13585_s5 = smov 128   ;;  %s13586_s22 = smov 8  }
  0x1d   :  { %68 = dma.hbm_to_vmem [thread:$0]  %s16820_s7, 8192, %s63_s25, [#allocation5], %s13585_s5, %s13585_s5, %s13586_s22  }
  0x1e   :  { %s13587_s24 = smov [#allocation7]   ;;  %s13588_s26 = smov [#allocation10]  }
  0x1f   :  { %s86_s2 = sshll.u32 %s13587_s24, 4  ;;  %s109_s27 = sshll.u32 %s13588_s26, 4  ;;  %s87_s2 = int_to_ptr.vmem [resolvable:$true] %s86_s2  ;;  %s110_s27 = int_to_ptr.vmem [resolvable:$true] %s109_s27 }
  0x20   :  { %s13374_s29 = scalar_lea.hbm %s16822_s9, 8192 }
  0x21   :  { %p13375_p8 = scmp.ne.s32.totalorder %s16822_s9, %s13374_s29  ;;  %p13378_p9 = scmp.lt.u32.totalorder %s13374_s29, %s16822_s9 }
  0x23   :  { %p13380_p10 = pnand %p13378_p9, %p13375_p8 }
  0x25   :  { %13383 = shalt.err (!%p13380_p10)
}
  0x26   :  { %s13384_s7 = scalar_lea.vmem %s87_s2, 8192  ;;  %p13389_p12 = scmp.lt.s32.totalorder %s87_s2, %s87_s2 }
  0x27   :  { %p13385_p11 = scmp.ne.s32.totalorder %s87_s2, %s13384_s7  ;;  %p13390_p13 = scmp.lt.s32.totalorder %s13384_s7, %s13384_s7 }
  0x29   :  { %p13391_p0 = por %p13390_p13, %p13389_p12 }
  0x2b   :  { %p13392_p1 = pnand %p13391_p0, %p13385_p11 }
  0x2d   :  { %13395 = shalt.err (!%p13392_p1)
}
  0x2e   :  { %92 = dma.hbm_to_vmem [thread:$0]  %s16822_s9, 8192, %s87_s2, [#allocation8], %s13585_s5, %s13585_s5, %s13586_s22  }
  0x2f   :  { %s13396_s24 = scalar_lea.hbm %s16824_s11, 128 }
  0x30   :  { %p13397_p2 = scmp.ne.s32.totalorder %s16824_s11, %s13396_s24  ;;  %p13400_p3 = scmp.lt.u32.totalorder %s13396_s24, %s16824_s11 }
  0x32   :  { %p13402_p4 = pnand %p13400_p3, %p13397_p2 }
  0x34   :  { %13405 = shalt.err (!%p13402_p4)
}
  0x35   :  { %s13406_s0 = scalar_lea.vmem %s110_s27, 128  ;;  %p13411_p6 = scmp.lt.s32.totalorder %s110_s27, %s110_s27 }
  0x36   :  { %p13407_p5 = scmp.ne.s32.totalorder %s110_s27, %s13406_s0  ;;  %p13412_p7 = scmp.lt.s32.totalorder %s13406_s0, %s13406_s0 }
  0x38   :  { %p13413_p8 = por %p13412_p7, %p13411_p6 }
  0x3a   :  { %p13414_p9 = pnand %p13413_p8, %p13407_p5 }
  0x3c   :  { %13417 = shalt.err (!%p13414_p9)
}
  0x3d   :  { %112 = dma.hbm_to_vmem [thread:$0]  %s16824_s11, 128, %s110_s27, [#allocation11]  }
  0x3e   :  { %s13589_s4 = smov [#allocation13]   ;;  %s13590_s7 = smov [#allocation2]  }
  0x3f   :  { %s137_s30 = sshll.u32 %s13589_s4, 4  ;;  %s44_s25 = sshll.u32 %s13590_s7, 4  ;;  %s138_s30 = int_to_ptr.vmem [resolvable:$true] %s137_s30  ;;  %s45_s25 = int_to_ptr.vmem [resolvable:$true] %s44_s25 }
  0x40   :  { %s13418_s20 = scalar_lea.hbm %s16830_s17, 16 }
  0x41   :  { %p13419_p10 = scmp.ne.s32.totalorder %s16830_s17, %s13418_s20  ;;  %p13422_p11 = scmp.lt.u32.totalorder %s13418_s20, %s16830_s17 }
  0x43   :  { %p13424_p12 = pnand %p13422_p11, %p13419_p10 }
  0x45   :  { %13427 = shalt.err (!%p13424_p12)
}
  0x46   :  { %s13428_s11 = scalar_lea.vmem %s138_s30, 16  ;;  %s13432_s27 = scalar_lea.vmem %s138_s30, 32 }
  0x47   :  { %p13429_p13 = scmp.ne.s32.totalorder %s138_s30, %s13428_s11  ;;  %p13433_p0 = scmp.lt.s32.totalorder %s138_s30, %s138_s30 }
  0x48   :  { %p13434_p1 = scmp.lt.s32.totalorder %s13432_s27, %s13428_s11 }
  0x4a   :  { %p13435_p2 = por %p13434_p1, %p13433_p0 }
  0x4c   :  { %p13436_p3 = pnand %p13435_p2, %p13429_p13 }
  0x4e   :  { %13439 = shalt.err (!%p13436_p3)
}
  0x4f   :  { %140 = dma.hbm_to_vmem [thread:$0]  %s16830_s17, 16, %s138_s30, [#allocation14]  }
  0x50   :  { %s16849_s4 = sld [smem:[#allocation86_spill]] }
  0x56   :  { %s13440_s7 = scalar_lea.hbm %s16849_s4, 64 }
  0x57   :  { %p13441_p4 = scmp.ne.s32.totalorder %s16849_s4, %s13440_s7  ;;  %p13444_p5 = scmp.lt.u32.totalorder %s13440_s7, %s16849_s4 }
  0x59   :  { %p13446_p6 = pnand %p13444_p5, %p13441_p4 }
  0x5b   :  { %13449 = shalt.err (!%p13446_p6)
}
  0x5c   :  { %s13450_s26 = scalar_lea.vmem %s45_s25, 64  ;;  %p13455_p8 = scmp.lt.s32.totalorder %s45_s25, %s45_s25 }
  0x5d   :  { %p13451_p7 = scmp.ne.s32.totalorder %s45_s25, %s13450_s26  ;;  %p13456_p9 = scmp.lt.s32.totalorder %s13450_s26, %s13450_s26 }
  0x5f   :  { %p13457_p10 = por %p13456_p9, %p13455_p8 }
  0x61   :  { %p13458_p11 = pnand %p13457_p10, %p13451_p7 }
  0x63   :  { %13461 = shalt.err (!%p13458_p11)
}
  0x64   :  { %s13591_s17 = smov 16   ;;  %s13592_s30 = smov 1  }
  0x65   :  { %50 = dma.hbm_to_vmem [thread:$0]  %s16849_s4, 64, %s45_s25, [#allocation3], %s13591_s17, %s13591_s17, %s13592_s30  }
  0x66   :  { %s13593_s11 = smov [#allocation6]   ;;  %s13462_s9 = scalar_lea.hbm %s16821_s8, 8192 }
  0x67   :  { %s74_s27 = sshll.u32 %s13593_s11, 4  ;;  %p13463_p12 = scmp.ne.s32.totalorder %s16821_s8, %s13462_s9  ;;  %s75_s27 = int_to_ptr.vmem [resolvable:$true] %s74_s27 }
  0x68   :  { %p13466_p13 = scmp.lt.u32.totalorder %s13462_s9, %s16821_s8 }
  0x6a   :  { %p13468_p0 = pnand %p13466_p13, %p13463_p12 }
  0x6c   :  { %13471 = shalt.err (!%p13468_p0)
}
  0x6d   :  { %s13472_s20 = scalar_lea.vmem %s75_s27, 8192  ;;  %p13477_p2 = scmp.lt.s32.totalorder %s75_s27, %s75_s27 }
  0x6e   :  { %p13473_p1 = scmp.ne.s32.totalorder %s75_s27, %s13472_s20  ;;  %p13478_p3 = scmp.lt.s32.totalorder %s13472_s20, %s13472_s20 }
  0x70   :  { %p13479_p4 = por %p13478_p3, %p13477_p2 }
  0x72   :  { %p13480_p5 = pnand %p13479_p4, %p13473_p1 }
  0x74   :  { %13483 = shalt.err (!%p13480_p5)
}
  0x75   :  { %s13594_s25 = smov 512   ;;  %s13595_s4 = smov 32  }
  0x76   :  { %80 = dma.hbm_to_vmem [thread:$0]  %s16821_s8, 8192, %s75_s27, [#allocation5], %s13594_s25, %s13594_s25, %s13595_s4  }
  0x77   :  { %s13596_s17 = smov [#allocation9]   ;;  %s13597_s3 = smov [#allocation12]  }
  0x78   :  { %s99_s30 = sshll.u32 %s13596_s17, 4  ;;  %s119_s28 = sshll.u32 %s13597_s3, 4  ;;  %s100_s30 = int_to_ptr.vmem [resolvable:$true] %s99_s30  ;;  %s120_s28 = int_to_ptr.vmem [resolvable:$true] %s119_s28 }
  0x79   :  { %s13484_s0 = scalar_lea.hbm %s16823_s10, 64 }
  0x7a   :  { %p13485_p6 = scmp.ne.s32.totalorder %s16823_s10, %s13484_s0  ;;  %p13488_p7 = scmp.lt.u32.totalorder %s13484_s0, %s16823_s10 }
  0x7c   :  { %p13490_p8 = pnand %p13488_p7, %p13485_p6 }
  0x7e   :  { %13493 = shalt.err (!%p13490_p8)
}
  0x7f   :  { %s13494_s8 = scalar_lea.vmem %s100_s30, 64  ;;  %p13499_p10 = scmp.lt.s32.totalorder %s100_s30, %s100_s30 }
  0x80   :  { %p13495_p9 = scmp.ne.s32.totalorder %s100_s30, %s13494_s8  ;;  %p13500_p11 = scmp.lt.s32.totalorder %s13494_s8, %s13494_s8 }
  0x82   :  { %p13501_p12 = por %p13500_p11, %p13499_p10 }
  0x84   :  { %p13502_p13 = pnand %p13501_p12, %p13495_p9 }
  0x86   :  { %13505 = shalt.err (!%p13502_p13)
}
  0x87   :  { %102 = dma.hbm_to_vmem [thread:$0]  %s16823_s10, 64, %s100_s30, [#allocation8]  }
  0x88   :  { %s13506_s4 = scalar_lea.hbm %s16825_s12, 32 }
  0x89   :  { %p13507_p0 = scmp.ne.s32.totalorder %s16825_s12, %s13506_s4  ;;  %p13510_p1 = scmp.lt.u32.totalorder %s13506_s4, %s16825_s12 }
  0x8b   :  { %p13512_p2 = pnand %p13510_p1, %p13507_p0 }
  0x8d   :  { %13515 = shalt.err (!%p13512_p2)
}
  0x8e   :  { %s13516_s11 = scalar_lea.vmem %s120_s28, 32  ;;  %p13521_p4 = scmp.lt.s32.totalorder %s120_s28, %s120_s28 }
  0x8f   :  { %p13517_p3 = scmp.ne.s32.totalorder %s120_s28, %s13516_s11  ;;  %p13522_p5 = scmp.lt.s32.totalorder %s13516_s11, %s13516_s11 }
  0x91   :  { %p13523_p6 = por %p13522_p5, %p13521_p4 }
  0x93   :  { %p13524_p7 = pnand %p13523_p6, %p13517_p3 }
  0x95   :  { %13527 = shalt.err (!%p13524_p7)
}
  0x96   :  { %122 = dma.hbm_to_vmem [thread:$0]  %s16825_s12, 32, %s120_s28, [#allocation11]  }
  0x97   :  { %s13598_s29 = smov [#allocation15]   ;;  %s13599_s9 = smov [#allocation16]  }
  0x98   :  { %s146_s0 = sshll.u32 %s13598_s29, 4  ;;  %s159_s2 = sshll.u32 %s13599_s9, 4  ;;  %s147_s0 = int_to_ptr.vmem [resolvable:$true] %s146_s0  ;;  %s160_s2 = int_to_ptr.vmem [resolvable:$true] %s159_s2 }
  0x99   :  { %s13528_s8 = scalar_lea.hbm %s16831_s18, 256 }
  0x9a   :  { %p13529_p8 = scmp.ne.s32.totalorder %s16831_s18, %s13528_s8  ;;  %p13532_p9 = scmp.lt.u32.totalorder %s13528_s8, %s16831_s18 }
  0x9c   :  { %p13534_p10 = pnand %p13532_p9, %p13529_p8 }
  0x9e   :  { %13537 = shalt.err (!%p13534_p10)
}
  0x9f   :  { %s13538_s12 = scalar_lea.vmem %s147_s0, 256  ;;  %p13543_p12 = scmp.lt.s32.totalorder %s147_s0, %s147_s0 }
  0xa0   :  { %p13539_p11 = scmp.ne.s32.totalorder %s147_s0, %s13538_s12  ;;  %p13544_p13 = scmp.lt.s32.totalorder %s13538_s12, %s13538_s12 }
  0xa2   :  { %p13545_p0 = por %p13544_p13, %p13543_p12 }
  0xa4   :  { %p13546_p1 = pnand %p13545_p0, %p13539_p11 }
  0xa6   :  { %13549 = shalt.err (!%p13546_p1)
}
  0xa7   :  { %152 = dma.hbm_to_vmem [thread:$0]  %s16831_s18, 256, %s147_s0, [#allocation14], %s13585_s5, %s13585_s5, %s13586_s22  }
  0xa8   :  { %s13550_s17 = scalar_lea.hbm %s16832_s19, 16 }
  0xa9   :  { %p13551_p2 = scmp.ne.s32.totalorder %s16832_s19, %s13550_s17  ;;  %p13554_p3 = scmp.lt.u32.totalorder %s13550_s17, %s16832_s19 }
  0xab   :  { %p13556_p4 = pnand %p13554_p3, %p13551_p2 }
  0xad   :  { %13559 = shalt.err (!%p13556_p4)
}
  0xae   :  { %s13560_s29 = scalar_lea.vmem %s160_s2, 16  ;;  %s13564_s9 = scalar_lea.vmem %s160_s2, 32 }
  0xaf   :  { %p13561_p5 = scmp.ne.s32.totalorder %s160_s2, %s13560_s29  ;;  %p13565_p6 = scmp.lt.s32.totalorder %s160_s2, %s160_s2 }
  0xb0   :  { %p13566_p7 = scmp.lt.s32.totalorder %s13564_s9, %s13560_s29 }
  0xb2   :  { %p13567_p8 = por %p13566_p7, %p13565_p6 }
  0xb4   :  { %p13568_p9 = pnand %p13567_p8, %p13561_p5 }
  0xb6   :  { %13571 = shalt.err (!%p13568_p9)
}
  0xb7   :  { %162 = dma.hbm_to_vmem [thread:$0]  %s16832_s19, 16, %s160_s2, [#allocation17]  }
  0xb8   :  { %13572 = dma.done.wait [#allocation3], 64  }
  0xb9   :  { %13573 = vsyncadd [#allocation3], 4294967232 }
  0xba   :  { %13574 = dma.done.wait [#allocation5], 16384  }
  0xbb   :  { %13575 = vsyncadd [#allocation5], 4294950912 }
  0xbc   :  { %13576 = dma.done.wait [#allocation8], 8256  }
  0xbd   :  { %13577 = vsyncadd [#allocation8], 4294959040 }
  0xbe   :  { %13578 = dma.done.wait [#allocation11], 160  }
  0xbf   :  { %13579 = vsyncadd [#allocation11], 4294967136 }
  0xc0   :  { %13580 = dma.done.wait [#allocation14], 272  }
  0xc1   :  { %13581 = vsyncadd [#allocation14], 4294967024 }
  0xc2   :  { %13582 = dma.done.wait [#allocation17], 16  }
  0xc3   :  { %13583 = vsyncadd [#allocation17], 4294967280  ;;  %s16850_s7 = sld [smem:[#allocation84_spill]]  ;;  %vm235_vm0 = vcmask 654336   ;;  %s16851_s27 = sld [smem:[#allocation83_spill]]  ;;  %vm13601_vm1 = vmmov 0  }
  0xc4   :  { %s16852_s24 = sld [smem:[#allocation85_spill]]  ;;  %vm1136_vm2 = vcmask 261120   ;;  %s16968_s19 = sld [smem:[#allocation87_spill]]  ;;  %vm9370_vm3 = vcmask 130048   ;;  %vm9444_vm4 = vcmask 80896  }
  0xc5   :  { %s16973_s10 = sld [smem:[#allocation88_spill]]  ;;  %s16974_s26 = sld [smem:[#allocation89_spill]] }
  0xc9   :  { %v218_v0 = vld [vmem:[%s16850_s7] sm:$0xff]  ;;  %v219_v1 = vld [vmem:[%s16850_s7 + $0x8] sm:$0xff]  ;;  %v9493_v2 = vld [vmem:[%s16850_s7 + $0x50] sm:$0xff] }
  0xca   :  { %v12128_v3 = vpack.c.bf16 %v219_v1, %v218_v0  ;;  %v9494_v4 = vld [vmem:[%s16850_s7 + $0x58] sm:$0xff]  ;;  %v220_v5 = vld [vmem:[%s16850_s7 + $0x10] sm:$0xff]  ;;  %v9495_v9 = vld [vmem:[%s16850_s7 + $0x60] sm:$0xff] }
  0xcb   :  { %v221_v6 = vld [vmem:[%s16850_s7 + $0x18] sm:$0xff]  ;;  %v12148_v7 = vpack.c.bf16 %v9494_v4, %v9493_v2  ;;  %v9496_v10 = vld [vmem:[%s16850_s7 + $0x68] sm:$0xff]  ;;  %v222_v11 = vld [vmem:[%s16850_s7 + $0x20] sm:$0xff] }
  0xcc   :  { %v12132_v8 = vpack.c.bf16 %v221_v6, %v220_v5  ;;  %12129 = vmatprep.subr.bf16.mxu0 %v12128_v3  ;;  %v12152_v12 = vpack.c.bf16 %v9496_v10, %v9495_v9  ;;  %v223_v13 = vld [vmem:[%s16850_s7 + $0x28] sm:$0xff]  ;;  %v9497_v14 = vld [vmem:[%s16850_s7 + $0x70] sm:$0xff]  ;;  %v9498_v15 = vld [vmem:[%s16850_s7 + $0x78] sm:$0xff]  ;;  %v16840_v9 = vmov 0.0  }
  0xcd   :  { %12149 = vmatprep.subr.bf16.mxu1 %v12148_v7  ;;  %12131 = vmatpush3.bf16.msra.mxu0 %v12128_v3  ;;  %v12136_v16 = vpack.c.bf16 %v223_v13, %v222_v11  ;;  %v12156_v17 = vpack.c.bf16 %v9498_v15, %v9497_v14  ;;  %v224_v18 = vld [vmem:[%s16850_s7 + $0x30] sm:$0xff]  ;;  %v225_v19 = vld [vmem:[%s16850_s7 + $0x38] sm:$0xff]  ;;  %v13888_v20 = vld [vmem:[%s16851_s27] sm:$0xff] }
  0xce   :  { %12151 = vmatpush3.bf16.msra.mxu1 %v12148_v7  ;;  %12133 = vmatprep.subr.bf16.mxu0 %v12132_v8  ;;  %v9499_v21 = vld [vmem:[%s16850_s7 + $0x80] sm:$0xff]  ;;  %v9500_v22 = vld [vmem:[%s16850_s7 + $0x88] sm:$0xff]  ;;  %v12140_v23 = vpack.c.bf16 %v225_v19, %v224_v18  ;;  %v9501_v27 = vld [vmem:[%s16850_s7 + $0x90] sm:$0xff] }
  0xcf   :  { %12153 = vmatprep.subr.bf16.mxu1 %v12152_v12  ;;  %10713 = vmatprep.mubr.msk.f32.mxu0 %vm235_vm0, %v13888_v20  ;;  %v12160_v24 = vpack.c.bf16 %v9500_v22, %v9499_v21  ;;  %v226_v25 = vld [vmem:[%s16850_s7 + $0x40] sm:$0xff]  ;;  %v227_v26 = vld [vmem:[%s16850_s7 + $0x48] sm:$0xff]  ;;  %v9502_v28 = vld [vmem:[%s16850_s7 + $0x98] sm:$0xff] }
  0xd0   :  { %10769 = vmatprep.mubr.msk.f32.mxu1 %vm235_vm0, %v13888_v20  ;;  %v12144_v29 = vpack.c.bf16 %v227_v26, %v226_v25  ;;  %v12164_v30 = vpack.c.bf16 %v9502_v28, %v9501_v27  ;;  %v9528_v31 = vld [vmem:[%s16850_s7 + $0xa0] sm:$0xff]  ;;  %v9529_v32 = vld [vmem:[%s16850_s7 + $0xa8] sm:$0xff]  ;;  %v9563_v33 = vld [vmem:[%s16850_s7 + $0xf0] sm:$0xff]  ;;  %v13602_v27 = vmov 0  }
  0xd1   :  { %12135 = vmatpush3.bf16.msra.mxu0 %v12132_v8  ;;  %v9564_v34 = vld [vmem:[%s16850_s7 + $0xf8] sm:$0xff]  ;;  %v12168_v35 = vpack.c.bf16 %v9529_v32, %v9528_v31  ;;  %v13927_v37 = vld [vmem:[%s16851_s27 + $0x8] sm:$0xff]  ;;  %v9530_v38 = vld [vmem:[%s16850_s7 + $0xb0] sm:$0xff] }
  0xd2   :  { %12155 = vmatpush3.bf16.msra.mxu1 %v12152_v12  ;;  %12137 = vmatprep.subr.bf16.mxu0 %v12136_v16  ;;  %v12188_v36 = vpack.c.bf16 %v9564_v34, %v9563_v33  ;;  %v9531_v39 = vld [vmem:[%s16850_s7 + $0xb8] sm:$0xff]  ;;  %v13938_v40 = vld [vmem:[%s16851_s27 + $0x10] sm:$0xff]  ;;  %v9565_v41 = vld [vmem:[%s16850_s7 + $0x100] sm:$0xff] }
  0xd3   :  { %12157 = vmatprep.subr.bf16.mxu1 %v12156_v17  ;;  %v9566_v42 = vld [vmem:[%s16850_s7 + $0x108] sm:$0xff]  ;;  %v9532_v43 = vld [vmem:[%s16850_s7 + $0xc0] sm:$0xff]  ;;  %v13952_v44 = vld [vmem:[%s16851_s27 + $0x18] sm:$0xff]  ;;  %v12172_v45 = vpack.c.bf16 %v9531_v39, %v9530_v38 }
  0xd4   :  { %v9533_v46 = vld [vmem:[%s16850_s7 + $0xc8] sm:$0xff]  ;;  %v13962_v47 = vld [vmem:[%s16851_s27 + $0x20] sm:$0xff]  ;;  %v12192_v48 = vpack.c.bf16 %v9566_v42, %v9565_v41  ;;  %v9567_v49 = vld [vmem:[%s16850_s7 + $0x110] sm:$0xff] }
  0xd5   :  { %12139 = vmatpush3.bf16.msra.mxu0 %v12136_v16  ;;  %v9568_v50 = vld [vmem:[%s16850_s7 + $0x118] sm:$0xff]  ;;  %v9534_v51 = vld [vmem:[%s16850_s7 + $0xd0] sm:$0xff]  ;;  %v13982_v52 = vld [vmem:[%s16851_s27 + $0x28] sm:$0xff]  ;;  %v12176_v53 = vpack.c.bf16 %v9533_v46, %v9532_v43 }
  0xd6   :  { %12159 = vmatpush3.bf16.msra.mxu1 %v12156_v17  ;;  %12141 = vmatprep.subr.bf16.mxu0 %v12140_v23  ;;  %v9535_v54 = vld [vmem:[%s16850_s7 + $0xd8] sm:$0xff]  ;;  %v12196_v55 = vpack.c.bf16 %v9568_v50, %v9567_v49  ;;  %v9569_v56 = vld [vmem:[%s16850_s7 + $0x120] sm:$0xff]  ;;  %v9570_v57 = vld [vmem:[%s16850_s7 + $0x128] sm:$0xff] }
  0xd7   :  { %12161 = vmatprep.subr.bf16.mxu1 %v12160_v24  ;;  %v14004_v58 = vld [vmem:[%s16851_s27 + $0x30] sm:$0xff]  ;;  %v12180_v59 = vpack.c.bf16 %v9535_v54, %v9534_v51  ;;  %v12200_v60 = vpack.c.bf16 %v9570_v57, %v9569_v56  ;;  %v9536_v61 = vld [vmem:[%s16850_s7 + $0xe0] sm:$0xff]  ;;  %v9537_v62 = vld [vmem:[%s16850_s7 + $0xe8] sm:$0xff] }
  0xd8   :  { %v14021_v63 = vld [vmem:[%s16851_s27 + $0x38] sm:$0xff]  ;;  %v9571_v0 = vld [vmem:[%s16850_s7 + $0x130] sm:$0xff]  ;;  %v14034_v2 = vld [vmem:[%s16851_s27 + $0x40] sm:$0xff]  ;;  %v12184_v3 = vpack.c.bf16 %v9537_v62, %v9536_v61 }
  0xd9   :  { %12143 = vmatpush3.bf16.msra.mxu0 %v12140_v23  ;;  %v9572_v1 = vld [vmem:[%s16850_s7 + $0x138] sm:$0xff]  ;;  %v14045_v5 = vld [vmem:[%s16851_s27 + $0x48] sm:$0xff]  ;;  %v14052_v6 = vld [vmem:[%s16851_s27 + $0x50] sm:$0xff] }
  0xda   :  { %12163 = vmatpush3.bf16.msra.mxu1 %v12160_v24  ;;  %12145 = vmatprep.subr.bf16.mxu0 %v12144_v29  ;;  %v12204_v4 = vpack.c.bf16 %v9572_v1, %v9571_v0  ;;  %v14063_v7 = vld [vmem:[%s16851_s27 + $0x58] sm:$0xff]  ;;  %v14070_v8 = vld [vmem:[%s16851_s27 + $0x60] sm:$0xff]  ;;  %v14083_v10 = vld [vmem:[%s16851_s27 + $0x68] sm:$0xff] }
  0xdb   :  { %12165 = vmatprep.subr.bf16.mxu1 %v12164_v30  ;;  %v14090_v11 = vld [vmem:[%s16851_s27 + $0x70] sm:$0xff]  ;;  %v14101_v12 = vld [vmem:[%s16851_s27 + $0x78] sm:$0xff]  ;;  %v14108_v13 = vld [vmem:[%s16851_s27 + $0x80] sm:$0xff] }
  0xdc   :  { %v14119_v14 = vld [vmem:[%s16851_s27 + $0x88] sm:$0xff]  ;;  %v14126_v15 = vld [vmem:[%s16851_s27 + $0x90] sm:$0xff]  ;;  %v14137_v16 = vld [vmem:[%s16851_s27 + $0x98] sm:$0xff] }
  0xdd   :  { %12147 = vmatpush3.bf16.msra.mxu0 %v12144_v29  ;;  %v14144_v17 = vld [vmem:[%s16851_s27 + $0xa0] sm:$0xff]  ;;  %v14155_v18 = vld [vmem:[%s16851_s27 + $0xa8] sm:$0xff]  ;;  %v14162_v19 = vld [vmem:[%s16851_s27 + $0xb0] sm:$0xff] }
  0xde   :  { %12167 = vmatpush3.bf16.msra.mxu1 %v12164_v30  ;;  %12169 = vmatprep.subr.bf16.mxu0 %v12168_v35  ;;  %v14173_v21 = vld [vmem:[%s16851_s27 + $0xb8] sm:$0xff]  ;;  %v14186_v22 = vld [vmem:[%s16852_s24] sm:$0xff]   ;;  %v14193_v23 = vld [vmem:[%s16852_s24 + $0x10] sm:$0xff]  }
  0xdf   :  { %12189 = vmatprep.subr.bf16.mxu1 %v12188_v36  ;;  %v14214_v24 = vld [vmem:[%s16852_s24 + $0x18] sm:$0xff]   ;;  %v14310_v25 = vld [vmem:[%s16852_s24 + $0x20] sm:$0xff]   ;;  %v14317_v26 = vld [vmem:[%s16852_s24 + $0x30] sm:$0xff]  }
  0xe0   :  { %10714 = vmatmul.mubr.msk.f32.vlgmr.msra.gmra.mrb[0].mxu0 %vm235_vm0, %v13927_v37  ;;  %v14323_v28 = vld [vmem:[%s16852_s24 + $0x28] sm:$0xff]   ;;  %v14330_v29 = vld [vmem:[%s16852_s24 + $0x38] sm:$0xff]   ;;  %v14353_v30 = vld [vmem:[#allocation2] ss:$0 sm:$0xff] }
  0xe1   :  { %10770 = vmatmul.mubr.msk.f32.vlgmr.msra.gmra.mrb[0].mxu1 %vm235_vm0, %v13927_v37  ;;  %12171 = vmatpush3.bf16.msra.mxu0 %v12168_v35  ;;  %v14355_v31 = vld [vmem:[#allocation2 + $0x1] ss:$0 sm:$0xff] }
  0xe2   :  { %12191 = vmatpush3.bf16.msra.mxu1 %v12188_v36  ;;  %10716 = vmatprep.mubr.msk.f32.mxu0 %vm235_vm0, %v13938_v40 }
  0xe3   :  { %10772 = vmatprep.mubr.msk.f32.mxu1 %vm235_vm0, %v13938_v40  ;;  %12173 = vmatprep.subr.bf16.mxu0 %v12172_v45 }
  0xe4   :  { %10717 = vmatmul.mubr.msk.f32.gmra.mrb[2].mxu0 %vm235_vm0, %v13952_v44  ;;  %12193 = vmatprep.subr.bf16.mxu1 %v12192_v48 }
  0xe5   :  { %10773 = vmatmul.mubr.msk.f32.gmra.mrb[2].mxu1 %vm235_vm0, %v13952_v44  ;;  %10719 = vmatprep.mubr.msk.f32.mxu0 %vm235_vm0, %v13962_v47 }
  0xe6   :  { %10775 = vmatprep.mubr.msk.f32.mxu1 %vm235_vm0, %v13962_v47  ;;  %12175 = vmatpush3.bf16.msra.mxu0 %v12172_v45 }
  0xe7   :  { %12195 = vmatpush3.bf16.msra.mxu1 %v12192_v48  ;;  %12177 = vmatprep.subr.bf16.mxu0 %v12176_v53 }
  0xe8   :  { %10720 = vmatmul.mubr.msk.f32.gmra.mrb[4].mxu0 %vm235_vm0, %v13982_v52  ;;  %12197 = vmatprep.subr.bf16.mxu1 %v12196_v55 }
  0xe9   :  { %10776 = vmatmul.mubr.msk.f32.gmra.mrb[4].mxu1 %vm235_vm0, %v13982_v52  ;;  %10722 = vmatprep.mubr.msk.f32.mxu0 %vm235_vm0, %v14004_v58 }
  0xea   :  { %10778 = vmatprep.mubr.msk.f32.mxu1 %vm235_vm0, %v14004_v58  ;;  %12179 = vmatpush3.bf16.msra.mxu0 %v12176_v53 }
  0xeb   :  { %12199 = vmatpush3.bf16.msra.mxu1 %v12196_v55  ;;  %12181 = vmatprep.subr.bf16.mxu0 %v12180_v59 }
  0xec   :  { %10723 = vmatmul.mubr.msk.f32.gmra.mrb[6].mxu0 %vm235_vm0, %v14021_v63  ;;  %12201 = vmatprep.subr.bf16.mxu1 %v12200_v60 }
  0xed   :  { %10779 = vmatmul.mubr.msk.f32.gmra.mrb[6].mxu1 %vm235_vm0, %v14021_v63  ;;  %10725 = vmatprep.mubr.msk.f32.mxu0 %vm235_vm0, %v14034_v2 }
  0xee   :  { %10781 = vmatprep.mubr.msk.f32.mxu1 %vm235_vm0, %v14034_v2  ;;  %12183 = vmatpush3.bf16.msra.mxu0 %v12180_v59 }
  0xef   :  { %12203 = vmatpush3.bf16.msra.mxu1 %v12200_v60  ;;  %12185 = vmatprep.subr.bf16.mxu0 %v12184_v3 }
  0xf0   :  { %10726 = vmatmul.mubr.msk.f32.gmra.mrb[8].mxu0 %vm235_vm0, %v14045_v5  ;;  %12205 = vmatprep.subr.bf16.mxu1 %v12204_v4 }
  0xf1   :  { %10782 = vmatmul.mubr.msk.f32.gmra.mrb[8].mxu1 %vm235_vm0, %v14045_v5  ;;  %10728 = vmatprep.mubr.msk.f32.mxu0 %vm235_vm0, %v14052_v6 }
  0xf2   :  { %10784 = vmatprep.mubr.msk.f32.mxu1 %vm235_vm0, %v14052_v6  ;;  %12187 = vmatpush3.bf16.msra.mxu0 %v12184_v3 }
  0xf3   :  { %12207 = vmatpush3.bf16.msra.mxu1 %v12204_v4  ;;  %10917 = vmatprep.subr.bf16.mxu0 %v16840_v9 }
  0xf4   :  { %10729 = vmatmul.mubr.msk.f32.gmra.mrb[10].mxu0 %vm235_vm0, %v14063_v7  ;;  %10925 = vmatprep.subr.bf16.mxu1 %v16840_v9 }
  0xf5   :  { %10785 = vmatmul.mubr.msk.f32.gmra.mrb[10].mxu1 %vm235_vm0, %v14063_v7  ;;  %10731 = vmatprep.mubr.msk.f32.mxu0 %vm235_vm0, %v14070_v8 }
  0xf6   :  { %10787 = vmatprep.mubr.msk.f32.mxu1 %vm235_vm0, %v14070_v8 }
  0xf8   :  { %10732 = vmatmul.mubr.msk.f32.gmra.mrb[12].mxu0 %vm235_vm0, %v14083_v10 }
  0xf9   :  { %10788 = vmatmul.mubr.msk.f32.gmra.mrb[12].mxu1 %vm235_vm0, %v14083_v10  ;;  %10734 = vmatprep.mubr.msk.f32.mxu0 %vm235_vm0, %v14090_v11 }
  0xfa   :  { %10790 = vmatprep.mubr.msk.f32.mxu1 %vm235_vm0, %v14090_v11 }
  0xfc   :  { %10735 = vmatmul.mubr.msk.f32.gmra.mrb[14].mxu0 %vm235_vm0, %v14101_v12 }
  0xfd   :  { %10791 = vmatmul.mubr.msk.f32.gmra.mrb[14].mxu1 %vm235_vm0, %v14101_v12  ;;  %10737 = vmatprep.mubr.msk.f32.mxu0 %vm235_vm0, %v14108_v13 }
  0xfe   :  { %10793 = vmatprep.mubr.msk.f32.mxu1 %vm235_vm0, %v14108_v13 }
 0x100   :  { %10738 = vmatmul.mubr.msk.f32.gmra.mrb[16].mxu0 %vm235_vm0, %v14119_v14 }
 0x101   :  { %10794 = vmatmul.mubr.msk.f32.gmra.mrb[16].mxu1 %vm235_vm0, %v14119_v14  ;;  %10740 = vmatprep.mubr.msk.f32.mxu0 %vm235_vm0, %v14126_v15 }
 0x102   :  { %10796 = vmatprep.mubr.msk.f32.mxu1 %vm235_vm0, %v14126_v15 }
 0x104   :  { %10741 = vmatmul.mubr.msk.f32.gmra.mrb[18].mxu0 %vm235_vm0, %v14137_v16 }
 0x105   :  { %10797 = vmatmul.mubr.msk.f32.gmra.mrb[18].mxu1 %vm235_vm0, %v14137_v16  ;;  %10743 = vmatprep.mubr.msk.f32.mxu0 %vm235_vm0, %v14144_v17 }
 0x106   :  { %10799 = vmatprep.mubr.msk.f32.mxu1 %vm235_vm0, %v14144_v17 }
 0x108   :  { %10744 = vmatmul.mubr.msk.f32.gmra.mrb[20].mxu0 %vm235_vm0, %v14155_v18 }
 0x109   :  { %10800 = vmatmul.mubr.msk.f32.gmra.mrb[20].mxu1 %vm235_vm0, %v14155_v18  ;;  %10746 = vmatprep.mubr.msk.f32.mxu0 %vm235_vm0, %v14162_v19 }
 0x10a   :  { %10802 = vmatprep.mubr.msk.f32.mxu1 %vm235_vm0, %v14162_v19 }
 0x10c   :  { %10747 = vmatmul.mubr.msk.f32.gmra.mrb[22].mxu0 %vm235_vm0, %v14173_v21 }
 0x10d   :  { %10803 = vmatmul.mubr.msk.f32.gmra.mrb[22].mxu1 %vm235_vm0, %v14173_v21  ;;  %10825 = vmatprep.mubr.msk.f32.mxu0 %vm235_vm0, %v13888_v20 }
 0x10e   :  { %10881 = vmatprep.mubr.msk.f32.mxu1 %vm235_vm0, %v13888_v20  ;;  %v14206_v20 = vld [vmem:[%s16852_s24 + $0x8] sm:$0xff]  }
 0x110   :  { %10826 = vmatmul.mubr.msk.f32.vlgmr.msra.gmra.mrb[24].mxu0 %vm235_vm0, %v13927_v37 }
 0x111   :  { %10882 = vmatmul.mubr.msk.f32.vlgmr.msra.gmra.mrb[24].mxu1 %vm235_vm0, %v13927_v37  ;;  %10918 = vmatpush3.bf16.msra.mxu0 %v14186_v22 }
 0x112   :  { %10926 = vmatpush3.bf16.msra.mxu1 %v14193_v23  ;;  %10828 = vmatprep.mubr.msk.f32.mxu0 %vm235_vm0, %v13938_v40 }
 0x113   :  { %10884 = vmatprep.mubr.msk.f32.mxu1 %vm235_vm0, %v13938_v40  ;;  %10919 = vmatprep.subr.bf16.mxu0 %v16840_v9 }
 0x114   :  { %10829 = vmatmul.mubr.msk.f32.gmra.mrb[26].mxu0 %vm235_vm0, %v13952_v44  ;;  %10927 = vmatprep.subr.bf16.mxu1 %v16840_v9 }
 0x115   :  { %10885 = vmatmul.mubr.msk.f32.gmra.mrb[26].mxu1 %vm235_vm0, %v13952_v44  ;;  %10831 = vmatprep.mubr.msk.f32.mxu0 %vm235_vm0, %v13962_v47 }
 0x116   :  { %10887 = vmatprep.mubr.msk.f32.mxu1 %vm235_vm0, %v13962_v47  ;;  %10920 = vmatpush3.bf16.msra.mxu0 %v14206_v20 }
 0x117   :  { %10928 = vmatpush3.bf16.msra.mxu1 %v14214_v24  ;;  %10933 = vmatprep.subr.bf16.mxu0 %v16840_v9 }
 0x118   :  { %10832 = vmatmul.mubr.msk.f32.gmra.mrb[28].mxu0 %vm235_vm0, %v13982_v52  ;;  %10941 = vmatprep.subr.bf16.mxu1 %v16840_v9 }
 0x119   :  { %10888 = vmatmul.mubr.msk.f32.gmra.mrb[28].mxu1 %vm235_vm0, %v13982_v52  ;;  %10834 = vmatprep.mubr.msk.f32.mxu0 %vm235_vm0, %v14004_v58 }
 0x11a   :  { %10890 = vmatprep.mubr.msk.f32.mxu1 %vm235_vm0, %v14004_v58 }
 0x11c   :  { %10835 = vmatmul.mubr.msk.f32.gmra.mrb[30].mxu0 %vm235_vm0, %v14021_v63 }
 0x11d   :  { %10891 = vmatmul.mubr.msk.f32.gmra.mrb[30].mxu1 %vm235_vm0, %v14021_v63  ;;  %10837 = vmatprep.mubr.msk.f32.mxu0 %vm235_vm0, %v14034_v2 }
 0x11e   :  { %10893 = vmatprep.mubr.msk.f32.mxu1 %vm235_vm0, %v14034_v2 }
 0x120   :  { %10838 = vmatmul.mubr.msk.f32.gmra.mrb[32].mxu0 %vm235_vm0, %v14045_v5 }
 0x121   :  { %10894 = vmatmul.mubr.msk.f32.gmra.mrb[32].mxu1 %vm235_vm0, %v14045_v5  ;;  %10840 = vmatprep.mubr.msk.f32.mxu0 %vm235_vm0, %v14052_v6 }
 0x122   :  { %10896 = vmatprep.mubr.msk.f32.mxu1 %vm235_vm0, %v14052_v6 }
 0x124   :  { %10841 = vmatmul.mubr.msk.f32.gmra.mrb[34].mxu0 %vm235_vm0, %v14063_v7 }
 0x125   :  { %10897 = vmatmul.mubr.msk.f32.gmra.mrb[34].mxu1 %vm235_vm0, %v14063_v7  ;;  %10843 = vmatprep.mubr.msk.f32.mxu0 %vm235_vm0, %v14070_v8 }
 0x126   :  { %10899 = vmatprep.mubr.msk.f32.mxu1 %vm235_vm0, %v14070_v8 }
 0x128   :  { %10844 = vmatmul.mubr.msk.f32.gmra.mrb[36].mxu0 %vm235_vm0, %v14083_v10 }
 0x129   :  { %10900 = vmatmul.mubr.msk.f32.gmra.mrb[36].mxu1 %vm235_vm0, %v14083_v10  ;;  %10846 = vmatprep.mubr.msk.f32.mxu0 %vm235_vm0, %v14090_v11 }
 0x12a   :  { %10902 = vmatprep.mubr.msk.f32.mxu1 %vm235_vm0, %v14090_v11 }
 0x12c   :  { %10847 = vmatmul.mubr.msk.f32.gmra.mrb[38].mxu0 %vm235_vm0, %v14101_v12 }
 0x12d   :  { %10903 = vmatmul.mubr.msk.f32.gmra.mrb[38].mxu1 %vm235_vm0, %v14101_v12  ;;  %10849 = vmatprep.mubr.msk.f32.mxu0 %vm235_vm0, %v14108_v13 }
 0x12e   :  { %10905 = vmatprep.mubr.msk.f32.mxu1 %vm235_vm0, %v14108_v13 }
 0x130   :  { %10850 = vmatmul.mubr.msk.f32.gmra.mrb[40].mxu0 %vm235_vm0, %v14119_v14 }
 0x131   :  { %10906 = vmatmul.mubr.msk.f32.gmra.mrb[40].mxu1 %vm235_vm0, %v14119_v14  ;;  %10852 = vmatprep.mubr.msk.f32.mxu0 %vm235_vm0, %v14126_v15 }
 0x132   :  { %10908 = vmatprep.mubr.msk.f32.mxu1 %vm235_vm0, %v14126_v15 }
 0x134   :  { %10853 = vmatmul.mubr.msk.f32.gmra.mrb[42].mxu0 %vm235_vm0, %v14137_v16 }
 0x135   :  { %10909 = vmatmul.mubr.msk.f32.gmra.mrb[42].mxu1 %vm235_vm0, %v14137_v16  ;;  %10855 = vmatprep.mubr.msk.f32.mxu0 %vm235_vm0, %v14144_v17 }
 0x136   :  { %10911 = vmatprep.mubr.msk.f32.mxu1 %vm235_vm0, %v14144_v17 }
 0x138   :  { %10856 = vmatmul.mubr.msk.f32.gmra.mrb[44].mxu0 %vm235_vm0, %v14155_v18 }
 0x139   :  { %10912 = vmatmul.mubr.msk.f32.gmra.mrb[44].mxu1 %vm235_vm0, %v14155_v18  ;;  %10858 = vmatprep.mubr.msk.f32.mxu0 %vm235_vm0, %v14162_v19 }
 0x13a   :  { %10914 = vmatprep.mubr.msk.f32.mxu1 %vm235_vm0, %v14162_v19 }
 0x13c   :  { %10859 = vmatmul.mubr.msk.f32.gmra.mrb[46].mxu0 %vm235_vm0, %v14173_v21 }
 0x13d   :  { %10915 = vmatmul.mubr.msk.f32.gmra.mrb[46].mxu1 %vm235_vm0, %v14173_v21  ;;  %10921 = vmatprep.mubr.msk.bf16.mxu0 %vm13601_vm1, %v16840_v9 }
 0x13e   :  { %10929 = vmatprep.mubr.msk.bf16.mxu1 %vm13601_vm1, %v16840_v9 }
 0x140   :  { %10922 = vmatmul.mubr.bf16.vlgmr.msra.gmra.mrb[48].mxu0 %v13602_v27 }
 0x141   :  { %10930 = vmatmul.mubr.bf16.vlgmr.msra.gmra.mrb[48].mxu1 %v13602_v27  ;;  %10934 = vmatpush3.bf16.msra.mxu0 %v14310_v25 }
 0x142   :  { %10942 = vmatpush3.bf16.msra.mxu1 %v14317_v26  ;;  %10935 = vmatprep.subr.bf16.mxu0 %v16840_v9 }
 0x143   :  { %10943 = vmatprep.subr.bf16.mxu1 %v16840_v9  ;;  %10937 = vmatprep.mubr.msk.bf16.mxu0 %vm13601_vm1, %v16840_v9 }
 0x144   :  { %10945 = vmatprep.mubr.msk.bf16.mxu1 %vm13601_vm1, %v16840_v9 }
 0x145   :  { %10936 = vmatpush3.bf16.msra.mxu0 %v14323_v28 }
 0x146   :  { %10944 = vmatpush3.bf16.msra.mxu1 %v14330_v29  ;;  %10949 = vmatprep.subr.bf16.mxu0 %v16840_v9 }
 0x147   :  { %10957 = vmatprep.subr.bf16.mxu1 %v16840_v9 }
 0x148   :  { %10938 = vmatmul.mubr.bf16.vlgmr.msra.gmra.mrb[52].mxu0 %v13602_v27 }
 0x149   :  { %10946 = vmatmul.mubr.bf16.vlgmr.msra.gmra.mrb[52].mxu1 %v13602_v27  ;;  %10950 = vmatpush3.bf16.msra.mxu0 %v14186_v22 }
 0x14a   :  { %10958 = vmatpush3.bf16.msra.mxu1 %v14193_v23  ;;  %10951 = vmatprep.subr.bf16.mxu0 %v16840_v9 }
 0x14b   :  { %10959 = vmatprep.subr.bf16.mxu1 %v16840_v9  ;;  %10953 = vmatprep.mubr.msk.bf16.mxu0 %vm13601_vm1, %v16840_v9 }
 0x14c   :  { %10961 = vmatprep.mubr.msk.bf16.mxu1 %vm13601_vm1, %v16840_v9 }
 0x14d   :  { %10952 = vmatpush3.bf16.msra.mxu0 %v14206_v20 }
 0x14e   :  { %10960 = vmatpush3.bf16.msra.mxu1 %v14214_v24  ;;  %10965 = vmatprep.subr.bf16.mxu0 %v16840_v9 }
 0x14f   :  { %10973 = vmatprep.subr.bf16.mxu1 %v16840_v9  ;;  %v14493_v9 = vld [vmem:[#allocation2 + $0x2] ss:$0 sm:$0xff] }
 0x1b3   :  { %v10715_v32 = vpop.f32.mrb[0].mxu0 }
 0x1b4   :  { %v10771_v33 = vpop.f32.mrb[0].mxu1  ;;  %v14357_v34 = vpop.f32.mrb[1].mxu0  ;;  %v14360_v35 = vadd.f32 %v10715_v32, %v14353_v30 }
 0x1b5   :  { %v14362_v36 = vpop.f32.mrb[1].mxu1  ;;  %v14365_v37 = vadd.f32 %v10771_v33, %v14355_v31 }
 0x1b7   :  { %v10718_v38 = vpop.f32.mrb[2].mxu0 }
 0x1b8   :  { %v10774_v39 = vpop.f32.mrb[2].mxu1  ;;  %v384_v40 = vpop.f32.mrb[3].mxu0  ;;  %v14368_v41 = vadd.f32 %v10718_v38, %v14353_v30 }
 0x1b9   :  { %v588_v42 = vpop.f32.mrb[3].mxu1  ;;  %v14371_v43 = vadd.f32 %v14353_v30, %v384_v40  ;;  %v14374_v44 = vadd.f32 %v10774_v39, %v14355_v31 }
 0x1ba   :  { %v14377_v45 = vadd.f32 %v14355_v31, %v588_v42 }
 0x1bb   :  { %v10721_v46 = vpop.f32.mrb[4].mxu0 }
 0x1bc   :  { %v10777_v47 = vpop.f32.mrb[4].mxu1  ;;  %v394_v48 = vpop.f32.mrb[5].mxu0  ;;  %v14380_v49 = vadd.f32 %v10721_v46, %v14353_v30 }
 0x1bd   :  { %v598_v50 = vpop.f32.mrb[5].mxu1  ;;  %v14383_v51 = vadd.f32 %v14353_v30, %v394_v48  ;;  %v14386_v52 = vadd.f32 %v10777_v47, %v14355_v31 }
 0x1be   :  { %v14389_v53 = vadd.f32 %v14355_v31, %v598_v50 }
 0x1bf   :  { %v10724_v54 = vpop.f32.mrb[6].mxu0 }
 0x1c0   :  { %v10780_v55 = vpop.f32.mrb[6].mxu1  ;;  %v404_v56 = vpop.f32.mrb[7].mxu0  ;;  %v14392_v57 = vadd.f32 %v10724_v54, %v14353_v30 }
 0x1c1   :  { %v608_v58 = vpop.f32.mrb[7].mxu1  ;;  %v14395_v59 = vadd.f32 %v14353_v30, %v404_v56  ;;  %v14398_v60 = vadd.f32 %v10780_v55, %v14355_v31 }
 0x1c2   :  { %v14401_v61 = vadd.f32 %v14355_v31, %v608_v58 }
 0x1c3   :  { %v10727_v62 = vpop.f32.mrb[8].mxu0 }
 0x1c4   :  { %v10783_v63 = vpop.f32.mrb[8].mxu1  ;;  %v414_v0 = vpop.f32.mrb[9].mxu0  ;;  %v14404_v1 = vadd.f32 %v10727_v62, %v14353_v30 }
 0x1c5   :  { %v618_v2 = vpop.f32.mrb[9].mxu1  ;;  %v14407_v3 = vadd.f32 %v14353_v30, %v414_v0  ;;  %v14410_v4 = vadd.f32 %v10783_v63, %v14355_v31 }
 0x1c6   :  { %16853 = vst [vmem:[#allocation24_spill] sm:$0xff] %v14404_v1  ;;  %v14413_v5 = vadd.f32 %v14355_v31, %v618_v2 }
 0x1c7   :  { %16854 = vst [vmem:[#allocation25_spill] sm:$0xff] %v14410_v4  ;;  %v10730_v6 = vpop.f32.mrb[10].mxu0 }
 0x1c8   :  { %v10786_v7 = vpop.f32.mrb[10].mxu1  ;;  %v424_v8 = vpop.f32.mrb[11].mxu0  ;;  %v14416_v10 = vadd.f32 %v10730_v6, %v14353_v30 }
 0x1c9   :  { %v628_v11 = vpop.f32.mrb[11].mxu1  ;;  %v14419_v12 = vadd.f32 %v14353_v30, %v424_v8  ;;  %v14422_v13 = vadd.f32 %v10786_v7, %v14355_v31 }
 0x1ca   :  { %16855 = vst [vmem:[#allocation26_spill] sm:$0xff] %v14416_v10  ;;  %v14425_v14 = vadd.f32 %v14355_v31, %v628_v11 }
 0x1cb   :  { %16856 = vst [vmem:[#allocation27_spill] sm:$0xff] %v14419_v12  ;;  %16857 = vst [vmem:[#allocation28_spill] sm:$0xff] %v14422_v13  ;;  %v10733_v15 = vpop.f32.mrb[12].mxu0 }
 0x1cc   :  { %16858 = vst [vmem:[#allocation29_spill] sm:$0xff] %v14425_v14  ;;  %v10789_v16 = vpop.f32.mrb[12].mxu1  ;;  %v434_v17 = vpop.f32.mrb[13].mxu0  ;;  %v14428_v18 = vadd.f32 %v10733_v15, %v14353_v30 }
 0x1cd   :  { %v638_v19 = vpop.f32.mrb[13].mxu1  ;;  %v14431_v21 = vadd.f32 %v14353_v30, %v434_v17  ;;  %v14434_v27 = vadd.f32 %v10789_v16, %v14355_v31 }
 0x1ce   :  { %16859 = vst [vmem:[#allocation30_spill] sm:$0xff] %v14428_v18  ;;  %v14437_v32 = vadd.f32 %v14355_v31, %v638_v19 }
 0x1cf   :  { %16860 = vst [vmem:[#allocation31_spill] sm:$0xff] %v14431_v21  ;;  %16861 = vst [vmem:[#allocation32_spill] sm:$0xff] %v14434_v27  ;;  %v10736_v33 = vpop.f32.mrb[14].mxu0 }
 0x1d0   :  { %16862 = vst [vmem:[#allocation33_spill] sm:$0xff] %v14437_v32  ;;  %v10792_v38 = vpop.f32.mrb[14].mxu1  ;;  %v444_v39 = vpop.f32.mrb[15].mxu0  ;;  %v14440_v40 = vadd.f32 %v10736_v33, %v14353_v30 }
 0x1d1   :  { %v648_v42 = vpop.f32.mrb[15].mxu1  ;;  %v14443_v46 = vadd.f32 %v14353_v30, %v444_v39  ;;  %v14446_v47 = vadd.f32 %v10792_v38, %v14355_v31 }
 0x1d2   :  { %16863 = vst [vmem:[#allocation34_spill] sm:$0xff] %v14440_v40  ;;  %v14449_v48 = vadd.f32 %v14355_v31, %v648_v42 }
 0x1d3   :  { %16864 = vst [vmem:[#allocation35_spill] sm:$0xff] %v14443_v46  ;;  %16865 = vst [vmem:[#allocation36_spill] sm:$0xff] %v14446_v47  ;;  %v10739_v50 = vpop.f32.mrb[16].mxu0 }
 0x1d4   :  { %16866 = vst [vmem:[#allocation37_spill] sm:$0xff] %v14449_v48  ;;  %v10795_v54 = vpop.f32.mrb[16].mxu1  ;;  %v454_v55 = vpop.f32.mrb[17].mxu0  ;;  %v14452_v56 = vadd.f32 %v10739_v50, %v14353_v30 }
 0x1d5   :  { %v658_v58 = vpop.f32.mrb[17].mxu1  ;;  %v14455_v62 = vadd.f32 %v14353_v30, %v454_v55  ;;  %v14458_v63 = vadd.f32 %v10795_v54, %v14355_v31 }
 0x1d6   :  { %16867 = vst [vmem:[#allocation38_spill] sm:$0xff] %v14452_v56  ;;  %v14461_v0 = vadd.f32 %v14355_v31, %v658_v58 }
 0x1d7   :  { %16868 = vst [vmem:[#allocation39_spill] sm:$0xff] %v14455_v62  ;;  %16869 = vst [vmem:[#allocation40_spill] sm:$0xff] %v14458_v63  ;;  %v10742_v2 = vpop.f32.mrb[18].mxu0 }
 0x1d8   :  { %16870 = vst [vmem:[#allocation41_spill] sm:$0xff] %v14461_v0  ;;  %v10798_v6 = vpop.f32.mrb[18].mxu1  ;;  %v464_v7 = vpop.f32.mrb[19].mxu0  ;;  %v14464_v8 = vadd.f32 %v10742_v2, %v14353_v30 }
 0x1d9   :  { %v668_v11 = vpop.f32.mrb[19].mxu1  ;;  %v14467_v15 = vadd.f32 %v14353_v30, %v464_v7  ;;  %v14470_v16 = vadd.f32 %v10798_v6, %v14355_v31 }
 0x1da   :  { %16871 = vst [vmem:[#allocation42_spill] sm:$0xff] %v14464_v8  ;;  %v14473_v17 = vadd.f32 %v14355_v31, %v668_v11 }
 0x1db   :  { %16872 = vst [vmem:[#allocation43_spill] sm:$0xff] %v14467_v15  ;;  %16873 = vst [vmem:[#allocation44_spill] sm:$0xff] %v14470_v16  ;;  %v10745_v19 = vpop.f32.mrb[20].mxu0 }
 0x1dc   :  { %16874 = vst [vmem:[#allocation45_spill] sm:$0xff] %v14473_v17  ;;  %v14476_v33 = vadd.f32 %v10745_v19, %v14353_v30  ;;  %v10801_v38 = vpop.f32.mrb[20].mxu1  ;;  %v474_v39 = vpop.f32.mrb[21].mxu0 }
 0x1dd   :  { %v14479_v42 = vadd.f32 %v14353_v30, %v474_v39  ;;  %v678_v50 = vpop.f32.mrb[21].mxu1  ;;  %v14482_v54 = vadd.f32 %v10801_v38, %v14355_v31  ;;  %v14498_v38 = vld [vmem:[#allocation2 + $0x3] ss:$0 sm:$0xff] }
 0x1de   :  { %16875 = vst [vmem:[#allocation46_spill] sm:$0xff] %v14476_v33  ;;  %v14485_v55 = vadd.f32 %v14355_v31, %v678_v50 }
 0x1df   :  { %16876 = vst [vmem:[#allocation47_spill] sm:$0xff] %v14479_v42  ;;  %16877 = vst [vmem:[#allocation48_spill] sm:$0xff] %v14482_v54  ;;  %v10748_v58 = vpop.f32.mrb[22].mxu0 }
 0x1e0   :  { %16878 = vst [vmem:[#allocation49_spill] sm:$0xff] %v14485_v55  ;;  %v14488_v2 = vadd.f32 %v10748_v58, %v14353_v30  ;;  %v10804_v6 = vpop.f32.mrb[22].mxu1  ;;  %v484_v7 = vpop.f32.mrb[23].mxu0 }
 0x1e1   :  { %v14491_v11 = vadd.f32 %v14353_v30, %v484_v7  ;;  %v688_v19 = vpop.f32.mrb[23].mxu1  ;;  %v14496_v39 = vadd.f32 %v10804_v6, %v14355_v31 }
 0x1e2   :  { %16879 = vst [vmem:[#allocation50_spill] sm:$0xff] %v14488_v2  ;;  %v14501_v50 = vadd.f32 %v14355_v31, %v688_v19 }
 0x1e3   :  { %16880 = vst [vmem:[#allocation51_spill] sm:$0xff] %v14491_v11  ;;  %16881 = vst [vmem:[#allocation52_spill] sm:$0xff] %v14496_v39  ;;  %v10827_v54 = vpop.f32.mrb[24].mxu0 }
 0x1e4   :  { %16882 = vst [vmem:[#allocation53_spill] sm:$0xff] %v14501_v50  ;;  %v14504_v58 = vadd.f32 %v10827_v54, %v14493_v9  ;;  %v10883_v2 = vpop.f32.mrb[24].mxu1  ;;  %v14506_v33 = vpop.f32.mrb[25].mxu0 }
 0x1e5   :  { %v14508_v7 = vpop.f32.mrb[25].mxu1  ;;  %v14511_v11 = vadd.f32 %v10883_v2, %v14498_v38 }
 0x1e7   :  { %v10830_v55 = vpop.f32.mrb[26].mxu0 }
 0x1e8   :  { %v14514_v6 = vadd.f32 %v10830_v55, %v14493_v9  ;;  %v10886_v39 = vpop.f32.mrb[26].mxu1  ;;  %v792_v42 = vpop.f32.mrb[27].mxu0 }
 0x1e9   :  { %v14517_v19 = vadd.f32 %v14493_v9, %v792_v42  ;;  %v996_v50 = vpop.f32.mrb[27].mxu1  ;;  %v14520_v54 = vadd.f32 %v10886_v39, %v14498_v38 }
 0x1ea   :  { %v14523_v16 = vadd.f32 %v14498_v38, %v996_v50 }
 0x1eb   :  { %v10833_v8 = vpop.f32.mrb[28].mxu0 }
 0x1ec   :  { %v14526_v2 = vadd.f32 %v10833_v8, %v14493_v9  ;;  %v10889_v17 = vpop.f32.mrb[28].mxu1  ;;  %v802_v15 = vpop.f32.mrb[29].mxu0 }
 0x1ed   :  { %v14529_v55 = vadd.f32 %v14493_v9, %v802_v15  ;;  %v1006_v63 = vpop.f32.mrb[29].mxu1  ;;  %v14532_v42 = vadd.f32 %v10889_v17, %v14498_v38 }
 0x1ee   :  { %v14535_v56 = vadd.f32 %v14498_v38, %v1006_v63 }
 0x1ef   :  { %v10836_v39 = vpop.f32.mrb[30].mxu0 }
 0x1f0   :  { %v14538_v50 = vadd.f32 %v10836_v39, %v14493_v9  ;;  %v10892_v0 = vpop.f32.mrb[30].mxu1  ;;  %v812_v62 = vpop.f32.mrb[31].mxu0 }
 0x1f1   :  { %v14541_v8 = vadd.f32 %v14493_v9, %v812_v62  ;;  %v1016_v47 = vpop.f32.mrb[31].mxu1  ;;  %v14544_v15 = vadd.f32 %v10892_v0, %v14498_v38 }
 0x1f2   :  { %v14547_v40 = vadd.f32 %v14498_v38, %v1016_v47 }
 0x1f3   :  { %v10839_v17 = vpop.f32.mrb[32].mxu0 }
 0x1f4   :  { %v14550_v63 = vadd.f32 %v10839_v17, %v14493_v9  ;;  %v10895_v48 = vpop.f32.mrb[32].mxu1  ;;  %v822_v46 = vpop.f32.mrb[33].mxu0 }
 0x1f5   :  { %v14553_v39 = vadd.f32 %v14493_v9, %v822_v46  ;;  %v1026_v27 = vpop.f32.mrb[33].mxu1  ;;  %v14556_v62 = vadd.f32 %v10895_v48, %v14498_v38 }
 0x1f6   :  { %16883 = vst [vmem:[#allocation54_spill] sm:$0xff] %v14550_v63  ;;  %v14559_v18 = vadd.f32 %v14498_v38, %v1026_v27 }
 0x1f7   :  { %16884 = vst [vmem:[#allocation55_spill] sm:$0xff] %v14556_v62  ;;  %v10842_v0 = vpop.f32.mrb[34].mxu0 }
 0x1f8   :  { %v14562_v47 = vadd.f32 %v10842_v0, %v14493_v9  ;;  %v10898_v32 = vpop.f32.mrb[34].mxu1  ;;  %v832_v21 = vpop.f32.mrb[35].mxu0 }
 0x1f9   :  { %v14565_v17 = vadd.f32 %v14493_v9, %v832_v21  ;;  %v1036_v13 = vpop.f32.mrb[35].mxu1  ;;  %v14568_v46 = vadd.f32 %v10898_v32, %v14498_v38 }
 0x1fa   :  { %16885 = vst [vmem:[#allocation56_spill] sm:$0xff] %v14562_v47  ;;  %v14571_v10 = vadd.f32 %v14498_v38, %v1036_v13 }
 0x1fb   :  { %16886 = vst [vmem:[#allocation57_spill] sm:$0xff] %v14565_v17  ;;  %16887 = vst [vmem:[#allocation58_spill] sm:$0xff] %v14568_v46  ;;  %v10845_v48 = vpop.f32.mrb[36].mxu0 }
 0x1fc   :  { %16888 = vst [vmem:[#allocation59_spill] sm:$0xff] %v14571_v10  ;;  %v14574_v27 = vadd.f32 %v10845_v48, %v14493_v9  ;;  %v10901_v14 = vpop.f32.mrb[36].mxu1  ;;  %v842_v12 = vpop.f32.mrb[37].mxu0 }
 0x1fd   :  { %v14577_v0 = vadd.f32 %v14493_v9, %v842_v12  ;;  %v1046_v47 = vpop.f32.mrb[37].mxu1  ;;  %v14580_v21 = vadd.f32 %v10901_v14, %v14498_v38 }
 0x1fe   :  { %16889 = vst [vmem:[#allocation60_spill] sm:$0xff] %v14574_v27  ;;  %v14583_v17 = vadd.f32 %v14498_v38, %v1046_v47 }
 0x1ff   :  { %16890 = vst [vmem:[#allocation61_spill] sm:$0xff] %v14577_v0  ;;  %16891 = vst [vmem:[#allocation62_spill] sm:$0xff] %v14580_v21  ;;  %v10848_v32 = vpop.f32.mrb[38].mxu0 }
 0x200   :  { %16892 = vst [vmem:[#allocation63_spill] sm:$0xff] %v14583_v17  ;;  %v14586_v13 = vadd.f32 %v10848_v32, %v14493_v9  ;;  %v10904_v46 = vpop.f32.mrb[38].mxu1  ;;  %v852_v10 = vpop.f32.mrb[39].mxu0 }
 0x201   :  { %v14589_v48 = vadd.f32 %v14493_v9, %v852_v10  ;;  %v1056_v27 = vpop.f32.mrb[39].mxu1  ;;  %v14592_v12 = vadd.f32 %v10904_v46, %v14498_v38 }
 0x202   :  { %16893 = vst [vmem:[#allocation64_spill] sm:$0xff] %v14586_v13  ;;  %v14595_v0 = vadd.f32 %v14498_v38, %v1056_v27 }
 0x203   :  { %16894 = vst [vmem:[#allocation65_spill] sm:$0xff] %v14589_v48  ;;  %16895 = vst [vmem:[#allocation66_spill] sm:$0xff] %v14592_v12  ;;  %v10851_v14 = vpop.f32.mrb[40].mxu0 }
 0x204   :  { %16896 = vst [vmem:[#allocation67_spill] sm:$0xff] %v14595_v0  ;;  %v14598_v47 = vadd.f32 %v10851_v14, %v14493_v9  ;;  %v10907_v21 = vpop.f32.mrb[40].mxu1  ;;  %v862_v17 = vpop.f32.mrb[41].mxu0 }
 0x205   :  { %v14601_v32 = vadd.f32 %v14493_v9, %v862_v17  ;;  %v1066_v13 = vpop.f32.mrb[41].mxu1  ;;  %v14604_v10 = vadd.f32 %v10907_v21, %v14498_v38 }
 0x206   :  { %16897 = vst [vmem:[#allocation68_spill] sm:$0xff] %v14598_v47  ;;  %v14607_v48 = vadd.f32 %v14498_v38, %v1066_v13 }
 0x207   :  { %16898 = vst [vmem:[#allocation69_spill] sm:$0xff] %v14601_v32  ;;  %16899 = vst [vmem:[#allocation70_spill] sm:$0xff] %v14604_v10  ;;  %v10854_v46 = vpop.f32.mrb[42].mxu0 }
 0x208   :  { %16900 = vst [vmem:[#allocation71_spill] sm:$0xff] %v14607_v48  ;;  %v14610_v27 = vadd.f32 %v10854_v46, %v14493_v9  ;;  %v10910_v12 = vpop.f32.mrb[42].mxu1  ;;  %v872_v0 = vpop.f32.mrb[43].mxu0 }
 0x209   :  { %v14613_v14 = vadd.f32 %v10910_v12, %v14498_v38  ;;  %v14616_v47 = vadd.f32 %v14493_v9, %v872_v0  ;;  %v1076_v17 = vpop.f32.mrb[43].mxu1 }
 0x20a   :  { %16901 = vst [vmem:[#allocation72_spill] sm:$0xff] %v14610_v27  ;;  %v14619_v32 = vadd.f32 %v14498_v38, %v1076_v17 }
 0x20b   :  { %16902 = vst [vmem:[#allocation73_spill] sm:$0xff] %v14613_v14  ;;  %16903 = vst [vmem:[#allocation74_spill] sm:$0xff] %v14616_v47  ;;  %v10857_v21 = vpop.f32.mrb[44].mxu0 }
 0x20c   :  { %16904 = vst [vmem:[#allocation75_spill] sm:$0xff] %v14619_v32  ;;  %v14622_v13 = vadd.f32 %v10857_v21, %v14493_v9  ;;  %v10913_v10 = vpop.f32.mrb[44].mxu1  ;;  %v882_v48 = vpop.f32.mrb[45].mxu0 }
 0x20d   :  { %v14625_v46 = vadd.f32 %v10913_v10, %v14498_v38  ;;  %v14628_v27 = vadd.f32 %v14493_v9, %v882_v48  ;;  %v1086_v12 = vpop.f32.mrb[45].mxu1 }
 0x20e   :  { %16905 = vst [vmem:[#allocation76_spill] sm:$0xff] %v14622_v13  ;;  %v14631_v0 = vadd.f32 %v14498_v38, %v1086_v12  ;;  %v375_v12 = vadd.f32 %v14353_v30, %v14357_v34  ;;  %v783_v30 = vadd.f32 %v14493_v9, %v14506_v33 }
 0x20f   :  { %16906 = vst [vmem:[#allocation77_spill] sm:$0xff] %v14625_v46  ;;  %16907 = vst [vmem:[#allocation78_spill] sm:$0xff] %v14628_v27  ;;  %v10860_v14 = vpop.f32.mrb[46].mxu0 }
 0x210   :  { %16908 = vst [vmem:[#allocation79_spill] sm:$0xff] %v14631_v0  ;;  %v14634_v17 = vadd.f32 %v10860_v14, %v14493_v9  ;;  %v10916_v32 = vpop.f32.mrb[46].mxu1  ;;  %v892_v47 = vpop.f32.mrb[47].mxu0  ;;  %v579_v14 = vadd.f32 %v14355_v31, %v14362_v36  ;;  %v987_v31 = vadd.f32 %v14498_v38, %v14508_v7 }
 0x211   :  { %v14637_v21 = vadd.f32 %v10916_v32, %v14498_v38  ;;  %v14640_v13 = vadd.f32 %v14493_v9, %v892_v47  ;;  %v1096_v10 = vpop.f32.mrb[47].mxu1 }
 0x212   :  { %16909 = vst [vmem:[#allocation80_spill] sm:$0xff] %v14634_v17  ;;  %v14643_v48 = vadd.f32 %v14498_v38, %v1096_v10 }
 0x213   :  { %16910 = vst [vmem:[#allocation81_spill] sm:$0xff] %v14637_v21  ;;  %16911 = vst [vmem:[#allocation82_spill] sm:$0xff] %v14640_v13  ;;  %v1174_v46 = vpop.f32.mrb[48].mxu0 }
 0x214   :  { %v1180_v17 = vadd.f32 %v1174_v46, %v375_v12  ;;  %v1227_v0 = vpop.f32.mrb[48].mxu1  ;;  %v10923_v27 = vpop.f32.mrb[49].mxu0 }
 0x215   :  { %v1233_v62 = vadd.f32 %v1227_v0, %v579_v14  ;;  %v10931_v32 = vpop.f32.mrb[49].mxu1  ;;  %v1177_v21 = vpop.f32.mrb[50].mxu0 }
 0x216   :  { %v9619_v63 = vmul.f32 -1.442695, %v1180_v17  ;;  %v1230_v47 = vpop.f32.mrb[50].mxu1  ;;  %v10924_v13 = vpop.f32.mrb[51].mxu0 }
 0x217   :  { %v9618_v4 = vmul.f32 -1.442695, %v1233_v62  ;;  %v10932_v1 = vpop.f32.mrb[51].mxu1 }
 0x218   :  { %12859 = vpow2.f32 %v9619_v63 }
 0x219   :  { %12861 = vpow2.f32 %v9618_v4 }
 0x21b   :  { %v1280_v34 = vpop.f32.mrb[52].mxu0 }
 0x21c   :  { %v1286_v36 = vadd.f32 %v1280_v34, %v783_v30  ;;  %v1333_v46 = vpop.f32.mrb[52].mxu1  ;;  %v10939_v27 = vpop.f32.mrb[53].mxu0 }
 0x21d   :  { %v1339_v0 = vadd.f32 %v1333_v46, %v987_v31  ;;  %v10947_v10 = vpop.f32.mrb[53].mxu1  ;;  %v1283_v21 = vpop.f32.mrb[54].mxu0 }
 0x21e   :  { %v1336_v17 = vpop.f32.mrb[54].mxu1  ;;  %v10940_v12 = vpop.f32.mrb[55].mxu0 }
 0x21f   :  { %v9620_v13 = vmul.f32 -1.442695, %v1339_v0  ;;  %v10948_v62 = vpop.f32.mrb[55].mxu1  ;;  %v16912_v0 = vmov 0.0  }
 0x221   :  { %12863 = vpow2.f32 %v9620_v13 }
 0x222   :  { %v12860_v1 = vpop.eup %12859  ;;  %12865 = vtanh.f32 %v1286_v36 }
 0x223   :  { %v12862_v63 = vpop.eup %12861  ;;  %v1350_v4 = vadd.f32 1.0, %v12860_v1 }
 0x224   :  { %v1343_v14 = vadd.f32 1.0, %v12862_v63 }
 0x225   :  { %12867 = vrcp.f32 %v1350_v4 }
 0x226   :  { %12869 = vrcp.f32 %v1343_v14 }
 0x22b   :  { %v12864_v9 = vpop.eup %12863 }
 0x22c   :  { %v12866_v33 = vpop.eup %12865  ;;  %v1359_v47 = vadd.f32 1.0, %v12864_v9 }
 0x22e   :  { %12871 = vrcp.f32 %v1359_v47 }
 0x22f   :  { %v12868_v38 = vpop.eup %12867 }
 0x230   :  { %v12870_v7 = vpop.eup %12869  ;;  %v1354_v32 = vmul.f32 %v12868_v38, %v12866_v33 }
 0x231   :  { %v1346_v30 = vmul.f32 0.0, %v12870_v7 }
 0x233   :  { %v14653_v34 = vadd.f32 %v1354_v32, %v1346_v30 }
 0x235   :  { %12873 = vtanh.f32 %v14653_v34 }
 0x238   :  { %v12872_v31 = vpop.eup %12871 }
 0x23f   :  { %v12874_v46 = vpop.eup %12873 }
 0x240   :  { %v14656_v27 = vmul.f32 %v12874_v46, %v12872_v31 }
 0x242   :  { %v1364_v36 = vpack.c.bf16 %v14656_v27, %v14656_v27 }
 0x244   :  { %10954 = vmatmul.mubr.msk.bf16.vlgmr.msra.gmra.mrb[56].mxu0 %vm1136_vm2, %v1364_v36  ;;  %10962 = vmatmul.mubr.msk.bf16.vlgmr.msra.gmra.mrb[56].mxu1 %vm1136_vm2, %v1364_v36 }
 0x245   :  { %10966 = vmatpush3.bf16.msra.mxu0 %v14310_v25  ;;  %10974 = vmatpush3.bf16.msra.mxu1 %v14317_v26 }
 0x246   :  { %10967 = vmatprep.subr.bf16.mxu0 %v16912_v0  ;;  %10975 = vmatprep.subr.bf16.mxu1 %v16912_v0 }
 0x247   :  { %10969 = vmatprep.mubr.msk.bf16.mxu0 %vm13601_vm1, %v16912_v0  ;;  %10977 = vmatprep.mubr.msk.bf16.mxu1 %vm13601_vm1, %v16912_v0 }
 0x249   :  { %10968 = vmatpush3.bf16.msra.mxu0 %v14323_v28  ;;  %10976 = vmatpush3.bf16.msra.mxu1 %v14330_v29 }
 0x24a   :  { %10981 = vmatprep.subr.bf16.mxu0 %v16912_v0  ;;  %10989 = vmatprep.subr.bf16.mxu1 %v16912_v0 }
 0x24c   :  { %10970 = vmatmul.mubr.msk.bf16.vlgmr.msra.gmra.mrb[60].mxu0 %vm1136_vm2, %v1364_v36  ;;  %10978 = vmatmul.mubr.msk.bf16.vlgmr.msra.gmra.mrb[60].mxu1 %vm1136_vm2, %v1364_v36 }
 0x24d   :  { %10982 = vmatpush3.bf16.msra.mxu0 %v14186_v22  ;;  %10990 = vmatpush3.bf16.msra.mxu1 %v14193_v23 }
 0x24e   :  { %10983 = vmatprep.subr.bf16.mxu0 %v16912_v0  ;;  %10991 = vmatprep.subr.bf16.mxu1 %v16912_v0 }
 0x24f   :  { %10985 = vmatprep.mubr.msk.bf16.mxu0 %vm13601_vm1, %v16912_v0  ;;  %10993 = vmatprep.mubr.msk.bf16.mxu1 %vm13601_vm1, %v16912_v0 }
 0x251   :  { %10984 = vmatpush3.bf16.msra.mxu0 %v14206_v20  ;;  %10992 = vmatpush3.bf16.msra.mxu1 %v14214_v24 }
 0x252   :  { %10997 = vmatprep.subr.bf16.mxu0 %v16912_v0  ;;  %11005 = vmatprep.subr.bf16.mxu1 %v16912_v0 }
 0x317   :  { %v1402_v10 = vpop.f32.mrb[56].mxu0  ;;  %v1443_v21 = vpop.f32.mrb[56].mxu1 }
 0x318   :  { %v1408_v17 = vadd.f32 %v1402_v10, %v14360_v35  ;;  %v1449_v12 = vadd.f32 %v1443_v21, %v14365_v37  ;;  %v10955_v13 = vpop.f32.mrb[57].mxu0  ;;  %v10963_v62 = vpop.f32.mrb[57].mxu1 }
 0x319   :  { %v1405_v1 = vpop.f32.mrb[58].mxu0  ;;  %v1446_v63 = vpop.f32.mrb[58].mxu1 }
 0x31a   :  { %v9626_v4 = vmul.f32 -1.442695, %v1408_v17  ;;  %v9625_v14 = vmul.f32 -1.442695, %v1449_v12  ;;  %v10956_v9 = vpop.f32.mrb[59].mxu0  ;;  %v10964_v33 = vpop.f32.mrb[59].mxu1 }
 0x31c   :  { %12875 = vpow2.f32 %v9626_v4 }
 0x31d   :  { %12877 = vpow2.f32 %v9625_v14 }
 0x31f   :  { %v1484_v38 = vpop.f32.mrb[60].mxu0  ;;  %v1525_v7 = vpop.f32.mrb[60].mxu1 }
 0x320   :  { %v1490_v32 = vadd.f32 %v1484_v38, %v14504_v58  ;;  %v1531_v47 = vadd.f32 %v1525_v7, %v14511_v11  ;;  %v10971_v30 = vpop.f32.mrb[61].mxu0  ;;  %v10979_v35 = vpop.f32.mrb[61].mxu1 }
 0x321   :  { %v1487_v31 = vpop.f32.mrb[62].mxu0  ;;  %v1528_v37 = vpop.f32.mrb[62].mxu1 }
 0x322   :  { %v10972_v46 = vpop.f32.mrb[63].mxu0  ;;  %v10980_v36 = vpop.f32.mrb[63].mxu1  ;;  %v9627_v10 = vmul.f32 -1.442695, %v1531_v47 }
 0x324   :  { %12879 = vpow2.f32 %v9627_v10 }
 0x325   :  { %12881 = vtanh.f32 %v1490_v32 }
 0x326   :  { %v12876_v21 = vpop.eup %12875 }
 0x327   :  { %v12878_v17 = vpop.eup %12877  ;;  %v1542_v12 = vadd.f32 1.0, %v12876_v21 }
 0x328   :  { %v1535_v13 = vadd.f32 1.0, %v12878_v17 }
 0x329   :  { %12883 = vrcp.f32 %v1542_v12 }
 0x32a   :  { %12885 = vrcp.f32 %v1535_v13 }
 0x32e   :  { %v12880_v62 = vpop.eup %12879 }
 0x32f   :  { %v12882_v1 = vpop.eup %12881  ;;  %v1551_v4 = vadd.f32 1.0, %v12880_v62 }
 0x331   :  { %12887 = vrcp.f32 %v1551_v4 }
 0x333   :  { %v12884_v58 = vpop.eup %12883 }
 0x334   :  { %v12886_v63 = vpop.eup %12885  ;;  %v1546_v11 = vmul.f32 %v12884_v58, %v12882_v1 }
 0x335   :  { %v1538_v14 = vmul.f32 %v12886_v63, %v14653_v34 }
 0x337   :  { %v14693_v9 = vadd.f32 %v1546_v11, %v1538_v14 }
 0x339   :  { %12889 = vtanh.f32 %v14693_v9 }
 0x33b   :  { %v12888_v33 = vpop.eup %12887 }
 0x343   :  { %v12890_v38 = vpop.eup %12889 }
 0x344   :  { %v14696_v7 = vmul.f32 %v12890_v38, %v12888_v33 }
 0x346   :  { %v1556_v32 = vpack.c.bf16 %v14696_v7, %v14696_v7 }
 0x348   :  { %10986 = vmatmul.mubr.msk.bf16.vlgmr.msra.gmra.mrb[64].mxu0 %vm1136_vm2, %v1556_v32  ;;  %10994 = vmatmul.mubr.msk.bf16.vlgmr.msra.gmra.mrb[64].mxu1 %vm1136_vm2, %v1556_v32 }
 0x349   :  { %10998 = vmatpush3.bf16.msra.mxu0 %v14310_v25  ;;  %11006 = vmatpush3.bf16.msra.mxu1 %v14317_v26 }
 0x34a   :  { %10999 = vmatprep.subr.bf16.mxu0 %v16912_v0  ;;  %11007 = vmatprep.subr.bf16.mxu1 %v16912_v0 }
 0x34b   :  { %11001 = vmatprep.mubr.msk.bf16.mxu0 %vm13601_vm1, %v16912_v0  ;;  %11009 = vmatprep.mubr.msk.bf16.mxu1 %vm13601_vm1, %v16912_v0 }
 0x34d   :  { %11000 = vmatpush3.bf16.msra.mxu0 %v14323_v28  ;;  %11008 = vmatpush3.bf16.msra.mxu1 %v14330_v29 }
 0x34e   :  { %11013 = vmatprep.subr.bf16.mxu0 %v16912_v0  ;;  %11021 = vmatprep.subr.bf16.mxu1 %v16912_v0 }
 0x350   :  { %11002 = vmatmul.mubr.msk.bf16.vlgmr.msra.gmra.mrb[68].mxu0 %vm1136_vm2, %v1556_v32  ;;  %11010 = vmatmul.mubr.msk.bf16.vlgmr.msra.gmra.mrb[68].mxu1 %vm1136_vm2, %v1556_v32 }
 0x351   :  { %11014 = vmatpush3.bf16.msra.mxu0 %v14186_v22  ;;  %11022 = vmatpush3.bf16.msra.mxu1 %v14193_v23 }
 0x352   :  { %11015 = vmatprep.subr.bf16.mxu0 %v16912_v0  ;;  %11023 = vmatprep.subr.bf16.mxu1 %v16912_v0 }
 0x353   :  { %11017 = vmatprep.mubr.msk.bf16.mxu0 %vm13601_vm1, %v16912_v0  ;;  %11025 = vmatprep.mubr.msk.bf16.mxu1 %vm13601_vm1, %v16912_v0 }
 0x355   :  { %11016 = vmatpush3.bf16.msra.mxu0 %v14206_v20  ;;  %11024 = vmatpush3.bf16.msra.mxu1 %v14214_v24 }
 0x356   :  { %11029 = vmatprep.subr.bf16.mxu0 %v16912_v0  ;;  %11037 = vmatprep.subr.bf16.mxu1 %v16912_v0 }
 0x41b   :  { %v1594_v34 = vpop.f32.mrb[64].mxu0  ;;  %v1635_v47 = vpop.f32.mrb[64].mxu1 }
 0x41c   :  { %v1600_v30 = vadd.f32 %v1594_v34, %v14371_v43  ;;  %v1641_v35 = vadd.f32 %v1635_v47, %v14377_v45  ;;  %v10987_v31 = vpop.f32.mrb[65].mxu0  ;;  %v10995_v37 = vpop.f32.mrb[65].mxu1 }
 0x41d   :  { %v1597_v46 = vpop.f32.mrb[66].mxu0  ;;  %v1638_v36 = vpop.f32.mrb[66].mxu1 }
 0x41e   :  { %v9633_v10 = vmul.f32 -1.442695, %v1600_v30  ;;  %v9632_v21 = vmul.f32 -1.442695, %v1641_v35  ;;  %v10988_v17 = vpop.f32.mrb[67].mxu0  ;;  %v10996_v12 = vpop.f32.mrb[67].mxu1 }
 0x420   :  { %12891 = vpow2.f32 %v9633_v10 }
 0x421   :  { %12893 = vpow2.f32 %v9632_v21 }
 0x423   :  { %v1676_v13 = vpop.f32.mrb[68].mxu0  ;;  %v1717_v62 = vpop.f32.mrb[68].mxu1 }
 0x424   :  { %v1682_v1 = vadd.f32 %v1676_v13, %v14517_v19  ;;  %v1723_v58 = vadd.f32 %v1717_v62, %v14523_v16  ;;  %v11003_v63 = vpop.f32.mrb[69].mxu0  ;;  %v11011_v43 = vpop.f32.mrb[69].mxu1 }
 0x425   :  { %v1679_v11 = vpop.f32.mrb[70].mxu0  ;;  %v1720_v45 = vpop.f32.mrb[70].mxu1 }
 0x426   :  { %v11004_v4 = vpop.f32.mrb[71].mxu0  ;;  %v11012_v14 = vpop.f32.mrb[71].mxu1  ;;  %v9634_v33 = vmul.f32 -1.442695, %v1723_v58 }
 0x428   :  { %12895 = vpow2.f32 %v9634_v33 }
 0x429   :  { %12897 = vtanh.f32 %v1682_v1 }
 0x42a   :  { %v12892_v38 = vpop.eup %12891 }
 0x42b   :  { %v12894_v32 = vpop.eup %12893  ;;  %v1734_v34 = vadd.f32 1.0, %v12892_v38 }
 0x42c   :  { %v1727_v47 = vadd.f32 1.0, %v12894_v32 }
 0x42d   :  { %12899 = vrcp.f32 %v1734_v34 }
 0x42e   :  { %12901 = vrcp.f32 %v1727_v47 }
 0x432   :  { %v12896_v30 = vpop.eup %12895 }
 0x433   :  { %v12898_v35 = vpop.eup %12897  ;;  %v1743_v37 = vadd.f32 1.0, %v12896_v30 }
 0x435   :  { %12903 = vrcp.f32 %v1743_v37 }
 0x437   :  { %v12900_v19 = vpop.eup %12899 }
 0x438   :  { %v12902_v31 = vpop.eup %12901  ;;  %v1738_v16 = vmul.f32 %v12900_v19, %v12898_v35 }
 0x439   :  { %v1730_v46 = vmul.f32 %v12902_v31, %v14693_v9 }
 0x43b   :  { %v14733_v36 = vadd.f32 %v1738_v16, %v1730_v46 }
 0x43d   :  { %12905 = vtanh.f32 %v14733_v36 }
 0x43f   :  { %v12904_v10 = vpop.eup %12903 }
 0x447   :  { %v12906_v21 = vpop.eup %12905 }
 0x448   :  { %v14736_v17 = vmul.f32 %v12906_v21, %v12904_v10 }
 0x44a   :  { %v1748_v12 = vpack.c.bf16 %v14736_v17, %v14736_v17 }
 0x44c   :  { %11018 = vmatmul.mubr.msk.bf16.vlgmr.msra.gmra.mrb[72].mxu0 %vm1136_vm2, %v1748_v12  ;;  %11026 = vmatmul.mubr.msk.bf16.vlgmr.msra.gmra.mrb[72].mxu1 %vm1136_vm2, %v1748_v12 }
 0x44d   :  { %11030 = vmatpush3.bf16.msra.mxu0 %v14310_v25  ;;  %11038 = vmatpush3.bf16.msra.mxu1 %v14317_v26 }
 0x44e   :  { %11031 = vmatprep.subr.bf16.mxu0 %v16912_v0  ;;  %11039 = vmatprep.subr.bf16.mxu1 %v16912_v0 }
 0x44f   :  { %11033 = vmatprep.mubr.msk.bf16.mxu0 %vm13601_vm1, %v16912_v0  ;;  %11041 = vmatprep.mubr.msk.bf16.mxu1 %vm13601_vm1, %v16912_v0 }
 0x451   :  { %11032 = vmatpush3.bf16.msra.mxu0 %v14323_v28  ;;  %11040 = vmatpush3.bf16.msra.mxu1 %v14330_v29 }
 0x452   :  { %11045 = vmatprep.subr.bf16.mxu0 %v16912_v0  ;;  %11053 = vmatprep.subr.bf16.mxu1 %v16912_v0 }
 0x454   :  { %11034 = vmatmul.mubr.msk.bf16.vlgmr.msra.gmra.mrb[76].mxu0 %vm1136_vm2, %v1748_v12  ;;  %11042 = vmatmul.mubr.msk.bf16.vlgmr.msra.gmra.mrb[76].mxu1 %vm1136_vm2, %v1748_v12 }
 0x455   :  { %11046 = vmatpush3.bf16.msra.mxu0 %v14186_v22  ;;  %11054 = vmatpush3.bf16.msra.mxu1 %v14193_v23 }
 0x456   :  { %11047 = vmatprep.subr.bf16.mxu0 %v16912_v0  ;;  %11055 = vmatprep.subr.bf16.mxu1 %v16912_v0 }
 0x457   :  { %11049 = vmatprep.mubr.msk.bf16.mxu0 %vm13601_vm1, %v16912_v0  ;;  %11057 = vmatprep.mubr.msk.bf16.mxu1 %vm13601_vm1, %v16912_v0 }
 0x459   :  { %11048 = vmatpush3.bf16.msra.mxu0 %v14206_v20  ;;  %11056 = vmatpush3.bf16.msra.mxu1 %v14214_v24 }
 0x45a   :  { %11061 = vmatprep.subr.bf16.mxu0 %v16912_v0  ;;  %11069 = vmatprep.subr.bf16.mxu1 %v16912_v0 }
 0x51f   :  { %v1786_v22 = vpop.f32.mrb[72].mxu0  ;;  %v1827_v23 = vpop.f32.mrb[72].mxu1 }
 0x520   :  { %v1792_v9 = vadd.f32 %v1786_v22, %v14368_v41  ;;  %v1833_v13 = vadd.f32 %v1827_v23, %v14374_v44  ;;  %v11019_v62 = vpop.f32.mrb[73].mxu0  ;;  %v11027_v1 = vpop.f32.mrb[73].mxu1 }
 0x521   :  { %v1789_v58 = vpop.f32.mrb[74].mxu0  ;;  %v1830_v63 = vpop.f32.mrb[74].mxu1 }
 0x522   :  { %v9640_v43 = vmul.f32 -1.442695, %v1792_v9  ;;  %v9639_v11 = vmul.f32 -1.442695, %v1833_v13  ;;  %v11020_v45 = vpop.f32.mrb[75].mxu0  ;;  %v11028_v20 = vpop.f32.mrb[75].mxu1 }
 0x524   :  { %12907 = vpow2.f32 %v9640_v43 }
 0x525   :  { %12909 = vpow2.f32 %v9639_v11 }
 0x527   :  { %v1868_v24 = vpop.f32.mrb[76].mxu0  ;;  %v1909_v4 = vpop.f32.mrb[76].mxu1 }
 0x528   :  { %v1874_v14 = vadd.f32 %v1868_v24, %v14514_v6  ;;  %v1915_v33 = vadd.f32 %v1909_v4, %v14520_v54  ;;  %v11035_v38 = vpop.f32.mrb[77].mxu0  ;;  %v11043_v41 = vpop.f32.mrb[77].mxu1 }
 0x529   :  { %v1871_v32 = vpop.f32.mrb[78].mxu0  ;;  %v1912_v44 = vpop.f32.mrb[78].mxu1 }
 0x52a   :  { %v11036_v34 = vpop.f32.mrb[79].mxu0  ;;  %v11044_v47 = vpop.f32.mrb[79].mxu1  ;;  %v9641_v30 = vmul.f32 -1.442695, %v1915_v33 }
 0x52c   :  { %12911 = vpow2.f32 %v9641_v30 }
 0x52d   :  { %12913 = vtanh.f32 %v1874_v14 }
 0x52e   :  { %v12908_v35 = vpop.eup %12907 }
 0x52f   :  { %v12910_v19 = vpop.eup %12909  ;;  %v1926_v31 = vadd.f32 1.0, %v12908_v35 }
 0x530   :  { %v1919_v16 = vadd.f32 1.0, %v12910_v19 }
 0x531   :  { %12915 = vrcp.f32 %v1926_v31 }
 0x532   :  { %12917 = vrcp.f32 %v1919_v16 }
 0x536   :  { %v12912_v37 = vpop.eup %12911 }
 0x537   :  { %v12914_v46 = vpop.eup %12913  ;;  %v1935_v21 = vadd.f32 1.0, %v12912_v37 }
 0x539   :  { %12919 = vrcp.f32 %v1935_v21 }
 0x53b   :  { %v12916_v6 = vpop.eup %12915 }
 0x53c   :  { %v12918_v10 = vpop.eup %12917  ;;  %v1930_v54 = vmul.f32 %v12916_v6, %v12914_v46 }
 0x53d   :  { %v1922_v12 = vmul.f32 %v12918_v10, %v14733_v36 }
 0x53f   :  { %v14773_v22 = vadd.f32 %v1930_v54, %v1922_v12 }
 0x541   :  { %12921 = vtanh.f32 %v14773_v22 }
 0x543   :  { %v12920_v23 = vpop.eup %12919 }
 0x54b   :  { %v12922_v9 = vpop.eup %12921 }
 0x54c   :  { %v14776_v13 = vmul.f32 %v12922_v9, %v12920_v23 }
 0x54e   :  { %v1940_v62 = vpack.c.bf16 %v14776_v13, %v14776_v13 }
 0x550   :  { %11050 = vmatmul.mubr.msk.bf16.vlgmr.msra.gmra.mrb[80].mxu0 %vm1136_vm2, %v1940_v62  ;;  %11058 = vmatmul.mubr.msk.bf16.vlgmr.msra.gmra.mrb[80].mxu1 %vm1136_vm2, %v1940_v62 }
 0x551   :  { %11062 = vmatpush3.bf16.msra.mxu0 %v14310_v25  ;;  %11070 = vmatpush3.bf16.msra.mxu1 %v14317_v26  ;;  %v14799_v25 = vld [vmem:[%s16852_s24] sm:$0xff]   ;;  %v14805_v26 = vld [vmem:[%s16852_s24 + $0x10] sm:$0xff]  }
 0x552   :  { %11063 = vmatprep.subr.bf16.mxu0 %v16912_v0  ;;  %11071 = vmatprep.subr.bf16.mxu1 %v16912_v0 }
 0x553   :  { %11065 = vmatprep.mubr.msk.bf16.mxu0 %vm13601_vm1, %v16912_v0  ;;  %11073 = vmatprep.mubr.msk.bf16.mxu1 %vm13601_vm1, %v16912_v0 }
 0x555   :  { %11064 = vmatpush3.bf16.msra.mxu0 %v14323_v28  ;;  %11072 = vmatpush3.bf16.msra.mxu1 %v14330_v29  ;;  %v14817_v28 = vld [vmem:[%s16852_s24 + $0x8] sm:$0xff]   ;;  %v14823_v29 = vld [vmem:[%s16852_s24 + $0x18] sm:$0xff]  }
 0x556   :  { %11077 = vmatprep.subr.bf16.mxu0 %v16912_v0  ;;  %11085 = vmatprep.subr.bf16.mxu1 %v16912_v0 }
 0x558   :  { %11066 = vmatmul.mubr.msk.bf16.vlgmr.msra.gmra.mrb[84].mxu0 %vm1136_vm2, %v1940_v62  ;;  %11074 = vmatmul.mubr.msk.bf16.vlgmr.msra.gmra.mrb[84].mxu1 %vm1136_vm2, %v1940_v62 }
 0x559   :  { %11078 = vmatpush3.bf16.msra.mxu0 %v14799_v25  ;;  %11086 = vmatpush3.bf16.msra.mxu1 %v14805_v26 }
 0x55a   :  { %11079 = vmatprep.subr.bf16.mxu0 %v16912_v0  ;;  %11087 = vmatprep.subr.bf16.mxu1 %v16912_v0 }
 0x55b   :  { %11081 = vmatprep.mubr.msk.bf16.mxu0 %vm13601_vm1, %v16912_v0  ;;  %11089 = vmatprep.mubr.msk.bf16.mxu1 %vm13601_vm1, %v16912_v0 }
 0x55d   :  { %11080 = vmatpush3.bf16.msra.mxu0 %v14817_v28  ;;  %11088 = vmatpush3.bf16.msra.mxu1 %v14823_v29 }
 0x55e   :  { %11093 = vmatprep.subr.bf16.mxu0 %v16912_v0  ;;  %11101 = vmatprep.subr.bf16.mxu1 %v16912_v0 }
 0x623   :  { %v1978_v36 = vpop.f32.mrb[80].mxu0  ;;  %v2019_v1 = vpop.f32.mrb[80].mxu1 }
 0x624   :  { %v1984_v58 = vadd.f32 %v1978_v36, %v14383_v51  ;;  %v2025_v63 = vadd.f32 %v2019_v1, %v14389_v53  ;;  %v11051_v43 = vpop.f32.mrb[81].mxu0  ;;  %v11059_v11 = vpop.f32.mrb[81].mxu1 }
 0x625   :  { %v1981_v45 = vpop.f32.mrb[82].mxu0  ;;  %v2022_v20 = vpop.f32.mrb[82].mxu1  ;;  %v14869_v43 = vld [vmem:[%s16852_s24 + $0x38] sm:$0xff]  }
 0x626   :  { %v9647_v24 = vmul.f32 -1.442695, %v1984_v58  ;;  %v9646_v4 = vmul.f32 -1.442695, %v2025_v63  ;;  %v11052_v14 = vpop.f32.mrb[83].mxu0  ;;  %v11060_v33 = vpop.f32.mrb[83].mxu1 }
 0x627   :  { %v14851_v58 = vld [vmem:[%s16852_s24 + $0x30] sm:$0xff]   ;;  %v14863_v63 = vld [vmem:[%s16852_s24 + $0x28] sm:$0xff]  }
 0x628   :  { %12923 = vpow2.f32 %v9647_v24 }
 0x629   :  { %12925 = vpow2.f32 %v9646_v4 }
 0x62b   :  { %v2060_v38 = vpop.f32.mrb[84].mxu0  ;;  %v2101_v41 = vpop.f32.mrb[84].mxu1 }
 0x62c   :  { %v2066_v32 = vadd.f32 %v2060_v38, %v14529_v55  ;;  %v2107_v44 = vadd.f32 %v2101_v41, %v14535_v56  ;;  %v11067_v34 = vpop.f32.mrb[85].mxu0  ;;  %v11075_v51 = vpop.f32.mrb[85].mxu1 }
 0x62d   :  { %v2063_v47 = vpop.f32.mrb[86].mxu0  ;;  %v2104_v53 = vpop.f32.mrb[86].mxu1 }
 0x62e   :  { %v11068_v30 = vpop.f32.mrb[87].mxu0  ;;  %v11076_v35 = vpop.f32.mrb[87].mxu1  ;;  %v9648_v19 = vmul.f32 -1.442695, %v2107_v44 }
 0x630   :  { %12927 = vpow2.f32 %v9648_v19 }
 0x631   :  { %12929 = vtanh.f32 %v2066_v32 }
 0x632   :  { %v12924_v31 = vpop.eup %12923 }
 0x633   :  { %v12926_v16 = vpop.eup %12925  ;;  %v2118_v37 = vadd.f32 1.0, %v12924_v31 }
 0x634   :  { %v2111_v46 = vadd.f32 1.0, %v12926_v16 }
 0x635   :  { %12931 = vrcp.f32 %v2118_v37 }
 0x636   :  { %12933 = vrcp.f32 %v2111_v46 }
 0x63a   :  { %v12928_v6 = vpop.eup %12927 }
 0x63b   :  { %v12930_v10 = vpop.eup %12929  ;;  %v2127_v21 = vadd.f32 1.0, %v12928_v6 }
 0x63d   :  { %12935 = vrcp.f32 %v2127_v21 }
 0x63f   :  { %v12932_v55 = vpop.eup %12931 }
 0x640   :  { %v12934_v54 = vpop.eup %12933  ;;  %v2122_v56 = vmul.f32 %v12932_v55, %v12930_v10 }
 0x641   :  { %v2114_v12 = vmul.f32 %v12934_v54, %v14773_v22  ;;  %v14845_v22 = vld [vmem:[%s16852_s24 + $0x20] sm:$0xff]  }
 0x643   :  { %v14833_v23 = vadd.f32 %v2122_v56, %v2114_v12 }
 0x645   :  { %12937 = vtanh.f32 %v14833_v23 }
 0x647   :  { %v12936_v9 = vpop.eup %12935 }
 0x64f   :  { %v12938_v62 = vpop.eup %12937 }
 0x650   :  { %v14836_v36 = vmul.f32 %v12938_v62, %v12936_v9 }
 0x652   :  { %v2132_v1 = vpack.c.bf16 %v14836_v36, %v14836_v36 }
 0x654   :  { %11082 = vmatmul.mubr.msk.bf16.vlgmr.msra.gmra.mrb[88].mxu0 %vm1136_vm2, %v2132_v1  ;;  %11090 = vmatmul.mubr.msk.bf16.vlgmr.msra.gmra.mrb[88].mxu1 %vm1136_vm2, %v2132_v1 }
 0x655   :  { %11094 = vmatpush3.bf16.msra.mxu0 %v14845_v22  ;;  %11102 = vmatpush3.bf16.msra.mxu1 %v14851_v58 }
 0x656   :  { %11095 = vmatprep.subr.bf16.mxu0 %v16912_v0  ;;  %11103 = vmatprep.subr.bf16.mxu1 %v16912_v0 }
 0x657   :  { %11097 = vmatprep.mubr.msk.bf16.mxu0 %vm13601_vm1, %v16912_v0  ;;  %11105 = vmatprep.mubr.msk.bf16.mxu1 %vm13601_vm1, %v16912_v0 }
 0x659   :  { %11096 = vmatpush3.bf16.msra.mxu0 %v14863_v63  ;;  %11104 = vmatpush3.bf16.msra.mxu1 %v14869_v43 }
 0x65a   :  { %11109 = vmatprep.subr.bf16.mxu0 %v16912_v0  ;;  %11117 = vmatprep.subr.bf16.mxu1 %v16912_v0 }
 0x65c   :  { %11098 = vmatmul.mubr.msk.bf16.vlgmr.msra.gmra.mrb[92].mxu0 %vm1136_vm2, %v2132_v1  ;;  %11106 = vmatmul.mubr.msk.bf16.vlgmr.msra.gmra.mrb[92].mxu1 %vm1136_vm2, %v2132_v1 }
 0x65d   :  { %11110 = vmatpush3.bf16.msra.mxu0 %v14799_v25  ;;  %11118 = vmatpush3.bf16.msra.mxu1 %v14805_v26 }
 0x65e   :  { %11111 = vmatprep.subr.bf16.mxu0 %v16912_v0  ;;  %11119 = vmatprep.subr.bf16.mxu1 %v16912_v0 }
 0x65f   :  { %11113 = vmatprep.mubr.msk.bf16.mxu0 %vm13601_vm1, %v16912_v0  ;;  %11121 = vmatprep.mubr.msk.bf16.mxu1 %vm13601_vm1, %v16912_v0 }
 0x661   :  { %11112 = vmatpush3.bf16.msra.mxu0 %v14817_v28  ;;  %11120 = vmatpush3.bf16.msra.mxu1 %v14823_v29 }
 0x662   :  { %11125 = vmatprep.subr.bf16.mxu0 %v16912_v0  ;;  %11133 = vmatprep.subr.bf16.mxu1 %v16912_v0 }
 0x727   :  { %v2170_v11 = vpop.f32.mrb[88].mxu0  ;;  %v2211_v45 = vpop.f32.mrb[88].mxu1 }
 0x728   :  { %v2176_v20 = vadd.f32 %v2170_v11, %v14380_v49  ;;  %v2217_v24 = vadd.f32 %v2211_v45, %v14386_v52  ;;  %v11083_v4 = vpop.f32.mrb[89].mxu0  ;;  %v11091_v14 = vpop.f32.mrb[89].mxu1 }
 0x729   :  { %v2173_v33 = vpop.f32.mrb[90].mxu0  ;;  %v2214_v38 = vpop.f32.mrb[90].mxu1 }
 0x72a   :  { %v9654_v41 = vmul.f32 -1.442695, %v2176_v20  ;;  %v9653_v32 = vmul.f32 -1.442695, %v2217_v24  ;;  %v11084_v44 = vpop.f32.mrb[91].mxu0  ;;  %v11092_v34 = vpop.f32.mrb[91].mxu1 }
 0x72c   :  { %12939 = vpow2.f32 %v9654_v41 }
 0x72d   :  { %12941 = vpow2.f32 %v9653_v32 }
 0x72f   :  { %v2252_v51 = vpop.f32.mrb[92].mxu0  ;;  %v2293_v47 = vpop.f32.mrb[92].mxu1 }
 0x730   :  { %v2258_v53 = vadd.f32 %v2252_v51, %v14526_v2  ;;  %v2299_v30 = vadd.f32 %v2293_v47, %v14532_v42  ;;  %v11099_v35 = vpop.f32.mrb[93].mxu0  ;;  %v11107_v49 = vpop.f32.mrb[93].mxu1 }
 0x731   :  { %v2255_v19 = vpop.f32.mrb[94].mxu0  ;;  %v2296_v52 = vpop.f32.mrb[94].mxu1 }
 0x732   :  { %v11100_v31 = vpop.f32.mrb[95].mxu0  ;;  %v11108_v16 = vpop.f32.mrb[95].mxu1  ;;  %v9655_v37 = vmul.f32 -1.442695, %v2299_v30 }
 0x734   :  { %12943 = vpow2.f32 %v9655_v37 }
 0x735   :  { %12945 = vtanh.f32 %v2258_v53 }
 0x736   :  { %v12940_v46 = vpop.eup %12939 }
 0x737   :  { %v12942_v6 = vpop.eup %12941  ;;  %v2310_v10 = vadd.f32 1.0, %v12940_v46 }
 0x738   :  { %v2303_v55 = vadd.f32 1.0, %v12942_v6 }
 0x739   :  { %12947 = vrcp.f32 %v2310_v10 }
 0x73a   :  { %12949 = vrcp.f32 %v2303_v55 }
 0x73e   :  { %v12944_v54 = vpop.eup %12943 }
 0x73f   :  { %v12946_v56 = vpop.eup %12945  ;;  %v2319_v12 = vadd.f32 1.0, %v12944_v54 }
 0x741   :  { %12951 = vrcp.f32 %v2319_v12 }
 0x743   :  { %v12948_v2 = vpop.eup %12947 }
 0x744   :  { %v12950_v21 = vpop.eup %12949  ;;  %v2314_v42 = vmul.f32 %v12948_v2, %v12946_v56 }
 0x745   :  { %v2306_v9 = vmul.f32 %v12950_v21, %v14833_v23 }
 0x747   :  { %v14893_v62 = vadd.f32 %v2314_v42, %v2306_v9 }
 0x749   :  { %12953 = vtanh.f32 %v14893_v62 }
 0x74b   :  { %v12952_v1 = vpop.eup %12951 }
 0x753   :  { %v12954_v11 = vpop.eup %12953 }
 0x754   :  { %v14896_v45 = vmul.f32 %v12954_v11, %v12952_v1 }
 0x756   :  { %v2324_v20 = vpack.c.bf16 %v14896_v45, %v14896_v45 }
 0x758   :  { %11114 = vmatmul.mubr.msk.bf16.vlgmr.msra.gmra.mrb[96].mxu0 %vm1136_vm2, %v2324_v20  ;;  %11122 = vmatmul.mubr.msk.bf16.vlgmr.msra.gmra.mrb[96].mxu1 %vm1136_vm2, %v2324_v20 }
 0x759   :  { %11126 = vmatpush3.bf16.msra.mxu0 %v14845_v22  ;;  %11134 = vmatpush3.bf16.msra.mxu1 %v14851_v58 }
 0x75a   :  { %11127 = vmatprep.subr.bf16.mxu0 %v16912_v0  ;;  %11135 = vmatprep.subr.bf16.mxu1 %v16912_v0 }
 0x75b   :  { %11129 = vmatprep.mubr.msk.bf16.mxu0 %vm13601_vm1, %v16912_v0  ;;  %11137 = vmatprep.mubr.msk.bf16.mxu1 %vm13601_vm1, %v16912_v0 }
 0x75d   :  { %11128 = vmatpush3.bf16.msra.mxu0 %v14863_v63  ;;  %11136 = vmatpush3.bf16.msra.mxu1 %v14869_v43 }
 0x75e   :  { %11141 = vmatprep.subr.bf16.mxu0 %v16912_v0  ;;  %11149 = vmatprep.subr.bf16.mxu1 %v16912_v0 }
 0x760   :  { %11130 = vmatmul.mubr.msk.bf16.vlgmr.msra.gmra.mrb[100].mxu0 %vm1136_vm2, %v2324_v20  ;;  %11138 = vmatmul.mubr.msk.bf16.vlgmr.msra.gmra.mrb[100].mxu1 %vm1136_vm2, %v2324_v20 }
 0x761   :  { %11142 = vmatpush3.bf16.msra.mxu0 %v14799_v25  ;;  %11150 = vmatpush3.bf16.msra.mxu1 %v14805_v26 }
 0x762   :  { %11143 = vmatprep.subr.bf16.mxu0 %v16912_v0  ;;  %11151 = vmatprep.subr.bf16.mxu1 %v16912_v0 }
 0x763   :  { %11145 = vmatprep.mubr.msk.bf16.mxu0 %vm13601_vm1, %v16912_v0  ;;  %11153 = vmatprep.mubr.msk.bf16.mxu1 %vm13601_vm1, %v16912_v0 }
 0x765   :  { %11144 = vmatpush3.bf16.msra.mxu0 %v14817_v28  ;;  %11152 = vmatpush3.bf16.msra.mxu1 %v14823_v29 }
 0x766   :  { %11157 = vmatprep.subr.bf16.mxu0 %v16912_v0  ;;  %11165 = vmatprep.subr.bf16.mxu1 %v16912_v0 }
 0x82b   :  { %v2362_v23 = vpop.f32.mrb[96].mxu0  ;;  %v2403_v24 = vpop.f32.mrb[96].mxu1 }
 0x82c   :  { %v2368_v4 = vadd.f32 %v2362_v23, %v14395_v59  ;;  %v2409_v14 = vadd.f32 %v2403_v24, %v14401_v61  ;;  %v11115_v33 = vpop.f32.mrb[97].mxu0  ;;  %v11123_v38 = vpop.f32.mrb[97].mxu1 }
 0x82d   :  { %v2365_v41 = vpop.f32.mrb[98].mxu0  ;;  %v2406_v32 = vpop.f32.mrb[98].mxu1 }
 0x82e   :  { %v9661_v44 = vmul.f32 -1.442695, %v2368_v4  ;;  %v9660_v34 = vmul.f32 -1.442695, %v2409_v14  ;;  %v11116_v51 = vpop.f32.mrb[99].mxu0  ;;  %v11124_v47 = vpop.f32.mrb[99].mxu1 }
 0x830   :  { %12955 = vpow2.f32 %v9661_v44 }
 0x831   :  { %12957 = vpow2.f32 %v9660_v34 }
 0x833   :  { %v2444_v53 = vpop.f32.mrb[100].mxu0  ;;  %v2485_v30 = vpop.f32.mrb[100].mxu1 }
 0x834   :  { %v2450_v35 = vadd.f32 %v2444_v53, %v14541_v8  ;;  %v2491_v49 = vadd.f32 %v2485_v30, %v14547_v40  ;;  %v11131_v19 = vpop.f32.mrb[101].mxu0  ;;  %v11139_v59 = vpop.f32.mrb[101].mxu1 }
 0x835   :  { %v2447_v52 = vpop.f32.mrb[102].mxu0  ;;  %v2488_v61 = vpop.f32.mrb[102].mxu1 }
 0x836   :  { %v11132_v31 = vpop.f32.mrb[103].mxu0  ;;  %v11140_v16 = vpop.f32.mrb[103].mxu1  ;;  %v9662_v37 = vmul.f32 -1.442695, %v2491_v49 }
 0x838   :  { %12959 = vpow2.f32 %v9662_v37 }
 0x839   :  { %12961 = vtanh.f32 %v2450_v35 }
 0x83a   :  { %v12956_v46 = vpop.eup %12955 }
 0x83b   :  { %v12958_v6 = vpop.eup %12957  ;;  %v2502_v10 = vadd.f32 1.0, %v12956_v46 }
 0x83c   :  { %v2495_v55 = vadd.f32 1.0, %v12958_v6 }
 0x83d   :  { %12963 = vrcp.f32 %v2502_v10 }
 0x83e   :  { %12965 = vrcp.f32 %v2495_v55 }
 0x842   :  { %v12960_v54 = vpop.eup %12959 }
 0x843   :  { %v12962_v56 = vpop.eup %12961  ;;  %v2511_v21 = vadd.f32 1.0, %v12960_v54 }
 0x845   :  { %12967 = vrcp.f32 %v2511_v21 }
 0x847   :  { %v12964_v8 = vpop.eup %12963 }
 0x848   :  { %v12966_v2 = vpop.eup %12965  ;;  %v2506_v40 = vmul.f32 %v12964_v8, %v12962_v56 }
 0x849   :  { %v2498_v42 = vmul.f32 %v12966_v2, %v14893_v62 }
 0x84b   :  { %v14933_v12 = vadd.f32 %v2506_v40, %v2498_v42 }
 0x84d   :  { %12969 = vtanh.f32 %v14933_v12 }
 0x84f   :  { %v12968_v9 = vpop.eup %12967 }
 0x857   :  { %v12970_v1 = vpop.eup %12969 }
 0x858   :  { %v14936_v11 = vmul.f32 %v12970_v1, %v12968_v9 }
 0x85a   :  { %v2516_v20 = vpack.c.bf16 %v14936_v11, %v14936_v11 }
 0x85c   :  { %11146 = vmatmul.mubr.msk.bf16.vlgmr.msra.gmra.mrb[104].mxu0 %vm1136_vm2, %v2516_v20  ;;  %11154 = vmatmul.mubr.msk.bf16.vlgmr.msra.gmra.mrb[104].mxu1 %vm1136_vm2, %v2516_v20 }
 0x85d   :  { %11158 = vmatpush3.bf16.msra.mxu0 %v14845_v22  ;;  %11166 = vmatpush3.bf16.msra.mxu1 %v14851_v58 }
 0x85e   :  { %11159 = vmatprep.subr.bf16.mxu0 %v16912_v0  ;;  %11167 = vmatprep.subr.bf16.mxu1 %v16912_v0 }
 0x85f   :  { %11161 = vmatprep.mubr.msk.bf16.mxu0 %vm13601_vm1, %v16912_v0  ;;  %11169 = vmatprep.mubr.msk.bf16.mxu1 %vm13601_vm1, %v16912_v0 }
 0x861   :  { %11160 = vmatpush3.bf16.msra.mxu0 %v14863_v63  ;;  %11168 = vmatpush3.bf16.msra.mxu1 %v14869_v43 }
 0x862   :  { %11173 = vmatprep.subr.bf16.mxu0 %v16912_v0  ;;  %11181 = vmatprep.subr.bf16.mxu1 %v16912_v0 }
 0x864   :  { %11162 = vmatmul.mubr.msk.bf16.vlgmr.msra.gmra.mrb[108].mxu0 %vm1136_vm2, %v2516_v20  ;;  %11170 = vmatmul.mubr.msk.bf16.vlgmr.msra.gmra.mrb[108].mxu1 %vm1136_vm2, %v2516_v20 }
 0x865   :  { %11174 = vmatpush3.bf16.msra.mxu0 %v14799_v25  ;;  %11182 = vmatpush3.bf16.msra.mxu1 %v14805_v26 }
 0x866   :  { %11175 = vmatprep.subr.bf16.mxu0 %v16912_v0  ;;  %11183 = vmatprep.subr.bf16.mxu1 %v16912_v0 }
 0x867   :  { %11177 = vmatprep.mubr.msk.bf16.mxu0 %vm13601_vm1, %v16912_v0  ;;  %11185 = vmatprep.mubr.msk.bf16.mxu1 %vm13601_vm1, %v16912_v0 }
 0x869   :  { %11176 = vmatpush3.bf16.msra.mxu0 %v14817_v28  ;;  %11184 = vmatpush3.bf16.msra.mxu1 %v14823_v29 }
 0x86a   :  { %11189 = vmatprep.subr.bf16.mxu0 %v16912_v0  ;;  %11197 = vmatprep.subr.bf16.mxu1 %v16912_v0 }
 0x92f   :  { %v2554_v62 = vpop.f32.mrb[104].mxu0  ;;  %v2595_v23 = vpop.f32.mrb[104].mxu1 }
 0x930   :  { %v2560_v24 = vadd.f32 %v2554_v62, %v14392_v57  ;;  %v2601_v4 = vadd.f32 %v2595_v23, %v14398_v60  ;;  %v11147_v14 = vpop.f32.mrb[105].mxu0  ;;  %v11155_v33 = vpop.f32.mrb[105].mxu1 }
 0x931   :  { %v2557_v38 = vpop.f32.mrb[106].mxu0  ;;  %v2598_v41 = vpop.f32.mrb[106].mxu1 }
 0x932   :  { %v9668_v32 = vmul.f32 -1.442695, %v2560_v24  ;;  %v9667_v44 = vmul.f32 -1.442695, %v2601_v4  ;;  %v11148_v34 = vpop.f32.mrb[107].mxu0  ;;  %v11156_v51 = vpop.f32.mrb[107].mxu1 }
 0x934   :  { %12971 = vpow2.f32 %v9668_v32 }
 0x935   :  { %12973 = vpow2.f32 %v9667_v44 }
 0x937   :  { %v2636_v47 = vpop.f32.mrb[108].mxu0  ;;  %v2677_v53 = vpop.f32.mrb[108].mxu1 }
 0x938   :  { %v2642_v30 = vadd.f32 %v2636_v47, %v14538_v50  ;;  %v2683_v35 = vadd.f32 %v2677_v53, %v14544_v15  ;;  %v11163_v49 = vpop.f32.mrb[109].mxu0  ;;  %v11171_v57 = vpop.f32.mrb[109].mxu1 }
 0x939   :  { %v2639_v19 = vpop.f32.mrb[110].mxu0  ;;  %v2680_v60 = vpop.f32.mrb[110].mxu1 }
 0x93a   :  { %v11164_v59 = vpop.f32.mrb[111].mxu0  ;;  %v11172_v52 = vpop.f32.mrb[111].mxu1  ;;  %v9669_v61 = vmul.f32 -1.442695, %v2683_v35 }
 0x93c   :  { %12975 = vpow2.f32 %v9669_v61 }
 0x93d   :  { %12977 = vtanh.f32 %v2642_v30 }
 0x93e   :  { %v12972_v31 = vpop.eup %12971 }
 0x93f   :  { %v12974_v16 = vpop.eup %12973  ;;  %v2694_v37 = vadd.f32 1.0, %v12972_v31 }
 0x940   :  { %v2687_v46 = vadd.f32 1.0, %v12974_v16 }
 0x941   :  { %12979 = vrcp.f32 %v2694_v37 }
 0x942   :  { %12981 = vrcp.f32 %v2687_v46 }
 0x946   :  { %v12976_v6 = vpop.eup %12975 }
 0x947   :  { %v12978_v10 = vpop.eup %12977  ;;  %v2703_v54 = vadd.f32 1.0, %v12976_v6 }
 0x949   :  { %12983 = vrcp.f32 %v2703_v54 }
 0x94b   :  { %v12980_v50 = vpop.eup %12979 }
 0x94c   :  { %v12982_v55 = vpop.eup %12981  ;;  %v2698_v15 = vmul.f32 %v12980_v50, %v12978_v10 }
 0x94d   :  { %v2690_v56 = vmul.f32 %v12982_v55, %v14933_v12 }
 0x94f   :  { %v14973_v8 = vadd.f32 %v2698_v15, %v2690_v56  ;;  %v16913_v56 = vld [vmem:[#allocation24_spill] sm:$0xff] }
 0x951   :  { %12985 = vtanh.f32 %v14973_v8 }
 0x953   :  { %v12984_v2 = vpop.eup %12983 }
 0x95b   :  { %v12986_v40 = vpop.eup %12985 }
 0x95c   :  { %v14976_v21 = vmul.f32 %v12986_v40, %v12984_v2  ;;  %v16914_v2 = vld [vmem:[#allocation25_spill] sm:$0xff] }
 0x95e   :  { %v2708_v42 = vpack.c.bf16 %v14976_v21, %v14976_v21 }
 0x960   :  { %11178 = vmatmul.mubr.msk.bf16.vlgmr.msra.gmra.mrb[112].mxu0 %vm1136_vm2, %v2708_v42  ;;  %11186 = vmatmul.mubr.msk.bf16.vlgmr.msra.gmra.mrb[112].mxu1 %vm1136_vm2, %v2708_v42 }
 0x961   :  { %11190 = vmatpush3.bf16.msra.mxu0 %v14845_v22  ;;  %11198 = vmatpush3.bf16.msra.mxu1 %v14851_v58 }
 0x962   :  { %11191 = vmatprep.subr.bf16.mxu0 %v16912_v0  ;;  %11199 = vmatprep.subr.bf16.mxu1 %v16912_v0 }
 0x963   :  { %11193 = vmatprep.mubr.msk.bf16.mxu0 %vm13601_vm1, %v16912_v0  ;;  %11201 = vmatprep.mubr.msk.bf16.mxu1 %vm13601_vm1, %v16912_v0 }
 0x965   :  { %11192 = vmatpush3.bf16.msra.mxu0 %v14863_v63  ;;  %11200 = vmatpush3.bf16.msra.mxu1 %v14869_v43 }
 0x966   :  { %11205 = vmatprep.subr.bf16.mxu0 %v16912_v0  ;;  %11213 = vmatprep.subr.bf16.mxu1 %v16912_v0 }
 0x968   :  { %11194 = vmatmul.mubr.msk.bf16.vlgmr.msra.gmra.mrb[116].mxu0 %vm1136_vm2, %v2708_v42  ;;  %11202 = vmatmul.mubr.msk.bf16.vlgmr.msra.gmra.mrb[116].mxu1 %vm1136_vm2, %v2708_v42 }
 0x969   :  { %11206 = vmatpush3.bf16.msra.mxu0 %v14799_v25  ;;  %11214 = vmatpush3.bf16.msra.mxu1 %v14805_v26 }
 0x96a   :  { %11207 = vmatprep.subr.bf16.mxu0 %v16912_v0  ;;  %11215 = vmatprep.subr.bf16.mxu1 %v16912_v0 }
 0x96b   :  { %11209 = vmatprep.mubr.msk.bf16.mxu0 %vm13601_vm1, %v16912_v0  ;;  %11217 = vmatprep.mubr.msk.bf16.mxu1 %vm13601_vm1, %v16912_v0 }
 0x96d   :  { %11208 = vmatpush3.bf16.msra.mxu0 %v14817_v28  ;;  %11216 = vmatpush3.bf16.msra.mxu1 %v14823_v29 }
 0x96e   :  { %11221 = vmatprep.subr.bf16.mxu0 %v16912_v0  ;;  %11229 = vmatprep.subr.bf16.mxu1 %v16912_v0 }
 0xa33   :  { %v2746_v12 = vpop.f32.mrb[112].mxu0  ;;  %v2787_v9 = vpop.f32.mrb[112].mxu1 }
 0xa34   :  { %v2752_v1 = vadd.f32 %v2746_v12, %v14407_v3  ;;  %v2793_v20 = vadd.f32 %v2787_v9, %v14413_v5  ;;  %v11179_v62 = vpop.f32.mrb[113].mxu0  ;;  %v11187_v23 = vpop.f32.mrb[113].mxu1 }
 0xa35   :  { %v2749_v24 = vpop.f32.mrb[114].mxu0  ;;  %v2790_v4 = vpop.f32.mrb[114].mxu1 }
 0xa36   :  { %v9675_v14 = vmul.f32 -1.442695, %v2752_v1  ;;  %v9674_v33 = vmul.f32 -1.442695, %v2793_v20  ;;  %v11180_v38 = vpop.f32.mrb[115].mxu0  ;;  %v11188_v41 = vpop.f32.mrb[115].mxu1 }
 0xa37   :  { %v16916_v41 = vld [vmem:[#allocation55_spill] sm:$0xff] }
 0xa38   :  { %12987 = vpow2.f32 %v9675_v14 }
 0xa39   :  { %12989 = vpow2.f32 %v9674_v33  ;;  %v16915_v33 = vld [vmem:[#allocation54_spill] sm:$0xff] }
 0xa3b   :  { %v2828_v32 = vpop.f32.mrb[116].mxu0  ;;  %v2869_v44 = vpop.f32.mrb[116].mxu1 }
 0xa3c   :  { %v2834_v34 = vadd.f32 %v2828_v32, %v14553_v39  ;;  %v2875_v51 = vadd.f32 %v2869_v44, %v14559_v18  ;;  %v11195_v47 = vpop.f32.mrb[117].mxu0  ;;  %v11203_v3 = vpop.f32.mrb[117].mxu1 }
 0xa3d   :  { %v2831_v53 = vpop.f32.mrb[118].mxu0  ;;  %v2872_v5 = vpop.f32.mrb[118].mxu1 }
 0xa3e   :  { %v11196_v30 = vpop.f32.mrb[119].mxu0  ;;  %v11204_v35 = vpop.f32.mrb[119].mxu1  ;;  %v9676_v49 = vmul.f32 -1.442695, %v2875_v51 }
 0xa40   :  { %12991 = vpow2.f32 %v9676_v49 }
 0xa41   :  { %12993 = vtanh.f32 %v2834_v34 }
 0xa42   :  { %v12988_v57 = vpop.eup %12987 }
 0xa43   :  { %v12990_v19 = vpop.eup %12989  ;;  %v2886_v60 = vadd.f32 1.0, %v12988_v57 }
 0xa44   :  { %v2879_v59 = vadd.f32 1.0, %v12990_v19 }
 0xa45   :  { %12995 = vrcp.f32 %v2886_v60 }
 0xa46   :  { %12997 = vrcp.f32 %v2879_v59 }
 0xa4a   :  { %v12992_v52 = vpop.eup %12991 }
 0xa4b   :  { %v12994_v61 = vpop.eup %12993  ;;  %v2895_v16 = vadd.f32 1.0, %v12992_v52 }
 0xa4d   :  { %12999 = vrcp.f32 %v2895_v16 }
 0xa4f   :  { %v12996_v39 = vpop.eup %12995 }
 0xa50   :  { %v12998_v31 = vpop.eup %12997  ;;  %v2890_v18 = vmul.f32 %v12996_v39, %v12994_v61 }
 0xa51   :  { %v2882_v37 = vmul.f32 %v12998_v31, %v14973_v8 }
 0xa53   :  { %v15013_v46 = vadd.f32 %v2890_v18, %v2882_v37 }
 0xa55   :  { %13001 = vtanh.f32 %v15013_v46 }
 0xa57   :  { %v13000_v6 = vpop.eup %12999 }
 0xa5f   :  { %v13002_v10 = vpop.eup %13001 }
 0xa60   :  { %v15016_v50 = vmul.f32 %v13002_v10, %v13000_v6 }
 0xa62   :  { %v2900_v55 = vpack.c.bf16 %v15016_v50, %v15016_v50 }
 0xa64   :  { %11210 = vmatmul.mubr.msk.bf16.vlgmr.msra.gmra.mrb[120].mxu0 %vm1136_vm2, %v2900_v55  ;;  %11218 = vmatmul.mubr.msk.bf16.vlgmr.msra.gmra.mrb[120].mxu1 %vm1136_vm2, %v2900_v55 }
 0xa65   :  { %11222 = vmatpush3.bf16.msra.mxu0 %v14845_v22  ;;  %11230 = vmatpush3.bf16.msra.mxu1 %v14851_v58 }
 0xa66   :  { %11223 = vmatprep.subr.bf16.mxu0 %v16912_v0  ;;  %11231 = vmatprep.subr.bf16.mxu1 %v16912_v0 }
 0xa67   :  { %11225 = vmatprep.mubr.msk.bf16.mxu0 %vm13601_vm1, %v16912_v0  ;;  %11233 = vmatprep.mubr.msk.bf16.mxu1 %vm13601_vm1, %v16912_v0 }
 0xa69   :  { %11224 = vmatpush3.bf16.msra.mxu0 %v14863_v63  ;;  %11232 = vmatpush3.bf16.msra.mxu1 %v14869_v43 }
 0xa6a   :  { %11237 = vmatprep.subr.bf16.mxu0 %v16912_v0  ;;  %11245 = vmatprep.subr.bf16.mxu1 %v16912_v0 }
 0xa6c   :  { %11226 = vmatmul.mubr.msk.bf16.vlgmr.msra.gmra.mrb[124].mxu0 %vm1136_vm2, %v2900_v55  ;;  %11234 = vmatmul.mubr.msk.bf16.vlgmr.msra.gmra.mrb[124].mxu1 %vm1136_vm2, %v2900_v55 }
 0xa6d   :  { %11238 = vmatpush3.bf16.msra.mxu0 %v14799_v25  ;;  %11246 = vmatpush3.bf16.msra.mxu1 %v14805_v26 }
 0xa6e   :  { %11239 = vmatprep.subr.bf16.mxu0 %v16912_v0  ;;  %11247 = vmatprep.subr.bf16.mxu1 %v16912_v0 }
 0xa6f   :  { %11241 = vmatprep.mubr.msk.bf16.mxu0 %vm13601_vm1, %v16912_v0  ;;  %11249 = vmatprep.mubr.msk.bf16.mxu1 %vm13601_vm1, %v16912_v0 }
 0xa71   :  { %11240 = vmatpush3.bf16.msra.mxu0 %v14817_v28  ;;  %11248 = vmatpush3.bf16.msra.mxu1 %v14823_v29 }
 0xa72   :  { %11253 = vmatprep.subr.bf16.mxu0 %v16912_v0  ;;  %11261 = vmatprep.subr.bf16.mxu1 %v16912_v0 }
 0xb37   :  { %v2938_v15 = vpop.f32.mrb[120].mxu0  ;;  %v2979_v54 = vpop.f32.mrb[120].mxu1 }
 0xb38   :  { %v2944_v8 = vadd.f32 %v2938_v15, %v16913_v56  ;;  %v2985_v40 = vadd.f32 %v2979_v54, %v16914_v2  ;;  %v11211_v42 = vpop.f32.mrb[121].mxu0  ;;  %v11219_v12 = vpop.f32.mrb[121].mxu1  ;;  %v16917_v15 = vld [vmem:[#allocation27_spill] sm:$0xff]  ;;  %v16918_v56 = vld [vmem:[#allocation29_spill] sm:$0xff] }
 0xb39   :  { %v2941_v9 = vpop.f32.mrb[122].mxu0  ;;  %v2982_v1 = vpop.f32.mrb[122].mxu1 }
 0xb3a   :  { %v9682_v20 = vmul.f32 -1.442695, %v2944_v8  ;;  %v9681_v62 = vmul.f32 -1.442695, %v2985_v40  ;;  %v11212_v23 = vpop.f32.mrb[123].mxu0  ;;  %v11220_v24 = vpop.f32.mrb[123].mxu1 }
 0xb3c   :  { %13003 = vpow2.f32 %v9682_v20 }
 0xb3d   :  { %13005 = vpow2.f32 %v9681_v62 }
 0xb3f   :  { %v3020_v4 = vpop.f32.mrb[124].mxu0  ;;  %v3061_v14 = vpop.f32.mrb[124].mxu1 }
 0xb40   :  { %v3026_v38 = vadd.f32 %v3020_v4, %v16915_v33  ;;  %v3067_v32 = vadd.f32 %v3061_v14, %v16916_v41  ;;  %v11227_v44 = vpop.f32.mrb[125].mxu0  ;;  %v11235_v34 = vpop.f32.mrb[125].mxu1  ;;  %v16919_v4 = vld [vmem:[#allocation57_spill] sm:$0xff]  ;;  %v16920_v33 = vld [vmem:[#allocation59_spill] sm:$0xff] }
 0xb41   :  { %v3023_v51 = vpop.f32.mrb[126].mxu0  ;;  %v3064_v47 = vpop.f32.mrb[126].mxu1 }
 0xb42   :  { %v11228_v3 = vpop.f32.mrb[127].mxu0  ;;  %v11236_v53 = vpop.f32.mrb[127].mxu1  ;;  %v9683_v5 = vmul.f32 -1.442695, %v3067_v32 }
 0xb44   :  { %13007 = vpow2.f32 %v9683_v5 }
 0xb45   :  { %13009 = vtanh.f32 %v3026_v38 }
 0xb46   :  { %v13004_v30 = vpop.eup %13003 }
 0xb47   :  { %v13006_v35 = vpop.eup %13005  ;;  %v3078_v49 = vadd.f32 1.0, %v13004_v30 }
 0xb48   :  { %v3071_v57 = vadd.f32 1.0, %v13006_v35 }
 0xb49   :  { %13011 = vrcp.f32 %v3078_v49 }
 0xb4a   :  { %13013 = vrcp.f32 %v3071_v57 }
 0xb4e   :  { %v13008_v19 = vpop.eup %13007 }
 0xb4f   :  { %v13010_v60 = vpop.eup %13009  ;;  %v3087_v39 = vadd.f32 1.0, %v13008_v19 }
 0xb51   :  { %13015 = vrcp.f32 %v3087_v39 }
 0xb53   :  { %v13012_v59 = vpop.eup %13011 }
 0xb54   :  { %v13014_v52 = vpop.eup %13013  ;;  %v3082_v61 = vmul.f32 %v13012_v59, %v13010_v60 }
 0xb55   :  { %v3074_v31 = vmul.f32 %v13014_v52, %v15013_v46 }
 0xb57   :  { %v15053_v18 = vadd.f32 %v3082_v61, %v3074_v31 }
 0xb59   :  { %13017 = vtanh.f32 %v15053_v18 }
 0xb5b   :  { %v13016_v16 = vpop.eup %13015 }
 0xb63   :  { %v13018_v37 = vpop.eup %13017 }
 0xb64   :  { %v15056_v6 = vmul.f32 %v13018_v37, %v13016_v16 }
 0xb66   :  { %v3092_v10 = vpack.c.bf16 %v15056_v6, %v15056_v6 }
 0xb68   :  { %11242 = vmatmul.mubr.msk.bf16.vlgmr.msra.gmra.mrb[128].mxu0 %vm1136_vm2, %v3092_v10  ;;  %11250 = vmatmul.mubr.msk.bf16.vlgmr.msra.gmra.mrb[128].mxu1 %vm1136_vm2, %v3092_v10 }
 0xb69   :  { %11254 = vmatpush3.bf16.msra.mxu0 %v14845_v22  ;;  %11262 = vmatpush3.bf16.msra.mxu1 %v14851_v58 }
 0xb6a   :  { %11255 = vmatprep.subr.bf16.mxu0 %v16912_v0  ;;  %11263 = vmatprep.subr.bf16.mxu1 %v16912_v0 }
 0xb6b   :  { %11257 = vmatprep.mubr.msk.bf16.mxu0 %vm13601_vm1, %v16912_v0  ;;  %11265 = vmatprep.mubr.msk.bf16.mxu1 %vm13601_vm1, %v16912_v0 }
 0xb6d   :  { %11256 = vmatpush3.bf16.msra.mxu0 %v14863_v63  ;;  %11264 = vmatpush3.bf16.msra.mxu1 %v14869_v43 }
 0xb6e   :  { %11269 = vmatprep.subr.bf16.mxu0 %v16912_v0  ;;  %11277 = vmatprep.subr.bf16.mxu1 %v16912_v0 }
 0xb70   :  { %11258 = vmatmul.mubr.msk.bf16.vlgmr.msra.gmra.mrb[132].mxu0 %vm1136_vm2, %v3092_v10  ;;  %11266 = vmatmul.mubr.msk.bf16.vlgmr.msra.gmra.mrb[132].mxu1 %vm1136_vm2, %v3092_v10 }
 0xb71   :  { %11270 = vmatpush3.bf16.msra.mxu0 %v14799_v25  ;;  %11278 = vmatpush3.bf16.msra.mxu1 %v14805_v26 }
 0xb72   :  { %11271 = vmatprep.subr.bf16.mxu0 %v16912_v0  ;;  %11279 = vmatprep.subr.bf16.mxu1 %v16912_v0 }
 0xb73   :  { %11273 = vmatprep.mubr.msk.bf16.mxu0 %vm13601_vm1, %v16912_v0  ;;  %11281 = vmatprep.mubr.msk.bf16.mxu1 %vm13601_vm1, %v16912_v0 }
 0xb75   :  { %11272 = vmatpush3.bf16.msra.mxu0 %v14817_v28  ;;  %11280 = vmatpush3.bf16.msra.mxu1 %v14823_v29 }
 0xb76   :  { %11285 = vmatprep.subr.bf16.mxu0 %v16912_v0  ;;  %11293 = vmatprep.subr.bf16.mxu1 %v16912_v0 }
 0xc3b   :  { %v3130_v46 = vpop.f32.mrb[128].mxu0  ;;  %v3171_v55 = vpop.f32.mrb[128].mxu1 }
 0xc3c   :  { %v3136_v54 = vadd.f32 %v3130_v46, %v16917_v15  ;;  %v3177_v8 = vadd.f32 %v3171_v55, %v16918_v56  ;;  %v11243_v2 = vpop.f32.mrb[129].mxu0  ;;  %v11251_v40 = vpop.f32.mrb[129].mxu1  ;;  %v16922_v55 = vld [vmem:[#allocation28_spill] sm:$0xff] }
 0xc3d   :  { %v3133_v42 = vpop.f32.mrb[130].mxu0  ;;  %v3174_v12 = vpop.f32.mrb[130].mxu1 }
 0xc3e   :  { %v9689_v9 = vmul.f32 -1.442695, %v3136_v54  ;;  %v9688_v1 = vmul.f32 -1.442695, %v3177_v8  ;;  %v11244_v20 = vpop.f32.mrb[131].mxu0  ;;  %v11252_v62 = vpop.f32.mrb[131].mxu1 }
 0xc3f   :  { %v16924_v62 = vld [vmem:[#allocation58_spill] sm:$0xff] }
 0xc40   :  { %13019 = vpow2.f32 %v9689_v9 }
 0xc41   :  { %13021 = vpow2.f32 %v9688_v1  ;;  %v16923_v1 = vld [vmem:[#allocation56_spill] sm:$0xff] }
 0xc43   :  { %v3212_v23 = vpop.f32.mrb[132].mxu0  ;;  %v3253_v24 = vpop.f32.mrb[132].mxu1 }
 0xc44   :  { %v3218_v14 = vadd.f32 %v3212_v23, %v16919_v4  ;;  %v3259_v38 = vadd.f32 %v3253_v24, %v16920_v33  ;;  %v11259_v41 = vpop.f32.mrb[133].mxu0  ;;  %v11267_v32 = vpop.f32.mrb[133].mxu1 }
 0xc45   :  { %v3215_v44 = vpop.f32.mrb[134].mxu0  ;;  %v3256_v34 = vpop.f32.mrb[134].mxu1 }
 0xc46   :  { %v11260_v51 = vpop.f32.mrb[135].mxu0  ;;  %v11268_v47 = vpop.f32.mrb[135].mxu1  ;;  %v9690_v3 = vmul.f32 -1.442695, %v3259_v38 }
 0xc48   :  { %13023 = vpow2.f32 %v9690_v3 }
 0xc49   :  { %13025 = vtanh.f32 %v3218_v14 }
 0xc4a   :  { %v13020_v53 = vpop.eup %13019 }
 0xc4b   :  { %v13022_v5 = vpop.eup %13021  ;;  %v3270_v30 = vadd.f32 1.0, %v13020_v53 }
 0xc4c   :  { %v3263_v35 = vadd.f32 1.0, %v13022_v5 }
 0xc4d   :  { %13027 = vrcp.f32 %v3270_v30 }
 0xc4e   :  { %13029 = vrcp.f32 %v3263_v35 }
 0xc52   :  { %v13024_v49 = vpop.eup %13023 }
 0xc53   :  { %v13026_v57 = vpop.eup %13025  ;;  %v3279_v52 = vadd.f32 1.0, %v13024_v49 }
 0xc55   :  { %13031 = vrcp.f32 %v3279_v52 }
 0xc57   :  { %v13028_v19 = vpop.eup %13027 }
 0xc58   :  { %v13030_v60 = vpop.eup %13029  ;;  %v3274_v59 = vmul.f32 %v13028_v19, %v13026_v57 }
 0xc59   :  { %v3266_v61 = vmul.f32 %v13030_v60, %v15053_v18  ;;  %v16921_v18 = vld [vmem:[#allocation26_spill] sm:$0xff] }
 0xc5b   :  { %v15093_v39 = vadd.f32 %v3274_v59, %v3266_v61 }
 0xc5d   :  { %13033 = vtanh.f32 %v15093_v39 }
 0xc5f   :  { %v13032_v31 = vpop.eup %13031 }
 0xc67   :  { %v13034_v16 = vpop.eup %13033 }
 0xc68   :  { %v15096_v37 = vmul.f32 %v13034_v16, %v13032_v31  ;;  %v16925_v16 = vld [vmem:[#allocation31_spill] sm:$0xff] }
 0xc6a   :  { %v3284_v10 = vpack.c.bf16 %v15096_v37, %v15096_v37 }
 0xc6c   :  { %11274 = vmatmul.mubr.msk.bf16.vlgmr.msra.gmra.mrb[136].mxu0 %vm1136_vm2, %v3284_v10  ;;  %11282 = vmatmul.mubr.msk.bf16.vlgmr.msra.gmra.mrb[136].mxu1 %vm1136_vm2, %v3284_v10 }
 0xc6d   :  { %11286 = vmatpush3.bf16.msra.mxu0 %v14845_v22  ;;  %11294 = vmatpush3.bf16.msra.mxu1 %v14851_v58 }
 0xc6e   :  { %11287 = vmatprep.subr.bf16.mxu0 %v16912_v0  ;;  %11295 = vmatprep.subr.bf16.mxu1 %v16912_v0 }
 0xc6f   :  { %11289 = vmatprep.mubr.msk.bf16.mxu0 %vm13601_vm1, %v16912_v0  ;;  %11297 = vmatprep.mubr.msk.bf16.mxu1 %vm13601_vm1, %v16912_v0 }
 0xc71   :  { %11288 = vmatpush3.bf16.msra.mxu0 %v14863_v63  ;;  %11296 = vmatpush3.bf16.msra.mxu1 %v14869_v43 }
 0xc72   :  { %11301 = vmatprep.subr.bf16.mxu0 %v16912_v0  ;;  %11309 = vmatprep.subr.bf16.mxu1 %v16912_v0 }
 0xc74   :  { %11290 = vmatmul.mubr.msk.bf16.vlgmr.msra.gmra.mrb[140].mxu0 %vm1136_vm2, %v3284_v10  ;;  %11298 = vmatmul.mubr.msk.bf16.vlgmr.msra.gmra.mrb[140].mxu1 %vm1136_vm2, %v3284_v10 }
 0xc75   :  { %11302 = vmatpush3.bf16.msra.mxu0 %v14799_v25  ;;  %11310 = vmatpush3.bf16.msra.mxu1 %v14805_v26 }
 0xc76   :  { %11303 = vmatprep.subr.bf16.mxu0 %v16912_v0  ;;  %11311 = vmatprep.subr.bf16.mxu1 %v16912_v0 }
 0xc77   :  { %11305 = vmatprep.mubr.msk.bf16.mxu0 %vm13601_vm1, %v16912_v0  ;;  %11313 = vmatprep.mubr.msk.bf16.mxu1 %vm13601_vm1, %v16912_v0 }
 0xc79   :  { %11304 = vmatpush3.bf16.msra.mxu0 %v14817_v28  ;;  %11312 = vmatpush3.bf16.msra.mxu1 %v14823_v29 }
 0xc7a   :  { %11317 = vmatprep.subr.bf16.mxu0 %v16912_v0  ;;  %11325 = vmatprep.subr.bf16.mxu1 %v16912_v0 }
 0xd3f   :  { %v3322_v25 = vpop.f32.mrb[136].mxu0  ;;  %v3363_v26 = vpop.f32.mrb[136].mxu1 }
 0xd40   :  { %v3328_v46 = vadd.f32 %v3322_v25, %v16921_v18  ;;  %v3369_v15 = vadd.f32 %v3363_v26, %v16922_v55  ;;  %v11275_v54 = vpop.f32.mrb[137].mxu0  ;;  %v11283_v56 = vpop.f32.mrb[137].mxu1  ;;  %v16926_v25 = vld [vmem:[#allocation33_spill] sm:$0xff] }
 0xd41   :  { %v3325_v8 = vpop.f32.mrb[138].mxu0  ;;  %v3366_v2 = vpop.f32.mrb[138].mxu1 }
 0xd42   :  { %v9696_v40 = vmul.f32 -1.442695, %v3328_v46  ;;  %v9695_v42 = vmul.f32 -1.442695, %v3369_v15  ;;  %v11276_v12 = vpop.f32.mrb[139].mxu0  ;;  %v11284_v28 = vpop.f32.mrb[139].mxu1 }
 0xd43   :  { %v16927_v12 = vld [vmem:[#allocation61_spill] sm:$0xff] }
 0xd44   :  { %13035 = vpow2.f32 %v9696_v40 }
 0xd45   :  { %13037 = vpow2.f32 %v9695_v42 }
 0xd47   :  { %v3404_v29 = vpop.f32.mrb[140].mxu0  ;;  %v3445_v9 = vpop.f32.mrb[140].mxu1 }
 0xd48   :  { %v3410_v20 = vadd.f32 %v3404_v29, %v16923_v1  ;;  %v3451_v23 = vadd.f32 %v3445_v9, %v16924_v62  ;;  %v11291_v24 = vpop.f32.mrb[141].mxu0  ;;  %v11299_v4 = vpop.f32.mrb[141].mxu1  ;;  %v16928_v29 = vld [vmem:[#allocation63_spill] sm:$0xff] }
 0xd49   :  { %v3407_v14 = vpop.f32.mrb[142].mxu0  ;;  %v3448_v33 = vpop.f32.mrb[142].mxu1 }
 0xd4a   :  { %v11292_v38 = vpop.f32.mrb[143].mxu0  ;;  %v11300_v41 = vpop.f32.mrb[143].mxu1  ;;  %v9697_v32 = vmul.f32 -1.442695, %v3451_v23 }
 0xd4c   :  { %13039 = vpow2.f32 %v9697_v32 }
 0xd4d   :  { %13041 = vtanh.f32 %v3410_v20 }
 0xd4e   :  { %v13036_v44 = vpop.eup %13035 }
 0xd4f   :  { %v13038_v34 = vpop.eup %13037  ;;  %v3462_v51 = vadd.f32 1.0, %v13036_v44 }
 0xd50   :  { %v3455_v47 = vadd.f32 1.0, %v13038_v34 }
 0xd51   :  { %13043 = vrcp.f32 %v3462_v51 }
 0xd52   :  { %13045 = vrcp.f32 %v3455_v47 }
 0xd56   :  { %v13040_v3 = vpop.eup %13039 }
 0xd57   :  { %v13042_v53 = vpop.eup %13041  ;;  %v3471_v49 = vadd.f32 1.0, %v13040_v3 }
 0xd59   :  { %13047 = vrcp.f32 %v3471_v49 }
 0xd5b   :  { %v13044_v5 = vpop.eup %13043 }
 0xd5c   :  { %v13046_v30 = vpop.eup %13045  ;;  %v3466_v35 = vmul.f32 %v13044_v5, %v13042_v53 }
 0xd5d   :  { %v3458_v57 = vmul.f32 %v13046_v30, %v15093_v39 }
 0xd5f   :  { %v15133_v19 = vadd.f32 %v3466_v35, %v3458_v57 }
 0xd61   :  { %13049 = vtanh.f32 %v15133_v19 }
 0xd63   :  { %v13048_v60 = vpop.eup %13047 }
 0xd6b   :  { %v13050_v59 = vpop.eup %13049 }
 0xd6c   :  { %v15136_v52 = vmul.f32 %v13050_v59, %v13048_v60  ;;  %v15211_v59 = vld [vmem:[%s16852_s24 + $0x30] sm:$0xff]  }
 0xd6e   :  { %v3476_v61 = vpack.c.bf16 %v15136_v52, %v15136_v52 }
 0xd70   :  { %11306 = vmatmul.mubr.msk.bf16.vlgmr.msra.gmra.mrb[144].mxu0 %vm1136_vm2, %v3476_v61  ;;  %11314 = vmatmul.mubr.msk.bf16.vlgmr.msra.gmra.mrb[144].mxu1 %vm1136_vm2, %v3476_v61 }
 0xd71   :  { %11318 = vmatpush3.bf16.msra.mxu0 %v14845_v22  ;;  %11326 = vmatpush3.bf16.msra.mxu1 %v14851_v58  ;;  %v15159_v22 = vld [vmem:[%s16852_s24] sm:$0xff]   ;;  %v15165_v58 = vld [vmem:[%s16852_s24 + $0x10] sm:$0xff]  }
 0xd72   :  { %11319 = vmatprep.subr.bf16.mxu0 %v16912_v0  ;;  %11327 = vmatprep.subr.bf16.mxu1 %v16912_v0 }
 0xd73   :  { %11321 = vmatprep.mubr.msk.bf16.mxu0 %vm13601_vm1, %v16912_v0  ;;  %11329 = vmatprep.mubr.msk.bf16.mxu1 %vm13601_vm1, %v16912_v0 }
 0xd75   :  { %11320 = vmatpush3.bf16.msra.mxu0 %v14863_v63  ;;  %11328 = vmatpush3.bf16.msra.mxu1 %v14869_v43  ;;  %v15177_v63 = vld [vmem:[%s16852_s24 + $0x8] sm:$0xff]   ;;  %v15183_v43 = vld [vmem:[%s16852_s24 + $0x18] sm:$0xff]  }
 0xd76   :  { %11333 = vmatprep.subr.bf16.mxu0 %v16912_v0  ;;  %11341 = vmatprep.subr.bf16.mxu1 %v16912_v0 }
 0xd78   :  { %11322 = vmatmul.mubr.msk.bf16.vlgmr.msra.gmra.mrb[148].mxu0 %vm1136_vm2, %v3476_v61  ;;  %11330 = vmatmul.mubr.msk.bf16.vlgmr.msra.gmra.mrb[148].mxu1 %vm1136_vm2, %v3476_v61  ;;  %v15223_v61 = vld [vmem:[%s16852_s24 + $0x28] sm:$0xff]  }
 0xd79   :  { %11334 = vmatpush3.bf16.msra.mxu0 %v15159_v22  ;;  %11342 = vmatpush3.bf16.msra.mxu1 %v15165_v58 }
 0xd7a   :  { %11335 = vmatprep.subr.bf16.mxu0 %v16912_v0  ;;  %11343 = vmatprep.subr.bf16.mxu1 %v16912_v0 }
 0xd7b   :  { %11337 = vmatprep.mubr.msk.bf16.mxu0 %vm13601_vm1, %v16912_v0  ;;  %11345 = vmatprep.mubr.msk.bf16.mxu1 %vm13601_vm1, %v16912_v0 }
 0xd7d   :  { %11336 = vmatpush3.bf16.msra.mxu0 %v15177_v63  ;;  %11344 = vmatpush3.bf16.msra.mxu1 %v15183_v43 }
 0xd7e   :  { %11349 = vmatprep.subr.bf16.mxu0 %v16912_v0  ;;  %11357 = vmatprep.subr.bf16.mxu1 %v16912_v0 }
 0xe43   :  { %v3514_v39 = vpop.f32.mrb[144].mxu0  ;;  %v3555_v31 = vpop.f32.mrb[144].mxu1 }
 0xe44   :  { %v3520_v10 = vadd.f32 %v3514_v39, %v16925_v16  ;;  %v3561_v26 = vadd.f32 %v3555_v31, %v16926_v25  ;;  %v11307_v18 = vpop.f32.mrb[145].mxu0  ;;  %v11315_v46 = vpop.f32.mrb[145].mxu1  ;;  %v15229_v39 = vld [vmem:[%s16852_s24 + $0x38] sm:$0xff]  }
 0xe45   :  { %v3517_v55 = vpop.f32.mrb[146].mxu0  ;;  %v3558_v15 = vpop.f32.mrb[146].mxu1 }
 0xe46   :  { %v9703_v54 = vmul.f32 -1.442695, %v3520_v10  ;;  %v9702_v56 = vmul.f32 -1.442695, %v3561_v26  ;;  %v11308_v8 = vpop.f32.mrb[147].mxu0  ;;  %v11316_v2 = vpop.f32.mrb[147].mxu1 }
 0xe47   :  { %v16929_v10 = vld [vmem:[#allocation30_spill] sm:$0xff]  ;;  %v16930_v26 = vld [vmem:[#allocation32_spill] sm:$0xff] }
 0xe48   :  { %13051 = vpow2.f32 %v9703_v54 }
 0xe49   :  { %13053 = vpow2.f32 %v9702_v56 }
 0xe4b   :  { %v3596_v40 = vpop.f32.mrb[148].mxu0  ;;  %v3637_v42 = vpop.f32.mrb[148].mxu1 }
 0xe4c   :  { %v3602_v28 = vadd.f32 %v3596_v40, %v16927_v12  ;;  %v3643_v9 = vadd.f32 %v3637_v42, %v16928_v29  ;;  %v11323_v1 = vpop.f32.mrb[149].mxu0  ;;  %v11331_v20 = vpop.f32.mrb[149].mxu1 }
 0xe4d   :  { %v3599_v62 = vpop.f32.mrb[150].mxu0  ;;  %v3640_v23 = vpop.f32.mrb[150].mxu1 }
 0xe4e   :  { %v11324_v24 = vpop.f32.mrb[151].mxu0  ;;  %v11332_v4 = vpop.f32.mrb[151].mxu1  ;;  %v9704_v14 = vmul.f32 -1.442695, %v3643_v9  ;;  %v16932_v9 = vld [vmem:[#allocation62_spill] sm:$0xff] }
 0xe50   :  { %13055 = vpow2.f32 %v9704_v14 }
 0xe51   :  { %13057 = vtanh.f32 %v3602_v28  ;;  %v16931_v28 = vld [vmem:[#allocation60_spill] sm:$0xff] }
 0xe52   :  { %v13052_v33 = vpop.eup %13051 }
 0xe53   :  { %v13054_v38 = vpop.eup %13053  ;;  %v3654_v41 = vadd.f32 1.0, %v13052_v33 }
 0xe54   :  { %v3647_v32 = vadd.f32 1.0, %v13054_v38 }
 0xe55   :  { %13059 = vrcp.f32 %v3654_v41 }
 0xe56   :  { %13061 = vrcp.f32 %v3647_v32 }
 0xe5a   :  { %v13056_v44 = vpop.eup %13055 }
 0xe5b   :  { %v13058_v34 = vpop.eup %13057  ;;  %v3663_v53 = vadd.f32 1.0, %v13056_v44 }
 0xe5d   :  { %13063 = vrcp.f32 %v3663_v53 }
 0xe5f   :  { %v13060_v51 = vpop.eup %13059 }
 0xe60   :  { %v13062_v47 = vpop.eup %13061  ;;  %v3658_v3 = vmul.f32 %v13060_v51, %v13058_v34 }
 0xe61   :  { %v3650_v5 = vmul.f32 %v13062_v47, %v15133_v19  ;;  %v15205_v19 = vld [vmem:[%s16852_s24 + $0x20] sm:$0xff]  }
 0xe63   :  { %v15193_v30 = vadd.f32 %v3658_v3, %v3650_v5 }
 0xe65   :  { %13065 = vtanh.f32 %v15193_v30 }
 0xe67   :  { %v13064_v35 = vpop.eup %13063 }
 0xe6f   :  { %v13066_v49 = vpop.eup %13065 }
 0xe70   :  { %v15196_v57 = vmul.f32 %v13066_v49, %v13064_v35 }
 0xe72   :  { %v3668_v60 = vpack.c.bf16 %v15196_v57, %v15196_v57 }
 0xe74   :  { %11338 = vmatmul.mubr.msk.bf16.vlgmr.msra.gmra.mrb[152].mxu0 %vm1136_vm2, %v3668_v60  ;;  %11346 = vmatmul.mubr.msk.bf16.vlgmr.msra.gmra.mrb[152].mxu1 %vm1136_vm2, %v3668_v60 }
 0xe75   :  { %11350 = vmatpush3.bf16.msra.mxu0 %v15205_v19  ;;  %11358 = vmatpush3.bf16.msra.mxu1 %v15211_v59 }
 0xe76   :  { %11351 = vmatprep.subr.bf16.mxu0 %v16912_v0  ;;  %11359 = vmatprep.subr.bf16.mxu1 %v16912_v0 }
 0xe77   :  { %11353 = vmatprep.mubr.msk.bf16.mxu0 %vm13601_vm1, %v16912_v0  ;;  %11361 = vmatprep.mubr.msk.bf16.mxu1 %vm13601_vm1, %v16912_v0 }
 0xe79   :  { %11352 = vmatpush3.bf16.msra.mxu0 %v15223_v61  ;;  %11360 = vmatpush3.bf16.msra.mxu1 %v15229_v39 }
 0xe7a   :  { %11365 = vmatprep.subr.bf16.mxu0 %v16912_v0  ;;  %11373 = vmatprep.subr.bf16.mxu1 %v16912_v0 }
 0xe7c   :  { %11354 = vmatmul.mubr.msk.bf16.vlgmr.msra.gmra.mrb[156].mxu0 %vm1136_vm2, %v3668_v60  ;;  %11362 = vmatmul.mubr.msk.bf16.vlgmr.msra.gmra.mrb[156].mxu1 %vm1136_vm2, %v3668_v60 }
 0xe7d   :  { %11366 = vmatpush3.bf16.msra.mxu0 %v15159_v22  ;;  %11374 = vmatpush3.bf16.msra.mxu1 %v15165_v58 }
 0xe7e   :  { %11367 = vmatprep.subr.bf16.mxu0 %v16912_v0  ;;  %11375 = vmatprep.subr.bf16.mxu1 %v16912_v0 }
 0xe7f   :  { %11369 = vmatprep.mubr.msk.bf16.mxu0 %vm13601_vm1, %v16912_v0  ;;  %11377 = vmatprep.mubr.msk.bf16.mxu1 %vm13601_vm1, %v16912_v0 }
 0xe81   :  { %11368 = vmatpush3.bf16.msra.mxu0 %v15177_v63  ;;  %11376 = vmatpush3.bf16.msra.mxu1 %v15183_v43 }
 0xe82   :  { %11381 = vmatprep.subr.bf16.mxu0 %v16912_v0  ;;  %11389 = vmatprep.subr.bf16.mxu1 %v16912_v0 }
 0xf47   :  { %v3706_v31 = vpop.f32.mrb[152].mxu0  ;;  %v3747_v16 = vpop.f32.mrb[152].mxu1 }
 0xf48   :  { %v3712_v25 = vadd.f32 %v3706_v31, %v16929_v10  ;;  %v3753_v18 = vadd.f32 %v3747_v16, %v16930_v26  ;;  %v11339_v46 = vpop.f32.mrb[153].mxu0  ;;  %v11347_v55 = vpop.f32.mrb[153].mxu1  ;;  %v16933_v26 = vld [vmem:[#allocation35_spill] sm:$0xff] }
 0xf49   :  { %v3709_v15 = vpop.f32.mrb[154].mxu0  ;;  %v3750_v54 = vpop.f32.mrb[154].mxu1  ;;  %v16934_v46 = vld [vmem:[#allocation37_spill] sm:$0xff] }
 0xf4a   :  { %v9710_v56 = vmul.f32 -1.442695, %v3712_v25  ;;  %v9709_v8 = vmul.f32 -1.442695, %v3753_v18  ;;  %v11340_v2 = vpop.f32.mrb[155].mxu0  ;;  %v11348_v40 = vpop.f32.mrb[155].mxu1 }
 0xf4c   :  { %13067 = vpow2.f32 %v9710_v56 }
 0xf4d   :  { %13069 = vpow2.f32 %v9709_v8 }
 0xf4f   :  { %v3788_v42 = vpop.f32.mrb[156].mxu0  ;;  %v3829_v12 = vpop.f32.mrb[156].mxu1 }
 0xf50   :  { %v3794_v29 = vadd.f32 %v3788_v42, %v16931_v28  ;;  %v3835_v1 = vadd.f32 %v3829_v12, %v16932_v9  ;;  %v11355_v20 = vpop.f32.mrb[157].mxu0  ;;  %v11363_v62 = vpop.f32.mrb[157].mxu1  ;;  %v16935_v9 = vld [vmem:[#allocation65_spill] sm:$0xff] }
 0xf51   :  { %v3791_v23 = vpop.f32.mrb[158].mxu0  ;;  %v3832_v24 = vpop.f32.mrb[158].mxu1  ;;  %v16936_v20 = vld [vmem:[#allocation67_spill] sm:$0xff] }
 0xf52   :  { %v11356_v4 = vpop.f32.mrb[159].mxu0  ;;  %v11364_v14 = vpop.f32.mrb[159].mxu1  ;;  %v9711_v33 = vmul.f32 -1.442695, %v3835_v1 }
 0xf54   :  { %13071 = vpow2.f32 %v9711_v33 }
 0xf55   :  { %13073 = vtanh.f32 %v3794_v29 }
 0xf56   :  { %v13068_v38 = vpop.eup %13067 }
 0xf57   :  { %v13070_v41 = vpop.eup %13069  ;;  %v3846_v32 = vadd.f32 1.0, %v13068_v38 }
 0xf58   :  { %v3839_v44 = vadd.f32 1.0, %v13070_v41 }
 0xf59   :  { %13075 = vrcp.f32 %v3846_v32 }
 0xf5a   :  { %13077 = vrcp.f32 %v3839_v44 }
 0xf5e   :  { %v13072_v34 = vpop.eup %13071 }
 0xf5f   :  { %v13074_v51 = vpop.eup %13073  ;;  %v3855_v5 = vadd.f32 1.0, %v13072_v34 }
 0xf61   :  { %13079 = vrcp.f32 %v3855_v5 }
 0xf63   :  { %v13076_v47 = vpop.eup %13075 }
 0xf64   :  { %v13078_v3 = vpop.eup %13077  ;;  %v3850_v53 = vmul.f32 %v13076_v47, %v13074_v51 }
 0xf65   :  { %v3842_v35 = vmul.f32 %v13078_v3, %v15193_v30 }
 0xf67   :  { %v15253_v49 = vadd.f32 %v3850_v53, %v3842_v35 }
 0xf69   :  { %13081 = vtanh.f32 %v15253_v49 }
 0xf6b   :  { %v13080_v60 = vpop.eup %13079 }
 0xf73   :  { %v13082_v31 = vpop.eup %13081 }
 0xf74   :  { %v15256_v16 = vmul.f32 %v13082_v31, %v13080_v60 }
 0xf76   :  { %v3860_v10 = vpack.c.bf16 %v15256_v16, %v15256_v16 }
 0xf78   :  { %11370 = vmatmul.mubr.msk.bf16.vlgmr.msra.gmra.mrb[160].mxu0 %vm1136_vm2, %v3860_v10  ;;  %11378 = vmatmul.mubr.msk.bf16.vlgmr.msra.gmra.mrb[160].mxu1 %vm1136_vm2, %v3860_v10 }
 0xf79   :  { %11382 = vmatpush3.bf16.msra.mxu0 %v15205_v19  ;;  %11390 = vmatpush3.bf16.msra.mxu1 %v15211_v59 }
 0xf7a   :  { %11383 = vmatprep.subr.bf16.mxu0 %v16912_v0  ;;  %11391 = vmatprep.subr.bf16.mxu1 %v16912_v0 }
 0xf7b   :  { %11385 = vmatprep.mubr.msk.bf16.mxu0 %vm13601_vm1, %v16912_v0  ;;  %11393 = vmatprep.mubr.msk.bf16.mxu1 %vm13601_vm1, %v16912_v0 }
 0xf7d   :  { %11384 = vmatpush3.bf16.msra.mxu0 %v15223_v61  ;;  %11392 = vmatpush3.bf16.msra.mxu1 %v15229_v39 }
 0xf7e   :  { %11397 = vmatprep.subr.bf16.mxu0 %v16912_v0  ;;  %11405 = vmatprep.subr.bf16.mxu1 %v16912_v0 }
 0xf80   :  { %11386 = vmatmul.mubr.msk.bf16.vlgmr.msra.gmra.mrb[164].mxu0 %vm1136_vm2, %v3860_v10  ;;  %11394 = vmatmul.mubr.msk.bf16.vlgmr.msra.gmra.mrb[164].mxu1 %vm1136_vm2, %v3860_v10 }
 0xf81   :  { %11398 = vmatpush3.bf16.msra.mxu0 %v15159_v22  ;;  %11406 = vmatpush3.bf16.msra.mxu1 %v15165_v58 }
 0xf82   :  { %11399 = vmatprep.subr.bf16.mxu0 %v16912_v0  ;;  %11407 = vmatprep.subr.bf16.mxu1 %v16912_v0 }
 0xf83   :  { %11401 = vmatprep.mubr.msk.bf16.mxu0 %vm13601_vm1, %v16912_v0  ;;  %11409 = vmatprep.mubr.msk.bf16.mxu1 %vm13601_vm1, %v16912_v0 }
 0xf85   :  { %11400 = vmatpush3.bf16.msra.mxu0 %v15177_v63  ;;  %11408 = vmatpush3.bf16.msra.mxu1 %v15183_v43 }
 0xf86   :  { %11413 = vmatprep.subr.bf16.mxu0 %v16912_v0  ;;  %11421 = vmatprep.subr.bf16.mxu1 %v16912_v0 }
0x104b   :  { %v3898_v30 = vpop.f32.mrb[160].mxu0  ;;  %v3939_v25 = vpop.f32.mrb[160].mxu1 }
0x104c   :  { %v3904_v18 = vadd.f32 %v3898_v30, %v16933_v26  ;;  %v3945_v55 = vadd.f32 %v3939_v25, %v16934_v46  ;;  %v11371_v15 = vpop.f32.mrb[161].mxu0  ;;  %v11379_v54 = vpop.f32.mrb[161].mxu1 }
0x104d   :  { %v3901_v56 = vpop.f32.mrb[162].mxu0  ;;  %v3942_v8 = vpop.f32.mrb[162].mxu1  ;;  %v16938_v54 = vld [vmem:[#allocation36_spill] sm:$0xff] }
0x104e   :  { %v9717_v2 = vmul.f32 -1.442695, %v3904_v18  ;;  %v9716_v40 = vmul.f32 -1.442695, %v3945_v55  ;;  %v11372_v42 = vpop.f32.mrb[163].mxu0  ;;  %v11380_v12 = vpop.f32.mrb[163].mxu1 }
0x104f   :  { %v16937_v55 = vld [vmem:[#allocation34_spill] sm:$0xff] }
0x1050   :  { %13083 = vpow2.f32 %v9717_v2 }
0x1051   :  { %13085 = vpow2.f32 %v9716_v40 }
0x1053   :  { %v3980_v28 = vpop.f32.mrb[164].mxu0  ;;  %v4021_v29 = vpop.f32.mrb[164].mxu1 }
0x1054   :  { %v3986_v1 = vadd.f32 %v3980_v28, %v16935_v9  ;;  %v4027_v62 = vadd.f32 %v4021_v29, %v16936_v20  ;;  %v11387_v23 = vpop.f32.mrb[165].mxu0  ;;  %v11395_v24 = vpop.f32.mrb[165].mxu1 }
0x1055   :  { %v3983_v4 = vpop.f32.mrb[166].mxu0  ;;  %v4024_v14 = vpop.f32.mrb[166].mxu1  ;;  %v16940_v24 = vld [vmem:[#allocation66_spill] sm:$0xff] }
0x1056   :  { %v11388_v33 = vpop.f32.mrb[167].mxu0  ;;  %v11396_v38 = vpop.f32.mrb[167].mxu1  ;;  %v9718_v41 = vmul.f32 -1.442695, %v4027_v62  ;;  %v16939_v62 = vld [vmem:[#allocation64_spill] sm:$0xff] }
0x1058   :  { %13087 = vpow2.f32 %v9718_v41 }
0x1059   :  { %13089 = vtanh.f32 %v3986_v1 }
0x105a   :  { %v13084_v32 = vpop.eup %13083 }
0x105b   :  { %v13086_v44 = vpop.eup %13085  ;;  %v4038_v34 = vadd.f32 1.0, %v13084_v32 }
0x105c   :  { %v4031_v51 = vadd.f32 1.0, %v13086_v44 }
0x105d   :  { %13091 = vrcp.f32 %v4038_v34 }
0x105e   :  { %13093 = vrcp.f32 %v4031_v51 }
0x1062   :  { %v13088_v47 = vpop.eup %13087 }
0x1063   :  { %v13090_v3 = vpop.eup %13089  ;;  %v4047_v60 = vadd.f32 1.0, %v13088_v47 }
0x1065   :  { %13095 = vrcp.f32 %v4047_v60 }
0x1067   :  { %v13092_v53 = vpop.eup %13091 }
0x1068   :  { %v13094_v5 = vpop.eup %13093  ;;  %v4042_v35 = vmul.f32 %v13092_v53, %v13090_v3 }
0x1069   :  { %v4034_v31 = vmul.f32 %v13094_v5, %v15253_v49 }
0x106b   :  { %v15293_v10 = vadd.f32 %v4042_v35, %v4034_v31 }
0x106d   :  { %13097 = vtanh.f32 %v15293_v10 }
0x106f   :  { %v13096_v30 = vpop.eup %13095 }
0x1077   :  { %v13098_v25 = vpop.eup %13097 }
0x1078   :  { %v15296_v26 = vmul.f32 %v13098_v25, %v13096_v30 }
0x107a   :  { %v4052_v18 = vpack.c.bf16 %v15296_v26, %v15296_v26 }
0x107c   :  { %11402 = vmatmul.mubr.msk.bf16.vlgmr.msra.gmra.mrb[168].mxu0 %vm1136_vm2, %v4052_v18  ;;  %11410 = vmatmul.mubr.msk.bf16.vlgmr.msra.gmra.mrb[168].mxu1 %vm1136_vm2, %v4052_v18 }
0x107d   :  { %11414 = vmatpush3.bf16.msra.mxu0 %v15205_v19  ;;  %11422 = vmatpush3.bf16.msra.mxu1 %v15211_v59 }
0x107e   :  { %11415 = vmatprep.subr.bf16.mxu0 %v16912_v0  ;;  %11423 = vmatprep.subr.bf16.mxu1 %v16912_v0 }
0x107f   :  { %11417 = vmatprep.mubr.msk.bf16.mxu0 %vm13601_vm1, %v16912_v0  ;;  %11425 = vmatprep.mubr.msk.bf16.mxu1 %vm13601_vm1, %v16912_v0 }
0x1081   :  { %11416 = vmatpush3.bf16.msra.mxu0 %v15223_v61  ;;  %11424 = vmatpush3.bf16.msra.mxu1 %v15229_v39 }
0x1082   :  { %11429 = vmatprep.subr.bf16.mxu0 %v16912_v0  ;;  %11437 = vmatprep.subr.bf16.mxu1 %v16912_v0 }
0x1084   :  { %11418 = vmatmul.mubr.msk.bf16.vlgmr.msra.gmra.mrb[172].mxu0 %vm1136_vm2, %v4052_v18  ;;  %11426 = vmatmul.mubr.msk.bf16.vlgmr.msra.gmra.mrb[172].mxu1 %vm1136_vm2, %v4052_v18 }
0x1085   :  { %11430 = vmatpush3.bf16.msra.mxu0 %v15159_v22  ;;  %11438 = vmatpush3.bf16.msra.mxu1 %v15165_v58 }
0x1086   :  { %11431 = vmatprep.subr.bf16.mxu0 %v16912_v0  ;;  %11439 = vmatprep.subr.bf16.mxu1 %v16912_v0 }
0x1087   :  { %11433 = vmatprep.mubr.msk.bf16.mxu0 %vm13601_vm1, %v16912_v0  ;;  %11441 = vmatprep.mubr.msk.bf16.mxu1 %vm13601_vm1, %v16912_v0 }
0x1089   :  { %11432 = vmatpush3.bf16.msra.mxu0 %v15177_v63  ;;  %11440 = vmatpush3.bf16.msra.mxu1 %v15183_v43 }
0x108a   :  { %11445 = vmatprep.subr.bf16.mxu0 %v16912_v0  ;;  %11453 = vmatprep.subr.bf16.mxu1 %v16912_v0 }
0x114f   :  { %v4090_v49 = vpop.f32.mrb[168].mxu0  ;;  %v4131_v46 = vpop.f32.mrb[168].mxu1 }
0x1150   :  { %v4096_v15 = vadd.f32 %v4090_v49, %v16937_v55  ;;  %v4137_v56 = vadd.f32 %v4131_v46, %v16938_v54  ;;  %v11403_v8 = vpop.f32.mrb[169].mxu0  ;;  %v11411_v2 = vpop.f32.mrb[169].mxu1 }
0x1151   :  { %v4093_v40 = vpop.f32.mrb[170].mxu0  ;;  %v4134_v42 = vpop.f32.mrb[170].mxu1  ;;  %v16941_v8 = vld [vmem:[#allocation39_spill] sm:$0xff] }
0x1152   :  { %v9724_v12 = vmul.f32 -1.442695, %v4096_v15  ;;  %v9723_v28 = vmul.f32 -1.442695, %v4137_v56  ;;  %v11404_v29 = vpop.f32.mrb[171].mxu0  ;;  %v11412_v9 = vpop.f32.mrb[171].mxu1 }
0x1153   :  { %v16942_v40 = vld [vmem:[#allocation41_spill] sm:$0xff] }
0x1154   :  { %13099 = vpow2.f32 %v9724_v12 }
0x1155   :  { %13101 = vpow2.f32 %v9723_v28 }
0x1157   :  { %v4172_v1 = vpop.f32.mrb[172].mxu0  ;;  %v4213_v20 = vpop.f32.mrb[172].mxu1 }
0x1158   :  { %v4178_v23 = vadd.f32 %v4172_v1, %v16939_v62  ;;  %v4219_v4 = vadd.f32 %v4213_v20, %v16940_v24  ;;  %v11419_v14 = vpop.f32.mrb[173].mxu0  ;;  %v11427_v33 = vpop.f32.mrb[173].mxu1 }
0x1159   :  { %v4175_v38 = vpop.f32.mrb[174].mxu0  ;;  %v4216_v41 = vpop.f32.mrb[174].mxu1  ;;  %v16943_v14 = vld [vmem:[#allocation69_spill] sm:$0xff] }
0x115a   :  { %v11420_v32 = vpop.f32.mrb[175].mxu0  ;;  %v11428_v44 = vpop.f32.mrb[175].mxu1  ;;  %v9725_v34 = vmul.f32 -1.442695, %v4219_v4  ;;  %v16944_v38 = vld [vmem:[#allocation71_spill] sm:$0xff] }
0x115c   :  { %13103 = vpow2.f32 %v9725_v34 }
0x115d   :  { %13105 = vtanh.f32 %v4178_v23 }
0x115e   :  { %v13100_v51 = vpop.eup %13099 }
0x115f   :  { %v13102_v47 = vpop.eup %13101  ;;  %v4230_v3 = vadd.f32 1.0, %v13100_v51 }
0x1160   :  { %v4223_v53 = vadd.f32 1.0, %v13102_v47 }
0x1161   :  { %13107 = vrcp.f32 %v4230_v3 }
0x1162   :  { %13109 = vrcp.f32 %v4223_v53 }
0x1166   :  { %v13104_v5 = vpop.eup %13103 }
0x1167   :  { %v13106_v35 = vpop.eup %13105  ;;  %v4239_v25 = vadd.f32 1.0, %v13104_v5 }
0x1169   :  { %13111 = vrcp.f32 %v4239_v25 }
0x116b   :  { %v13108_v60 = vpop.eup %13107 }
0x116c   :  { %v13110_v31 = vpop.eup %13109  ;;  %v4234_v30 = vmul.f32 %v13108_v60, %v13106_v35 }
0x116d   :  { %v4226_v18 = vmul.f32 %v13110_v31, %v15293_v10 }
0x116f   :  { %v15333_v49 = vadd.f32 %v4234_v30, %v4226_v18 }
0x1171   :  { %13113 = vtanh.f32 %v15333_v49 }
0x1173   :  { %v13112_v46 = vpop.eup %13111 }
0x117b   :  { %v13114_v55 = vpop.eup %13113 }
0x117c   :  { %v15336_v15 = vmul.f32 %v13114_v55, %v13112_v46 }
0x117e   :  { %v4244_v54 = vpack.c.bf16 %v15336_v15, %v15336_v15 }
0x1180   :  { %11434 = vmatmul.mubr.msk.bf16.vlgmr.msra.gmra.mrb[176].mxu0 %vm1136_vm2, %v4244_v54  ;;  %11442 = vmatmul.mubr.msk.bf16.vlgmr.msra.gmra.mrb[176].mxu1 %vm1136_vm2, %v4244_v54 }
0x1181   :  { %11446 = vmatpush3.bf16.msra.mxu0 %v15205_v19  ;;  %11454 = vmatpush3.bf16.msra.mxu1 %v15211_v59 }
0x1182   :  { %11447 = vmatprep.subr.bf16.mxu0 %v16912_v0  ;;  %11455 = vmatprep.subr.bf16.mxu1 %v16912_v0 }
0x1183   :  { %11449 = vmatprep.mubr.msk.bf16.mxu0 %vm13601_vm1, %v16912_v0  ;;  %11457 = vmatprep.mubr.msk.bf16.mxu1 %vm13601_vm1, %v16912_v0 }
0x1185   :  { %11448 = vmatpush3.bf16.msra.mxu0 %v15223_v61  ;;  %11456 = vmatpush3.bf16.msra.mxu1 %v15229_v39 }
0x1186   :  { %11461 = vmatprep.subr.bf16.mxu0 %v16912_v0  ;;  %11469 = vmatprep.subr.bf16.mxu1 %v16912_v0 }
0x1188   :  { %11450 = vmatmul.mubr.msk.bf16.vlgmr.msra.gmra.mrb[180].mxu0 %vm1136_vm2, %v4244_v54  ;;  %11458 = vmatmul.mubr.msk.bf16.vlgmr.msra.gmra.mrb[180].mxu1 %vm1136_vm2, %v4244_v54 }
0x1189   :  { %11462 = vmatpush3.bf16.msra.mxu0 %v15159_v22  ;;  %11470 = vmatpush3.bf16.msra.mxu1 %v15165_v58 }
0x118a   :  { %11463 = vmatprep.subr.bf16.mxu0 %v16912_v0  ;;  %11471 = vmatprep.subr.bf16.mxu1 %v16912_v0 }
0x118b   :  { %11465 = vmatprep.mubr.msk.bf16.mxu0 %vm13601_vm1, %v16912_v0  ;;  %11473 = vmatprep.mubr.msk.bf16.mxu1 %vm13601_vm1, %v16912_v0 }
0x118d   :  { %11464 = vmatpush3.bf16.msra.mxu0 %v15177_v63  ;;  %11472 = vmatpush3.bf16.msra.mxu1 %v15183_v43 }
0x118e   :  { %11477 = vmatprep.subr.bf16.mxu0 %v16912_v0  ;;  %11485 = vmatprep.subr.bf16.mxu1 %v16912_v0 }
0x1253   :  { %v4282_v10 = vpop.f32.mrb[176].mxu0  ;;  %v4323_v56 = vpop.f32.mrb[176].mxu1 }
0x1254   :  { %v4288_v2 = vadd.f32 %v4282_v10, %v16941_v8  ;;  %v4329_v42 = vadd.f32 %v4323_v56, %v16942_v40  ;;  %v11435_v12 = vpop.f32.mrb[177].mxu0  ;;  %v11443_v28 = vpop.f32.mrb[177].mxu1 }
0x1255   :  { %v4285_v29 = vpop.f32.mrb[178].mxu0  ;;  %v4326_v9 = vpop.f32.mrb[178].mxu1  ;;  %v16945_v28 = vld [vmem:[#allocation38_spill] sm:$0xff] }
0x1256   :  { %v9731_v1 = vmul.f32 -1.442695, %v4288_v2  ;;  %v9730_v20 = vmul.f32 -1.442695, %v4329_v42  ;;  %v11436_v62 = vpop.f32.mrb[179].mxu0  ;;  %v11444_v23 = vpop.f32.mrb[179].mxu1 }
0x1257   :  { %v16946_v9 = vld [vmem:[#allocation40_spill] sm:$0xff] }
0x1258   :  { %13115 = vpow2.f32 %v9731_v1 }
0x1259   :  { %13117 = vpow2.f32 %v9730_v20 }
0x125b   :  { %v4364_v24 = vpop.f32.mrb[180].mxu0  ;;  %v4405_v4 = vpop.f32.mrb[180].mxu1 }
0x125c   :  { %v4370_v33 = vadd.f32 %v4364_v24, %v16943_v14  ;;  %v4411_v41 = vadd.f32 %v4405_v4, %v16944_v38  ;;  %v11451_v32 = vpop.f32.mrb[181].mxu0  ;;  %v11459_v44 = vpop.f32.mrb[181].mxu1 }
0x125d   :  { %v4367_v34 = vpop.f32.mrb[182].mxu0  ;;  %v4408_v51 = vpop.f32.mrb[182].mxu1  ;;  %v16947_v44 = vld [vmem:[#allocation68_spill] sm:$0xff] }
0x125e   :  { %v11452_v47 = vpop.f32.mrb[183].mxu0  ;;  %v11460_v3 = vpop.f32.mrb[183].mxu1  ;;  %v9732_v53 = vmul.f32 -1.442695, %v4411_v41  ;;  %v16948_v51 = vld [vmem:[#allocation70_spill] sm:$0xff] }
0x1260   :  { %13119 = vpow2.f32 %v9732_v53 }
0x1261   :  { %13121 = vtanh.f32 %v4370_v33 }
0x1262   :  { %v13116_v5 = vpop.eup %13115 }
0x1263   :  { %v13118_v35 = vpop.eup %13117  ;;  %v4422_v60 = vadd.f32 1.0, %v13116_v5 }
0x1264   :  { %v4415_v31 = vadd.f32 1.0, %v13118_v35 }
0x1265   :  { %13123 = vrcp.f32 %v4422_v60 }
0x1266   :  { %13125 = vrcp.f32 %v4415_v31 }
0x126a   :  { %v13120_v30 = vpop.eup %13119 }
0x126b   :  { %v13122_v25 = vpop.eup %13121  ;;  %v4431_v54 = vadd.f32 1.0, %v13120_v30 }
0x126d   :  { %13127 = vrcp.f32 %v4431_v54 }
0x126f   :  { %v13124_v18 = vpop.eup %13123 }
0x1270   :  { %v13126_v46 = vpop.eup %13125  ;;  %v4426_v55 = vmul.f32 %v13124_v18, %v13122_v25 }
0x1271   :  { %v4418_v10 = vmul.f32 %v13126_v46, %v15333_v49 }
0x1273   :  { %v15373_v56 = vadd.f32 %v4426_v55, %v4418_v10 }
0x1275   :  { %13129 = vtanh.f32 %v15373_v56 }
0x1277   :  { %v13128_v8 = vpop.eup %13127 }
0x127f   :  { %v13130_v2 = vpop.eup %13129 }
0x1280   :  { %v15376_v40 = vmul.f32 %v13130_v2, %v13128_v8 }
0x1282   :  { %v4436_v42 = vpack.c.bf16 %v15376_v40, %v15376_v40 }
0x1284   :  { %11466 = vmatmul.mubr.msk.bf16.vlgmr.msra.gmra.mrb[184].mxu0 %vm1136_vm2, %v4436_v42  ;;  %11474 = vmatmul.mubr.msk.bf16.vlgmr.msra.gmra.mrb[184].mxu1 %vm1136_vm2, %v4436_v42 }
0x1285   :  { %11478 = vmatpush3.bf16.msra.mxu0 %v15205_v19  ;;  %11486 = vmatpush3.bf16.msra.mxu1 %v15211_v59 }
0x1286   :  { %11479 = vmatprep.subr.bf16.mxu0 %v16912_v0  ;;  %11487 = vmatprep.subr.bf16.mxu1 %v16912_v0 }
0x1287   :  { %11481 = vmatprep.mubr.msk.bf16.mxu0 %vm13601_vm1, %v16912_v0  ;;  %11489 = vmatprep.mubr.msk.bf16.mxu1 %vm13601_vm1, %v16912_v0 }
0x1289   :  { %11480 = vmatpush3.bf16.msra.mxu0 %v15223_v61  ;;  %11488 = vmatpush3.bf16.msra.mxu1 %v15229_v39 }
0x128a   :  { %11493 = vmatprep.subr.bf16.mxu0 %v16912_v0  ;;  %11501 = vmatprep.subr.bf16.mxu1 %v16912_v0 }
0x128c   :  { %11482 = vmatmul.mubr.msk.bf16.vlgmr.msra.gmra.mrb[188].mxu0 %vm1136_vm2, %v4436_v42  ;;  %11490 = vmatmul.mubr.msk.bf16.vlgmr.msra.gmra.mrb[188].mxu1 %vm1136_vm2, %v4436_v42 }
0x128d   :  { %11494 = vmatpush3.bf16.msra.mxu0 %v15159_v22  ;;  %11502 = vmatpush3.bf16.msra.mxu1 %v15165_v58 }
0x128e   :  { %11495 = vmatprep.subr.bf16.mxu0 %v16912_v0  ;;  %11503 = vmatprep.subr.bf16.mxu1 %v16912_v0 }
0x128f   :  { %11497 = vmatprep.mubr.msk.bf16.mxu0 %vm13601_vm1, %v16912_v0  ;;  %11505 = vmatprep.mubr.msk.bf16.mxu1 %vm13601_vm1, %v16912_v0 }
0x1291   :  { %11496 = vmatpush3.bf16.msra.mxu0 %v15177_v63  ;;  %11504 = vmatpush3.bf16.msra.mxu1 %v15183_v43 }
0x1292   :  { %11509 = vmatprep.subr.bf16.mxu0 %v16912_v0  ;;  %11517 = vmatprep.subr.bf16.mxu1 %v16912_v0 }
0x1357   :  { %v4474_v49 = vpop.f32.mrb[184].mxu0  ;;  %v4515_v12 = vpop.f32.mrb[184].mxu1 }
0x1358   :  { %v4480_v29 = vadd.f32 %v4474_v49, %v16945_v28  ;;  %v4521_v1 = vadd.f32 %v4515_v12, %v16946_v9  ;;  %v11467_v20 = vpop.f32.mrb[185].mxu0  ;;  %v11475_v62 = vpop.f32.mrb[185].mxu1 }
0x1359   :  { %v4477_v23 = vpop.f32.mrb[186].mxu0  ;;  %v4518_v24 = vpop.f32.mrb[186].mxu1 }
0x135a   :  { %v9738_v4 = vmul.f32 -1.442695, %v4480_v29  ;;  %v9737_v14 = vmul.f32 -1.442695, %v4521_v1  ;;  %v11468_v33 = vpop.f32.mrb[187].mxu0  ;;  %v11476_v38 = vpop.f32.mrb[187].mxu1 }
0x135b   :  { %v16949_v23 = vld [vmem:[#allocation43_spill] sm:$0xff] }
0x135c   :  { %13131 = vpow2.f32 %v9738_v4  ;;  %v16950_v4 = vld [vmem:[#allocation45_spill] sm:$0xff] }
0x135d   :  { %13133 = vpow2.f32 %v9737_v14 }
0x135f   :  { %v4556_v41 = vpop.f32.mrb[188].mxu0  ;;  %v4597_v32 = vpop.f32.mrb[188].mxu1 }
0x1360   :  { %v4562_v34 = vadd.f32 %v4556_v41, %v16947_v44  ;;  %v4603_v47 = vadd.f32 %v4597_v32, %v16948_v51  ;;  %v11483_v3 = vpop.f32.mrb[189].mxu0  ;;  %v11491_v53 = vpop.f32.mrb[189].mxu1 }
0x1361   :  { %v4559_v5 = vpop.f32.mrb[190].mxu0  ;;  %v4600_v35 = vpop.f32.mrb[190].mxu1 }
0x1362   :  { %v11484_v60 = vpop.f32.mrb[191].mxu0  ;;  %v11492_v31 = vpop.f32.mrb[191].mxu1  ;;  %v9739_v30 = vmul.f32 -1.442695, %v4603_v47  ;;  %v16951_v5 = vld [vmem:[#allocation74_spill] sm:$0xff] }
0x1363   :  { %v16952_v60 = vld [vmem:[#allocation75_spill] sm:$0xff] }
0x1364   :  { %13135 = vpow2.f32 %v9739_v30 }
0x1365   :  { %13137 = vtanh.f32 %v4562_v34 }
0x1366   :  { %v13132_v25 = vpop.eup %13131 }
0x1367   :  { %v13134_v18 = vpop.eup %13133  ;;  %v4614_v46 = vadd.f32 1.0, %v13132_v25 }
0x1368   :  { %v4607_v55 = vadd.f32 1.0, %v13134_v18 }
0x1369   :  { %13139 = vrcp.f32 %v4614_v46 }
0x136a   :  { %13141 = vrcp.f32 %v4607_v55 }
0x136e   :  { %v13136_v54 = vpop.eup %13135 }
0x136f   :  { %v13138_v10 = vpop.eup %13137  ;;  %v4623_v49 = vadd.f32 1.0, %v13136_v54 }
0x1371   :  { %13143 = vrcp.f32 %v4623_v49 }
0x1373   :  { %v13140_v8 = vpop.eup %13139 }
0x1374   :  { %v13142_v2 = vpop.eup %13141  ;;  %v4618_v42 = vmul.f32 %v13140_v8, %v13138_v10 }
0x1375   :  { %v4610_v12 = vmul.f32 %v13142_v2, %v15373_v56 }
0x1377   :  { %v15413_v28 = vadd.f32 %v4618_v42, %v4610_v12 }
0x1379   :  { %13145 = vtanh.f32 %v15413_v28 }
0x137b   :  { %v13144_v29 = vpop.eup %13143 }
0x1383   :  { %v13146_v9 = vpop.eup %13145 }
0x1384   :  { %v15416_v1 = vmul.f32 %v13146_v9, %v13144_v29 }
0x1386   :  { %v4628_v20 = vpack.c.bf16 %v15416_v1, %v15416_v1 }
0x1388   :  { %11498 = vmatmul.mubr.msk.bf16.vlgmr.msra.gmra.mrb[192].mxu0 %vm1136_vm2, %v4628_v20  ;;  %11506 = vmatmul.mubr.msk.bf16.vlgmr.msra.gmra.mrb[192].mxu1 %vm1136_vm2, %v4628_v20 }
0x1389   :  { %11510 = vmatpush3.bf16.msra.mxu0 %v15205_v19  ;;  %11518 = vmatpush3.bf16.msra.mxu1 %v15211_v59 }
0x138a   :  { %11511 = vmatprep.subr.bf16.mxu0 %v16912_v0  ;;  %11519 = vmatprep.subr.bf16.mxu1 %v16912_v0 }
0x138b   :  { %11513 = vmatprep.mubr.msk.bf16.mxu0 %vm13601_vm1, %v16912_v0  ;;  %11521 = vmatprep.mubr.msk.bf16.mxu1 %vm13601_vm1, %v16912_v0 }
0x138d   :  { %11512 = vmatpush3.bf16.msra.mxu0 %v15223_v61  ;;  %11520 = vmatpush3.bf16.msra.mxu1 %v15229_v39 }
0x138e   :  { %11525 = vmatprep.subr.bf16.mxu0 %v16912_v0  ;;  %11533 = vmatprep.subr.bf16.mxu1 %v16912_v0 }
0x1390   :  { %11514 = vmatmul.mubr.msk.bf16.vlgmr.msra.gmra.mrb[196].mxu0 %vm1136_vm2, %v4628_v20  ;;  %11522 = vmatmul.mubr.msk.bf16.vlgmr.msra.gmra.mrb[196].mxu1 %vm1136_vm2, %v4628_v20 }
0x1391   :  { %11526 = vmatpush3.bf16.msra.mxu0 %v15159_v22  ;;  %11534 = vmatpush3.bf16.msra.mxu1 %v15165_v58 }
0x1392   :  { %11527 = vmatprep.subr.bf16.mxu0 %v16912_v0  ;;  %11535 = vmatprep.subr.bf16.mxu1 %v16912_v0 }
0x1393   :  { %11529 = vmatprep.mubr.msk.bf16.mxu0 %vm13601_vm1, %v16912_v0  ;;  %11537 = vmatprep.mubr.msk.bf16.mxu1 %vm13601_vm1, %v16912_v0 }
0x1395   :  { %11528 = vmatpush3.bf16.msra.mxu0 %v15177_v63  ;;  %11536 = vmatpush3.bf16.msra.mxu1 %v15183_v43 }
0x1396   :  { %11541 = vmatprep.subr.bf16.mxu0 %v16912_v0  ;;  %11549 = vmatprep.subr.bf16.mxu1 %v16912_v0 }
0x145b   :  { %v4666_v56 = vpop.f32.mrb[192].mxu0  ;;  %v4707_v62 = vpop.f32.mrb[192].mxu1 }
0x145c   :  { %v4672_v24 = vadd.f32 %v4666_v56, %v16949_v23  ;;  %v4713_v14 = vadd.f32 %v4707_v62, %v16950_v4  ;;  %v11499_v33 = vpop.f32.mrb[193].mxu0  ;;  %v11507_v38 = vpop.f32.mrb[193].mxu1 }
0x145d   :  { %v4669_v41 = vpop.f32.mrb[194].mxu0  ;;  %v4710_v32 = vpop.f32.mrb[194].mxu1 }
0x145e   :  { %v9745_v44 = vmul.f32 -1.442695, %v4672_v24  ;;  %v9744_v34 = vmul.f32 -1.442695, %v4713_v14  ;;  %v11500_v51 = vpop.f32.mrb[195].mxu0  ;;  %v11508_v47 = vpop.f32.mrb[195].mxu1 }
0x145f   :  { %v16954_v32 = vld [vmem:[#allocation44_spill] sm:$0xff] }
0x1460   :  { %13147 = vpow2.f32 %v9745_v44 }
0x1461   :  { %13149 = vpow2.f32 %v9744_v34 }
0x1463   :  { %v4748_v3 = vpop.f32.mrb[196].mxu0  ;;  %v4789_v53 = vpop.f32.mrb[196].mxu1 }
0x1464   :  { %v4754_v35 = vadd.f32 %v4748_v3, %v16951_v5  ;;  %v4795_v31 = vadd.f32 %v4789_v53, %v16952_v60  ;;  %v11515_v30 = vpop.f32.mrb[197].mxu0  ;;  %v11523_v25 = vpop.f32.mrb[197].mxu1 }
0x1465   :  { %v4751_v18 = vpop.f32.mrb[198].mxu0  ;;  %v4792_v46 = vpop.f32.mrb[198].mxu1  ;;  %v16956_v25 = vld [vmem:[#allocation73_spill] sm:$0xff] }
0x1466   :  { %v11516_v55 = vpop.f32.mrb[199].mxu0  ;;  %v11524_v54 = vpop.f32.mrb[199].mxu1  ;;  %v9746_v10 = vmul.f32 -1.442695, %v4795_v31  ;;  %v16955_v31 = vld [vmem:[#allocation72_spill] sm:$0xff] }
0x1468   :  { %13151 = vpow2.f32 %v9746_v10 }
0x1469   :  { %13153 = vtanh.f32 %v4754_v35 }
0x146a   :  { %v13148_v8 = vpop.eup %13147 }
0x146b   :  { %v13150_v2 = vpop.eup %13149  ;;  %v4806_v42 = vadd.f32 1.0, %v13148_v8 }
0x146c   :  { %v4799_v49 = vadd.f32 1.0, %v13150_v2 }
0x146d   :  { %13155 = vrcp.f32 %v4806_v42 }
0x146e   :  { %13157 = vrcp.f32 %v4799_v49 }
0x1472   :  { %v13152_v12 = vpop.eup %13151 }
0x1473   :  { %v13154_v29 = vpop.eup %13153  ;;  %v4815_v62 = vadd.f32 1.0, %v13152_v12 }
0x1475   :  { %13159 = vrcp.f32 %v4815_v62 }
0x1477   :  { %v13156_v9 = vpop.eup %13155 }
0x1478   :  { %v13158_v20 = vpop.eup %13157  ;;  %v4810_v56 = vmul.f32 %v13156_v9, %v13154_v29 }
0x1479   :  { %v4802_v23 = vmul.f32 %v13158_v20, %v15413_v28  ;;  %v16953_v28 = vld [vmem:[#allocation42_spill] sm:$0xff] }
0x147b   :  { %v15453_v24 = vadd.f32 %v4810_v56, %v4802_v23 }
0x147d   :  { %13161 = vtanh.f32 %v15453_v24 }
0x147f   :  { %v13160_v4 = vpop.eup %13159 }
0x1487   :  { %v13162_v14 = vpop.eup %13161 }
0x1488   :  { %v15456_v33 = vmul.f32 %v13162_v14, %v13160_v4 }
0x148a   :  { %v4820_v38 = vpack.c.bf16 %v15456_v33, %v15456_v33 }
0x148c   :  { %11530 = vmatmul.mubr.msk.bf16.vlgmr.msra.gmra.mrb[200].mxu0 %vm1136_vm2, %v4820_v38  ;;  %11538 = vmatmul.mubr.msk.bf16.vlgmr.msra.gmra.mrb[200].mxu1 %vm1136_vm2, %v4820_v38 }
0x148d   :  { %11542 = vmatpush3.bf16.msra.mxu0 %v15205_v19  ;;  %11550 = vmatpush3.bf16.msra.mxu1 %v15211_v59 }
0x148e   :  { %11543 = vmatprep.subr.bf16.mxu0 %v16912_v0  ;;  %11551 = vmatprep.subr.bf16.mxu1 %v16912_v0 }
0x148f   :  { %11545 = vmatprep.mubr.msk.bf16.mxu0 %vm13601_vm1, %v16912_v0  ;;  %11553 = vmatprep.mubr.msk.bf16.mxu1 %vm13601_vm1, %v16912_v0 }
0x1491   :  { %11544 = vmatpush3.bf16.msra.mxu0 %v15223_v61  ;;  %11552 = vmatpush3.bf16.msra.mxu1 %v15229_v39 }
0x1492   :  { %11557 = vmatprep.subr.bf16.mxu0 %v16912_v0  ;;  %11565 = vmatprep.subr.bf16.mxu1 %v16912_v0 }
0x1494   :  { %11546 = vmatmul.mubr.msk.bf16.vlgmr.msra.gmra.mrb[204].mxu0 %vm1136_vm2, %v4820_v38  ;;  %11554 = vmatmul.mubr.msk.bf16.vlgmr.msra.gmra.mrb[204].mxu1 %vm1136_vm2, %v4820_v38 }
0x1495   :  { %11558 = vmatpush3.bf16.msra.mxu0 %v15159_v22  ;;  %11566 = vmatpush3.bf16.msra.mxu1 %v15165_v58 }
0x1496   :  { %11559 = vmatprep.subr.bf16.mxu0 %v16912_v0  ;;  %11567 = vmatprep.subr.bf16.mxu1 %v16912_v0 }
0x1497   :  { %11561 = vmatprep.mubr.msk.bf16.mxu0 %vm13601_vm1, %v16912_v0  ;;  %11569 = vmatprep.mubr.msk.bf16.mxu1 %vm13601_vm1, %v16912_v0 }
0x1499   :  { %11560 = vmatpush3.bf16.msra.mxu0 %v15177_v63  ;;  %11568 = vmatpush3.bf16.msra.mxu1 %v15183_v43 }
0x149a   :  { %11573 = vmatprep.subr.bf16.mxu0 %v16912_v0  ;;  %11581 = vmatprep.subr.bf16.mxu1 %v16912_v0 }
0x155f   :  { %v4858_v22 = vpop.f32.mrb[200].mxu0  ;;  %v4899_v58 = vpop.f32.mrb[200].mxu1 }
0x1560   :  { %v4864_v41 = vadd.f32 %v4858_v22, %v16953_v28  ;;  %v4905_v44 = vadd.f32 %v4899_v58, %v16954_v32  ;;  %v11531_v34 = vpop.f32.mrb[201].mxu0  ;;  %v11539_v51 = vpop.f32.mrb[201].mxu1 }
0x1561   :  { %v4861_v47 = vpop.f32.mrb[202].mxu0  ;;  %v4902_v3 = vpop.f32.mrb[202].mxu1  ;;  %v16957_v34 = vld [vmem:[#allocation47_spill] sm:$0xff] }
0x1562   :  { %v9752_v53 = vmul.f32 -1.442695, %v4864_v41  ;;  %v9751_v5 = vmul.f32 -1.442695, %v4905_v44  ;;  %v11532_v35 = vpop.f32.mrb[203].mxu0  ;;  %v11540_v63 = vpop.f32.mrb[203].mxu1 }
0x1563   :  { %v16958_v47 = vld [vmem:[#allocation49_spill] sm:$0xff] }
0x1564   :  { %13163 = vpow2.f32 %v9752_v53 }
0x1565   :  { %13165 = vpow2.f32 %v9751_v5 }
0x1567   :  { %v4940_v43 = vpop.f32.mrb[204].mxu0  ;;  %v4981_v60 = vpop.f32.mrb[204].mxu1 }
0x1568   :  { %v4946_v30 = vadd.f32 %v4940_v43, %v16955_v31  ;;  %v4987_v18 = vadd.f32 %v4981_v60, %v16956_v25  ;;  %v11547_v46 = vpop.f32.mrb[205].mxu0  ;;  %v11555_v55 = vpop.f32.mrb[205].mxu1 }
0x1569   :  { %v4943_v54 = vpop.f32.mrb[206].mxu0  ;;  %v4984_v10 = vpop.f32.mrb[206].mxu1  ;;  %v16959_v46 = vld [vmem:[#allocation78_spill] sm:$0xff] }
0x156a   :  { %v11548_v8 = vpop.f32.mrb[207].mxu0  ;;  %v11556_v2 = vpop.f32.mrb[207].mxu1  ;;  %v9753_v42 = vmul.f32 -1.442695, %v4987_v18  ;;  %v16960_v54 = vld [vmem:[#allocation79_spill] sm:$0xff] }
0x156c   :  { %13167 = vpow2.f32 %v9753_v42 }
0x156d   :  { %13169 = vtanh.f32 %v4946_v30 }
0x156e   :  { %v13164_v49 = vpop.eup %13163 }
0x156f   :  { %v13166_v12 = vpop.eup %13165  ;;  %v4998_v29 = vadd.f32 1.0, %v13164_v49 }
0x1570   :  { %v4991_v9 = vadd.f32 1.0, %v13166_v12 }
0x1571   :  { %13171 = vrcp.f32 %v4998_v29 }
0x1572   :  { %13173 = vrcp.f32 %v4991_v9 }
0x1576   :  { %v13168_v20 = vpop.eup %13167 }
0x1577   :  { %v13170_v56 = vpop.eup %13169  ;;  %v5007_v14 = vadd.f32 1.0, %v13168_v20 }
0x1579   :  { %13175 = vrcp.f32 %v5007_v14 }
0x157b   :  { %v13172_v62 = vpop.eup %13171 }
0x157c   :  { %v13174_v23 = vpop.eup %13173  ;;  %v5002_v4 = vmul.f32 %v13172_v62, %v13170_v56 }
0x157d   :  { %v4994_v38 = vmul.f32 %v13174_v23, %v15453_v24 }
0x157f   :  { %v15493_v22 = vadd.f32 %v5002_v4, %v4994_v38 }
0x1581   :  { %13177 = vtanh.f32 %v15493_v22 }
0x1583   :  { %v13176_v58 = vpop.eup %13175 }
0x158b   :  { %v13178_v28 = vpop.eup %13177 }
0x158c   :  { %v15496_v41 = vmul.f32 %v13178_v28, %v13176_v58 }
0x158e   :  { %v5012_v32 = vpack.c.bf16 %v15496_v41, %v15496_v41 }
0x1590   :  { %11562 = vmatmul.mubr.msk.bf16.vlgmr.msra.gmra.mrb[208].mxu0 %vm1136_vm2, %v5012_v32  ;;  %11570 = vmatmul.mubr.msk.bf16.vlgmr.msra.gmra.mrb[208].mxu1 %vm1136_vm2, %v5012_v32 }
0x1591   :  { %11574 = vmatpush3.bf16.msra.mxu0 %v15205_v19  ;;  %11582 = vmatpush3.bf16.msra.mxu1 %v15211_v59  ;;  %v15519_v19 = vld [vmem:[%s16852_s24] sm:$0xff]   ;;  %v15525_v59 = vld [vmem:[%s16852_s24 + $0x10] sm:$0xff]  }
0x1592   :  { %11575 = vmatprep.subr.bf16.mxu0 %v16912_v0  ;;  %11583 = vmatprep.subr.bf16.mxu1 %v16912_v0 }
0x1593   :  { %11577 = vmatprep.mubr.msk.bf16.mxu0 %vm13601_vm1, %v16912_v0  ;;  %11585 = vmatprep.mubr.msk.bf16.mxu1 %vm13601_vm1, %v16912_v0 }
0x1595   :  { %11576 = vmatpush3.bf16.msra.mxu0 %v15223_v61  ;;  %11584 = vmatpush3.bf16.msra.mxu1 %v15229_v39  ;;  %v15537_v61 = vld [vmem:[%s16852_s24 + $0x8] sm:$0xff]   ;;  %v15543_v39 = vld [vmem:[%s16852_s24 + $0x18] sm:$0xff]  }
0x1596   :  { %11589 = vmatprep.subr.bf16.mxu0 %v16912_v0  ;;  %11597 = vmatprep.subr.bf16.mxu1 %v16912_v0 }
0x1598   :  { %11578 = vmatmul.mubr.msk.bf16.vlgmr.msra.gmra.mrb[212].mxu0 %vm1136_vm2, %v5012_v32  ;;  %11586 = vmatmul.mubr.msk.bf16.vlgmr.msra.gmra.mrb[212].mxu1 %vm1136_vm2, %v5012_v32 }
0x1599   :  { %11590 = vmatpush3.bf16.msra.mxu0 %v15519_v19  ;;  %11598 = vmatpush3.bf16.msra.mxu1 %v15525_v59 }
0x159a   :  { %11591 = vmatprep.subr.bf16.mxu0 %v16912_v0  ;;  %11599 = vmatprep.subr.bf16.mxu1 %v16912_v0 }
0x159b   :  { %11593 = vmatprep.mubr.msk.bf16.mxu0 %vm13601_vm1, %v16912_v0  ;;  %11601 = vmatprep.mubr.msk.bf16.mxu1 %vm13601_vm1, %v16912_v0 }
0x159d   :  { %11592 = vmatpush3.bf16.msra.mxu0 %v15537_v61  ;;  %11600 = vmatpush3.bf16.msra.mxu1 %v15543_v39 }
0x159e   :  { %11605 = vmatprep.subr.bf16.mxu0 %v16912_v0  ;;  %11613 = vmatprep.subr.bf16.mxu1 %v16912_v0 }
0x1663   :  { %v5050_v24 = vpop.f32.mrb[208].mxu0  ;;  %v5091_v44 = vpop.f32.mrb[208].mxu1 }
0x1664   :  { %v5056_v51 = vadd.f32 %v5050_v24, %v16957_v34  ;;  %v5097_v3 = vadd.f32 %v5091_v44, %v16958_v47  ;;  %v11563_v53 = vpop.f32.mrb[209].mxu0  ;;  %v11571_v5 = vpop.f32.mrb[209].mxu1 }
0x1665   :  { %v5053_v35 = vpop.f32.mrb[210].mxu0  ;;  %v5094_v63 = vpop.f32.mrb[210].mxu1  ;;  %v15571_v53 = vld [vmem:[%s16852_s24 + $0x30] sm:$0xff]   ;;  %v15583_v5 = vld [vmem:[%s16852_s24 + $0x28] sm:$0xff]  }
0x1666   :  { %v9759_v43 = vmul.f32 -1.442695, %v5056_v51  ;;  %v9758_v60 = vmul.f32 -1.442695, %v5097_v3  ;;  %v11564_v31 = vpop.f32.mrb[211].mxu0  ;;  %v11572_v30 = vpop.f32.mrb[211].mxu1 }
0x1667   :  { %v15589_v35 = vld [vmem:[%s16852_s24 + $0x38] sm:$0xff]   ;;  %v16962_v30 = vld [vmem:[#allocation48_spill] sm:$0xff] }
0x1668   :  { %13179 = vpow2.f32 %v9759_v43 }
0x1669   :  { %13181 = vpow2.f32 %v9758_v60  ;;  %v16961_v60 = vld [vmem:[#allocation46_spill] sm:$0xff] }
0x166b   :  { %v5132_v25 = vpop.f32.mrb[212].mxu0  ;;  %v5173_v18 = vpop.f32.mrb[212].mxu1 }
0x166c   :  { %v5138_v55 = vadd.f32 %v5132_v25, %v16959_v46  ;;  %v5179_v10 = vadd.f32 %v5173_v18, %v16960_v54  ;;  %v11579_v8 = vpop.f32.mrb[213].mxu0  ;;  %v11587_v2 = vpop.f32.mrb[213].mxu1 }
0x166d   :  { %v5135_v42 = vpop.f32.mrb[214].mxu0  ;;  %v5176_v49 = vpop.f32.mrb[214].mxu1 }
0x166e   :  { %v11580_v12 = vpop.f32.mrb[215].mxu0  ;;  %v11588_v29 = vpop.f32.mrb[215].mxu1  ;;  %v9760_v9 = vmul.f32 -1.442695, %v5179_v10 }
0x166f   :  { %v16963_v29 = vld [vmem:[#allocation76_spill] sm:$0xff] }
0x1670   :  { %13183 = vpow2.f32 %v9760_v9 }
0x1671   :  { %13185 = vtanh.f32 %v5138_v55 }
0x1672   :  { %v13180_v20 = vpop.eup %13179 }
0x1673   :  { %v13182_v56 = vpop.eup %13181  ;;  %v5190_v62 = vadd.f32 1.0, %v13180_v20  ;;  %v16964_v20 = vld [vmem:[#allocation77_spill] sm:$0xff] }
0x1674   :  { %v5183_v23 = vadd.f32 1.0, %v13182_v56 }
0x1675   :  { %13187 = vrcp.f32 %v5190_v62 }
0x1676   :  { %13189 = vrcp.f32 %v5183_v23 }
0x167a   :  { %v13184_v4 = vpop.eup %13183 }
0x167b   :  { %v13186_v14 = vpop.eup %13185  ;;  %v5199_v32 = vadd.f32 1.0, %v13184_v4 }
0x167d   :  { %13191 = vrcp.f32 %v5199_v32 }
0x167f   :  { %v13188_v38 = vpop.eup %13187 }
0x1680   :  { %v13190_v58 = vpop.eup %13189  ;;  %v5194_v28 = vmul.f32 %v13188_v38, %v13186_v14 }
0x1681   :  { %v5186_v24 = vmul.f32 %v13190_v58, %v15493_v22  ;;  %v15565_v22 = vld [vmem:[%s16852_s24 + $0x20] sm:$0xff]  }
0x1683   :  { %v15553_v44 = vadd.f32 %v5194_v28, %v5186_v24 }
0x1685   :  { %13193 = vtanh.f32 %v15553_v44 }
0x1687   :  { %v13192_v34 = vpop.eup %13191 }
0x168f   :  { %v13194_v51 = vpop.eup %13193 }
0x1690   :  { %v15556_v47 = vmul.f32 %v13194_v51, %v13192_v34 }
0x1692   :  { %v5204_v3 = vpack.c.bf16 %v15556_v47, %v15556_v47 }
0x1694   :  { %11594 = vmatmul.mubr.msk.bf16.vlgmr.msra.gmra.mrb[216].mxu0 %vm1136_vm2, %v5204_v3  ;;  %11602 = vmatmul.mubr.msk.bf16.vlgmr.msra.gmra.mrb[216].mxu1 %vm1136_vm2, %v5204_v3 }
0x1695   :  { %11606 = vmatpush3.bf16.msra.mxu0 %v15565_v22  ;;  %11614 = vmatpush3.bf16.msra.mxu1 %v15571_v53 }
0x1696   :  { %11607 = vmatprep.subr.bf16.mxu0 %v16912_v0  ;;  %11615 = vmatprep.subr.bf16.mxu1 %v16912_v0 }
0x1697   :  { %11609 = vmatprep.mubr.msk.bf16.mxu0 %vm13601_vm1, %v16912_v0  ;;  %11617 = vmatprep.mubr.msk.bf16.mxu1 %vm13601_vm1, %v16912_v0 }
0x1699   :  { %11608 = vmatpush3.bf16.msra.mxu0 %v15583_v5  ;;  %11616 = vmatpush3.bf16.msra.mxu1 %v15589_v35 }
0x169a   :  { %11621 = vmatprep.subr.bf16.mxu0 %v16912_v0  ;;  %11629 = vmatprep.subr.bf16.mxu1 %v16912_v0 }
0x169c   :  { %11610 = vmatmul.mubr.msk.bf16.vlgmr.msra.gmra.mrb[220].mxu0 %vm1136_vm2, %v5204_v3  ;;  %11618 = vmatmul.mubr.msk.bf16.vlgmr.msra.gmra.mrb[220].mxu1 %vm1136_vm2, %v5204_v3 }
0x169d   :  { %11622 = vmatpush3.bf16.msra.mxu0 %v15519_v19  ;;  %11630 = vmatpush3.bf16.msra.mxu1 %v15525_v59 }
0x169e   :  { %11623 = vmatprep.subr.bf16.mxu0 %v16912_v0  ;;  %11631 = vmatprep.subr.bf16.mxu1 %v16912_v0 }
0x169f   :  { %11625 = vmatprep.mubr.msk.bf16.mxu0 %vm13601_vm1, %v16912_v0  ;;  %11633 = vmatprep.mubr.msk.bf16.mxu1 %vm13601_vm1, %v16912_v0 }
0x16a1   :  { %11624 = vmatpush3.bf16.msra.mxu0 %v15537_v61  ;;  %11632 = vmatpush3.bf16.msra.mxu1 %v15543_v39 }
0x16a2   :  { %11637 = vmatprep.subr.bf16.mxu0 %v16912_v0  ;;  %11645 = vmatprep.subr.bf16.mxu1 %v16912_v0 }
0x1767   :  { %v5242_v63 = vpop.f32.mrb[216].mxu0  ;;  %v5283_v43 = vpop.f32.mrb[216].mxu1 }
0x1768   :  { %v5248_v31 = vadd.f32 %v5242_v63, %v16961_v60  ;;  %v5289_v25 = vadd.f32 %v5283_v43, %v16962_v30  ;;  %v11595_v18 = vpop.f32.mrb[217].mxu0  ;;  %v11603_v46 = vpop.f32.mrb[217].mxu1 }
0x1769   :  { %v5245_v55 = vpop.f32.mrb[218].mxu0  ;;  %v5286_v54 = vpop.f32.mrb[218].mxu1 }
0x176a   :  { %v9766_v10 = vmul.f32 -1.442695, %v5248_v31  ;;  %v9765_v8 = vmul.f32 -1.442695, %v5289_v25  ;;  %v11596_v2 = vpop.f32.mrb[219].mxu0  ;;  %v11604_v42 = vpop.f32.mrb[219].mxu1 }
0x176b   :  { %v16966_v2 = vld [vmem:[#allocation53_spill] sm:$0xff] }
0x176c   :  { %13195 = vpow2.f32 %v9766_v10 }
0x176d   :  { %13197 = vpow2.f32 %v9765_v8 }
0x176f   :  { %v5324_v49 = vpop.f32.mrb[220].mxu0  ;;  %v5365_v12 = vpop.f32.mrb[220].mxu1 }
0x1770   :  { %v5330_v9 = vadd.f32 %v5324_v49, %v16963_v29  ;;  %v5371_v56 = vadd.f32 %v5365_v12, %v16964_v20  ;;  %v11611_v62 = vpop.f32.mrb[221].mxu0  ;;  %v11619_v23 = vpop.f32.mrb[221].mxu1 }
0x1771   :  { %v5327_v4 = vpop.f32.mrb[222].mxu0  ;;  %v5368_v14 = vpop.f32.mrb[222].mxu1 }
0x1772   :  { %v11612_v38 = vpop.f32.mrb[223].mxu0  ;;  %v11620_v58 = vpop.f32.mrb[223].mxu1  ;;  %v9767_v28 = vmul.f32 -1.442695, %v5371_v56  ;;  %v16967_v4 = vld [vmem:[#allocation82_spill] sm:$0xff] }
0x1774   :  { %13199 = vpow2.f32 %v9767_v28 }
0x1775   :  { %13201 = vtanh.f32 %v5330_v9 }
0x1776   :  { %v13196_v32 = vpop.eup %13195 }
0x1777   :  { %v13198_v24 = vpop.eup %13197  ;;  %v5382_v34 = vadd.f32 1.0, %v13196_v32 }
0x1778   :  { %v5375_v51 = vadd.f32 1.0, %v13198_v24 }
0x1779   :  { %13203 = vrcp.f32 %v5382_v34 }
0x177a   :  { %13205 = vrcp.f32 %v5375_v51 }
0x177e   :  { %v13200_v3 = vpop.eup %13199 }
0x177f   :  { %v13202_v63 = vpop.eup %13201  ;;  %v5391_v30 = vadd.f32 1.0, %v13200_v3 }
0x1781   :  { %13207 = vrcp.f32 %v5391_v30 }
0x1783   :  { %v13204_v43 = vpop.eup %13203 }
0x1784   :  { %v13206_v60 = vpop.eup %13205  ;;  %v5386_v31 = vmul.f32 %v13204_v43, %v13202_v63 }
0x1785   :  { %v5378_v25 = vmul.f32 %v13206_v60, %v15553_v44  ;;  %v16965_v44 = vld [vmem:[#allocation51_spill] sm:$0xff] }
0x1787   :  { %v15613_v18 = vadd.f32 %v5386_v31, %v5378_v25 }
0x1789   :  { %13209 = vtanh.f32 %v15613_v18 }
0x178b   :  { %v13208_v46 = vpop.eup %13207 }
0x1793   :  { %v13210_v55 = vpop.eup %13209 }
0x1794   :  { %v15616_v54 = vmul.f32 %v13210_v55, %v13208_v46 }
0x1796   :  { %v5396_v10 = vpack.c.bf16 %v15616_v54, %v15616_v54 }
0x1798   :  { %11626 = vmatmul.mubr.msk.bf16.vlgmr.msra.gmra.mrb[224].mxu0 %vm1136_vm2, %v5396_v10  ;;  %11634 = vmatmul.mubr.msk.bf16.vlgmr.msra.gmra.mrb[224].mxu1 %vm1136_vm2, %v5396_v10 }
0x1799   :  { %11638 = vmatpush3.bf16.msra.mxu0 %v15565_v22  ;;  %11646 = vmatpush3.bf16.msra.mxu1 %v15571_v53 }
0x179a   :  { %11639 = vmatprep.subr.bf16.mxu0 %v16912_v0  ;;  %11647 = vmatprep.subr.bf16.mxu1 %v16912_v0 }
0x179b   :  { %11641 = vmatprep.mubr.msk.bf16.mxu0 %vm13601_vm1, %v16912_v0  ;;  %11649 = vmatprep.mubr.msk.bf16.mxu1 %vm13601_vm1, %v16912_v0 }
0x179d   :  { %11640 = vmatpush3.bf16.msra.mxu0 %v15583_v5  ;;  %11648 = vmatpush3.bf16.msra.mxu1 %v15589_v35 }
0x179e   :  { %11653 = vmatprep.subr.bf16.mxu0 %v16912_v0  ;;  %11661 = vmatprep.subr.bf16.mxu1 %v16912_v0 }
0x17a0   :  { %11642 = vmatmul.mubr.msk.bf16.vlgmr.msra.gmra.mrb[228].mxu0 %vm1136_vm2, %v5396_v10  ;;  %11650 = vmatmul.mubr.msk.bf16.vlgmr.msra.gmra.mrb[228].mxu1 %vm1136_vm2, %v5396_v10 }
0x17a1   :  { %11654 = vmatpush3.bf16.msra.mxu0 %v15519_v19  ;;  %11662 = vmatpush3.bf16.msra.mxu1 %v15525_v59 }
0x17a2   :  { %11655 = vmatprep.subr.bf16.mxu0 %v16912_v0  ;;  %11663 = vmatprep.subr.bf16.mxu1 %v16912_v0 }
0x17a3   :  { %11657 = vmatprep.mubr.msk.bf16.mxu0 %vm13601_vm1, %v16912_v0  ;;  %11665 = vmatprep.mubr.msk.bf16.mxu1 %vm13601_vm1, %v16912_v0 }
0x17a5   :  { %11656 = vmatpush3.bf16.msra.mxu0 %v15537_v61  ;;  %11664 = vmatpush3.bf16.msra.mxu1 %v15543_v39 }
0x17a6   :  { %11669 = vmatprep.subr.bf16.mxu0 %v16912_v0  ;;  %11677 = vmatprep.subr.bf16.mxu1 %v16912_v0 }
0x186b   :  { %v5434_v19 = vpop.f32.mrb[224].mxu0  ;;  %v5475_v59 = vpop.f32.mrb[224].mxu1 }
0x186c   :  { %v5440_v8 = vadd.f32 %v5434_v19, %v16965_v44  ;;  %v5481_v42 = vadd.f32 %v5475_v59, %v16966_v2  ;;  %v11627_v49 = vpop.f32.mrb[225].mxu0  ;;  %v11635_v12 = vpop.f32.mrb[225].mxu1 }
0x186d   :  { %v5437_v29 = vpop.f32.mrb[226].mxu0  ;;  %v5478_v9 = vpop.f32.mrb[226].mxu1  ;;  %v5788_v49 = vld [vmem:[%s16968_s19] sm:$0xff]  ;;  %v5789_v12 = vld [vmem:[%s16968_s19 + $0x8] sm:$0xff] }
0x186e   :  { %v9773_v20 = vmul.f32 -1.442695, %v5440_v8  ;;  %v9772_v56 = vmul.f32 -1.442695, %v5481_v42  ;;  %v11628_v62 = vpop.f32.mrb[227].mxu0  ;;  %v11636_v61 = vpop.f32.mrb[227].mxu1 }
0x186f   :  { %v5790_v29 = vld [vmem:[%s16968_s19 + $0x10] sm:$0xff]  ;;  %v5890_v9 = vld [vmem:[%s16968_s19 + $0x20] sm:$0xff] }
0x1870   :  { %13211 = vpow2.f32 %v9773_v20  ;;  %v5891_v20 = vld [vmem:[%s16968_s19 + $0x28] sm:$0xff]  ;;  %v5992_v61 = vld [vmem:[%s16968_s19 + $0x40] sm:$0xff] }
0x1871   :  { %13213 = vpow2.f32 %v9772_v56  ;;  %v5893_v56 = vld [vmem:[%s16968_s19 + $0x38] sm:$0xff] }
0x1873   :  { %v5516_v39 = vpop.f32.mrb[228].mxu0  ;;  %v5557_v23 = vpop.f32.mrb[228].mxu1 }
0x1874   :  { %v5522_v14 = vadd.f32 %v5516_v39, %v16967_v4  ;;  %v5563_v38 = vadd.f32 %v5557_v23, %v14643_v48  ;;  %v11643_v58 = vpop.f32.mrb[229].mxu0  ;;  %v11651_v28 = vpop.f32.mrb[229].mxu1  ;;  %v5993_v39 = vld [vmem:[%s16968_s19 + $0x48] sm:$0xff]  ;;  %v5994_v4 = vld [vmem:[%s16968_s19 + $0x50] sm:$0xff] }
0x1875   :  { %v5519_v32 = vpop.f32.mrb[230].mxu0  ;;  %v5560_v24 = vpop.f32.mrb[230].mxu1  ;;  %v12224_v23 = vpack.c.bf16 %v5993_v39, %v5992_v61  ;;  %v6092_v58 = vld [vmem:[%s16968_s19 + $0x68] sm:$0xff]  ;;  %v6766_v61 = vld [vmem:[%s16968_s19 + $0x140] sm:$0xff] }
0x1876   :  { %v11644_v34 = vpop.f32.mrb[231].mxu0  ;;  %v11652_v51 = vpop.f32.mrb[231].mxu1  ;;  %v9774_v3 = vmul.f32 -1.442695, %v5563_v38  ;;  %v6091_v38 = vld [vmem:[%s16968_s19 + $0x60] sm:$0xff]  ;;  %v6093_v32 = vld [vmem:[%s16968_s19 + $0x70] sm:$0xff] }
0x1877   :  { %v12232_v28 = vpack.c.bf16 %v6092_v58, %v6091_v38  ;;  %v6094_v24 = vld [vmem:[%s16968_s19 + $0x78] sm:$0xff]  ;;  %v6190_v34 = vld [vmem:[%s16968_s19 + $0x80] sm:$0xff]  ;;  %v6191_v51 = vld [vmem:[%s16968_s19 + $0x88] sm:$0xff] }
0x1878   :  { %13215 = vpow2.f32 %v9774_v3  ;;  %v12240_v3 = vpack.c.bf16 %v6191_v51, %v6190_v34  ;;  %v6767_v39 = vld [vmem:[%s16968_s19 + $0x148] sm:$0xff]  ;;  %v6960_v51 = vld [vmem:[%s16968_s19 + $0x190] sm:$0xff] }
0x1879   :  { %13217 = vtanh.f32 %v5522_v14  ;;  %v5995_v14 = vld [vmem:[%s16968_s19 + $0x58] sm:$0xff]  ;;  %v6863_v38 = vld [vmem:[%s16968_s19 + $0x168] sm:$0xff] }
0x187a   :  { %v13212_v63 = vpop.eup %13211 }
0x187b   :  { %v13214_v43 = vpop.eup %13213  ;;  %v5574_v60 = vadd.f32 1.0, %v13212_v63  ;;  %v6192_v63 = vld [vmem:[%s16968_s19 + $0x90] sm:$0xff] }
0x187c   :  { %v5567_v31 = vadd.f32 1.0, %v13214_v43  ;;  %v6193_v43 = vld [vmem:[%s16968_s19 + $0x98] sm:$0xff] }
0x187d   :  { %13219 = vrcp.f32 %v5574_v60  ;;  %v6286_v60 = vld [vmem:[%s16968_s19 + $0xa0] sm:$0xff] }
0x187e   :  { %13221 = vrcp.f32 %v5567_v31  ;;  %v6287_v31 = vld [vmem:[%s16968_s19 + $0xa8] sm:$0xff] }
0x1882   :  { %v13216_v30 = vpop.eup %13215 }
0x1883   :  { %v13218_v25 = vpop.eup %13217  ;;  %v5583_v10 = vadd.f32 1.0, %v13216_v30  ;;  %v12248_v30 = vpack.c.bf16 %v6287_v31, %v6286_v60  ;;  %v7056_v60 = vld [vmem:[%s16968_s19 + $0x1b0] sm:$0xff]  ;;  %v7057_v31 = vld [vmem:[%s16968_s19 + $0x1b8] sm:$0xff] }
0x1885   :  { %13223 = vrcp.f32 %v5583_v10 }
0x1887   :  { %v13220_v46 = vpop.eup %13219 }
0x1888   :  { %v13222_v55 = vpop.eup %13221  ;;  %v5578_v48 = vmul.f32 %v13220_v46, %v13218_v25  ;;  %v6288_v25 = vld [vmem:[%s16968_s19 + $0xb0] sm:$0xff]  ;;  %v6289_v46 = vld [vmem:[%s16968_s19 + $0xb8] sm:$0xff] }
0x1889   :  { %v5570_v19 = vmul.f32 %v13222_v55, %v15613_v18  ;;  %v12208_v18 = vpack.c.bf16 %v5789_v12, %v5788_v49  ;;  %v6382_v55 = vld [vmem:[%s16968_s19 + $0xc0] sm:$0xff]  ;;  %v6480_v49 = vld [vmem:[%s16968_s19 + $0xf0] sm:$0xff]  ;;  %v6481_v12 = vld [vmem:[%s16968_s19 + $0xf8] sm:$0xff] }
0x188b   :  { %v15653_v59 = vadd.f32 %v5578_v48, %v5570_v19  ;;  %v6383_v48 = vld [vmem:[%s16968_s19 + $0xc8] sm:$0xff]  ;;  %v6384_v19 = vld [vmem:[%s16968_s19 + $0xd0] sm:$0xff] }
0x188c   :  { %v12256_v10 = vpack.c.bf16 %v6383_v48, %v6382_v55  ;;  %v7153_v55 = vld [vmem:[%s16968_s19 + $0x1d8] sm:$0xff]  ;;  %v7246_v48 = vld [vmem:[%s16968_s19 + $0x1e0] sm:$0xff] }
0x188d   :  { %13225 = vtanh.f32 %v15653_v59 }
0x188f   :  { %v13224_v44 = vpop.eup %13223 }
0x1897   :  { %v13226_v8 = vpop.eup %13225 }
0x1898   :  { %v5587_v2 = vmul.f32 %v13226_v8, %v13224_v44  ;;  %v6385_v44 = vld [vmem:[%s16968_s19 + $0xd8] sm:$0xff]  ;;  %v6478_v8 = vld [vmem:[%s16968_s19 + $0xe0] sm:$0xff] }
0x189a   :  { %v5588_v42 = vpack.c.bf16 %v5587_v2, %v5587_v2  ;;  %v6479_v2 = vld [vmem:[%s16968_s19 + $0xe8] sm:$0xff] }
0x189c   :  { %11658 = vmatmul.mubr.msk.bf16.vlgmr.msra.gmra.mrb[232].mxu0 %vm1136_vm2, %v5588_v42  ;;  %11666 = vmatmul.mubr.msk.bf16.vlgmr.msra.gmra.mrb[232].mxu1 %vm1136_vm2, %v5588_v42 }
0x189d   :  { %11670 = vmatpush3.bf16.msra.mxu0 %v15565_v22  ;;  %11678 = vmatpush3.bf16.msra.mxu1 %v15571_v53  ;;  %v5791_v22 = vld [vmem:[%s16968_s19 + $0x18] sm:$0xff] }
0x189e   :  { %11671 = vmatprep.subr.bf16.mxu0 %v16912_v0  ;;  %11679 = vmatprep.subr.bf16.mxu1 %v16912_v0  ;;  %v12212_v53 = vpack.c.bf16 %v5791_v22, %v5790_v29  ;;  %v6575_v29 = vld [vmem:[%s16968_s19 + $0x108] sm:$0xff] }
0x189f   :  { %11673 = vmatprep.mubr.msk.bf16.mxu0 %vm13601_vm1, %v16912_v0  ;;  %11681 = vmatprep.mubr.msk.bf16.mxu1 %vm13601_vm1, %v16912_v0 }
0x18a1   :  { %11672 = vmatpush3.bf16.msra.mxu0 %v15583_v5  ;;  %11680 = vmatpush3.bf16.msra.mxu1 %v15589_v35  ;;  %v12216_v5 = vpack.c.bf16 %v5891_v20, %v5890_v9  ;;  %v5892_v35 = vld [vmem:[%s16968_s19 + $0x30] sm:$0xff]  ;;  %v6577_v9 = vld [vmem:[%s16968_s19 + $0x118] sm:$0xff]  ;;  %v6670_v20 = vld [vmem:[%s16968_s19 + $0x120] sm:$0xff] }
0x18a2   :  { %12209 = vmatprep.subr.bf16.mxu0 %v12208_v18  ;;  %v12220_v62 = vpack.c.bf16 %v5893_v56, %v5892_v35  ;;  %v6672_v56 = vld [vmem:[%s16968_s19 + $0x130] sm:$0xff] }
0x18a4   :  { %11674 = vmatmul.mubr.msk.bf16.vlgmr.msra.gmra.mrb[236].mxu0 %vm1136_vm2, %v5588_v42  ;;  %11682 = vmatmul.mubr.msk.bf16.vlgmr.msra.gmra.mrb[236].mxu1 %vm1136_vm2, %v5588_v42  ;;  %v12264_v42 = vpack.c.bf16 %v6479_v2, %v6478_v8  ;;  %v7343_v8 = vld [vmem:[%s16826_s13 + $0x8] sm:$0xff] }
0x18a5   :  { %12211 = vmatpush3.bf16.msra.mxu0 %v12208_v18  ;;  %11693 = vmatprep.mubr.msk.f32.mxu0 %vm1136_vm2, %v14936_v11  ;;  %v6574_v18 = vld [vmem:[%s16968_s19 + $0x100] sm:$0xff] }
0x18a6   :  { %12213 = vmatprep.subr.bf16.mxu0 %v12212_v53  ;;  %v12272_v22 = vpack.c.bf16 %v6575_v29, %v6574_v18  ;;  %v7349_v18 = vld [vmem:[%s16826_s13 + $0x38] sm:$0xff]  ;;  %v7350_v29 = vld [vmem:[%s16826_s13 + $0x40] sm:$0xff] }
0x18a9   :  { %12215 = vmatpush3.bf16.msra.mxu0 %v12212_v53  ;;  %v6576_v53 = vld [vmem:[%s16968_s19 + $0x110] sm:$0xff] }
0x18aa   :  { %12217 = vmatprep.subr.bf16.mxu0 %v12216_v5 }
0x18ac   :  { %11694 = vmatmul.mubr.msk.f32.vlgmr.msra.gmra.mrb[240].mxu0 %vm1136_vm2, %v14936_v11 }
0x18ad   :  { %11696 = vmatprep.mubr.msk.f32.mxu0 %vm1136_vm2, %v14656_v27  ;;  %12219 = vmatpush3.bf16.msra.mxu0 %v12216_v5  ;;  %v12228_v27 = vpack.c.bf16 %v5995_v14, %v5994_v4  ;;  %v6671_v5 = vld [vmem:[%s16968_s19 + $0x128] sm:$0xff]  ;;  %v6768_v4 = vld [vmem:[%s16968_s19 + $0x150] sm:$0xff]  ;;  %v6769_v14 = vld [vmem:[%s16968_s19 + $0x158] sm:$0xff] }
0x18ae   :  { %12221 = vmatprep.subr.bf16.mxu0 %v12220_v62  ;;  %v12280_v35 = vpack.c.bf16 %v6671_v5, %v6670_v20 }
0x18b0   :  { %11697 = vmatmul.mubr.msk.f32.gmra.mrb[242].mxu0 %vm1136_vm2, %v14836_v36 }
0x18b1   :  { %12223 = vmatpush3.bf16.msra.mxu0 %v12220_v62  ;;  %11707 = vmatprep.mubr.msk.f32.mxu0 %vm1136_vm2, %v14976_v21  ;;  %v6673_v62 = vld [vmem:[%s16968_s19 + $0x138] sm:$0xff] }
0x18b2   :  { %12225 = vmatprep.subr.bf16.mxu0 %v12224_v23 }
0x18b4   :  { %11708 = vmatmul.mubr.msk.f32.vlgmr.msra.gmra.mrb[240].mxu0 %vm1136_vm2, %v14976_v21 }
0x18b5   :  { %11710 = vmatprep.mubr.msk.f32.mxu0 %vm1136_vm2, %v14696_v7  ;;  %12227 = vmatpush3.bf16.msra.mxu0 %v12224_v23  ;;  %v12236_v7 = vpack.c.bf16 %v6094_v24, %v6093_v32  ;;  %v12288_v23 = vpack.c.bf16 %v6767_v39, %v6766_v61  ;;  %v6865_v32 = vld [vmem:[%s16968_s19 + $0x178] sm:$0xff]  ;;  %v6958_v24 = vld [vmem:[%s16968_s19 + $0x180] sm:$0xff] }
0x18b6   :  { %12229 = vmatprep.subr.bf16.mxu0 %v12228_v27 }
0x18b8   :  { %11711 = vmatmul.mubr.msk.f32.gmra.mrb[242].mxu0 %vm1136_vm2, %v14896_v45 }
0x18b9   :  { %12231 = vmatpush3.bf16.msra.mxu0 %v12228_v27  ;;  %11721 = vmatprep.mubr.msk.f32.mxu0 %vm1136_vm2, %v15016_v50  ;;  %v6862_v27 = vld [vmem:[%s16968_s19 + $0x160] sm:$0xff] }
0x18ba   :  { %12233 = vmatprep.subr.bf16.mxu0 %v12232_v28  ;;  %v12296_v58 = vpack.c.bf16 %v6863_v38, %v6862_v27 }
0x18bc   :  { %11722 = vmatmul.mubr.msk.f32.vlgmr.msra.gmra.mrb[240].mxu0 %vm1136_vm2, %v15016_v50 }
0x18bd   :  { %11724 = vmatprep.mubr.msk.f32.mxu0 %vm1136_vm2, %v14736_v17  ;;  %12235 = vmatpush3.bf16.msra.mxu0 %v12232_v28  ;;  %v12244_v17 = vpack.c.bf16 %v6193_v43, %v6192_v63  ;;  %v6864_v28 = vld [vmem:[%s16968_s19 + $0x170] sm:$0xff]  ;;  %v7054_v63 = vld [vmem:[%s16968_s19 + $0x1a0] sm:$0xff]  ;;  %v7055_v43 = vld [vmem:[%s16968_s19 + $0x1a8] sm:$0xff] }
0x18be   :  { %12237 = vmatprep.subr.bf16.mxu0 %v12236_v7 }
0x18c0   :  { %11725 = vmatmul.mubr.msk.f32.gmra.mrb[242].mxu0 %vm1136_vm2, %v14936_v11 }
0x18c1   :  { %12239 = vmatpush3.bf16.msra.mxu0 %v12236_v7  ;;  %11735 = vmatprep.mubr.msk.f32.mxu0 %vm1136_vm2, %v15056_v6  ;;  %v6959_v7 = vld [vmem:[%s16968_s19 + $0x188] sm:$0xff] }
0x18c2   :  { %12241 = vmatprep.subr.bf16.mxu0 %v12240_v3  ;;  %v12304_v34 = vpack.c.bf16 %v6959_v7, %v6958_v24 }
0x18c4   :  { %11736 = vmatmul.mubr.msk.f32.vlgmr.msra.gmra.mrb[240].mxu0 %vm1136_vm2, %v15056_v6 }
0x18c5   :  { %11738 = vmatprep.mubr.msk.f32.mxu0 %vm1136_vm2, %v14776_v13  ;;  %12243 = vmatpush3.bf16.msra.mxu0 %v12240_v3  ;;  %v12252_v13 = vpack.c.bf16 %v6289_v46, %v6288_v25  ;;  %v6961_v3 = vld [vmem:[%s16968_s19 + $0x198] sm:$0xff]  ;;  %v7151_v25 = vld [vmem:[%s16968_s19 + $0x1c8] sm:$0xff] }
0x18c6   :  { %12245 = vmatprep.subr.bf16.mxu0 %v12244_v17 }
0x18c8   :  { %11739 = vmatmul.mubr.msk.f32.gmra.mrb[242].mxu0 %vm1136_vm2, %v14976_v21 }
0x18c9   :  { %12247 = vmatpush3.bf16.msra.mxu0 %v12244_v17  ;;  %11749 = vmatprep.mubr.msk.f32.mxu0 %vm1136_vm2, %v15096_v37  ;;  %v12312_v17 = vpack.c.bf16 %v7055_v43, %v7054_v63 }
0x18ca   :  { %12249 = vmatprep.subr.bf16.mxu0 %v12248_v30 }
0x18cc   :  { %11750 = vmatmul.mubr.msk.f32.vlgmr.msra.gmra.mrb[240].mxu0 %vm1136_vm2, %v15096_v37 }
0x18cd   :  { %11752 = vmatprep.mubr.msk.f32.mxu0 %vm1136_vm2, %v14836_v36  ;;  %12251 = vmatpush3.bf16.msra.mxu0 %v12248_v30  ;;  %v12260_v36 = vpack.c.bf16 %v6385_v44, %v6384_v19  ;;  %v7150_v30 = vld [vmem:[%s16968_s19 + $0x1c0] sm:$0xff]  ;;  %v7248_v19 = vld [vmem:[%s16968_s19 + $0x1f0] sm:$0xff]  ;;  %v7249_v44 = vld [vmem:[%s16968_s19 + $0x1f8] sm:$0xff] }
0x18ce   :  { %12253 = vmatprep.subr.bf16.mxu0 %v12252_v13  ;;  %v12320_v46 = vpack.c.bf16 %v7151_v25, %v7150_v30 }
0x18d0   :  { %11753 = vmatmul.mubr.msk.f32.gmra.mrb[242].mxu0 %vm1136_vm2, %v15016_v50 }
0x18d1   :  { %12255 = vmatpush3.bf16.msra.mxu0 %v12252_v13  ;;  %11763 = vmatprep.mubr.msk.f32.mxu0 %vm1136_vm2, %v15136_v52  ;;  %v7152_v13 = vld [vmem:[%s16968_s19 + $0x1d0] sm:$0xff] }
0x18d2   :  { %12257 = vmatprep.subr.bf16.mxu0 %v12256_v10 }
0x18d4   :  { %11764 = vmatmul.mubr.msk.f32.vlgmr.msra.gmra.mrb[240].mxu0 %vm1136_vm2, %v15136_v52 }
0x18d5   :  { %11766 = vmatprep.mubr.msk.f32.mxu0 %vm1136_vm2, %v14896_v45  ;;  %12259 = vmatpush3.bf16.msra.mxu0 %v12256_v10  ;;  %v12268_v45 = vpack.c.bf16 %v6481_v12, %v6480_v49  ;;  %v7247_v10 = vld [vmem:[%s16968_s19 + $0x1e8] sm:$0xff]  ;;  %v7346_v49 = vld [vmem:[%s16826_s13 + $0x20] sm:$0xff] }
0x18d6   :  { %12261 = vmatprep.subr.bf16.mxu0 %v12260_v36  ;;  %v7347_v12 = vld [vmem:[%s16826_s13 + $0x28] sm:$0xff] }
0x18d8   :  { %11767 = vmatmul.mubr.msk.f32.gmra.mrb[242].mxu0 %vm1136_vm2, %v15056_v6 }
0x18d9   :  { %12263 = vmatpush3.bf16.msra.mxu0 %v12260_v36  ;;  %11777 = vmatprep.mubr.msk.f32.mxu0 %vm1136_vm2, %v15196_v57  ;;  %v7342_v36 = vld [vmem:[%s16826_s13] sm:$0xff] }
0x18da   :  { %12265 = vmatprep.subr.bf16.mxu0 %v12264_v42  ;;  %v15989_v2 = vpack.c.bf16 %v7343_v8, %v7342_v36 }
0x18dc   :  { %11778 = vmatmul.mubr.msk.f32.vlgmr.msra.gmra.mrb[240].mxu0 %vm1136_vm2, %v15196_v57  ;;  %12337 = vmatprep.subr.bf16.mxu1 %v15989_v2 }
0x18dd   :  { %11780 = vmatprep.mubr.msk.f32.mxu0 %vm1136_vm2, %v14936_v11  ;;  %12267 = vmatpush3.bf16.msra.mxu0 %v12264_v42  ;;  %v12276_v11 = vpack.c.bf16 %v6577_v9, %v6576_v53  ;;  %v7353_v53 = vld [vmem:[%s16826_s13 + $0x58] sm:$0xff] }
0x18de   :  { %12269 = vmatprep.subr.bf16.mxu0 %v12268_v45  ;;  %12339 = vmatpush3.bf16.msra.mxu1 %v15989_v2 }
0x18e0   :  { %11781 = vmatmul.mubr.msk.f32.gmra.mrb[242].mxu0 %vm1136_vm2, %v15096_v37 }
0x18e1   :  { %12271 = vmatpush3.bf16.msra.mxu0 %v12268_v45  ;;  %11791 = vmatprep.mubr.msk.f32.mxu0 %vm1136_vm2, %v15256_v16  ;;  %v7348_v45 = vld [vmem:[%s16826_s13 + $0x30] sm:$0xff] }
0x18e2   :  { %12273 = vmatprep.subr.bf16.mxu0 %v12272_v22 }
0x18e4   :  { %11792 = vmatmul.mubr.msk.f32.vlgmr.msra.gmra.mrb[240].mxu0 %vm1136_vm2, %v15256_v16 }
0x18e5   :  { %11794 = vmatprep.mubr.msk.f32.mxu0 %vm1136_vm2, %v14976_v21  ;;  %12275 = vmatpush3.bf16.msra.mxu0 %v12272_v22  ;;  %v12284_v21 = vpack.c.bf16 %v6673_v62, %v6672_v56  ;;  %v7351_v22 = vld [vmem:[%s16826_s13 + $0x48] sm:$0xff]  ;;  %v16969_v56 = vld [vmem:[#allocation50_spill] sm:$0xff] }
0x18e6   :  { %12277 = vmatprep.subr.bf16.mxu0 %v12276_v11 }
0x18e8   :  { %11795 = vmatmul.mubr.msk.f32.gmra.mrb[242].mxu0 %vm1136_vm2, %v15136_v52 }
0x18e9   :  { %12279 = vmatpush3.bf16.msra.mxu0 %v12276_v11  ;;  %11805 = vmatprep.mubr.msk.f32.mxu0 %vm1136_vm2, %v15296_v26  ;;  %v7355_v11 = vld [vmem:[%s16826_s13 + $0x68] sm:$0xff] }
0x18ea   :  { %12281 = vmatprep.subr.bf16.mxu0 %v12280_v35 }
0x18ec   :  { %11806 = vmatmul.mubr.msk.f32.vlgmr.msra.gmra.mrb[240].mxu0 %vm1136_vm2, %v15296_v26 }
0x18ed   :  { %11808 = vmatprep.mubr.msk.f32.mxu0 %vm1136_vm2, %v15016_v50  ;;  %12283 = vmatpush3.bf16.msra.mxu0 %v12280_v35  ;;  %v12292_v50 = vpack.c.bf16 %v6769_v14, %v6768_v4 }
0x18ee   :  { %12285 = vmatprep.subr.bf16.mxu0 %v12284_v21 }
0x18f0   :  { %11809 = vmatmul.mubr.msk.f32.gmra.mrb[242].mxu0 %vm1136_vm2, %v15196_v57 }
0x18f1   :  { %12287 = vmatpush3.bf16.msra.mxu0 %v12284_v21  ;;  %11819 = vmatprep.mubr.msk.f32.mxu0 %vm1136_vm2, %v15336_v15  ;;  %v16970_v21 = vld [vmem:[#allocation52_spill] sm:$0xff] }
0x18f2   :  { %12289 = vmatprep.subr.bf16.mxu0 %v12288_v23 }
0x18f4   :  { %11820 = vmatmul.mubr.msk.f32.vlgmr.msra.gmra.mrb[240].mxu0 %vm1136_vm2, %v15336_v15 }
0x18f5   :  { %11822 = vmatprep.mubr.msk.f32.mxu0 %vm1136_vm2, %v15056_v6  ;;  %12291 = vmatpush3.bf16.msra.mxu0 %v12288_v23  ;;  %v12300_v6 = vpack.c.bf16 %v6865_v32, %v6864_v28  ;;  %v7356_v28 = vld [vmem:[%s16826_s13 + $0x70] sm:$0xff]  ;;  %v7357_v32 = vld [vmem:[%s16826_s13 + $0x78] sm:$0xff] }
0x18f6   :  { %12293 = vmatprep.subr.bf16.mxu0 %v12292_v50  ;;  %v16068_v7 = vpack.c.bf16 %v7357_v32, %v7356_v28 }
0x18f8   :  { %11823 = vmatmul.mubr.msk.f32.gmra.mrb[242].mxu0 %vm1136_vm2, %v15256_v16 }
0x18f9   :  { %12295 = vmatpush3.bf16.msra.mxu0 %v12292_v50  ;;  %11833 = vmatprep.mubr.msk.f32.mxu0 %vm1136_vm2, %v15376_v40 }
0x18fa   :  { %12297 = vmatprep.subr.bf16.mxu0 %v12296_v58 }
0x18fc   :  { %11834 = vmatmul.mubr.msk.f32.vlgmr.msra.gmra.mrb[240].mxu0 %vm1136_vm2, %v15376_v40 }
0x18fd   :  { %11836 = vmatprep.mubr.msk.f32.mxu0 %vm1136_vm2, %v15096_v37  ;;  %12299 = vmatpush3.bf16.msra.mxu0 %v12296_v58  ;;  %v12308_v37 = vpack.c.bf16 %v6961_v3, %v6960_v51  ;;  %v16972_v3 = vld [vmem:[#allocation81_spill] sm:$0xff] }
0x18fe   :  { %12301 = vmatprep.subr.bf16.mxu0 %v12300_v6 }
0x1900   :  { %11837 = vmatmul.mubr.msk.f32.gmra.mrb[242].mxu0 %vm1136_vm2, %v15296_v26 }
0x1901   :  { %12303 = vmatpush3.bf16.msra.mxu0 %v12300_v6  ;;  %11847 = vmatprep.mubr.msk.f32.mxu0 %vm1136_vm2, %v15416_v1 }
0x1902   :  { %12305 = vmatprep.subr.bf16.mxu0 %v12304_v34 }
0x1904   :  { %11848 = vmatmul.mubr.msk.f32.vlgmr.msra.gmra.mrb[240].mxu0 %vm1136_vm2, %v15416_v1 }
0x1905   :  { %11850 = vmatprep.mubr.msk.f32.mxu0 %vm1136_vm2, %v15136_v52  ;;  %12307 = vmatpush3.bf16.msra.mxu0 %v12304_v34  ;;  %v12316_v52 = vpack.c.bf16 %v7057_v31, %v7056_v60  ;;  %v16971_v34 = vld [vmem:[#allocation80_spill] sm:$0xff] }
0x1906   :  { %12309 = vmatprep.subr.bf16.mxu0 %v12308_v37 }
0x1908   :  { %11851 = vmatmul.mubr.msk.f32.gmra.mrb[242].mxu0 %vm1136_vm2, %v15336_v15 }
0x1909   :  { %12311 = vmatpush3.bf16.msra.mxu0 %v12308_v37  ;;  %11861 = vmatprep.mubr.msk.f32.mxu0 %vm1136_vm2, %v15456_v33 }
0x190a   :  { %12313 = vmatprep.subr.bf16.mxu0 %v12312_v17 }
0x190c   :  { %11862 = vmatmul.mubr.msk.f32.vlgmr.msra.gmra.mrb[240].mxu0 %vm1136_vm2, %v15456_v33 }
0x190d   :  { %11864 = vmatprep.mubr.msk.f32.mxu0 %vm1136_vm2, %v15196_v57  ;;  %12315 = vmatpush3.bf16.msra.mxu0 %v12312_v17  ;;  %v12324_v57 = vpack.c.bf16 %v7153_v55, %v7152_v13 }
0x190e   :  { %12317 = vmatprep.subr.bf16.mxu0 %v12316_v52 }
0x1910   :  { %11865 = vmatmul.mubr.msk.f32.gmra.mrb[242].mxu0 %vm1136_vm2, %v15376_v40  ;;  %v12328_v40 = vpack.c.bf16 %v7247_v10, %v7246_v48 }
0x1911   :  { %12319 = vmatpush3.bf16.msra.mxu0 %v12316_v52  ;;  %11875 = vmatprep.mubr.msk.f32.mxu0 %vm1136_vm2, %v15496_v41 }
0x1912   :  { %12321 = vmatprep.subr.bf16.mxu0 %v12320_v46 }
0x1914   :  { %11876 = vmatmul.mubr.msk.f32.vlgmr.msra.gmra.mrb[240].mxu0 %vm1136_vm2, %v15496_v41 }
0x1915   :  { %11878 = vmatprep.mubr.msk.f32.mxu0 %vm1136_vm2, %v15256_v16  ;;  %12323 = vmatpush3.bf16.msra.mxu0 %v12320_v46  ;;  %v12332_v16 = vpack.c.bf16 %v7249_v44, %v7248_v19 }
0x1916   :  { %12325 = vmatprep.subr.bf16.mxu0 %v12324_v57 }
0x1918   :  { %11879 = vmatmul.mubr.msk.f32.gmra.mrb[242].mxu0 %vm1136_vm2, %v15416_v1  ;;  %v7344_v1 = vld [vmem:[%s16826_s13 + $0x10] sm:$0xff] }
0x1919   :  { %12327 = vmatpush3.bf16.msra.mxu0 %v12324_v57  ;;  %11889 = vmatprep.mubr.msk.f32.mxu0 %vm1136_vm2, %v15556_v47 }
0x191a   :  { %12329 = vmatprep.subr.bf16.mxu0 %v12328_v40 }
0x191c   :  { %11890 = vmatmul.mubr.msk.f32.vlgmr.msra.gmra.mrb[240].mxu0 %vm1136_vm2, %v15556_v47  ;;  %v7345_v47 = vld [vmem:[%s16826_s13 + $0x18] sm:$0xff] }
0x191d   :  { %11892 = vmatprep.mubr.msk.f32.mxu0 %vm1136_vm2, %v15296_v26  ;;  %12331 = vmatpush3.bf16.msra.mxu0 %v12328_v40  ;;  %v15994_v42 = vpack.c.bf16 %v7345_v47, %v7344_v1  ;;  %v16008_v26 = vpack.c.bf16 %v7347_v12, %v7346_v49  ;;  %v9782_v49 = vld [vmem:[%s16973_s10] ss:$0 sm:$0xff] }
0x191e   :  { %12333 = vmatprep.subr.bf16.mxu0 %v12332_v16 }
0x191f   :  { %12341 = vmatprep.subr.bf16.mxu1 %v15994_v42 }
0x1920   :  { %11893 = vmatmul.mubr.msk.f32.gmra.mrb[242].mxu0 %vm1136_vm2, %v15456_v33  ;;  %12343 = vmatpush3.bf16.msra.mxu1 %v15994_v42  ;;  %v16023_v33 = vpack.c.bf16 %v7349_v18, %v7348_v45 }
0x1921   :  { %12335 = vmatpush3.bf16.msra.mxu0 %v12332_v16  ;;  %11903 = vmatprep.mubr.msk.f32.mxu0 %vm1136_vm2, %v15616_v54 }
0x1922   :  { %12345 = vmatprep.subr.bf16.mxu1 %v16008_v26 }
0x1924   :  { %11904 = vmatmul.mubr.msk.f32.vlgmr.msra.gmra.mrb[240].mxu0 %vm1136_vm2, %v15616_v54  ;;  %12347 = vmatpush3.bf16.msra.mxu1 %v16008_v26  ;;  %v7352_v54 = vld [vmem:[%s16826_s13 + $0x50] sm:$0xff] }
0x1925   :  { %11906 = vmatprep.mubr.msk.f32.mxu0 %vm1136_vm2, %v15336_v15  ;;  %12349 = vmatprep.subr.bf16.mxu1 %v16023_v33  ;;  %v16035_v15 = vpack.c.bf16 %v7351_v22, %v7350_v29  ;;  %v16045_v9 = vpack.c.bf16 %v7353_v53, %v7352_v54 }
0x1928   :  { %11907 = vmatmul.mubr.msk.f32.gmra.mrb[242].mxu0 %vm1136_vm2, %v15496_v41  ;;  %12351 = vmatpush3.bf16.msra.mxu1 %v16023_v33  ;;  %v7354_v41 = vld [vmem:[%s16826_s13 + $0x60] sm:$0xff] }
0x1929   :  { %12353 = vmatprep.subr.bf16.mxu1 %v16035_v15  ;;  %v16055_v20 = vpack.c.bf16 %v7355_v11, %v7354_v41  ;;  %v7564_v41 = vld [vmem:[%s16819_s6 + $0x8] sm:$0xff] }
0x192a   :  { %v7568_v11 = vld [vmem:[%s16819_s6 + $0x28] sm:$0xff] }
0x192c   :  { %12355 = vmatpush3.bf16.msra.mxu1 %v16035_v15 }
0x192d   :  { %12357 = vmatprep.subr.bf16.mxu1 %v16045_v9 }
0x1930   :  { %12359 = vmatpush3.bf16.msra.mxu1 %v16045_v9 }
0x1931   :  { %12361 = vmatprep.subr.bf16.mxu1 %v16055_v20 }
0x1934   :  { %12363 = vmatpush3.bf16.msra.mxu1 %v16055_v20 }
0x1935   :  { %12365 = vmatprep.subr.bf16.mxu1 %v16068_v7 }
0x1938   :  { %12367 = vmatpush3.bf16.msra.mxu1 %v16068_v7 }
0x1939   :  { %12369 = vmatprep.subr.bf16.mxu1 %v15989_v2 }
0x196f   :  { %v5626_v5 = vpop.f32.mrb[232].mxu0  ;;  %v5667_v35 = vpop.f32.mrb[232].mxu1 }
0x1970   :  { %v5632_v62 = vadd.f32 %v5626_v5, %v16969_v56  ;;  %v5673_v61 = vadd.f32 %v5667_v35, %v16970_v21  ;;  %v11659_v39 = vpop.f32.mrb[233].mxu0  ;;  %v11667_v23 = vpop.f32.mrb[233].mxu1  ;;  %v12400_v5 = vpack.c.bf16 %v7568_v11, %v7564_v41  ;;  %v7563_v21 = vld [vmem:[%s16819_s6] sm:$0xff] }
0x1971   :  { %v5629_v4 = vpop.f32.mrb[234].mxu0  ;;  %v5670_v14 = vpop.f32.mrb[234].mxu1  ;;  %v7572_v23 = vld [vmem:[%s16819_s6 + $0x48] sm:$0xff]  ;;  %v7611_v11 = vld [vmem:[%s16819_s6 + $0x180] sm:$0xff] }
0x1972   :  { %v9780_v50 = vmul.f32 -1.442695, %v5632_v62  ;;  %v9779_v27 = vmul.f32 -1.442695, %v5673_v61  ;;  %v11660_v38 = vpop.f32.mrb[235].mxu0  ;;  %v11668_v58 = vpop.f32.mrb[235].mxu1 }
0x1973   :  { %v7567_v61 = vld [vmem:[%s16819_s6 + $0x20] sm:$0xff]  ;;  %v7576_v4 = vld [vmem:[%s16819_s6 + $0x68] sm:$0xff] }
0x1974   :  { %13227 = vpow2.f32 %v9780_v50  ;;  %v12404_v32 = vpack.c.bf16 %v7576_v4, %v7572_v23  ;;  %v7619_v23 = vld [vmem:[%s16819_s6 + $0x1c0] sm:$0xff] }
0x1975   :  { %13229 = vpow2.f32 %v9779_v27  ;;  %v12402_v27 = vpack.c.bf16 %v7567_v61, %v7563_v21  ;;  %v7624_v21 = vld [vmem:[%s16819_s6 + $0x1e8] sm:$0xff]  ;;  %v7623_v4 = vld [vmem:[%s16819_s6 + $0x1e0] sm:$0xff] }
0x1977   :  { %v5708_v6 = vpop.f32.mrb[236].mxu0  ;;  %v5749_v24 = vpop.f32.mrb[236].mxu1 }
0x1978   :  { %v5714_v51 = vadd.f32 %v5708_v6, %v16971_v34  ;;  %v5755_v37 = vadd.f32 %v5749_v24, %v16972_v3  ;;  %v11675_v63 = vpop.f32.mrb[237].mxu0  ;;  %v11683_v43 = vpop.f32.mrb[237].mxu1  ;;  %v7571_v6 = vld [vmem:[%s16819_s6 + $0x40] sm:$0xff]  ;;  %v7584_v3 = vld [vmem:[%s16819_s6 + $0xa8] sm:$0xff] }
0x1979   :  { %v5711_v17 = vpop.f32.mrb[238].mxu0  ;;  %v5752_v60 = vpop.f32.mrb[238].mxu1  ;;  %v7575_v24 = vld [vmem:[%s16819_s6 + $0x60] sm:$0xff] }
0x197a   :  { %v11676_v31 = vpop.f32.mrb[239].mxu0  ;;  %v11684_v52 = vpop.f32.mrb[239].mxu1  ;;  %v9781_v30 = vmul.f32 -1.442695, %v5755_v37  ;;  %v12406_v63 = vpack.c.bf16 %v7575_v24, %v7571_v6  ;;  %v7579_v60 = vld [vmem:[%s16819_s6 + $0x80] sm:$0xff]  ;;  %v7547_v24 = vlaneseq }
0x197b   :  { %v7583_v31 = vld [vmem:[%s16819_s6 + $0xa0] sm:$0xff] }
0x197c   :  { %13231 = vpow2.f32 %v9781_v30  ;;  %v12410_v52 = vpack.c.bf16 %v7583_v31, %v7579_v60  ;;  %v7588_v30 = vld [vmem:[%s16819_s6 + $0xc8] sm:$0xff]  ;;  %v7358_v31 = vld [vmem:[#allocation9] sm:$0xf] }
0x197d   :  { %13233 = vtanh.f32 %v5714_v51  ;;  %v7580_v51 = vld [vmem:[%s16819_s6 + $0x88] sm:$0xff] }
0x197e   :  { %v13228_v25 = vpop.eup %13227  ;;  %v12408_v17 = vpack.c.bf16 %v7584_v3, %v7580_v51 }
0x197f   :  { %v13230_v46 = vpop.eup %13229  ;;  %v5766_v13 = vadd.f32 1.0, %v13228_v25  ;;  %v7592_v25 = vld [vmem:[%s16819_s6 + $0xe8] sm:$0xff] }
0x1980   :  { %v5759_v55 = vadd.f32 1.0, %v13230_v46  ;;  %v12412_v46 = vpack.c.bf16 %v7592_v25, %v7588_v30 }
0x1981   :  { %13235 = vrcp.f32 %v5766_v13  ;;  %v7587_v13 = vld [vmem:[%s16819_s6 + $0xc0] sm:$0xff] }
0x1982   :  { %13237 = vrcp.f32 %v5759_v55  ;;  %v7591_v55 = vld [vmem:[%s16819_s6 + $0xe0] sm:$0xff] }
0x1986   :  { %v13232_v57 = vpop.eup %13231 }
0x1987   :  { %v13234_v48 = vpop.eup %13233  ;;  %v5775_v44 = vadd.f32 1.0, %v13232_v57  ;;  %v12414_v57 = vpack.c.bf16 %v7591_v55, %v7587_v13 }
0x1989   :  { %13239 = vrcp.f32 %v5775_v44  ;;  %v7599_v44 = vld [vmem:[%s16819_s6 + $0x120] sm:$0xff] }
0x198b   :  { %v13236_v10 = vpop.eup %13235 }
0x198c   :  { %v13238_v40 = vpop.eup %13237  ;;  %v5770_v19 = vmul.f32 %v13236_v10, %v13234_v48  ;;  %v7596_v48 = vld [vmem:[%s16819_s6 + $0x108] sm:$0xff] }
0x198d   :  { %v5762_v16 = vmul.f32 %v13238_v40, %v15653_v59  ;;  %v7600_v10 = vld [vmem:[%s16819_s6 + $0x128] sm:$0xff] }
0x198e   :  { %v12416_v40 = vpack.c.bf16 %v7600_v10, %v7596_v48  ;;  %v7569_v48 = vld [vmem:[%s16819_s6 + $0x30] sm:$0xff] }
0x198f   :  { %v5771_v36 = vadd.f32 %v5770_v19, %v5762_v16  ;;  %v7595_v19 = vld [vmem:[%s16819_s6 + $0x100] sm:$0xff] }
0x1990   :  { %v12418_v16 = vpack.c.bf16 %v7599_v44, %v7595_v19 }
0x1991   :  { %13241 = vtanh.f32 %v5771_v36  ;;  %v7604_v36 = vld [vmem:[%s16819_s6 + $0x148] sm:$0xff] }
0x1993   :  { %v13240_v8 = vpop.eup %13239 }
0x199b   :  { %v13242_v1 = vpop.eup %13241 }
0x199c   :  { %v16076_v47 = vmul.f32 %v13242_v1, %v13240_v8  ;;  %v7608_v8 = vld [vmem:[%s16819_s6 + $0x168] sm:$0xff] }
0x199d   :  { %v12420_v1 = vpack.c.bf16 %v7608_v8, %v7604_v36 }
0x19f7   :  { %v11905_v12 = vpop.f32.mrb[240].mxu0 }
0x19f8   :  { %v7319_v45 = vpop.f32.mrb[241].mxu0  ;;  %v16083_v29 = vadd.f32 %v11905_v12, %v9782_v49  ;;  %v7607_v12 = vld [vmem:[%s16819_s6 + $0x160] sm:$0xff] }
0x19f9   :  { %v16081_v18 = vadd.f32 %v9782_v49, %v7319_v45 }
0x19fb   :  { %v11908_v22 = vpop.f32.mrb[242].mxu0  ;;  %11941 = vmatprep.mubr.f32.mxu1 %v16081_v18 }
0x19fc   :  { %v7329_v59 = vpop.f32.mrb[243].mxu0  ;;  %11942 = vmatmul.mubr.f32.vlgmr.msra.gmra.mrb[240].mxu1 %v16083_v29  ;;  %v16090_v53 = vadd.f32 %v11908_v22, %v9782_v49  ;;  %v7612_v22 = vld [vmem:[%s16819_s6 + $0x188] sm:$0xff] }
0x19fd   :  { %v16087_v54 = vadd.f32 %v9782_v49, %v7329_v59  ;;  %12371 = vmatpush3.bf16.msra.mxu1 %v15989_v2  ;;  %v7603_v49 = vld [vmem:[%s16819_s6 + $0x140] sm:$0xff]  ;;  %v7616_v59 = vld [vmem:[%s16819_s6 + $0x1a8] sm:$0xff] }
0x19fe   :  { %12373 = vmatprep.subr.bf16.mxu1 %v15994_v42  ;;  %v12422_v45 = vpack.c.bf16 %v7607_v12, %v7603_v49  ;;  %v12424_v41 = vpack.c.bf16 %v7616_v59, %v7612_v22  ;;  %v7573_v49 = vld [vmem:[%s16819_s6 + $0x50] sm:$0xff]  ;;  %v7582_v22 = vld [vmem:[%s16819_s6 + $0x98] sm:$0xff] }
0x19ff   :  { %11944 = vmatprep.mubr.f32.mxu1 %v16087_v54  ;;  %v7586_v59 = vld [vmem:[%s16819_s6 + $0xb8] sm:$0xff] }
0x1a00   :  { %11945 = vmatmul.mubr.f32.gmra.mrb[242].mxu1 %v16090_v53 }
0x1a01   :  { %12375 = vmatpush3.bf16.msra.mxu1 %v15994_v42 }
0x1a02   :  { %12377 = vmatprep.subr.bf16.mxu1 %v16008_v26 }
0x1a05   :  { %12379 = vmatpush3.bf16.msra.mxu1 %v16008_v26 }
0x1a06   :  { %12381 = vmatprep.subr.bf16.mxu1 %v16023_v33 }
0x1a09   :  { %12383 = vmatpush3.bf16.msra.mxu1 %v16023_v33 }
0x1a0a   :  { %12385 = vmatprep.subr.bf16.mxu1 %v16035_v15 }
0x1a0d   :  { %12387 = vmatpush3.bf16.msra.mxu1 %v16035_v15 }
0x1a0e   :  { %12389 = vmatprep.subr.bf16.mxu1 %v16045_v9 }
0x1a11   :  { %12391 = vmatpush3.bf16.msra.mxu1 %v16045_v9 }
0x1a12   :  { %12393 = vmatprep.subr.bf16.mxu1 %v16055_v20 }
0x1a15   :  { %12395 = vmatpush3.bf16.msra.mxu1 %v16055_v20 }
0x1a16   :  { %12397 = vmatprep.subr.bf16.mxu1 %v16068_v7 }
0x1a19   :  { %12399 = vmatpush3.bf16.msra.mxu1 %v16068_v7 }
0x1a1a   :  { %12401 = vmatprep.subr.bf16.mxu1 %v12400_v5  ;;  %v7615_v5 = vld [vmem:[%s16819_s6 + $0x1a0] sm:$0xff] }
0x1acf   :  { %v11943_v35 = vpop.f32.mrb[240].mxu1 }
0x1ad0   :  { %v16115_v56 = vsub.f32 %v16083_v29, %v11943_v35  ;;  %v7427_v62 = vpop.f32.mrb[241].mxu1  ;;  %v12426_v35 = vpack.c.bf16 %v7615_v5, %v7611_v11  ;;  %v12440_v5 = vpack.c.bf16 %v7586_v59, %v7582_v22  ;;  %v7986_v22 = vld [vmem:[#allocation4] sm:$0xff]  ;;  %v7987_v59 = vld [vmem:[#allocation4 + $0x8] sm:$0xff] }
0x1ad1   :  { %v16124_v39 = vsub.f32 %v16081_v18, %v7427_v62  ;;  %v7620_v62 = vld [vmem:[%s16819_s6 + $0x1c8] sm:$0xff] }
0x1ad2   :  { %v7451_v38 = vmul.f32 %v16115_v56, %v16115_v56  ;;  %v12428_v61 = vpack.c.bf16 %v7624_v21, %v7620_v62  ;;  %v7585_v62 = vld [vmem:[%s16819_s6 + $0xb0] sm:$0xff] }
0x1ad3   :  { %v7450_v14 = vmul.f32 %v16124_v39, %v16124_v39  ;;  %v11946_v50 = vpop.f32.mrb[242].mxu1 }
0x1ad4   :  { %v16137_v58 = vsub.f32 %v16090_v53, %v11946_v50  ;;  %v7437_v28 = vpop.f32.mrb[243].mxu1  ;;  %v12430_v50 = vpack.c.bf16 %v7623_v4, %v7619_v23  ;;  %v7594_v23 = vld [vmem:[%s16819_s6 + $0xf8] sm:$0xff] }
0x1ad5   :  { %v16146_v34 = vsub.f32 %v16087_v54, %v7437_v28  ;;  %11979 = vmatprep.mubr.f32.mxu1 %v7450_v14  ;;  %v7566_v14 = vld [vmem:[%s16819_s6 + $0x18] sm:$0xff] }
0x1ad6   :  { %11980 = vmatmul.mubr.f32.vlgmr.msra.gmra.mrb[244].mxu1 %v7451_v38  ;;  %v7453_v43 = vmul.f32 %v16137_v58, %v16137_v58 }
0x1ad7   :  { %v7452_v37 = vmul.f32 %v16146_v34, %v16146_v34  ;;  %12403 = vmatpush1.bf16.msra.mxu1 %v12402_v27  ;;  %v7570_v27 = vld [vmem:[%s16819_s6 + $0x38] sm:$0xff] }
0x1ad8   :  { %12405 = vmatprep.subr.bf16.mxu1 %v12404_v32  ;;  %v12432_v38 = vpack.c.bf16 %v7570_v27, %v7566_v14 }
0x1ad9   :  { %11982 = vmatprep.mubr.f32.mxu1 %v7452_v37 }
0x1ada   :  { %11983 = vmatmul.mubr.f32.gmra.mrb[246].mxu1 %v7453_v43 }
0x1adb   :  { %12407 = vmatpush1.bf16.msra.mxu1 %v12406_v63  ;;  %7728 = vmatprep.mubr.f32.mxu1 %v16912_v0  ;;  %v16231_v63 = vshrl.u32 %v7547_v24, 7 }
0x1adc   :  { %12409 = vmatprep.subr.bf16.mxu1 %v12408_v17 }
0x1add   :  { %v16234_v60 = vsub.s32 0, %v16231_v63 }
0x1adf   :  { %12411 = vmatpush1.bf16.msra.mxu1 %v12410_v52  ;;  %v16237_v52 = vsub.s32 1, %v16231_v63  ;;  %v7550_v25 = vrot.slane %v7358_v31, %v16234_v60 }
0x1ae0   :  { %12413 = vmatprep.subr.bf16.mxu1 %v12412_v46 }
0x1ae1   :  { %v7558_v55 = vrot.slane %v7358_v31, %v16237_v52 }
0x1ae3   :  { %12415 = vmatpush1.bf16.msra.mxu1 %v12414_v57  ;;  %v7565_v57 = vld [vmem:[%s16819_s6 + $0x10] sm:$0xff] }
0x1ae4   :  { %12417 = vmatprep.subr.bf16.mxu1 %v12416_v40  ;;  %v7574_v40 = vld [vmem:[%s16819_s6 + $0x58] sm:$0xff] }
0x1ae7   :  { %12419 = vmatpush1.bf16.msra.mxu1 %v12418_v16  ;;  %v12434_v16 = vpack.c.bf16 %v7569_v48, %v7565_v57 }
0x1ae8   :  { %12421 = vmatprep.subr.bf16.mxu1 %v12420_v1 }
0x1aeb   :  { %12423 = vmatpush1.bf16.msra.mxu1 %v12422_v45 }
0x1aec   :  { %12425 = vmatprep.subr.bf16.mxu1 %v12424_v41 }
0x1aef   :  { %12427 = vmatpush1.bf16.msra.mxu1 %v12426_v35 }
0x1af0   :  { %12429 = vmatprep.subr.bf16.mxu1 %v12428_v61  ;;  %v7590_v61 = vld [vmem:[%s16819_s6 + $0xd8] sm:$0xff] }
0x1af3   :  { %12431 = vmatpush1.bf16.msra.mxu1 %v12430_v50  ;;  %v12444_v50 = vpack.c.bf16 %v7594_v23, %v7590_v61  ;;  %v8007_v61 = vld [vmem:[#allocation4 + $0xa8] sm:$0xff] }
0x1af4   :  { %12433 = vmatprep.subr.bf16.mxu1 %v12432_v38  ;;  %v7593_v38 = vld [vmem:[%s16819_s6 + $0xf0] sm:$0xff] }
0x1ba9   :  { %v11981_v28 = vpop.f32.mrb[244].mxu1 }
0x1baa   :  { %v7526_v32 = vadd.f32 1e-05, %v11981_v28  ;;  %v7520_v6 = vpop.f32.mrb[245].mxu1  ;;  %v7598_v28 = vld [vmem:[%s16819_s6 + $0x118] sm:$0xff] }
0x1bab   :  { %v7521_v51 = vadd.f32 1e-05, %v7520_v6 }
0x1bac   :  { %13243 = vrsqrt.f32 %v7526_v32  ;;  %v7602_v32 = vld [vmem:[%s16819_s6 + $0x138] sm:$0xff] }
0x1bad   :  { %13245 = vrsqrt.f32 %v7521_v51  ;;  %v11984_v3 = vpop.f32.mrb[246].mxu1  ;;  %v12448_v51 = vpack.c.bf16 %v7602_v32, %v7598_v28  ;;  %v7992_v28 = vld [vmem:[#allocation4 + $0x30] sm:$0xff]  ;;  %v7993_v32 = vld [vmem:[#allocation4 + $0x38] sm:$0xff] }
0x1bae   :  { %v7530_v37 = vpop.f32.mrb[247].mxu1  ;;  %v7536_v43 = vadd.f32 1e-05, %v11984_v3  ;;  %v7597_v3 = vld [vmem:[%s16819_s6 + $0x110] sm:$0xff] }
0x1baf   :  { %v7531_v17 = vadd.f32 1e-05, %v7530_v37  ;;  %v7601_v37 = vld [vmem:[%s16819_s6 + $0x130] sm:$0xff] }
0x1bb0   :  { %v12450_v31 = vpack.c.bf16 %v7601_v37, %v7597_v3  ;;  %v7994_v37 = vld [vmem:[#allocation4 + $0x40] sm:$0xff] }
0x1bb1   :  { %13247 = vrsqrt.f32 %v7531_v17  ;;  %v7610_v17 = vld [vmem:[%s16819_s6 + $0x178] sm:$0xff] }
0x1bb2   :  { %13249 = vrsqrt.f32 %v7536_v43  ;;  %v7606_v43 = vld [vmem:[%s16819_s6 + $0x158] sm:$0xff] }
0x1bb6   :  { %v13244_v30 = vpop.eup %13243 }
0x1bb7   :  { %v13246_v46 = vpop.eup %13245  ;;  %v7544_v10 = vmul.f32 %v13244_v30, %v16115_v56  ;;  %v7577_v56 = vld [vmem:[%s16819_s6 + $0x70] sm:$0xff]  ;;  %v12452_v30 = vpack.c.bf16 %v7610_v17, %v7606_v43 }
0x1bb8   :  { %v7543_v13 = vmul.f32 %v13246_v46, %v16124_v39  ;;  %v7578_v39 = vld [vmem:[%s16819_s6 + $0x78] sm:$0xff]  ;;  %v12438_v41 = vpack.c.bf16 %v7577_v56, %v7573_v49  ;;  %v7609_v46 = vld [vmem:[%s16819_s6 + $0x170] sm:$0xff]  ;;  %v8002_v56 = vld [vmem:[#allocation4 + $0x80] sm:$0xff] }
0x1bb9   :  { %v12436_v8 = vpack.c.bf16 %v7578_v39, %v7574_v40  ;;  %v7552_v1 = vmul.f32 %v7550_v25, %v7544_v10  ;;  %v7613_v10 = vld [vmem:[%s16819_s6 + $0x190] sm:$0xff]  ;;  %v7622_v39 = vld [vmem:[%s16819_s6 + $0x1d8] sm:$0xff] }
0x1bba   :  { %v7551_v19 = vmul.f32 %v7550_v25, %v7543_v13  ;;  %v7614_v13 = vld [vmem:[%s16819_s6 + $0x198] sm:$0xff]  ;;  %v7617_v40 = vld [vmem:[%s16819_s6 + $0x1b0] sm:$0xff] }
0x1bbb   :  { %v13248_v44 = vpop.eup %13247  ;;  %v7560_v11 = vadd.f32 %v7558_v55, %v7552_v1  ;;  %v7625_v1 = vld [vmem:[%s16819_s6 + $0x1f0] sm:$0xff] }
0x1bbc   :  { %v16255_v36 = vadd.f32 %v7558_v55, %v7551_v19  ;;  %v7545_v12 = vmul.f32 %v13248_v44, %v16146_v34  ;;  %v13250_v45 = vpop.eup %13249  ;;  %v7581_v34 = vld [vmem:[%s16819_s6 + $0x90] sm:$0xff]  ;;  %v7626_v19 = vld [vmem:[%s16819_s6 + $0x1f8] sm:$0xff]  ;;  %v12458_v44 = vpack.c.bf16 %v7617_v40, %v7613_v10  ;;  %v7998_v40 = vld [vmem:[#allocation4 + $0x60] sm:$0xff] }
0x1bbd   :  { %v7546_v21 = vmul.f32 %v13250_v45, %v16137_v58  ;;  %v12442_v4 = vpack.c.bf16 %v7585_v62, %v7581_v34  ;;  %v7589_v58 = vld [vmem:[%s16819_s6 + $0xd0] sm:$0xff]  ;;  %v7989_v62 = vld [vmem:[#allocation4 + $0x18] sm:$0xff] }
0x1bbe   :  { %7729 = vmatmul.mubr.f32.vlgmr.msra.gmra.mrb[248].mxu1 %v16255_v36  ;;  %v7553_v35 = vmul.f32 %v7550_v25, %v7545_v12  ;;  %v12446_v6 = vpack.c.bf16 %v7593_v38, %v7589_v58  ;;  %v8003_v12 = vld [vmem:[#allocation4 + $0x88] sm:$0xff]  ;;  %v7988_v34 = vld [vmem:[#allocation4 + $0x10] sm:$0xff]  ;;  %v8009_v58 = vld [vmem:[#allocation4 + $0xb8] sm:$0xff] }
0x1bbf   :  { %12435 = vmatpush1.bf16.msra.mxu1 %v12434_v16  ;;  %7734 = vmatprep.mubr.f32.mxu1 %v16912_v0  ;;  %v7554_v27 = vmul.f32 %v7550_v25, %v7546_v21  ;;  %v7605_v25 = vld [vmem:[%s16819_s6 + $0x150] sm:$0xff]  ;;  %v12460_v16 = vpack.c.bf16 %v7626_v19, %v7622_v39  ;;  %v12464_v45 = vpack.c.bf16 %v8003_v12, %v8002_v56  ;;  %v8006_v21 = vld [vmem:[#allocation4 + $0xa0] sm:$0xff] }
0x1bc0   :  { %12437 = vmatprep.subr.bf16.mxu1 %v12436_v8  ;;  %v7561_v14 = vadd.f32 %v7558_v55, %v7553_v35  ;;  %v12454_v57 = vpack.c.bf16 %v7609_v46, %v7605_v25  ;;  %v7621_v8 = vld [vmem:[%s16819_s6 + $0x1d0] sm:$0xff]  ;;  %v8005_v35 = vld [vmem:[#allocation4 + $0x98] sm:$0xff]  ;;  %v12472_v23 = vpack.c.bf16 %v8007_v61, %v8006_v21  ;;  %v8034_v12 = vld [vmem:[#allocation4 + $0x180] sm:$0xff] }
0x1bc1   :  { %v7562_v24 = vadd.f32 %v7558_v55, %v7554_v27  ;;  %v7618_v55 = vld [vmem:[%s16819_s6 + $0x1b8] sm:$0xff]  ;;  %v12462_v49 = vpack.c.bf16 %v7625_v1, %v7621_v8  ;;  %12465 = vmatprep.subr.bf16.mxu0 %v12464_v45  ;;  %v7995_v43 = vld [vmem:[#allocation4 + $0x48] sm:$0xff]  ;;  %v8038_v61 = vld [vmem:[#allocation4 + $0x1a0] sm:$0xff] }
0x1bc2   :  { %7735 = vmatmul.mubr.f32.gmra.mrb[250].mxu1 %v7560_v11  ;;  %v12456_v48 = vpack.c.bf16 %v7618_v55, %v7614_v13  ;;  %v8008_v27 = vld [vmem:[#allocation4 + $0xb0] sm:$0xff]  ;;  %v12482_v17 = vpack.c.bf16 %v7995_v43, %v7994_v37  ;;  %v7997_v13 = vld [vmem:[#allocation4 + $0x58] sm:$0xff]  ;;  %v7999_v39 = vld [vmem:[#allocation4 + $0x68] sm:$0xff] }
0x1bc3   :  { %12439 = vmatpush1.bf16.msra.mxu1 %v12438_v41  ;;  %7740 = vmatprep.mubr.f32.mxu1 %v16912_v0  ;;  %v12466_v41 = vpack.c.bf16 %v7987_v59, %v7986_v22  ;;  %v12476_v38 = vpack.c.bf16 %v8009_v58, %v8008_v27  ;;  %v7996_v46 = vld [vmem:[#allocation4 + $0x50] sm:$0xff]  ;;  %v12490_v19 = vpack.c.bf16 %v7999_v39, %v7998_v40  ;;  %v8035_v45 = vld [vmem:[#allocation4 + $0x188] sm:$0xff]  ;;  %v8018_v59 = vld [vmem:[#allocation4 + $0x100] sm:$0xff] }
0x1bc4   :  { %12441 = vmatprep.subr.bf16.mxu1 %v12440_v5  ;;  %v8004_v5 = vld [vmem:[#allocation4 + $0x90] sm:$0xff]  ;;  %v12486_v55 = vpack.c.bf16 %v7997_v13, %v7996_v46  ;;  %v12496_v22 = vpack.c.bf16 %v8035_v45, %v8034_v12  ;;  %v8026_v43 = vld [vmem:[#allocation4 + $0x140] sm:$0xff] }
0x1bc5   :  { %12467 = vmatpush3.bf16.msra.mxu0 %v12466_v41  ;;  %v8000_v1 = vld [vmem:[#allocation4 + $0x70] sm:$0xff]  ;;  %v8019_v41 = vld [vmem:[#allocation4 + $0x108] sm:$0xff]  ;;  %v8030_v39 = vld [vmem:[#allocation4 + $0x160] sm:$0xff] }
0x1bc6   :  { %7741 = vmatmul.mubr.f32.gmra.mrb[252].mxu1 %v7561_v14  ;;  %v8040_v58 = vld [vmem:[#allocation4 + $0x1b0] sm:$0xff]  ;;  %v16348_v45 = vld [vmem:[#allocation10] sm:$0xff] }
0x1bc7   :  { %12443 = vmatpush1.bf16.msra.mxu1 %v12442_v4  ;;  %7746 = vmatprep.mubr.f32.mxu1 %v16912_v0  ;;  %v7990_v4 = vld [vmem:[#allocation4 + $0x20] sm:$0xff]  ;;  %v8028_v13 = vld [vmem:[#allocation4 + $0x150] sm:$0xff] }
0x1bc8   :  { %12445 = vmatprep.subr.bf16.mxu1 %v12444_v50 }
0x1bca   :  { %7747 = vmatmul.mubr.f32.gmra.mrb[254].mxu1 %v7562_v24 }
0x1bcb   :  { %12447 = vmatpush1.bf16.msra.mxu1 %v12446_v6  ;;  %7817 = vmatprep.mubr.f32.mxu1 %v16912_v0  ;;  %v12478_v6 = vpack.c.bf16 %v7993_v32, %v7992_v28  ;;  %v8024_v32 = vld [vmem:[#allocation4 + $0x130] sm:$0xff] }
0x1bcc   :  { %12449 = vmatprep.subr.bf16.mxu1 %v12448_v51  ;;  %v8011_v51 = vld [vmem:[#allocation4 + $0xc8] sm:$0xff] }
0x1bcf   :  { %12451 = vmatpush1.bf16.msra.mxu1 %v12450_v31  ;;  %v8012_v31 = vld [vmem:[#allocation4 + $0xd0] sm:$0xff] }
0x1bd0   :  { %12453 = vmatprep.subr.bf16.mxu1 %v12452_v30  ;;  %v8013_v30 = vld [vmem:[#allocation4 + $0xd8] sm:$0xff] }
0x1bd1   :  { %v12484_v25 = vpack.c.bf16 %v8013_v30, %v8012_v31  ;;  %v8044_v30 = vld [vmem:[#allocation4 + $0x1d0] sm:$0xff] }
0x1bd3   :  { %12455 = vmatpush1.bf16.msra.mxu1 %v12454_v57  ;;  %v8014_v57 = vld [vmem:[#allocation4 + $0xe0] sm:$0xff] }
0x1bd4   :  { %12457 = vmatprep.subr.bf16.mxu1 %v12456_v48  ;;  %v8015_v48 = vld [vmem:[#allocation4 + $0xe8] sm:$0xff] }
0x1bd5   :  { %v12488_v10 = vpack.c.bf16 %v8015_v48, %v8014_v57  ;;  %v8046_v48 = vld [vmem:[#allocation4 + $0x1e0] sm:$0xff] }
0x1bd7   :  { %12459 = vmatpush1.bf16.msra.mxu1 %v12458_v44  ;;  %v8016_v44 = vld [vmem:[#allocation4 + $0xf0] sm:$0xff] }
0x1bd8   :  { %12461 = vmatprep.subr.bf16.mxu1 %v12460_v16  ;;  %v8017_v16 = vld [vmem:[#allocation4 + $0xf8] sm:$0xff] }
0x1bd9   :  { %v12492_v8 = vpack.c.bf16 %v8017_v16, %v8016_v44  ;;  %v8048_v16 = vld [vmem:[#allocation4 + $0x1f0] sm:$0xff] }
0x1bdb   :  { %12463 = vmatpush1.bf16.msra.mxu1 %v12462_v49  ;;  %v8001_v49 = vld [vmem:[#allocation4 + $0x78] sm:$0xff] }
0x1bdc   :  { %v12494_v56 = vpack.c.bf16 %v8001_v49, %v8000_v1  ;;  %12497 = vmatprep.subr.bf16.mxu1 %v12496_v22  ;;  %v8032_v49 = vld [vmem:[#allocation4 + $0x170] sm:$0xff]  ;;  %v7634_v22 = vsub.s32 2, %v16231_v63 }
0x1bde   :  { %7818 = vmatmul.mubr.f32.vlgmr.msra.gmra.mrb[0].mxu1 %v16255_v36  ;;  %v12468_v36 = vpack.c.bf16 %v8005_v35, %v8004_v5  ;;  %v12498_v5 = vpack.c.bf16 %v8019_v41, %v8018_v59  ;;  %v8036_v35 = vld [vmem:[#allocation4 + $0x190] sm:$0xff]  ;;  %v7631_v59 = vrot.slane %v16348_v45, %v16234_v60  ;;  %v7635_v41 = vrot.slane %v16348_v45, %v7634_v22 }
0x1bdf   :  { %7823 = vmatprep.mubr.f32.mxu1 %v16912_v0 }
0x1be0   :  { %12469 = vmatprep.subr.bf16.mxu0 %v12468_v36  ;;  %12499 = vmatpush3.bf16.msra.mxu1 %v12498_v5  ;;  %v8037_v36 = vld [vmem:[#allocation4 + $0x198] sm:$0xff]  ;;  %v7651_v5 = vrot.slane %v7631_v59, %v16234_v60 }
0x1be2   :  { %7824 = vmatmul.mubr.f32.gmra.mrb[2].mxu1 %v7560_v11  ;;  %v12470_v11 = vpack.c.bf16 %v7989_v62, %v7988_v34  ;;  %v12500_v34 = vpack.c.bf16 %v8037_v36, %v8036_v35  ;;  %v8020_v62 = vld [vmem:[#allocation4 + $0x110] sm:$0xff]  ;;  %v7655_v35 = vrot.slane %v7635_v41, %v16234_v60 }
0x1be3   :  { %7829 = vmatprep.mubr.f32.mxu1 %v16912_v0 }
0x1be4   :  { %12471 = vmatpush3.bf16.msra.mxu0 %v12470_v11  ;;  %v8021_v11 = vld [vmem:[#allocation4 + $0x118] sm:$0xff]  ;;  %12501 = vmatprep.subr.bf16.mxu1 %v12500_v34 }
0x1be5   :  { %12473 = vmatprep.subr.bf16.mxu0 %v12472_v23  ;;  %v12502_v21 = vpack.c.bf16 %v8021_v11, %v8020_v62  ;;  %v8039_v23 = vld [vmem:[#allocation4 + $0x1a8] sm:$0xff] }
0x1be6   :  { %7830 = vmatmul.mubr.f32.gmra.mrb[4].mxu1 %v7561_v14  ;;  %v7991_v14 = vld [vmem:[#allocation4 + $0x28] sm:$0xff] }
0x1be7   :  { %7835 = vmatprep.mubr.f32.mxu1 %v16912_v0  ;;  %v12474_v50 = vpack.c.bf16 %v7991_v14, %v7990_v4  ;;  %12503 = vmatpush3.bf16.msra.mxu1 %v12502_v21  ;;  %v12504_v4 = vpack.c.bf16 %v8039_v23, %v8038_v61  ;;  %v8022_v14 = vld [vmem:[#allocation4 + $0x120] sm:$0xff] }
0x1be9   :  { %12475 = vmatpush3.bf16.msra.mxu0 %v12474_v50  ;;  %v8023_v50 = vld [vmem:[#allocation4 + $0x128] sm:$0xff]  ;;  %12505 = vmatprep.subr.bf16.mxu1 %v12504_v4 }
0x1bea   :  { %7836 = vmatmul.mubr.f32.gmra.mrb[6].mxu1 %v7562_v24  ;;  %12477 = vmatprep.subr.bf16.mxu0 %v12476_v38  ;;  %v8010_v24 = vld [vmem:[#allocation4 + $0xc0] sm:$0xff]  ;;  %v12506_v27 = vpack.c.bf16 %v8023_v50, %v8022_v14  ;;  %v8041_v38 = vld [vmem:[#allocation4 + $0x1b8] sm:$0xff] }
0x1beb   :  { %v12480_v3 = vpack.c.bf16 %v8011_v51, %v8010_v24  ;;  %v12508_v28 = vpack.c.bf16 %v8041_v38, %v8040_v58  ;;  %v8042_v51 = vld [vmem:[#allocation4 + $0x1c0] sm:$0xff] }
0x1bec   :  { %12507 = vmatpush3.bf16.msra.mxu1 %v12506_v27 }
0x1bed   :  { %12479 = vmatpush3.bf16.msra.mxu0 %v12478_v6  ;;  %v8025_v6 = vld [vmem:[#allocation4 + $0x138] sm:$0xff]  ;;  %12509 = vmatprep.subr.bf16.mxu1 %v12508_v28 }
0x1bee   :  { %12481 = vmatprep.subr.bf16.mxu0 %v12480_v3  ;;  %v12510_v24 = vpack.c.bf16 %v8025_v6, %v8024_v32  ;;  %v8043_v3 = vld [vmem:[#allocation4 + $0x1c8] sm:$0xff] }
0x1bef   :  { %v12512_v37 = vpack.c.bf16 %v8043_v3, %v8042_v51 }
0x1bf0   :  { %12511 = vmatpush3.bf16.msra.mxu1 %v12510_v24 }
0x1bf1   :  { %12483 = vmatpush3.bf16.msra.mxu0 %v12482_v17  ;;  %v8027_v17 = vld [vmem:[#allocation4 + $0x148] sm:$0xff]  ;;  %12513 = vmatprep.subr.bf16.mxu1 %v12512_v37 }
0x1bf2   :  { %12485 = vmatprep.subr.bf16.mxu0 %v12484_v25  ;;  %v12514_v31 = vpack.c.bf16 %v8027_v17, %v8026_v43  ;;  %v8045_v25 = vld [vmem:[#allocation4 + $0x1d8] sm:$0xff] }
0x1bf3   :  { %v12516_v46 = vpack.c.bf16 %v8045_v25, %v8044_v30 }
0x1bf4   :  { %12515 = vmatpush3.bf16.msra.mxu1 %v12514_v31 }
0x1bf5   :  { %12487 = vmatpush3.bf16.msra.mxu0 %v12486_v55  ;;  %v8029_v55 = vld [vmem:[#allocation4 + $0x158] sm:$0xff]  ;;  %12517 = vmatprep.subr.bf16.mxu1 %v12516_v46 }
0x1bf6   :  { %12489 = vmatprep.subr.bf16.mxu0 %v12488_v10  ;;  %v12518_v57 = vpack.c.bf16 %v8029_v55, %v8028_v13  ;;  %v8047_v10 = vld [vmem:[#allocation4 + $0x1e8] sm:$0xff] }
0x1bf7   :  { %v12520_v40 = vpack.c.bf16 %v8047_v10, %v8046_v48 }
0x1bf8   :  { %12519 = vmatpush3.bf16.msra.mxu1 %v12518_v57 }
0x1bf9   :  { %12491 = vmatpush3.bf16.msra.mxu0 %v12490_v19  ;;  %v8031_v19 = vld [vmem:[#allocation4 + $0x168] sm:$0xff]  ;;  %12521 = vmatprep.subr.bf16.mxu1 %v12520_v40 }
0x1bfa   :  { %12493 = vmatprep.subr.bf16.mxu0 %v12492_v8  ;;  %v12522_v44 = vpack.c.bf16 %v8031_v19, %v8030_v39  ;;  %v8049_v8 = vld [vmem:[#allocation4 + $0x1f8] sm:$0xff] }
0x1bfb   :  { %v12524_v1 = vpack.c.bf16 %v8049_v8, %v8048_v16 }
0x1bfc   :  { %12523 = vmatpush3.bf16.msra.mxu1 %v12522_v44 }
0x1bfd   :  { %12495 = vmatpush3.bf16.msra.mxu0 %v12494_v56  ;;  %v8033_v56 = vld [vmem:[#allocation4 + $0x178] sm:$0xff]  ;;  %12525 = vmatprep.subr.bf16.mxu1 %v12524_v1 }
0x1bfe   :  { %12529 = vmatprep.subr.bf16.mxu0 %v15989_v2  ;;  %v12526_v12 = vpack.c.bf16 %v8033_v56, %v8032_v49 }
0x1c00   :  { %12527 = vmatpush3.bf16.msra.mxu1 %v12526_v12 }
0x1c01   :  { %12561 = vmatprep.subr.bf16.mxu1 %v15989_v2 }
0x1c91   :  { %v7730_v36 = vpop.f32.mrb[248].mxu1 }
0x1c92   :  { %v16358_v34 = vadd.f32 %v7730_v36, %v7651_v5  ;;  %v7732_v62 = vpop.f32.mrb[249].mxu1 }
0x1c93   :  { %v16360_v11 = vadd.f32 %v7732_v62, %v7655_v35 }
0x1c94   :  { %v7842_v21 = vmul.f32 %v16358_v34, %v16358_v34 }
0x1c95   :  { %v7843_v61 = vmul.f32 %v16360_v11, %v16360_v11  ;;  %v7736_v23 = vpop.f32.mrb[250].mxu1 }
0x1c96   :  { %v7858_v4 = vmul.f32 %v7842_v21, %v16358_v34  ;;  %v16367_v14 = vadd.f32 %v7736_v23, %v7651_v5  ;;  %v7738_v50 = vpop.f32.mrb[251].mxu1 }
0x1c97   :  { %v7859_v27 = vmul.f32 %v7843_v61, %v16360_v11  ;;  %v16370_v58 = vadd.f32 %v7738_v50, %v7655_v35 }
0x1c98   :  { %v7874_v38 = vmul.f32 0.044715, %v7858_v4  ;;  %v7846_v28 = vmul.f32 %v16367_v14, %v16367_v14 }
0x1c99   :  { %v7875_v32 = vmul.f32 0.044715, %v7859_v27  ;;  %v7847_v6 = vmul.f32 %v16370_v58, %v16370_v58  ;;  %v7742_v24 = vpop.f32.mrb[252].mxu1 }
0x1c9a   :  { %v7890_v51 = vadd.f32 %v7874_v38, %v16358_v34  ;;  %v7862_v3 = vmul.f32 %v7846_v28, %v16367_v14  ;;  %v16378_v37 = vadd.f32 %v7742_v24, %v7651_v5  ;;  %v7744_v43 = vpop.f32.mrb[253].mxu1  ;;  %v7638_v38 = vsub.s32 4, %v16231_v63 }
0x1c9b   :  { %v7891_v17 = vadd.f32 %v7875_v32, %v16360_v11  ;;  %v7863_v31 = vmul.f32 %v7847_v6, %v16370_v58  ;;  %v16382_v30 = vadd.f32 %v7744_v43, %v7655_v35  ;;  %v7642_v32 = vsub.s32 6, %v16231_v63 }
0x1c9c   :  { %v7906_v25 = vmul.f32 0.7978846, %v7890_v51  ;;  %v7878_v46 = vmul.f32 0.044715, %v7862_v3  ;;  %v7850_v13 = vmul.f32 %v16378_v37, %v16378_v37 }
0x1c9d   :  { %v7907_v55 = vmul.f32 0.7978846, %v7891_v17  ;;  %v7879_v57 = vmul.f32 0.044715, %v7863_v31  ;;  %v7851_v48 = vmul.f32 %v16382_v30, %v16382_v30  ;;  %v7748_v10 = vpop.f32.mrb[254].mxu1  ;;  %v7639_v17 = vrot.slane %v16348_v45, %v7638_v38 }
0x1c9e   :  { %13251 = vtanh.f32 %v7906_v25  ;;  %v7894_v40 = vadd.f32 %v7878_v46, %v16367_v14  ;;  %v7866_v39 = vmul.f32 %v7850_v13, %v16378_v37  ;;  %v16390_v19 = vadd.f32 %v7748_v10, %v7651_v5  ;;  %v7750_v44 = vpop.f32.mrb[255].mxu1 }
0x1c9f   :  { %v7895_v16 = vadd.f32 %v7879_v57, %v16370_v58  ;;  %v7867_v8 = vmul.f32 %v7851_v48, %v16382_v30  ;;  %v16394_v1 = vadd.f32 %v7750_v44, %v7655_v35  ;;  %13253 = vtanh.f32 %v7907_v55 }
0x1ca0   :  { %v7910_v49 = vmul.f32 0.7978846, %v7894_v40  ;;  %v7882_v56 = vmul.f32 0.044715, %v7866_v39  ;;  %v7854_v12 = vmul.f32 %v16390_v19, %v16390_v19  ;;  %v7643_v46 = vrot.slane %v16348_v45, %v7642_v32 }
0x1ca1   :  { %v7911_v59 = vmul.f32 0.7978846, %v7895_v16  ;;  %v7883_v41 = vmul.f32 0.044715, %v7867_v8  ;;  %v7855_v36 = vmul.f32 %v16394_v1, %v16394_v1  ;;  %v16411_v10 = vrot.slane %v7639_v17, %v16234_v60 }
0x1ca2   :  { %v7898_v5 = vadd.f32 %v7882_v56, %v16378_v37  ;;  %v7870_v62 = vmul.f32 %v7854_v12, %v16390_v19  ;;  %13255 = vtanh.f32 %v7910_v49  ;;  %v16416_v16 = vrot.slane %v7643_v46, %v16234_v60 }
0x1ca3   :  { %v7899_v21 = vadd.f32 %v7883_v41, %v16382_v30  ;;  %v7871_v35 = vmul.f32 %v7855_v36, %v16394_v1  ;;  %13257 = vtanh.f32 %v7911_v59 }
0x1ca4   :  { %v7914_v61 = vmul.f32 0.7978846, %v7898_v5  ;;  %v7886_v23 = vmul.f32 0.044715, %v7870_v62 }
0x1ca5   :  { %v7915_v4 = vmul.f32 0.7978846, %v7899_v21  ;;  %v7887_v50 = vmul.f32 0.044715, %v7871_v35 }
0x1ca6   :  { %v7902_v27 = vadd.f32 %v7886_v23, %v16390_v19  ;;  %13259 = vtanh.f32 %v7914_v61 }
0x1ca7   :  { %v7903_v28 = vadd.f32 %v7887_v50, %v16394_v1  ;;  %13261 = vtanh.f32 %v7915_v4 }
0x1ca8   :  { %v13252_v6 = vpop.eup %13251  ;;  %v7918_v24 = vmul.f32 0.7978846, %v7902_v27 }
0x1ca9   :  { %v13254_v51 = vpop.eup %13253  ;;  %v7938_v3 = vadd.f32 1.0, %v13252_v6  ;;  %v7919_v43 = vmul.f32 0.7978846, %v7903_v28 }
0x1caa   :  { %v7939_v31 = vadd.f32 1.0, %v13254_v51  ;;  %13263 = vtanh.f32 %v7918_v24 }
0x1cab   :  { %v7954_v25 = vmul.f32 0.5, %v7938_v3  ;;  %13265 = vtanh.f32 %v7919_v43 }
0x1cac   :  { %v13256_v13 = vpop.eup %13255  ;;  %v7955_v55 = vmul.f32 0.5, %v7939_v31 }
0x1cad   :  { %v13258_v57 = vpop.eup %13257  ;;  %v7942_v48 = vadd.f32 1.0, %v13256_v13  ;;  %v7970_v44 = vmul.f32 %v7954_v25, %v16358_v34 }
0x1cae   :  { %v7971_v40 = vmul.f32 %v7955_v55, %v16360_v11  ;;  %v7943_v39 = vadd.f32 1.0, %v13258_v57 }
0x1caf   :  { %v7958_v8 = vmul.f32 0.5, %v7942_v48 }
0x1cb0   :  { %v13260_v49 = vpop.eup %13259  ;;  %8118 = vmatprep.mubr.f32.mxu0 %v7971_v40  ;;  %v7959_v45 = vmul.f32 0.5, %v7943_v39 }
0x1cb1   :  { %v13262_v56 = vpop.eup %13261  ;;  %v7819_v12 = vpop.f32.mrb[0].mxu1  ;;  %8119 = vmatmul.mubr.f32.vlgmr.msra.gmra.mrb[244].mxu0 %v7970_v44  ;;  %v7946_v59 = vadd.f32 1.0, %v13260_v49  ;;  %v7974_v62 = vmul.f32 %v7958_v8, %v16367_v14 }
0x1cb2   :  { %v16419_v41 = vadd.f32 %v7819_v12, %v16411_v10  ;;  %v7821_v36 = vpop.f32.mrb[1].mxu1  ;;  %v7975_v11 = vmul.f32 %v7959_v45, %v16370_v58  ;;  %v7947_v5 = vadd.f32 1.0, %v13262_v56  ;;  %12531 = vmatpush3.bf16.msra.mxu0 %v15989_v2 }
0x1cb3   :  { %v16424_v34 = vadd.f32 %v7821_v36, %v16416_v16  ;;  %v7962_v21 = vmul.f32 0.5, %v7946_v59  ;;  %12533 = vmatprep.subr.bf16.mxu0 %v15994_v42 }
0x1cb4   :  { %v13264_v35 = vpop.eup %13263  ;;  %v7844_v61 = vmul.f32 %v16419_v41, %v16419_v41  ;;  %8123 = vmatprep.mubr.f32.mxu0 %v7975_v11  ;;  %v7963_v23 = vmul.f32 0.5, %v7947_v5 }
0x1cb5   :  { %v13266_v4 = vpop.eup %13265  ;;  %v7845_v58 = vmul.f32 %v16424_v34, %v16424_v34  ;;  %v7825_v50 = vpop.f32.mrb[2].mxu1  ;;  %8124 = vmatmul.mubr.f32.gmra.mrb[246].mxu0 %v7974_v62  ;;  %v7950_v27 = vadd.f32 1.0, %v13264_v35  ;;  %v7978_v3 = vmul.f32 %v7962_v21, %v16378_v37 }
0x1cb6   :  { %v7860_v38 = vmul.f32 %v7844_v61, %v16419_v41  ;;  %v16434_v14 = vadd.f32 %v7825_v50, %v16411_v10  ;;  %v7827_v28 = vpop.f32.mrb[3].mxu1  ;;  %v7979_v32 = vmul.f32 %v7963_v23, %v16382_v30  ;;  %v7951_v6 = vadd.f32 1.0, %v13266_v4  ;;  %12535 = vmatpush3.bf16.msra.mxu0 %v15994_v42 }
0x1cb7   :  { %v7861_v24 = vmul.f32 %v7845_v58, %v16424_v34  ;;  %v16440_v51 = vadd.f32 %v7827_v28, %v16416_v16  ;;  %v7966_v43 = vmul.f32 0.5, %v7950_v27  ;;  %12537 = vmatprep.subr.bf16.mxu0 %v16008_v26 }
0x1cb8   :  { %v7876_v17 = vmul.f32 0.044715, %v7860_v38  ;;  %v7848_v31 = vmul.f32 %v16434_v14, %v16434_v14  ;;  %8128 = vmatprep.mubr.f32.mxu0 %v7979_v32  ;;  %v7967_v25 = vmul.f32 0.5, %v7951_v6 }
0x1cb9   :  { %v7877_v30 = vmul.f32 0.044715, %v7861_v24  ;;  %v7849_v46 = vmul.f32 %v16440_v51, %v16440_v51  ;;  %v7831_v13 = vpop.f32.mrb[4].mxu1  ;;  %8129 = vmatmul.mubr.f32.gmra.mrb[248].mxu0 %v7978_v3  ;;  %v7982_v49 = vmul.f32 %v7966_v43, %v16390_v19 }
0x1cba   :  { %v7892_v55 = vadd.f32 %v7876_v17, %v16419_v41  ;;  %v7864_v57 = vmul.f32 %v7848_v31, %v16434_v14  ;;  %v16451_v37 = vadd.f32 %v7831_v13, %v16411_v10  ;;  %v7833_v48 = vpop.f32.mrb[5].mxu1  ;;  %v7983_v40 = vmul.f32 %v7967_v25, %v16394_v1  ;;  %12539 = vmatpush3.bf16.msra.mxu0 %v16008_v26 }
0x1cbb   :  { %v7893_v39 = vadd.f32 %v7877_v30, %v16424_v34  ;;  %v7865_v44 = vmul.f32 %v7849_v46, %v16440_v51  ;;  %v16458_v8 = vadd.f32 %v7833_v48, %v16416_v16  ;;  %12541 = vmatprep.subr.bf16.mxu0 %v16023_v33 }
0x1cbc   :  { %v7908_v45 = vmul.f32 0.7978846, %v7892_v55  ;;  %v7880_v56 = vmul.f32 0.044715, %v7864_v57  ;;  %v7852_v12 = vmul.f32 %v16451_v37, %v16451_v37  ;;  %8133 = vmatprep.mubr.f32.mxu0 %v7983_v40 }
0x1cbd   :  { %v7909_v1 = vmul.f32 0.7978846, %v7893_v39  ;;  %v7881_v59 = vmul.f32 0.044715, %v7865_v44  ;;  %v7853_v36 = vmul.f32 %v16458_v8, %v16458_v8  ;;  %v7837_v11 = vpop.f32.mrb[6].mxu1  ;;  %8134 = vmatmul.mubr.f32.gmra.mrb[250].mxu0 %v7982_v49 }
0x1cbe   :  { %13267 = vtanh.f32 %v7908_v45  ;;  %v7896_v5 = vadd.f32 %v7880_v56, %v16434_v14  ;;  %v7868_v19 = vmul.f32 %v7852_v12, %v16451_v37  ;;  %v16469_v62 = vadd.f32 %v7837_v11, %v16411_v10  ;;  %v7839_v21 = vpop.f32.mrb[7].mxu1  ;;  %12543 = vmatpush3.bf16.msra.mxu0 %v16023_v33 }
0x1cbf   :  { %v7897_v35 = vadd.f32 %v7881_v59, %v16440_v51  ;;  %v7869_v61 = vmul.f32 %v7853_v36, %v16458_v8  ;;  %v16475_v23 = vadd.f32 %v7839_v21, %v16416_v16  ;;  %13269 = vtanh.f32 %v7909_v1  ;;  %12545 = vmatprep.subr.bf16.mxu0 %v16035_v15 }
0x1cc0   :  { %v7912_v4 = vmul.f32 0.7978846, %v7896_v5  ;;  %v7884_v58 = vmul.f32 0.044715, %v7868_v19  ;;  %v7856_v50 = vmul.f32 %v16469_v62, %v16469_v62 }
0x1cc1   :  { %v7913_v10 = vmul.f32 0.7978846, %v7897_v35  ;;  %v7885_v27 = vmul.f32 0.044715, %v7869_v61  ;;  %v7857_v38 = vmul.f32 %v16475_v23, %v16475_v23 }
0x1cc2   :  { %13271 = vtanh.f32 %v7912_v4  ;;  %v7900_v28 = vadd.f32 %v7884_v58, %v16451_v37  ;;  %v7872_v32 = vmul.f32 %v7856_v50, %v16469_v62  ;;  %12547 = vmatpush3.bf16.msra.mxu0 %v16035_v15 }
0x1cc3   :  { %v7901_v16 = vadd.f32 %v7885_v27, %v16458_v8  ;;  %v7873_v6 = vmul.f32 %v7857_v38, %v16475_v23  ;;  %13273 = vtanh.f32 %v7913_v10  ;;  %12549 = vmatprep.subr.bf16.mxu0 %v16045_v9 }
0x1cc4   :  { %v7916_v24 = vmul.f32 0.7978846, %v7900_v28  ;;  %v7888_v3 = vmul.f32 0.044715, %v7872_v32 }
0x1cc5   :  { %v7917_v43 = vmul.f32 0.7978846, %v7901_v16  ;;  %v7889_v17 = vmul.f32 0.044715, %v7873_v6 }
0x1cc6   :  { %13275 = vtanh.f32 %v7916_v24  ;;  %v7904_v31 = vadd.f32 %v7888_v3, %v16469_v62  ;;  %12551 = vmatpush3.bf16.msra.mxu0 %v16045_v9  ;;  %v7360_v24 = vld [vmem:[#allocation12] sm:$0x3] }
0x1cc7   :  { %v7905_v25 = vadd.f32 %v7889_v17, %v16475_v23  ;;  %13277 = vtanh.f32 %v7917_v43  ;;  %12553 = vmatprep.subr.bf16.mxu0 %v16055_v20  ;;  %v8053_v3 = vrot.slane %v7360_v24, %v16234_v60  ;;  %v8440_v24 = vld [vmem:[#allocation6 + $0x50] sm:$0xff] }
0x1cc8   :  { %v13268_v30 = vpop.eup %13267  ;;  %v7920_v46 = vmul.f32 0.7978846, %v7904_v31 }
0x1cc9   :  { %v13270_v13 = vpop.eup %13269  ;;  %v7940_v55 = vadd.f32 1.0, %v13268_v30  ;;  %v7921_v57 = vmul.f32 0.7978846, %v7905_v25 }
0x1cca   :  { %13279 = vtanh.f32 %v7920_v46  ;;  %v7941_v48 = vadd.f32 1.0, %v13270_v13  ;;  %12555 = vmatpush3.bf16.msra.mxu0 %v16055_v20 }
0x1ccb   :  { %v7956_v40 = vmul.f32 0.5, %v7940_v55  ;;  %13281 = vtanh.f32 %v7921_v57  ;;  %12557 = vmatprep.subr.bf16.mxu0 %v16068_v7 }
0x1ccc   :  { %v13272_v39 = vpop.eup %13271  ;;  %v7957_v44 = vmul.f32 0.5, %v7941_v48 }
0x1ccd   :  { %v13274_v49 = vpop.eup %13273  ;;  %v7944_v45 = vadd.f32 1.0, %v13272_v39  ;;  %v7972_v1 = vmul.f32 %v7956_v40, %v16419_v41 }
0x1cce   :  { %v7973_v56 = vmul.f32 %v7957_v44, %v16424_v34  ;;  %v7945_v12 = vadd.f32 1.0, %v13274_v49  ;;  %12559 = vmatpush3.bf16.msra.mxu0 %v16068_v7 }
0x1ccf   :  { %v7960_v59 = vmul.f32 0.5, %v7944_v45 }
0x1cd0   :  { %v13276_v36 = vpop.eup %13275  ;;  %8203 = vmatprep.mubr.f32.mxu1 %v7973_v56  ;;  %v7961_v11 = vmul.f32 0.5, %v7945_v12 }
0x1cd1   :  { %v13278_v5 = vpop.eup %13277  ;;  %v7948_v19 = vadd.f32 1.0, %v13276_v36  ;;  %8204 = vmatmul.mubr.f32.vlgmr.msra.gmra.mrb[8].mxu1 %v7972_v1  ;;  %v7976_v61 = vmul.f32 %v7960_v59, %v16434_v14 }
0x1cd2   :  { %v7977_v21 = vmul.f32 %v7961_v11, %v16440_v51  ;;  %v7949_v35 = vadd.f32 1.0, %v13278_v5  ;;  %12563 = vmatpush3.bf16.msra.mxu1 %v15989_v2  ;;  %v8435_v11 = vld [vmem:[#allocation6 + $0x28] sm:$0xff]  ;;  %v8433_v5 = vld [vmem:[#allocation6 + $0x18] sm:$0xff] }
0x1cd3   :  { %v7964_v34 = vmul.f32 0.5, %v7948_v19  ;;  %12565 = vmatprep.subr.bf16.mxu1 %v15994_v42 }
0x1cd4   :  { %v13280_v4 = vpop.eup %13279  ;;  %8208 = vmatprep.mubr.f32.mxu1 %v7977_v21  ;;  %v7965_v41 = vmul.f32 0.5, %v7949_v35  ;;  %v8437_v21 = vld [vmem:[#allocation6 + $0x38] sm:$0xff]  ;;  %v8430_v35 = vld [vmem:[#allocation6] sm:$0xff] }
0x1cd5   :  { %v13282_v58 = vpop.eup %13281  ;;  %v7952_v50 = vadd.f32 1.0, %v13280_v4  ;;  %8209 = vmatmul.mubr.f32.gmra.mrb[10].mxu1 %v7976_v61  ;;  %v7980_v51 = vmul.f32 %v7964_v34, %v16451_v37  ;;  %v8434_v61 = vld [vmem:[#allocation6 + $0x20] sm:$0xff]  ;;  %v12624_v34 = vpack.c.bf16 %v8437_v21, %v8433_v5  ;;  %v8439_v4 = vld [vmem:[#allocation6 + $0x48] sm:$0xff]  ;;  %v8456_v5 = vld [vmem:[#allocation6 + $0xd0] sm:$0xff] }
0x1cd6   :  { %v7981_v10 = vmul.f32 %v7965_v41, %v16458_v8  ;;  %v7953_v27 = vadd.f32 1.0, %v13282_v58  ;;  %12567 = vmatpush3.bf16.msra.mxu1 %v15994_v42  ;;  %v8443_v41 = vld [vmem:[#allocation6 + $0x68] sm:$0xff]  ;;  %v8438_v58 = vld [vmem:[#allocation6 + $0x40] sm:$0xff] }
0x1cd7   :  { %v7968_v38 = vmul.f32 0.5, %v7952_v50  ;;  %12569 = vmatprep.subr.bf16.mxu1 %v16008_v26  ;;  %v8442_v50 = vld [vmem:[#allocation6 + $0x60] sm:$0xff] }
0x1cd8   :  { %8213 = vmatprep.mubr.f32.mxu1 %v7981_v10  ;;  %v7969_v2 = vmul.f32 0.5, %v7953_v27  ;;  %v12598_v10 = vpack.c.bf16 %v8442_v50, %v8438_v58  ;;  %v8447_v27 = vld [vmem:[#allocation6 + $0x88] sm:$0xff] }
0x1cd9   :  { %8214 = vmatmul.mubr.f32.gmra.mrb[12].mxu1 %v7980_v51  ;;  %v7984_v28 = vmul.f32 %v7968_v38, %v16469_v62  ;;  %v8451_v51 = vld [vmem:[#allocation6 + $0xa8] sm:$0xff] }
0x1cda   :  { %v7985_v14 = vmul.f32 %v7969_v2, %v16475_v23  ;;  %12571 = vmatpush3.bf16.msra.mxu1 %v16008_v26  ;;  %v12600_v38 = vpack.c.bf16 %v8451_v51, %v8447_v27  ;;  %v8446_v2 = vld [vmem:[#allocation6 + $0x80] sm:$0xff]  ;;  %v8468_v27 = vld [vmem:[#allocation6 + $0x130] sm:$0xff] }
0x1cdb   :  { %12573 = vmatprep.subr.bf16.mxu1 %v16023_v33 }
0x1cdc   :  { %8218 = vmatprep.mubr.f32.mxu1 %v7985_v14  ;;  %v8450_v14 = vld [vmem:[#allocation6 + $0xa0] sm:$0xff] }
0x1cdd   :  { %8219 = vmatmul.mubr.f32.gmra.mrb[14].mxu1 %v7984_v28  ;;  %v12602_v28 = vpack.c.bf16 %v8450_v14, %v8446_v2  ;;  %v8475_v2 = vld [vmem:[#allocation6 + $0x168] sm:$0xff]  ;;  %v8473_v14 = vld [vmem:[#allocation6 + $0x158] sm:$0xff] }
0x1cde   :  { %12575 = vmatpush3.bf16.msra.mxu1 %v16023_v33 }
0x1cdf   :  { %12577 = vmatprep.subr.bf16.mxu1 %v16035_v15 }
0x1ce2   :  { %12579 = vmatpush3.bf16.msra.mxu1 %v16035_v15 }
0x1ce3   :  { %12581 = vmatprep.subr.bf16.mxu1 %v16045_v9 }
0x1ce6   :  { %12583 = vmatpush3.bf16.msra.mxu1 %v16045_v9 }
0x1ce7   :  { %12585 = vmatprep.subr.bf16.mxu1 %v16055_v20 }
0x1cea   :  { %12587 = vmatpush3.bf16.msra.mxu1 %v16055_v20 }
0x1ceb   :  { %12589 = vmatprep.subr.bf16.mxu1 %v16068_v7 }
0x1cee   :  { %12591 = vmatpush3.bf16.msra.mxu1 %v16068_v7 }
0x1cef   :  { %12625 = vmatprep.subr.bf16.mxu1 %v12624_v34  ;;  %v8465_v34 = vld [vmem:[#allocation6 + $0x118] sm:$0xff] }
0x1d84   :  { %v10476_v42 = vpop.f32.mrb[244].mxu0 }
0x1d85   :  { %v10477_v26 = vpop.f32.mrb[245].mxu0 }
0x1d86   :  { %v10478_v37 = vadd.f32 %v10477_v26, %v10476_v42 }
0x1d88   :  { %v10479_v33 = vpop.f32.mrb[246].mxu0  ;;  %v8121_v17 = vadd.f32 %v10478_v37, %v8053_v3 }
0x1d89   :  { %v10480_v8 = vpop.f32.mrb[247].mxu0 }
0x1d8a   :  { %v10481_v62 = vadd.f32 %v10480_v8, %v10479_v33  ;;  %v8432_v33 = vld [vmem:[#allocation6 + $0x10] sm:$0xff] }
0x1d8b   :  { %v8436_v8 = vld [vmem:[#allocation6 + $0x30] sm:$0xff] }
0x1d8c   :  { %v10482_v23 = vpop.f32.mrb[248].mxu0  ;;  %v8126_v46 = vadd.f32 %v10481_v62, %v8053_v3 }
0x1d8d   :  { %v10483_v15 = vpop.f32.mrb[249].mxu0 }
0x1d8e   :  { %v10484_v32 = vadd.f32 %v10483_v15, %v10482_v23  ;;  %v8441_v23 = vld [vmem:[#allocation6 + $0x58] sm:$0xff] }
0x1d8f   :  { %v8445_v15 = vld [vmem:[#allocation6 + $0x78] sm:$0xff] }
0x1d90   :  { %v10485_v16 = vpop.f32.mrb[250].mxu0  ;;  %v8131_v39 = vadd.f32 %v10484_v32, %v8053_v3 }
0x1d91   :  { %v10486_v6 = vpop.f32.mrb[251].mxu0 }
0x1d92   :  { %v10487_v9 = vadd.f32 %v10486_v6, %v10485_v16  ;;  %v12626_v16 = vpack.c.bf16 %v8436_v8, %v8432_v33  ;;  %v8474_v33 = vld [vmem:[#allocation6 + $0x160] sm:$0xff] }
0x1d94   :  { %v8136_v12 = vadd.f32 %v10487_v9, %v8053_v3  ;;  %v12628_v9 = vpack.c.bf16 %v8445_v15, %v8441_v23  ;;  %v8444_v3 = vld [vmem:[#allocation6 + $0x70] sm:$0xff] }
0x1d95   :  { %v8472_v15 = vld [vmem:[#allocation6 + $0x150] sm:$0xff] }
0x1da4   :  { %v10520_v20 = vpop.f32.mrb[8].mxu1 }
0x1da5   :  { %v10521_v43 = vpop.f32.mrb[9].mxu1 }
0x1da6   :  { %v10522_v31 = vadd.f32 %v10521_v43, %v10520_v20  ;;  %v8449_v20 = vld [vmem:[#allocation6 + $0x98] sm:$0xff] }
0x1da7   :  { %v8453_v43 = vld [vmem:[#allocation6 + $0xb8] sm:$0xff] }
0x1da8   :  { %v8206_v7 = vadd.f32 %v10522_v31, %v8121_v17  ;;  %v10523_v25 = vpop.f32.mrb[10].mxu1  ;;  %v12630_v31 = vpack.c.bf16 %v8444_v3, %v8440_v24  ;;  %v8481_v24 = vld [vmem:[#allocation6 + $0x198] sm:$0xff] }
0x1da9   :  { %v10524_v30 = vpop.f32.mrb[11].mxu1 }
0x1daa   :  { %v10525_v13 = vadd.f32 %v10524_v30, %v10523_v25  ;;  %v16520_v55 = vadd.f32 %v16081_v18, %v8206_v7  ;;  %v12632_v30 = vpack.c.bf16 %v8453_v43, %v8449_v20  ;;  %v8485_v20 = vld [vmem:[#allocation6 + $0x1b8] sm:$0xff]  ;;  %v8478_v43 = vld [vmem:[#allocation6 + $0x180] sm:$0xff] }
0x1dac   :  { %v8211_v57 = vadd.f32 %v10525_v13, %v8126_v46  ;;  %v10526_v48 = vpop.f32.mrb[12].mxu1  ;;  %12017 = vmatprep.mubr.f32.mxu0 %v16520_v55  ;;  %v8448_v46 = vld [vmem:[#allocation6 + $0x90] sm:$0xff] }
0x1dad   :  { %v10527_v40 = vpop.f32.mrb[13].mxu1  ;;  %v8452_v13 = vld [vmem:[#allocation6 + $0xb0] sm:$0xff] }
0x1dae   :  { %v16524_v60 = vadd.f32 %v16083_v29, %v8211_v57  ;;  %v10528_v44 = vadd.f32 %v10527_v40, %v10526_v48  ;;  %v8431_v29 = vld [vmem:[#allocation6 + $0x8] sm:$0xff]  ;;  %v12634_v40 = vpack.c.bf16 %v8452_v13, %v8448_v46  ;;  %v8484_v46 = vld [vmem:[#allocation6 + $0x1b0] sm:$0xff] }
0x1daf   :  { %v12592_v19 = vpack.c.bf16 %v8435_v11, %v8431_v29 }
0x1db0   :  { %v8216_v49 = vadd.f32 %v10528_v44, %v8131_v39  ;;  %v10529_v45 = vpop.f32.mrb[14].mxu1  ;;  %12018 = vmatmul.mubr.f32.vlgmr.msra.gmra.mrb[252].mxu0 %v16524_v60  ;;  %v8455_v44 = vld [vmem:[#allocation6 + $0xc8] sm:$0xff] }
0x1db1   :  { %v10530_v56 = vpop.f32.mrb[15].mxu1  ;;  %12593 = vmatprep.subr.bf16.mxu0 %v12592_v19  ;;  %v8460_v19 = vld [vmem:[#allocation6 + $0xf0] sm:$0xff] }
0x1db2   :  { %v10531_v1 = vadd.f32 %v10530_v56, %v10529_v45  ;;  %v16528_v18 = vadd.f32 %v16087_v54, %v8216_v49  ;;  %v12594_v54 = vpack.c.bf16 %v8434_v61, %v8430_v35  ;;  %v8459_v49 = vld [vmem:[#allocation6 + $0xe8] sm:$0xff]  ;;  %v8457_v45 = vld [vmem:[#allocation6 + $0xd8] sm:$0xff]  ;;  %v12638_v21 = vpack.c.bf16 %v8460_v19, %v8456_v5 }
0x1db3   :  { %v12604_v56 = vpack.c.bf16 %v8459_v49, %v8455_v44  ;;  %v8463_v35 = vld [vmem:[#allocation6 + $0x108] sm:$0xff]  ;;  %v8493_v49 = vld [vmem:[#allocation6 + $0x1f8] sm:$0xff] }
0x1db4   :  { %v8221_v59 = vadd.f32 %v10531_v1, %v8136_v12  ;;  %12020 = vmatprep.mubr.f32.mxu0 %v16528_v18  ;;  %12595 = vmatpush1.bf16.msra.mxu0 %v12594_v54  ;;  %v8461_v12 = vld [vmem:[#allocation6 + $0xf8] sm:$0xff]  ;;  %v8454_v1 = vld [vmem:[#allocation6 + $0xc0] sm:$0xff]  ;;  %v8467_v61 = vld [vmem:[#allocation6 + $0x128] sm:$0xff] }
0x1db5   :  { %v12636_v29 = vpack.c.bf16 %v8461_v12, %v8457_v45  ;;  %v12608_v54 = vpack.c.bf16 %v8467_v61, %v8463_v35  ;;  %v8486_v45 = vld [vmem:[#allocation6 + $0x1c0] sm:$0xff] }
0x1db6   :  { %v16532_v36 = vadd.f32 %v16090_v53, %v8221_v59  ;;  %v12596_v53 = vpack.c.bf16 %v8443_v41, %v8439_v4  ;;  %v8458_v59 = vld [vmem:[#allocation6 + $0xe0] sm:$0xff]  ;;  %v8469_v4 = vld [vmem:[#allocation6 + $0x138] sm:$0xff] }
0x1db7   :  { %v12606_v11 = vpack.c.bf16 %v8458_v59, %v8454_v1  ;;  %v8462_v41 = vld [vmem:[#allocation6 + $0x100] sm:$0xff]  ;;  %v12640_v58 = vpack.c.bf16 %v8469_v4, %v8465_v34  ;;  %v8488_v59 = vld [vmem:[#allocation6 + $0x1d0] sm:$0xff] }
0x1db8   :  { %12021 = vmatmul.mubr.f32.gmra.mrb[254].mxu0 %v16532_v36  ;;  %12597 = vmatprep.subr.bf16.mxu0 %v12596_v53  ;;  %v8466_v53 = vld [vmem:[#allocation6 + $0x120] sm:$0xff] }
0x1db9   :  { %8594 = vmatprep.mubr.f32.mxu0 %v16912_v0  ;;  %12599 = vmatpush1.bf16.msra.mxu0 %v12598_v10  ;;  %v12610_v50 = vpack.c.bf16 %v8466_v53, %v8462_v41  ;;  %v8464_v10 = vld [vmem:[#allocation6 + $0x110] sm:$0xff]  ;;  %v8424_v41 = vsub.s32 3, %v16231_v63  ;;  %v13349_v53 = vld [vmem:[#allocation9] sm:$0xf] }
0x1dba   :  { %12601 = vmatprep.subr.bf16.mxu0 %v12600_v38  ;;  %v12642_v51 = vpack.c.bf16 %v8468_v27, %v8464_v10  ;;  %v8471_v38 = vld [vmem:[#allocation6 + $0x148] sm:$0xff] }
0x1dbd   :  { %12603 = vmatpush1.bf16.msra.mxu0 %v12602_v28  ;;  %v12612_v28 = vpack.c.bf16 %v8475_v2, %v8471_v38  ;;  %v8425_v38 = vrot.slane %v13349_v53, %v8424_v41 }
0x1dbe   :  { %12605 = vmatprep.subr.bf16.mxu0 %v12604_v56  ;;  %v8490_v56 = vld [vmem:[#allocation6 + $0x1e0] sm:$0xff] }
0x1dbf   :  { %v12622_v1 = vpack.c.bf16 %v8490_v56, %v8486_v45  ;;  %v8886_v45 = vld [vmem:[#allocation7 + $0x110] sm:$0xff]  ;;  %v8887_v56 = vld [vmem:[#allocation7 + $0x118] sm:$0xff] }
0x1dc1   :  { %12607 = vmatpush1.bf16.msra.mxu0 %v12606_v11 }
0x1dc2   :  { %12609 = vmatprep.subr.bf16.mxu0 %v12608_v54 }
0x1dc5   :  { %12611 = vmatpush1.bf16.msra.mxu0 %v12610_v50 }
0x1dc6   :  { %12613 = vmatprep.subr.bf16.mxu0 %v12612_v28 }
0x1e83   :  { %v12019_v42 = vpop.f32.mrb[252].mxu0 }
0x1e84   :  { %v16537_v26 = vsub.f32 %v16524_v60, %v12019_v42  ;;  %v8294_v37 = vpop.f32.mrb[253].mxu0  ;;  %v8477_v42 = vld [vmem:[#allocation6 + $0x178] sm:$0xff] }
0x1e85   :  { %v16540_v62 = vsub.f32 %v16520_v55, %v8294_v37  ;;  %v8470_v37 = vld [vmem:[#allocation6 + $0x140] sm:$0xff]  ;;  %v12644_v8 = vpack.c.bf16 %v8477_v42, %v8473_v14 }
0x1e86   :  { %v8318_v6 = vmul.f32 %v16537_v26, %v16537_v26  ;;  %v12614_v23 = vpack.c.bf16 %v8474_v33, %v8470_v37 }
0x1e87   :  { %v8317_v32 = vmul.f32 %v16540_v62, %v16540_v62 }
0x1e88   :  { %12615 = vmatpush1.bf16.msra.mxu0 %v12614_v23 }
0x1e89   :  { %12055 = vmatprep.mubr.f32.mxu1 %v8317_v32  ;;  %v8476_v32 = vld [vmem:[#allocation6 + $0x170] sm:$0xff] }
0x1e8a   :  { %12056 = vmatmul.mubr.f32.vlgmr.msra.gmra.mrb[16].mxu1 %v8318_v6  ;;  %v8479_v6 = vld [vmem:[#allocation6 + $0x188] sm:$0xff] }
0x1e8b   :  { %v12022_v17 = vpop.f32.mrb[254].mxu0  ;;  %12627 = vmatpush1.bf16.msra.mxu1 %v12626_v16  ;;  %v12646_v16 = vpack.c.bf16 %v8476_v32, %v8472_v15  ;;  %v8869_v15 = vld [vmem:[#allocation7 + $0x88] sm:$0xff]  ;;  %v8900_v32 = vld [vmem:[#allocation7 + $0x180] sm:$0xff] }
0x1e8c   :  { %v16547_v7 = vsub.f32 %v16532_v36, %v12022_v17  ;;  %v8304_v25 = vpop.f32.mrb[255].mxu0  ;;  %12629 = vmatprep.subr.bf16.mxu1 %v12628_v9  ;;  %v8483_v9 = vld [vmem:[#allocation6 + $0x1a8] sm:$0xff]  ;;  %v8482_v17 = vld [vmem:[#allocation6 + $0x1a0] sm:$0xff] }
0x1e8d   :  { %v16550_v57 = vsub.f32 %v16528_v18, %v8304_v25  ;;  %v12616_v3 = vpack.c.bf16 %v8483_v9, %v8479_v6  ;;  %v12618_v25 = vpack.c.bf16 %v8482_v17, %v8478_v43  ;;  %v8901_v6 = vld [vmem:[#allocation7 + $0x188] sm:$0xff]  ;;  %v8852_v9 = vld [vmem:[#allocation7] sm:$0xff] }
0x1e8e   :  { %v8320_v39 = vmul.f32 %v16547_v7, %v16547_v7  ;;  %v8884_v43 = vld [vmem:[#allocation7 + $0x100] sm:$0xff]  ;;  %v8885_v17 = vld [vmem:[#allocation7 + $0x108] sm:$0xff] }
0x1e8f   :  { %v8319_v48 = vmul.f32 %v16550_v57, %v16550_v57  ;;  %12631 = vmatpush1.bf16.msra.mxu1 %v12630_v31  ;;  %v12648_v31 = vpack.c.bf16 %v8485_v20, %v8481_v24  ;;  %12617 = vmatprep.subr.bf16.mxu0 %v12616_v3  ;;  %v8853_v24 = vld [vmem:[#allocation7 + $0x8] sm:$0xff]  ;;  %v12688_v3 = vpack.c.bf16 %v8901_v6, %v8900_v32  ;;  %v8892_v32 = vld [vmem:[#allocation7 + $0x140] sm:$0xff] }
0x1e90   :  { %12633 = vmatprep.subr.bf16.mxu1 %v12632_v30  ;;  %v8480_v30 = vld [vmem:[#allocation6 + $0x190] sm:$0xff]  ;;  %12619 = vmatpush1.bf16.msra.mxu0 %v12618_v25  ;;  %v12658_v20 = vpack.c.bf16 %v8853_v24, %v8852_v9  ;;  %v8879_v24 = vld [vmem:[#allocation7 + $0xd8] sm:$0xff] }
0x1e91   :  { %12058 = vmatprep.mubr.f32.mxu1 %v8319_v48  ;;  %v12650_v13 = vpack.c.bf16 %v8484_v46, %v8480_v30  ;;  %v8487_v48 = vld [vmem:[#allocation6 + $0x1c8] sm:$0xff]  ;;  %v8870_v25 = vld [vmem:[#allocation7 + $0x90] sm:$0xff]  ;;  %v8871_v30 = vld [vmem:[#allocation7 + $0x98] sm:$0xff] }
0x1e92   :  { %12059 = vmatmul.mubr.f32.gmra.mrb[18].mxu1 %v8320_v39  ;;  %v8489_v39 = vld [vmem:[#allocation6 + $0x1d8] sm:$0xff]  ;;  %v8902_v46 = vld [vmem:[#allocation7 + $0x190] sm:$0xff] }
0x1e93   :  { %12635 = vmatpush1.bf16.msra.mxu1 %v12634_v40  ;;  %8683 = vmatprep.mubr.f32.mxu1 %v16912_v0  ;;  %v8491_v40 = vld [vmem:[#allocation6 + $0x1e8] sm:$0xff]  ;;  %v12652_v12 = vpack.c.bf16 %v8493_v49, %v8489_v39  ;;  %v8855_v39 = vld [vmem:[#allocation7 + $0x18] sm:$0xff]  ;;  %v8878_v9 = vld [vmem:[#allocation7 + $0xd0] sm:$0xff] }
0x1e94   :  { %12637 = vmatprep.subr.bf16.mxu1 %v12636_v29  ;;  %v12620_v44 = vpack.c.bf16 %v8491_v40, %v8487_v48  ;;  %v8492_v29 = vld [vmem:[#allocation6 + $0x1f0] sm:$0xff]  ;;  %v8903_v48 = vld [vmem:[#allocation7 + $0x198] sm:$0xff] }
0x1e95   :  { %v12654_v11 = vpack.c.bf16 %v8492_v29, %v8488_v59  ;;  %v8854_v40 = vld [vmem:[#allocation7 + $0x10] sm:$0xff]  ;;  %v8873_v59 = vld [vmem:[#allocation7 + $0xa8] sm:$0xff]  ;;  %v8904_v29 = vld [vmem:[#allocation7 + $0x1a0] sm:$0xff] }
0x1e96   :  { %12621 = vmatprep.subr.bf16.mxu0 %v12620_v44  ;;  %v12692_v44 = vpack.c.bf16 %v8903_v48, %v8902_v46  ;;  %v12662_v49 = vpack.c.bf16 %v8855_v39, %v8854_v40  ;;  %v8894_v46 = vld [vmem:[#allocation7 + $0x150] sm:$0xff]  ;;  %v8880_v40 = vld [vmem:[#allocation7 + $0xe0] sm:$0xff]  ;;  %v8881_v39 = vld [vmem:[#allocation7 + $0xe8] sm:$0xff] }
0x1e97   :  { %12639 = vmatpush1.bf16.msra.mxu1 %v12638_v21  ;;  %12623 = vmatpush1.bf16.msra.mxu0 %v12622_v1  ;;  %v8872_v1 = vld [vmem:[#allocation7 + $0xa0] sm:$0xff] }
0x1e98   :  { %12641 = vmatprep.subr.bf16.mxu1 %v12640_v58  ;;  %v8417_v58 = vrot.slane %v13349_v53, %v7634_v22  ;;  %v8874_v53 = vld [vmem:[#allocation7 + $0xb0] sm:$0xff] }
0x1e9b   :  { %12643 = vmatpush1.bf16.msra.mxu1 %v12642_v51 }
0x1e9c   :  { %12645 = vmatprep.subr.bf16.mxu1 %v12644_v8 }
0x1e9f   :  { %12647 = vmatpush1.bf16.msra.mxu1 %v12646_v16 }
0x1ea0   :  { %12649 = vmatprep.subr.bf16.mxu1 %v12648_v31  ;;  %v12690_v31 = vpack.c.bf16 %v8885_v17, %v8884_v43  ;;  %v8911_v43 = vld [vmem:[#allocation7 + $0x1d8] sm:$0xff]  ;;  %v8862_v17 = vld [vmem:[#allocation7 + $0x50] sm:$0xff] }
0x1ea3   :  { %12651 = vmatpush1.bf16.msra.mxu1 %v12650_v13  ;;  %v12660_v13 = vpack.c.bf16 %v8871_v30, %v8870_v25 }
0x1ea4   :  { %12653 = vmatprep.subr.bf16.mxu1 %v12652_v12  ;;  %v12694_v12 = vpack.c.bf16 %v8887_v56, %v8886_v45  ;;  %v8913_v45 = vld [vmem:[#allocation7 + $0x1e8] sm:$0xff]  ;;  %v8864_v56 = vld [vmem:[#allocation7 + $0x60] sm:$0xff] }
0x1ea7   :  { %12655 = vmatpush1.bf16.msra.mxu1 %v12654_v11  ;;  %v12664_v11 = vpack.c.bf16 %v8873_v59, %v8872_v1 }
0x1ea8   :  { %12689 = vmatprep.subr.bf16.mxu1 %v12688_v3  ;;  %v8910_v3 = vld [vmem:[#allocation7 + $0x1d0] sm:$0xff] }
0x1ea9   :  { %v12708_v25 = vpack.c.bf16 %v8911_v43, %v8910_v3 }
0x1f5d   :  { %v12057_v5 = vpop.f32.mrb[16].mxu1 }
0x1f5e   :  { %v8393_v19 = vadd.f32 1e-05, %v12057_v5  ;;  %v8387_v21 = vpop.f32.mrb[17].mxu1  ;;  %v8905_v5 = vld [vmem:[#allocation7 + $0x1a8] sm:$0xff] }
0x1f5f   :  { %v8388_v35 = vadd.f32 1e-05, %v8387_v21  ;;  %v8856_v21 = vld [vmem:[#allocation7 + $0x20] sm:$0xff] }
0x1f60   :  { %13283 = vrsqrt.f32 %v8393_v19  ;;  %v12696_v19 = vpack.c.bf16 %v8905_v5, %v8904_v29  ;;  %v8896_v29 = vld [vmem:[#allocation7 + $0x160] sm:$0xff] }
0x1f61   :  { %13285 = vrsqrt.f32 %v8388_v35  ;;  %v8857_v35 = vld [vmem:[#allocation7 + $0x28] sm:$0xff] }
0x1f65   :  { %v12060_v61 = vpop.f32.mrb[18].mxu1 }
0x1f66   :  { %v8403_v34 = vadd.f32 1e-05, %v12060_v61  ;;  %v8397_v54 = vpop.f32.mrb[19].mxu1  ;;  %v8888_v61 = vld [vmem:[#allocation7 + $0x120] sm:$0xff] }
0x1f67   :  { %v8398_v4 = vadd.f32 1e-05, %v8397_v54  ;;  %v8889_v54 = vld [vmem:[#allocation7 + $0x128] sm:$0xff] }
0x1f68   :  { %13287 = vrsqrt.f32 %v8403_v34  ;;  %v12666_v34 = vpack.c.bf16 %v8857_v35, %v8856_v21  ;;  %v8883_v21 = vld [vmem:[#allocation7 + $0xf8] sm:$0xff]  ;;  %v8914_v35 = vld [vmem:[#allocation7 + $0x1f0] sm:$0xff] }
0x1f69   :  { %13289 = vrsqrt.f32 %v8398_v4  ;;  %v12698_v4 = vpack.c.bf16 %v8889_v54, %v8888_v61  ;;  %v8866_v54 = vld [vmem:[#allocation7 + $0x70] sm:$0xff] }
0x1f6a   :  { %v13284_v50 = vpop.eup %13283 }
0x1f6b   :  { %v13286_v10 = vpop.eup %13285  ;;  %v8411_v27 = vmul.f32 %v13284_v50, %v16537_v26  ;;  %v8906_v50 = vld [vmem:[#allocation7 + $0x1b0] sm:$0xff] }
0x1f6c   :  { %v8410_v51 = vmul.f32 %v13286_v10, %v16540_v62 }
0x1f6d   :  { %v8419_v2 = vmul.f32 %v8417_v58, %v8411_v27  ;;  %v8907_v27 = vld [vmem:[#allocation7 + $0x1b8] sm:$0xff] }
0x1f6e   :  { %v8418_v14 = vmul.f32 %v8417_v58, %v8410_v51  ;;  %v12700_v51 = vpack.c.bf16 %v8907_v27, %v8906_v50  ;;  %v8898_v50 = vld [vmem:[#allocation7 + $0x170] sm:$0xff] }
0x1f6f   :  { %v8427_v26 = vadd.f32 %v8425_v38, %v8419_v2  ;;  %v8859_v2 = vld [vmem:[#allocation7 + $0x38] sm:$0xff] }
0x1f70   :  { %v8426_v28 = vadd.f32 %v8425_v38, %v8418_v14  ;;  %v8890_v14 = vld [vmem:[#allocation7 + $0x130] sm:$0xff] }
0x1f72   :  { %v13288_v42 = vpop.eup %13287  ;;  %8595 = vmatmul.mubr.f32.vlgmr.msra.gmra.mrb[0].mxu0 %v8426_v28  ;;  %8684 = vmatmul.mubr.f32.vlgmr.msra.gmra.mrb[20].mxu1 %v8426_v28 }
0x1f73   :  { %v13290_v37 = vpop.eup %13289  ;;  %v8413_v33 = vmul.f32 %v13288_v42, %v16547_v7  ;;  %8600 = vmatprep.mubr.f32.mxu0 %v16912_v0  ;;  %8689 = vmatprep.mubr.f32.mxu1 %v16912_v0  ;;  %v8891_v42 = vld [vmem:[#allocation7 + $0x138] sm:$0xff] }
0x1f74   :  { %v8412_v22 = vmul.f32 %v13290_v37, %v16550_v57  ;;  %v8868_v57 = vld [vmem:[#allocation7 + $0x80] sm:$0xff]  ;;  %12691 = vmatpush3.bf16.msra.mxu1 %v12690_v31  ;;  %v12702_v37 = vpack.c.bf16 %v8891_v42, %v8890_v14  ;;  %v8863_v31 = vld [vmem:[#allocation7 + $0x58] sm:$0xff]  ;;  %v8504_v14 = vsub.s32 5, %v16231_v63 }
0x1f75   :  { %v8421_v62 = vmul.f32 %v8417_v58, %v8413_v33  ;;  %v12656_v16 = vpack.c.bf16 %v8869_v15, %v8868_v57  ;;  %12693 = vmatprep.subr.bf16.mxu1 %v12692_v44  ;;  %v8876_v33 = vld [vmem:[#allocation7 + $0xc0] sm:$0xff]  ;;  %v12678_v30 = vpack.c.bf16 %v8863_v31, %v8862_v17 }
0x1f76   :  { %8601 = vmatmul.mubr.f32.gmra.mrb[2].mxu0 %v8427_v26  ;;  %8690 = vmatmul.mubr.f32.gmra.mrb[22].mxu1 %v8427_v26  ;;  %v8420_v8 = vmul.f32 %v8417_v58, %v8412_v22  ;;  %v8875_v58 = vld [vmem:[#allocation7 + $0xb8] sm:$0xff]  ;;  %v8877_v22 = vld [vmem:[#allocation7 + $0xc8] sm:$0xff]  ;;  %v8908_v26 = vld [vmem:[#allocation7 + $0x1c0] sm:$0xff] }
0x1f77   :  { %8606 = vmatprep.mubr.f32.mxu0 %v16912_v0  ;;  %8695 = vmatprep.mubr.f32.mxu1 %v16912_v0  ;;  %v8429_v7 = vadd.f32 %v8425_v38, %v8421_v62  ;;  %v12668_v10 = vpack.c.bf16 %v8875_v58, %v8874_v53  ;;  %v12672_v62 = vpack.c.bf16 %v8877_v22, %v8876_v33  ;;  %v8912_v44 = vld [vmem:[#allocation7 + $0x1e0] sm:$0xff] }
0x1f78   :  { %v8428_v23 = vadd.f32 %v8425_v38, %v8420_v8  ;;  %12657 = vmatprep.subr.bf16.mxu0 %v12656_v16  ;;  %12695 = vmatpush3.bf16.msra.mxu1 %v12694_v12  ;;  %v8858_v38 = vld [vmem:[#allocation7 + $0x30] sm:$0xff]  ;;  %v8909_v8 = vld [vmem:[#allocation7 + $0x1c8] sm:$0xff]  ;;  %v12712_v1 = vpack.c.bf16 %v8913_v45, %v8912_v44 }
0x1f79   :  { %12659 = vmatpush3.bf16.msra.mxu0 %v12658_v20  ;;  %12697 = vmatprep.subr.bf16.mxu1 %v12696_v19  ;;  %v12670_v28 = vpack.c.bf16 %v8859_v2, %v8858_v38  ;;  %v12704_v57 = vpack.c.bf16 %v8909_v8, %v8908_v26  ;;  %v8893_v16 = vld [vmem:[#allocation7 + $0x148] sm:$0xff]  ;;  %v12676_v20 = vpack.c.bf16 %v8879_v24, %v8878_v9  ;;  %v8882_v19 = vld [vmem:[#allocation7 + $0xf0] sm:$0xff] }
0x1f7a   :  { %8607 = vmatmul.mubr.f32.gmra.mrb[4].mxu0 %v8428_v23  ;;  %8696 = vmatmul.mubr.f32.gmra.mrb[24].mxu1 %v8428_v23  ;;  %v8860_v23 = vld [vmem:[#allocation7 + $0x40] sm:$0xff]  ;;  %v12706_v6 = vpack.c.bf16 %v8893_v16, %v8892_v32  ;;  %v8865_v12 = vld [vmem:[#allocation7 + $0x68] sm:$0xff]  ;;  %v12684_v61 = vpack.c.bf16 %v8883_v21, %v8882_v19 }
0x1f7b   :  { %8612 = vmatprep.mubr.f32.mxu0 %v16912_v0  ;;  %8701 = vmatprep.mubr.f32.mxu1 %v16912_v0  ;;  %v12682_v59 = vpack.c.bf16 %v8865_v12, %v8864_v56  ;;  %v9095_v38 = vld [vmem:[%s16827_s14 + $0x8] sm:$0xff] }
0x1f7c   :  { %12661 = vmatprep.subr.bf16.mxu0 %v12660_v13  ;;  %12699 = vmatpush3.bf16.msra.mxu1 %v12698_v4  ;;  %v8895_v13 = vld [vmem:[#allocation7 + $0x158] sm:$0xff]  ;;  %v13350_v42 = vld [vmem:[#allocation10] sm:$0xff] }
0x1f7d   :  { %12663 = vmatpush3.bf16.msra.mxu0 %v12662_v49  ;;  %12701 = vmatprep.subr.bf16.mxu1 %v12700_v51  ;;  %v12710_v48 = vpack.c.bf16 %v8895_v13, %v8894_v46  ;;  %v12680_v49 = vpack.c.bf16 %v8881_v39, %v8880_v40  ;;  %v8867_v4 = vld [vmem:[#allocation7 + $0x78] sm:$0xff]  ;;  %v8505_v33 = vrot.slane %v13350_v42, %v8504_v14 }
0x1f7e   :  { %8613 = vmatmul.mubr.f32.gmra.mrb[6].mxu0 %v8429_v7  ;;  %8702 = vmatmul.mubr.f32.gmra.mrb[26].mxu1 %v8429_v7  ;;  %v8861_v7 = vld [vmem:[#allocation7 + $0x48] sm:$0xff]  ;;  %v12686_v58 = vpack.c.bf16 %v8867_v4, %v8866_v54  ;;  %v9094_v51 = vld [vmem:[%s16827_s14] sm:$0xff]  ;;  %v8501_v22 = vrot.slane %v13350_v42, %v8424_v41 }
0x1f7f   :  { %12665 = vmatprep.subr.bf16.mxu0 %v12664_v11  ;;  %v12674_v15 = vpack.c.bf16 %v8861_v7, %v8860_v23  ;;  %v8897_v11 = vld [vmem:[#allocation7 + $0x168] sm:$0xff]  ;;  %v16578_v2 = vpack.c.bf16 %v9095_v38, %v9094_v51  ;;  %v16590_v8 = vrot.slane %v8505_v33, %v16237_v52 }
0x1f80   :  { %12703 = vmatpush3.bf16.msra.mxu1 %v12702_v37  ;;  %v12714_v5 = vpack.c.bf16 %v8897_v11, %v8896_v29  ;;  %v8497_v37 = vrot.slane %v13350_v42, %v16237_v52  ;;  %v16593_v23 = vrot.slane %v8501_v22, %v16237_v52 }
0x1f81   :  { %12667 = vmatpush3.bf16.msra.mxu0 %v12666_v34  ;;  %12705 = vmatprep.subr.bf16.mxu1 %v12704_v57  ;;  %v8915_v34 = vld [vmem:[#allocation7 + $0x1f8] sm:$0xff] }
0x1f82   :  { %12669 = vmatprep.subr.bf16.mxu0 %v12668_v10  ;;  %v12716_v53 = vpack.c.bf16 %v8915_v34, %v8914_v35  ;;  %v8899_v10 = vld [vmem:[#allocation7 + $0x178] sm:$0xff] }
0x1f83   :  { %v12718_v27 = vpack.c.bf16 %v8899_v10, %v8898_v50 }
0x1f84   :  { %12707 = vmatpush3.bf16.msra.mxu1 %v12706_v6 }
0x1f85   :  { %12671 = vmatpush3.bf16.msra.mxu0 %v12670_v28  ;;  %12709 = vmatprep.subr.bf16.mxu1 %v12708_v25  ;;  %v8508_v28 = vsub.s32 7, %v16231_v63 }
0x1f86   :  { %12673 = vmatprep.subr.bf16.mxu0 %v12672_v62  ;;  %v16587_v62 = vrot.slane %v8497_v37, %v16237_v52 }
0x1f87   :  { %v8509_v26 = vrot.slane %v13350_v42, %v8508_v28 }
0x1f88   :  { %12711 = vmatpush3.bf16.msra.mxu1 %v12710_v48 }
0x1f89   :  { %12675 = vmatpush3.bf16.msra.mxu0 %v12674_v15  ;;  %12713 = vmatprep.subr.bf16.mxu1 %v12712_v1  ;;  %v16596_v7 = vrot.slane %v8509_v26, %v16237_v52 }
0x1f8a   :  { %12677 = vmatprep.subr.bf16.mxu0 %v12676_v20 }
0x1f8c   :  { %12715 = vmatpush3.bf16.msra.mxu1 %v12714_v5 }
0x1f8d   :  { %12679 = vmatpush3.bf16.msra.mxu0 %v12678_v30  ;;  %12717 = vmatprep.subr.bf16.mxu1 %v12716_v53 }
0x1f8e   :  { %12681 = vmatprep.subr.bf16.mxu0 %v12680_v49 }
0x1f90   :  { %12719 = vmatpush3.bf16.msra.mxu1 %v12718_v27 }
0x1f91   :  { %12683 = vmatpush3.bf16.msra.mxu0 %v12682_v59 }
0x1f92   :  { %12685 = vmatprep.subr.bf16.mxu0 %v12684_v61 }
0x1f95   :  { %12687 = vmatpush3.bf16.msra.mxu0 %v12686_v58 }
0x1f96   :  { %12721 = vmatprep.subr.bf16.mxu0 %v16578_v2 }
0x2045   :  { %v8596_v57 = vpop.f32.mrb[0].mxu0  ;;  %v8685_v15 = vpop.f32.mrb[20].mxu1 }
0x2046   :  { %v16599_v32 = vadd.f32 %v8596_v57, %v16587_v62  ;;  %v16602_v63 = vadd.f32 %v8685_v15, %v16590_v8  ;;  %v8598_v41 = vpop.f32.mrb[1].mxu0  ;;  %v8687_v16 = vpop.f32.mrb[21].mxu1 }
0x2047   :  { %v16605_v6 = vadd.f32 %v8598_v41, %v16593_v23  ;;  %v16608_v9 = vadd.f32 %v8687_v16, %v16596_v7 }
0x2048   :  { %v8708_v24 = vmul.f32 %v16599_v32, %v16599_v32  ;;  %v8710_v3 = vmul.f32 %v16602_v63, %v16602_v63 }
0x2049   :  { %v8709_v20 = vmul.f32 %v16605_v6, %v16605_v6  ;;  %v8711_v43 = vmul.f32 %v16608_v9, %v16608_v9  ;;  %v8602_v17 = vpop.f32.mrb[2].mxu0  ;;  %v8691_v31 = vpop.f32.mrb[22].mxu1 }
0x204a   :  { %v8724_v25 = vmul.f32 %v8708_v24, %v16599_v32  ;;  %v8726_v30 = vmul.f32 %v8710_v3, %v16602_v63  ;;  %v16621_v46 = vadd.f32 %v8602_v17, %v16587_v62  ;;  %v16624_v13 = vadd.f32 %v8691_v31, %v16590_v8  ;;  %v8604_v48 = vpop.f32.mrb[3].mxu0  ;;  %v8693_v40 = vpop.f32.mrb[23].mxu1 }
0x204b   :  { %v8725_v39 = vmul.f32 %v8709_v20, %v16605_v6  ;;  %v8727_v44 = vmul.f32 %v8711_v43, %v16608_v9  ;;  %v16629_v49 = vadd.f32 %v8604_v48, %v16593_v23  ;;  %v16632_v45 = vadd.f32 %v8693_v40, %v16596_v7 }
0x204c   :  { %v8740_v56 = vmul.f32 0.044715, %v8724_v25  ;;  %v8742_v12 = vmul.f32 0.044715, %v8726_v30  ;;  %v8712_v1 = vmul.f32 %v16621_v46, %v16621_v46  ;;  %v8714_v59 = vmul.f32 %v16624_v13, %v16624_v13 }
0x204d   :  { %v8741_v29 = vmul.f32 0.044715, %v8725_v39  ;;  %v8713_v11 = vmul.f32 %v16629_v49, %v16629_v49  ;;  %v8715_v5 = vmul.f32 %v16632_v45, %v16632_v45  ;;  %v8608_v19 = vpop.f32.mrb[4].mxu0  ;;  %v8697_v21 = vpop.f32.mrb[24].mxu1  ;;  %v8743_v58 = vmul.f32 0.044715, %v8727_v44 }
0x204e   :  { %v8756_v35 = vadd.f32 %v8740_v56, %v16599_v32  ;;  %v8758_v61 = vadd.f32 %v8742_v12, %v16602_v63  ;;  %v8728_v34 = vmul.f32 %v8712_v1, %v16621_v46  ;;  %v8730_v54 = vmul.f32 %v8714_v59, %v16624_v13  ;;  %v8610_v4 = vpop.f32.mrb[5].mxu0  ;;  %v8699_v53 = vpop.f32.mrb[25].mxu1 }
0x204f   :  { %v8729_v50 = vmul.f32 %v8713_v11, %v16629_v49  ;;  %v8757_v27 = vadd.f32 %v8741_v29, %v16605_v6  ;;  %v16649_v38 = vadd.f32 %v8608_v19, %v16587_v62  ;;  %v16652_v28 = vadd.f32 %v8697_v21, %v16590_v8 }
0x2050   :  { %v8772_v10 = vmul.f32 0.7978846, %v8756_v35  ;;  %v8744_v51 = vmul.f32 0.044715, %v8728_v34  ;;  %v8746_v14 = vmul.f32 0.044715, %v8730_v54  ;;  %v8731_v33 = vmul.f32 %v8715_v5, %v16632_v45 }
0x2051   :  { %v8774_v42 = vmul.f32 0.7978846, %v8758_v61  ;;  %v8614_v22 = vpop.f32.mrb[6].mxu0  ;;  %v8703_v26 = vpop.f32.mrb[26].mxu1  ;;  %v8745_v57 = vmul.f32 0.044715, %v8729_v50  ;;  %v8716_v15 = vmul.f32 %v16649_v38, %v16649_v38  ;;  %v8718_v41 = vmul.f32 %v16652_v28, %v16652_v28 }
0x2052   :  { %v8760_v37 = vadd.f32 %v8744_v51, %v16621_v46  ;;  %v8616_v16 = vpop.f32.mrb[7].mxu0  ;;  %v8705_v24 = vpop.f32.mrb[27].mxu1  ;;  %13291 = vtanh.f32 %v8772_v10  ;;  %v8773_v3 = vmul.f32 0.7978846, %v8757_v27  ;;  %v8759_v20 = vadd.f32 %v8743_v58, %v16608_v9 }
0x2053   :  { %v16662_v43 = vadd.f32 %v8610_v4, %v16593_v23  ;;  %v8762_v17 = vadd.f32 %v8746_v14, %v16624_v13  ;;  %v8732_v31 = vmul.f32 %v8716_v15, %v16649_v38  ;;  %v8734_v25 = vmul.f32 %v8718_v41, %v16652_v28 }
0x2054   :  { %v16668_v30 = vadd.f32 %v8699_v53, %v16596_v7  ;;  %13293 = vtanh.f32 %v8774_v42  ;;  %v8776_v48 = vmul.f32 0.7978846, %v8760_v37  ;;  %v8747_v40 = vmul.f32 0.044715, %v8731_v33 }
0x2055   :  { %v8717_v39 = vmul.f32 %v16662_v43, %v16662_v43  ;;  %v8761_v44 = vadd.f32 %v8745_v57, %v16629_v49  ;;  %v8748_v56 = vmul.f32 0.044715, %v8732_v31  ;;  %v8750_v12 = vmul.f32 0.044715, %v8734_v25 }
0x2056   :  { %v8719_v1 = vmul.f32 %v16668_v30, %v16668_v30  ;;  %v16677_v29 = vadd.f32 %v8614_v22, %v16587_v62  ;;  %v16680_v11 = vadd.f32 %v8703_v26, %v16590_v8  ;;  %v16683_v5 = vadd.f32 %v8616_v16, %v16593_v23 }
0x2057   :  { %v8733_v59 = vmul.f32 %v8717_v39, %v16662_v43  ;;  %v8778_v19 = vmul.f32 0.7978846, %v8762_v17  ;;  %v8764_v21 = vadd.f32 %v8748_v56, %v16649_v38  ;;  %v16688_v61 = vadd.f32 %v8705_v24, %v16596_v7 }
0x2058   :  { %v8735_v35 = vmul.f32 %v8719_v1, %v16668_v30  ;;  %v8766_v34 = vadd.f32 %v8750_v12, %v16652_v28  ;;  %v8720_v62 = vmul.f32 %v16677_v29, %v16677_v29  ;;  %v8722_v8 = vmul.f32 %v16680_v11, %v16680_v11 }
0x2059   :  { %v8721_v23 = vmul.f32 %v16683_v5, %v16683_v5  ;;  %13295 = vtanh.f32 %v8776_v48  ;;  %v8780_v54 = vmul.f32 0.7978846, %v8764_v21  ;;  %v8749_v4 = vmul.f32 0.044715, %v8733_v59 }
0x205a   :  { %v8723_v53 = vmul.f32 %v16688_v61, %v16688_v61  ;;  %v8751_v58 = vmul.f32 0.044715, %v8735_v35  ;;  %v8736_v7 = vmul.f32 %v8720_v62, %v16677_v29  ;;  %v8738_v50 = vmul.f32 %v8722_v8, %v16680_v11 }
0x205b   :  { %v8737_v10 = vmul.f32 %v8721_v23, %v16683_v5  ;;  %v8775_v27 = vmul.f32 0.7978846, %v8759_v20  ;;  %13297 = vtanh.f32 %v8778_v19  ;;  %v8763_v42 = vadd.f32 %v8747_v40, %v16632_v45 }
0x205c   :  { %v8739_v51 = vmul.f32 %v8723_v53, %v16688_v61  ;;  %v13292_v14 = vpop.eup %13291  ;;  %13299 = vtanh.f32 %v8780_v54  ;;  %v8782_v37 = vmul.f32 0.7978846, %v8766_v34  ;;  %v8752_v33 = vmul.f32 0.044715, %v8736_v7  ;;  %v9096_v7 = vld [vmem:[%s16827_s14 + $0x10] sm:$0xff] }
0x205d   :  { %v8777_v22 = vmul.f32 0.7978846, %v8761_v44  ;;  %v8765_v26 = vadd.f32 %v8749_v4, %v16662_v43  ;;  %v8754_v57 = vmul.f32 0.044715, %v8738_v50  ;;  %13301 = vtanh.f32 %v8773_v3  ;;  %v9097_v50 = vld [vmem:[%s16827_s14 + $0x18] sm:$0xff] }
0x205e   :  { %v13294_v15 = vpop.eup %13293  ;;  %v8767_v41 = vadd.f32 %v8751_v58, %v16668_v30  ;;  %v8768_v16 = vadd.f32 %v8752_v33, %v16677_v29  ;;  %v8753_v24 = vmul.f32 0.044715, %v8737_v10  ;;  %v8755_v20 = vmul.f32 0.044715, %v8739_v51 }
0x205f   :  { %v8770_v17 = vadd.f32 %v8754_v57, %v16680_v11  ;;  %13303 = vtanh.f32 %v8775_v27  ;;  %v8779_v31 = vmul.f32 0.7978846, %v8763_v42  ;;  %v8781_v40 = vmul.f32 0.7978846, %v8765_v26  ;;  %v9098_v26 = vld [vmem:[%s16827_s14 + $0x20] sm:$0xff]  ;;  %v9099_v57 = vld [vmem:[%s16827_s14 + $0x28] sm:$0xff] }
0x2060   :  { %13305 = vtanh.f32 %v8782_v37  ;;  %v8784_v25 = vmul.f32 0.7978846, %v8768_v16  ;;  %v8769_v48 = vadd.f32 %v8753_v24, %v16683_v5  ;;  %v8771_v44 = vadd.f32 %v8755_v20, %v16688_v61 }
0x2061   :  { %v8786_v39 = vmul.f32 0.7978846, %v8770_v17  ;;  %13307 = vtanh.f32 %v8777_v22  ;;  %v8783_v3 = vmul.f32 0.7978846, %v8767_v41  ;;  %v8804_v19 = vadd.f32 1.0, %v13292_v14 }
0x2062   :  { %13309 = vtanh.f32 %v8784_v25  ;;  %v8785_v12 = vmul.f32 0.7978846, %v8769_v48  ;;  %v8787_v1 = vmul.f32 0.7978846, %v8771_v44  ;;  %v8806_v34 = vadd.f32 1.0, %v13294_v15  ;;  %v9100_v44 = vld [vmem:[%s16827_s14 + $0x30] sm:$0xff] }
0x2063   :  { %v13296_v56 = vpop.eup %13295  ;;  %13311 = vtanh.f32 %v8786_v39  ;;  %v8820_v54 = vmul.f32 0.5, %v8804_v19  ;;  %v12724_v24 = vpack.c.bf16 %v9097_v50, %v9096_v7  ;;  %v12728_v39 = vpack.c.bf16 %v9099_v57, %v9098_v26  ;;  %v9108_v26 = vld [vmem:[%s16827_s14 + $0x70] sm:$0xff]  ;;  %v9109_v57 = vld [vmem:[%s16827_s14 + $0x78] sm:$0xff] }
0x2064   :  { %13313 = vtanh.f32 %v8779_v31  ;;  %v8808_v62 = vadd.f32 1.0, %v13296_v56  ;;  %v8822_v27 = vmul.f32 0.5, %v8806_v34 }
0x2065   :  { %v13298_v59 = vpop.eup %13297  ;;  %13315 = vtanh.f32 %v8781_v40  ;;  %v8836_v41 = vmul.f32 %v8820_v54, %v16599_v32  ;;  %v9101_v32 = vld [vmem:[%s16827_s14 + $0x38] sm:$0xff] }
0x2066   :  { %v13300_v21 = vpop.eup %13299  ;;  %13317 = vtanh.f32 %v8783_v3  ;;  %v8810_v51 = vadd.f32 1.0, %v13298_v59  ;;  %v8824_v42 = vmul.f32 0.5, %v8808_v62  ;;  %v8838_v25 = vmul.f32 %v8822_v27, %v16602_v63 }
0x2067   :  { %v13302_v35 = vpop.eup %13301  ;;  %13319 = vtanh.f32 %v8785_v12  ;;  %v8812_v16 = vadd.f32 1.0, %v13300_v21 }
0x2068   :  { %v8805_v8 = vadd.f32 1.0, %v13302_v35  ;;  %13321 = vtanh.f32 %v8787_v1  ;;  %v8826_v48 = vmul.f32 0.5, %v8810_v51  ;;  %v8840_v56 = vmul.f32 %v8824_v42, %v16621_v46 }
0x2069   :  { %v13304_v23 = vpop.eup %13303  ;;  %v8828_v59 = vmul.f32 0.5, %v8812_v16  ;;  %v13351_v16 = vld [vmem:[#allocation12] sm:$0x3] }
0x206a   :  { %v13306_v4 = vpop.eup %13305  ;;  %v8821_v53 = vmul.f32 0.5, %v8805_v8  ;;  %v8807_v58 = vadd.f32 1.0, %v13304_v23  ;;  %v12732_v23 = vpack.c.bf16 %v9101_v32, %v9100_v44  ;;  %v8842_v46 = vmul.f32 %v8826_v48, %v16624_v13 }
0x206b   :  { %v13308_v10 = vpop.eup %13307  ;;  %v8844_v50 = vmul.f32 %v8828_v59, %v16649_v38 }
0x206c   :  { %v13310_v14 = vpop.eup %13309  ;;  %v8837_v37 = vmul.f32 %v8821_v53, %v16605_v6  ;;  %v8823_v33 = vmul.f32 0.5, %v8807_v58  ;;  %v8809_v22 = vadd.f32 1.0, %v13308_v10 }
0x206d   :  { %v13312_v15 = vpop.eup %13311  ;;  %v8816_v19 = vadd.f32 1.0, %v13310_v14 }
0x206e   :  { %v13314_v20 = vpop.eup %13313  ;;  %8984 = vmatprep.mubr.f32.mxu0 %v8837_v37  ;;  %v8839_v17 = vmul.f32 %v8823_v33, %v16608_v9  ;;  %v8825_v6 = vmul.f32 0.5, %v8809_v22  ;;  %v8814_v9 = vadd.f32 1.0, %v13306_v4  ;;  %v8818_v53 = vadd.f32 1.0, %v13312_v15  ;;  %v9107_v33 = vld [vmem:[%s16827_s14 + $0x68] sm:$0xff] }
0x206f   :  { %v13316_v31 = vpop.eup %13315  ;;  %8985 = vmatmul.mubr.f32.vlgmr.msra.gmra.mrb[8].mxu0 %v8836_v41  ;;  %v8811_v40 = vadd.f32 1.0, %v13314_v20  ;;  %v8832_v10 = vmul.f32 0.5, %v8816_v19  ;;  %v12748_v15 = vpack.c.bf16 %v9109_v57, %v9108_v26  ;;  %v9361_v26 = vld [vmem:[#allocation15] sm:$0xff]  ;;  %v9362_v57 = vld [vmem:[#allocation15 + $0x8] sm:$0xff] }
0x2070   :  { %v13318_v3 = vpop.eup %13317  ;;  %9069 = vmatprep.mubr.f32.mxu1 %v8839_v17  ;;  %v8841_v12 = vmul.f32 %v8825_v6, %v16629_v49  ;;  %v8813_v63 = vadd.f32 1.0, %v13316_v31  ;;  %12723 = vmatpush3.bf16.msra.mxu0 %v16578_v2  ;;  %v8830_v2 = vmul.f32 0.5, %v8814_v9  ;;  %v8834_v14 = vmul.f32 0.5, %v8818_v53 }
0x2071   :  { %v13320_v1 = vpop.eup %13319  ;;  %9070 = vmatmul.mubr.f32.vlgmr.msra.gmra.mrb[28].mxu1 %v8838_v25  ;;  %v8827_v21 = vmul.f32 0.5, %v8811_v40  ;;  %v8815_v35 = vadd.f32 1.0, %v13318_v3  ;;  %12725 = vmatprep.subr.bf16.mxu0 %v12724_v24  ;;  %v8848_v42 = vmul.f32 %v8832_v10, %v16677_v29  ;;  %v9105_v29 = vld [vmem:[%s16827_s14 + $0x58] sm:$0xff]  ;;  %v13603_v10 = vmov 0.0|0.0  }
0x2072   :  { %v13322_v34 = vpop.eup %13321  ;;  %8989 = vmatprep.mubr.f32.mxu0 %v8841_v12  ;;  %v8829_v62 = vmul.f32 0.5, %v8813_v63  ;;  %v8817_v8 = vadd.f32 1.0, %v13320_v1  ;;  %v8850_v37 = vmul.f32 %v8834_v14, %v16680_v11  ;;  %v9106_v11 = vld [vmem:[%s16827_s14 + $0x60] sm:$0xff]  ;;  %12752 = vmatprep.subr.bf16.mxu1 %v13603_v10 }
0x2073   :  { %v8843_v54 = vmul.f32 %v8827_v21, %v16632_v45  ;;  %8990 = vmatmul.mubr.f32.gmra.mrb[10].mxu0 %v8840_v56  ;;  %v8831_v49 = vmul.f32 0.5, %v8815_v35  ;;  %v8819_v4 = vadd.f32 1.0, %v13322_v34  ;;  %v9102_v45 = vld [vmem:[%s16827_s14 + $0x40] sm:$0xff]  ;;  %v12744_v22 = vpack.c.bf16 %v9107_v33, %v9106_v11  ;;  %v9201_v11 = vld [vmem:[%s16828_s15 + $0x10] sm:$0xff]  ;;  %v9202_v33 = vld [vmem:[%s16828_s15 + $0x18] sm:$0xff] }
0x2074   :  { %v8845_v58 = vmul.f32 %v8829_v62, %v16662_v43  ;;  %v8833_v7 = vmul.f32 0.5, %v8817_v8  ;;  %12727 = vmatpush3.bf16.msra.mxu0 %v12724_v24  ;;  %v9103_v43 = vld [vmem:[%s16827_s14 + $0x48] sm:$0xff]  ;;  %v8919_v24 = vrot.slane %v13351_v16, %v16237_v52 }
0x2075   :  { %9074 = vmatprep.mubr.f32.mxu1 %v8843_v54  ;;  %v8847_v27 = vmul.f32 %v8831_v49, %v16668_v30  ;;  %v8835_v51 = vmul.f32 0.5, %v8819_v4  ;;  %12729 = vmatprep.subr.bf16.mxu0 %v12728_v39  ;;  %v8846_v30 = vmul.f32 %v8830_v2, %v16652_v28  ;;  %v9104_v28 = vld [vmem:[%s16827_s14 + $0x50] sm:$0xff] }
0x2076   :  { %9075 = vmatmul.mubr.f32.gmra.mrb[30].mxu1 %v8842_v46  ;;  %8994 = vmatprep.mubr.f32.mxu0 %v8845_v58  ;;  %v8849_v13 = vmul.f32 %v8833_v7, %v16683_v5  ;;  %v12736_v5 = vpack.c.bf16 %v9103_v43, %v9102_v45 }
0x2077   :  { %9079 = vmatprep.mubr.f32.mxu1 %v8847_v27  ;;  %8995 = vmatmul.mubr.f32.gmra.mrb[12].mxu0 %v8844_v50  ;;  %v8851_v38 = vmul.f32 %v8835_v51, %v16688_v61  ;;  %v12740_v61 = vpack.c.bf16 %v9105_v29, %v9104_v28  ;;  %v9204_v27 = vld [vmem:[%s16829_s16 + $0x8] sm:$0xff] }
0x2078   :  { %8999 = vmatprep.mubr.f32.mxu0 %v8849_v13  ;;  %12731 = vmatpush3.bf16.msra.mxu0 %v12728_v39 }
0x2079   :  { %12733 = vmatprep.subr.bf16.mxu0 %v12732_v23 }
0x207a   :  { %9080 = vmatmul.mubr.f32.gmra.mrb[32].mxu1 %v8846_v30 }
0x207b   :  { %9084 = vmatprep.mubr.f32.mxu1 %v8851_v38  ;;  %9000 = vmatmul.mubr.f32.gmra.mrb[14].mxu0 %v8848_v42 }
0x207c   :  { %12735 = vmatpush3.bf16.msra.mxu0 %v12732_v23 }
0x207d   :  { %12737 = vmatprep.subr.bf16.mxu0 %v12736_v5 }
0x207e   :  { %9085 = vmatmul.mubr.f32.gmra.mrb[34].mxu1 %v8850_v37  ;;  %v9200_v37 = vld [vmem:[%s16828_s15 + $0x8] sm:$0xff] }
0x207f   :  { %12107 = vmatprep.mubr.msk.f32.mxu1 %vm13601_vm1, %v16912_v0 }
0x2080   :  { %12739 = vmatpush3.bf16.msra.mxu0 %v12736_v5  ;;  %v9199_v5 = vld [vmem:[%s16828_s15] sm:$0xff] }
0x2081   :  { %12741 = vmatprep.subr.bf16.mxu0 %v12740_v61  ;;  %v12759_v29 = vpack.c.bf16 %v9200_v37, %v9199_v5 }
0x2084   :  { %12743 = vmatpush3.bf16.msra.mxu0 %v12740_v61 }
0x2085   :  { %12745 = vmatprep.subr.bf16.mxu0 %v12744_v22 }
0x2088   :  { %12747 = vmatpush3.bf16.msra.mxu0 %v12744_v22  ;;  %v12762_v22 = vpack.c.bf16 %v9202_v33, %v9201_v11 }
0x2089   :  { %12749 = vmatprep.subr.bf16.mxu0 %v12748_v15 }
0x208c   :  { %12751 = vmatpush3.bf16.msra.mxu0 %v12748_v15  ;;  %v12765_v15 = vpack.c.bf16 %v9362_v57, %v9361_v26 }
0x2142   :  { %v10604_v41 = vpop.f32.mrb[8].mxu0 }
0x2143   :  { %v10605_v20 = vpop.f32.mrb[9].mxu0 }
0x2144   :  { %v10648_v17 = vpop.f32.mrb[28].mxu1  ;;  %v10606_v6 = vadd.f32 %v10605_v20, %v10604_v41  ;;  %v9849_v20 = vld [vmem:[#allocation13] ss:$0 sm:$0xff] }
0x2145   :  { %v10649_v31 = vpop.f32.mrb[29].mxu1 }
0x2146   :  { %v8987_v25 = vadd.f32 %v10606_v6, %v8919_v24  ;;  %v10650_v48 = vadd.f32 %v10649_v31, %v10648_v17  ;;  %v10607_v40 = vpop.f32.mrb[10].mxu0 }
0x2147   :  { %v10608_v39 = vpop.f32.mrb[11].mxu0 }
0x2148   :  { %v9072_v44 = vadd.f32 %v10650_v48, %v8987_v25  ;;  %v10609_v32 = vadd.f32 %v10608_v39, %v10607_v40 }
0x2149   :  { %v10651_v3 = vpop.f32.mrb[30].mxu1 }
0x214a   :  { %v8992_v56 = vadd.f32 %v10609_v32, %v8919_v24  ;;  %v10652_v9 = vpop.f32.mrb[31].mxu1  ;;  %v10610_v12 = vpop.f32.mrb[12].mxu0  ;;  %v9090_v63 = vadd.f32 %v9072_v44, %v16520_v55  ;;  %v9850_v44 = vld [vmem:[#allocation16] ss:$0 sm:$0xff] }
0x214b   :  { %v10653_v1 = vadd.f32 %v10652_v9, %v10651_v3  ;;  %v10611_v59 = vpop.f32.mrb[13].mxu0 }
0x214c   :  { %v10612_v19 = vadd.f32 %v10611_v59, %v10610_v12  ;;  %12093 = vmatprep.mubr.f32.mxu0 %v9090_v63 }
0x214d   :  { %v9077_v52 = vadd.f32 %v10653_v1, %v8992_v56  ;;  %v10654_v21 = vpop.f32.mrb[32].mxu1 }
0x214e   :  { %v8997_v35 = vadd.f32 %v10612_v19, %v8919_v24  ;;  %v10655_v34 = vpop.f32.mrb[33].mxu1  ;;  %v10613_v62 = vpop.f32.mrb[14].mxu0 }
0x214f   :  { %v9091_v8 = vadd.f32 %v9077_v52, %v16524_v60  ;;  %v10656_v23 = vadd.f32 %v10655_v34, %v10654_v21  ;;  %v10614_v46 = vpop.f32.mrb[15].mxu0  ;;  %v9203_v60 = vld [vmem:[%s16829_s16] sm:$0xff] }
0x2150   :  { %v10615_v54 = vadd.f32 %v10614_v46, %v10613_v62  ;;  %v12753_v51 = vpack.c.bf16 %v9204_v27, %v9203_v60 }
0x2151   :  { %v9082_v49 = vadd.f32 %v10656_v23, %v8997_v35  ;;  %v10657_v4 = vpop.f32.mrb[34].mxu1  ;;  %12094 = vmatmul.mubr.f32.vlgmr.msra.gmra.mrb[16].mxu0 %v9091_v8 }
0x2152   :  { %v9002_v2 = vadd.f32 %v10615_v54, %v8919_v24  ;;  %v10658_v53 = vpop.f32.mrb[35].mxu1  ;;  %12754 = vmatpush3.bf16.msra.mxu1 %v12753_v51 }
0x2153   :  { %v10659_v55 = vadd.f32 %v10658_v53, %v10657_v4  ;;  %v9092_v58 = vadd.f32 %v9082_v49, %v16528_v18  ;;  %12755 = vmatprep.subr.bf16.mxu1 %v13603_v10  ;;  %v9205_v18 = vld [vmem:[%s16829_s16 + $0x10] sm:$0xff] }
0x2155   :  { %v9087_v7 = vadd.f32 %v10659_v55, %v9002_v2  ;;  %12096 = vmatprep.mubr.f32.mxu0 %v9092_v58 }
0x2157   :  { %v9093_v50 = vadd.f32 %v9087_v7, %v16532_v36  ;;  %v9206_v36 = vld [vmem:[%s16829_s16 + $0x18] sm:$0xff] }
0x2158   :  { %v12756_v13 = vpack.c.bf16 %v9206_v36, %v9205_v18 }
0x2159   :  { %12097 = vmatmul.mubr.f32.gmra.mrb[18].mxu0 %v9093_v50 }
0x215a   :  { %12757 = vmatpush3.bf16.msra.mxu1 %v12756_v13 }
0x215b   :  { %12758 = vmatprep.subr.bf16.mxu1 %v13603_v10 }
0x2224   :  { %v12095_v45 = vpop.f32.mrb[16].mxu0 }
0x2225   :  { %v9176_v43 = vpop.f32.mrb[17].mxu0 }
0x2226   :  { %v9195_v38 = vadd.f32 %v12095_v45, %v9176_v43 }
0x222c   :  { %v12098_v30 = vpop.f32.mrb[18].mxu0 }
0x222d   :  { %v9186_v14 = vpop.f32.mrb[19].mxu0 }
0x222e   :  { %v9196_v42 = vadd.f32 %v9195_v38, %v9186_v14 }
0x2230   :  { %v9197_v28 = vadd.f32 %v12098_v30, %v9196_v42 }
0x2232   :  { %v9198_v61 = vmul.f32 0.25, %v9197_v28 }
0x2234   :  { %12108 = vmatmul.mubr.msk.f32.vlgmr.msra.gmra.mrb[36].mxu1 %vm1136_vm2, %v9198_v61 }
0x2235   :  { %12760 = vmatpush3.bf16.msra.mxu1 %v12759_v29  ;;  %12118 = vmatprep.mubr.msk.f32.mxu1 %vm13601_vm1, %v16912_v0 }
0x2236   :  { %12761 = vmatprep.subr.bf16.mxu1 %v13603_v10 }
0x2239   :  { %12763 = vmatpush3.bf16.msra.mxu1 %v12762_v22 }
0x223a   :  { %12764 = vmatprep.subr.bf16.mxu1 %v13603_v10 }
0x223c   :  { %12119 = vmatmul.mubr.msk.f32.vlgmr.msra.gmra.mrb[38].mxu1 %vm1136_vm2, %v16076_v47 }
0x223d   :  { %12125 = vmatprep.mubr.msk.f32.mxu1 %vm13601_vm1, %v16912_v0  ;;  %12766 = vmatpush3.bf16.msra.mxu1 %v12765_v15 }
0x2307   :  { %v9276_v41 = vpop.f32.mrb[36].mxu1 }
0x2308   :  { %v12109_v16 = vpop.f32.mrb[37].mxu1 }
0x230f   :  { %v9349_v24 = vpop.f32.mrb[38].mxu1 }
0x2310   :  { %v9350_v17 = vadd.f32 %v9349_v24, %v9276_v41  ;;  %v12120_v6 = vpop.f32.mrb[39].mxu1 }
0x2312   :  { %v9360_v31 = vadd.f32 %v9849_v20, %v9350_v17 }
0x2314   :  { %12126 = vmatmul.mubr.msk.f32.vlgmr.msra.gmra.mrb[40].mxu1 %vm9370_vm3, %v9360_v31  ;;  %v9446_v25 = vmul.f32 %v9360_v31, %v9360_v31 }
0x2316   :  { %v9447_v48 = vsel %vm9370_vm3, %v9446_v25, 0.0 }
0x2317   :  { %9448 = vadd.xlane.f32.xlu0 %v9447_v48 }
0x23a4   :  { %v9449_v47 = vpop.xlane.xlu0 %9448 }
0x23a5   :  { %v9450_v40 = vadd.f32 1e-12, %v9449_v47 }
0x23a7   :  { %13323 = vrsqrt.f32 %v9450_v40 }
0x23b1   :  { %v13324_v0 = vpop.eup %13323 }
0x23b2   :  { %v9452_v39 = vmul.f32 %v13324_v0, %v9360_v31 }
0x23b4   :  { %9453 = vst.msk [vmem:[%s16834_s21] sm:$0xff] %vm9370_vm3, %v9452_v39 }
0x23e7   :  { %v9440_v32 = vpop.f32.mrb[40].mxu1 }
0x23e8   :  { %v9441_v3 = vadd.f32 %v9850_v44, %v9440_v32  ;;  %v12127_v56 = vpop.f32.mrb[41].mxu1 }
0x23ea   :  { %9445 = vst.msk [vmem:[%s16974_s26] sm:$0xff] %vm9444_vm4, %v9441_v3 }
0x23eb   :  { %9462 = vsyncpa [#allocation3], 1 }
0x23ec   :  { %9463 = vsyncpa [#allocation5], 1 }
0x23ed   :  { %9464 = vsyncpa [#allocation8], 1 }
0x23ee   :  { %9465 = vsyncpa [#allocation11], 1 }
0x23ef   :  { %9466 = vsyncpa [#allocation14], 1 }
0x23f0   :  { %9467 = vsyncpa [#allocation17], 1 }

</bundles_post_ra>
